<compile_context>
chip_gen: v5e
topology: v5e:2x2
jax: 0.10.0
libtpu: 0.0.40
codegen_flags: <defaults>
</compile_context>

<pallas_src>
import functools

import jax
import jax.numpy as jnp
from jax import lax
from jax.experimental import pallas as pl
from jax.experimental.pallas import tpu as pltpu

_EPS = 1e-5
_K = 5
_SLOPE = 0.2
_TAIL = 8      # spare zero rows per activation scratch so strided tap reads stay in bounds


# --------------------------------------------------------------------- geometry
def _geometry(data_len):
    """Static layout of the stride-2 conv chain for a given input length."""
    pads = (2, 3, 2, 2, 2)                                   # en2..en6 conv paddings
    lins, louts = [data_len], []
    for p in pads:
        lo = (lins[-1] + 2 * p - _K) // 2 + 1
        louts.append(lo)
        lins.append(lo)
    # per-layer minimum block (rows/sample of that layer's input scratch, data at offset=pad):
    #   rows touched by valid outputs: 2*(Lout-1)+K, and pad + Lin must fit inside the block.
    need = [max(2 * (lo - 1) + _K, p + li) for li, p, lo in zip(lins[:-1], pads, louts)]
    # blocks halve every layer (flat stride-2 reads), so the first block fixes them all and
    # must be divisible by 2**5 to keep every later block even.
    b2 = max(nd * (2 ** i) for i, nd in enumerate(need))
    b2 = -(-b2 // 32) * 32
    blocks = tuple(b2 // (2 ** i) for i in range(5))
    return tuple(lins), pads, tuple(louts), blocks


def _vmem_limit_bytes():
    # v5e/v6e have 128 MiB VMEM, v7x only 64 MiB: stay below the physical size everywhere.
    try:
        cap = int(pltpu.get_tpu_info().vmem_capacity_bytes)
    except Exception:  # noqa: BLE001 - best effort, fall back to the v7x-safe value
        cap = 64 * 1024 * 1024
    return max(32 * 1024 * 1024, min(100 * 1024 * 1024, cap - 8 * 1024 * 1024))


# ----------------------------------------------------------------- fused kernel
def _disc_kernel(lhs1_ref, msk1_ref, scal_ref, w1_ref, b1_ref,
                 w2_ref, gb2_ref, w3_ref, gb3_ref, w4_ref, gb4_ref, w5_ref, gb5_ref,
                 w6_ref, out_ref,
                 s2, s3, s4, s5, s6, st2, st3, st4, st5,
                 *, n, lins, pads, louts, blocks):
    f32 = jnp.float32

    # Activation scratches must be zero outside the rows written below (those zero rows are
    # the conv padding of the next layer).  Buffers are tiny, so simply clear them.
    for s in (s2, s3, s4, s5, s6):
        s[...] = jnp.zeros(s.shape, s.dtype)

    # ------------- en1: BatchNorm1d(1) -> Conv1d(1, ngf, 5, s=1, p=2) -> LeakyReLU -------
    lhs1 = lhs1_ref[...]                       # (n*B2, K) raw-input im2col (period B2)
    m1 = msk1_ref[...]                         # 1.0 where the im2col entry is a real sample
    cnt1 = float(n * lins[0])
    xcol = lhs1[:, 2:3] * m1[:, 2:3]           # centre-tap column == x itself (masked)
    mean1 = jnp.sum(xcol, axis=(0, 1), keepdims=True) * (1.0 / cnt1)
    d1 = (lhs1[:, 2:3] - mean1) * m1[:, 2:3]
    var1 = jnp.sum(d1 * d1, axis=(0, 1), keepdims=True) * (1.0 / cnt1)
    a1 = scal_ref[0] * lax.rsqrt(var1 + _EPS)            # gamma / sigma
    c1 = scal_ref[1] - mean1 * a1                        # beta - mean * gamma / sigma
    lhs1n = lhs1 * a1 + m1 * c1                          # padding taps stay exactly zero
    h = jnp.dot(lhs1n.astype(jnp.bfloat16), w1_ref[...],
                preferred_element_type=f32) + b1_ref[...]
    h = jnp.where(h > 0, h, _SLOPE * h)
    rowvalid1 = m1[:, 2:3] > 0.5                         # rows holding a real output position
    s2[pl.ds(0, n * blocks[0]), :] = jnp.where(rowvalid1, h, 0.0)

    # ------------- en2..en5: Conv1d(s=2) -> BatchNorm1d (batch stats) -> LeakyReLU -------
    def enc_block(src, stage, w_ref, gb_ref, dst, block, lout, off_next):
        p_len = block // 2                     # rows per sample produced by this layer
        rows = n * p_len
        cin = src.shape[1]
        # K strided tap reads -> bf16 staging slab -> ONE stacked MXU matmul (K*cin deep)
        for t in range(_K):
            stage[:, t * cin:(t + 1) * cin] = (
                src[pl.ds(t, rows, stride=2), :].astype(jnp.bfloat16))
        acc = jnp.dot(stage[...], w_ref[...], preferred_element_type=f32)
        # in-kernel row-validity mask ("row % p_len < lout") without integer div/mod
        rowf = lax.broadcasted_iota(jnp.int32, acc.shape, 0).astype(f32)
        nidx = jnp.floor((rowf + 0.5) * (1.0 / p_len))
        valid = (rowf - nidx * float(p_len)) < float(lout)
        # train-mode BatchNorm over the n*lout valid rows (single masked pass: E[x], E[x^2])
        inv = 1.0 / float(n * lout)
        acc_m = jnp.where(valid, acc, 0.0)
        mean = jnp.sum(acc_m, axis=0, keepdims=True) * inv
        ex2 = jnp.sum(acc_m * acc_m, axis=0, keepdims=True) * inv
        var = jnp.maximum(ex2 - mean * mean, 0.0)
        scale = gb_ref[0:1, :] * lax.rsqrt(var + _EPS)
        shift = gb_ref[1:2, :] - mean * scale
        y = acc * scale + shift
        y = jnp.where(y > 0, y, _SLOPE * y)
        y = jnp.where(valid, y, 0.0)           # garbage rows stay 0 = next layer's padding
        dst[pl.ds(off_next, rows), :] = y

    enc_block(s2, st2, w2_ref, gb2_ref, s3, blocks[0], louts[0], pads[1])
    enc_block(s3, st3, w3_ref, gb3_ref, s4, blocks[1], louts[1], pads[2])
    enc_block(s4, st4, w4_ref, gb4_ref, s5, blocks[2], louts[2], pads[3])
    enc_block(s5, st5, w5_ref, gb5_ref, s6, blocks[3], louts[3], pads[4])

    # ------------- en6: Conv1d(8*ngf -> 1, s=2) -> Sigmoid --------------------------------
    # Cout == 1: VPU multiply + lane reduction instead of a 1-useful-column MXU matmul.
    p6 = blocks[4] // 2
    r6 = n * p6
    acc6 = jnp.zeros((r6, 1), f32)
    for t in range(_K):
        part = s6[pl.ds(t, r6, stride=2), :]
        acc6 = acc6 + jnp.sum(part * w6_ref[t:t + 1, :], axis=-1, keepdims=True)
    z = acc6 + scal_ref[2]
    ez = jnp.exp(-jnp.abs(z))                  # overflow-free sigmoid
    # TODO(synk): final store is (rows, 1) -> one masked vst; negligible for an (N, 3) result.
    out_ref[...] = jnp.where(z >= 0, 1.0 / (1.0 + ez), ez / (1.0 + ez))


# ------------------------------------------------------------------- parameters
def init_raw_params(key, ngf=64, kernel_size=5):
    """Torch-layout float32 parameters (Conv1d default init, BN gamma=1 / beta=0)."""
    assert kernel_size == _K
    chans = [(1, ngf), (ngf, 2 * ngf), (2 * ngf, 4 * ngf),
             (4 * ngf, 8 * ngf), (8 * ngf, 8 * ngf), (8 * ngf, 1)]
    keys = jax.random.split(key, len(chans))
    raw = {"bn1_g": jnp.ones((1,), jnp.float32), "bn1_b": jnp.zeros((1,), jnp.float32)}
    for i, ((cin, cout), kk) in enumerate(zip(chans, keys), start=1):
        k1, k2 = jax.random.split(kk)
        bound = 1.0 / (cin * _K) ** 0.5
        raw[f"w{i}"] = jax.random.uniform(k1, (cout, cin, _K), jnp.float32, -bound, bound)
        raw[f"b{i}"] = jax.random.uniform(k2, (cout,), jnp.float32, -bound, bound)
        if i in (2, 3, 4, 5):
            raw[f"g{i}"] = jnp.ones((cout,), jnp.float32)
            raw[f"bt{i}"] = jnp.zeros((cout,), jnp.float32)
    return raw


def pack_params(raw):
    """Pre-layout parameters for the fused kernel (stacked taps, bf16 MXU operands)."""
    p = {}
    p["w1"] = jnp.transpose(raw["w1"][:, 0, :], (1, 0)).astype(jnp.bfloat16)       # (K, ngf)
    p["b1"] = raw["b1"].reshape(1, -1).astype(jnp.float32)
    # tiny scalars live in SMEM: [bn1 gamma, bn1 beta, en6 bias, pad]
    p["scal"] = jnp.array([raw["bn1_g"][0], raw["bn1_b"][0], raw["b6"][0], 0.0], jnp.float32)
    for l in (2, 3, 4, 5):
        w = raw[f"w{l}"]                                                            # (cout,cin,K)
        cout, cin, _ = w.shape
        p[f"w{l}"] = jnp.transpose(w, (2, 1, 0)).reshape(_K * cin, cout).astype(jnp.bfloat16)
        p[f"gb{l}"] = jnp.stack([raw[f"g{l}"], raw[f"bt{l}"]], axis=0).astype(jnp.float32)
        # conv bias b{l} is dropped: exactly cancelled by the BN mean subtraction.
    p["w6"] = jnp.transpose(raw["w6"][0], (1, 0)).astype(jnp.float32)               # (K, 8*ngf)
    return p


# ---------------------------------------------------------------------- forward
def discriminator_forward(params, x1, x2):
    # torch: x = cat([x1, x2], dim=1).unsqueeze(1)
    x = jnp.concatenate([x1.astype(jnp.float32), x2.astype(jnp.float32)], axis=1)   # (N, L)
    n, L = x.shape
    lins, pads, louts, blocks = _geometry(L)
    ngf = params["w1"].shape[1]
    b2, o2 = blocks[0], pads[0]

    # One-time, tiny input prep (plain JAX): im2col of the *raw* input laid out with period
    # b2 so the kernel's en1 output lands directly in en2's padded scratch layout.  The
    # BatchNorm1d(1) itself runs in-kernel on batch statistics.
    xp = jnp.pad(x, ((0, 0), (2, 2)))
    op = jnp.pad(jnp.ones_like(x), ((0, 0), (2, 2)))
    cols = jnp.stack([xp[:, t:t + L] for t in range(_K)], axis=-1)                  # (n, L, K)
    ones = jnp.stack([op[:, t:t + L] for t in range(_K)], axis=-1)
    lhs1 = jnp.pad(cols, ((0, 0), (o2, b2 - o2 - L), (0, 0))).reshape(n * b2, _K)
    msk1 = jnp.pad(ones, ((0, 0), (o2, b2 - o2 - L), (0, 0))).reshape(n * b2, _K)

    chan = (ngf, 2 * ngf, 4 * ngf, 8 * ngf, 8 * ngf)        # channels held by s2..s6
    p6 = blocks[4] // 2

    vmem = pl.BlockSpec(memory_space=pltpu.MemorySpace.VMEM)
    smem = pl.BlockSpec(memory_space=pltpu.MemorySpace.SMEM)
    scratch = [pltpu.VMEM((n * blocks[i] + _TAIL, chan[i]), jnp.float32) for i in range(5)]
    scratch += [pltpu.VMEM((n * blocks[i] // 2, _K * chan[i]), jnp.bfloat16) for i in range(4)]

    kern = functools.partial(_disc_kernel, n=n, lins=lins, pads=pads,
                             louts=louts, blocks=blocks)

    out_flat = pl.pallas_call(
        kern,
        out_shape=jax.ShapeDtypeStruct((n * p6, 1), jnp.float32),
        in_specs=[vmem, vmem, smem] + [vmem] * 11,
        out_specs=vmem,
        scratch_shapes=scratch,
        compiler_params=pltpu.CompilerParams(vmem_limit_bytes=_vmem_limit_bytes()),
    )(lhs1, msk1, params["scal"], params["w1"], params["b1"],
      params["w2"], params["gb2"], params["w3"], params["gb3"],
      params["w4"], params["gb4"], params["w5"], params["gb5"], params["w6"])

    return out_flat.reshape(n, p6)[:, :louts[4]]            # == torch out.squeeze(1), (N, 3)


# --------------------------------------------------------------- XLA reference
def reference_forward(raw, x1, x2):
    """Pure-JAX/XLA reference of the PyTorch module (train-mode BatchNorm, f32)."""
    def bn(h, g, b):
        mean = jnp.mean(h, axis=(0, 2), keepdims=True)
        var = jnp.mean((h - mean) ** 2, axis=(0, 2), keepdims=True)
        return (h - mean) * lax.rsqrt(var + _EPS) * g.reshape(1, -1, 1) + b.reshape(1, -1, 1)

    def conv(h, w, b, stride, pad):
        y = lax.conv_general_dilated(h, w, window_strides=(stride,), padding=[(pad, pad)],
                                     dimension_numbers=("NCH", "OIH", "NCH"))
        return y + b.reshape(1, -1, 1)

    def leaky(h):
        return jnp.where(h > 0, h, _SLOPE * h)

    x = jnp.concatenate([x1, x2], axis=1)[:, None, :].astype(jnp.float32)
    h = leaky(conv(bn(x, raw["bn1_g"], raw["bn1_b"]), raw["w1"], raw["b1"], 1, 2))
    for l, pad in zip((2, 3, 4, 5), (2, 3, 2, 2)):
        h = leaky(bn(conv(h, raw[f"w{l}"], raw[f"b{l}"], 2, pad), raw[f"g{l}"], raw[f"bt{l}"]))
    h = conv(h, raw["w6"], raw["b6"], 2, 2)
    return jax.nn.sigmoid(h)[:, 0, :]


# ------------------------------------------------------------------------ main
if __name__ == "__main__":
    key = jax.random.PRNGKey(0)
    pkey, k1, k2 = jax.random.split(key, 3)

    batch = 2
    data_len = 70          # module default; x1 / x2 are each half of it
    ngf = 8                # small width for the smoke test (module default is 64)

    raw = init_raw_params(pkey, ngf=ngf)
    params = pack_params(raw)
    x1 = jax.random.normal(k1, (batch, data_len // 2), jnp.float32)
    x2 = jax.random.normal(k2, (batch, data_len // 2), jnp.float32)

    fwd = jax.jit(discriminator_forward)
    out = jax.block_until_ready(fwd(params, x1, x2))

    assert out.shape == (batch, 3), out.shape
    assert bool(jnp.all(jnp.isfinite(out)))
    assert bool(jnp.all((out >= 0.0) & (out <= 1.0)))        # sigmoid output range

    ref = reference_forward(raw, x1, x2)                     # f32 reference (loose tol: bf16 MXU)
    err = float(jnp.max(jnp.abs(out - ref)))
    assert err < 7.5e-2, f"max|kernel - reference| = {err}"
    print("KERNEL_OK")
</pallas_src>

<mosaic_0001>
module attributes {stable_mosaic.version = 11 : i64} {
  func.func @_disc_kernel(%arg0: memref<320x5xf32, #tpu.memory_space<vmem>>, %arg1: memref<320x5xf32, #tpu.memory_space<vmem>>, %arg2: memref<4xf32, #tpu.memory_space<smem>>, %arg3: memref<5x8xbf16, #tpu.memory_space<vmem>>, %arg4: memref<1x8xf32, #tpu.memory_space<vmem>>, %arg5: memref<40x16xbf16, #tpu.memory_space<vmem>>, %arg6: memref<2x16xf32, #tpu.memory_space<vmem>>, %arg7: memref<80x32xbf16, #tpu.memory_space<vmem>>, %arg8: memref<2x32xf32, #tpu.memory_space<vmem>>, %arg9: memref<160x64xbf16, #tpu.memory_space<vmem>>, %arg10: memref<2x64xf32, #tpu.memory_space<vmem>>, %arg11: memref<320x64xbf16, #tpu.memory_space<vmem>>, %arg12: memref<2x64xf32, #tpu.memory_space<vmem>>, %arg13: memref<5x64xf32, #tpu.memory_space<vmem>>, %arg14: memref<10x1xf32, #tpu.memory_space<vmem>>, %arg15: memref<328x8xf32, #tpu.memory_space<vmem>>, %arg16: memref<168x16xf32, #tpu.memory_space<vmem>>, %arg17: memref<88x32xf32, #tpu.memory_space<vmem>>, %arg18: memref<48x64xf32, #tpu.memory_space<vmem>>, %arg19: memref<28x64xf32, #tpu.memory_space<vmem>>, %arg20: memref<160x40xbf16, #tpu.memory_space<vmem>>, %arg21: memref<80x80xbf16, #tpu.memory_space<vmem>>, %arg22: memref<40x160xbf16, #tpu.memory_space<vmem>>, %arg23: memref<20x320xbf16, #tpu.memory_space<vmem>>) attributes {dimension_semantics = [], scalar_prefetch = 0 : i64, scratch_operands = 9 : i64, tpu.core_type = #tpu.core_type<tc>} {
    %cst = arith.constant 0.000000e+00 : f32
    %0 = vector.broadcast %cst : f32 to vector<328x8xf32>
    %c0 = arith.constant 0 : index
    %c0_0 = arith.constant 0 : index
    %1 = vector.load %arg15[%c0, %c0_0] : memref<328x8xf32, #tpu.memory_space<vmem>>, vector<328x8xf32>
    tpu.vector_store %arg15[%c0, %c0_0], %0 {strides = array<i32>} : memref<328x8xf32, #tpu.memory_space<vmem>>, vector<328x8xf32>,
    %cst_1 = arith.constant 0.000000e+00 : f32
    %2 = vector.broadcast %cst_1 : f32 to vector<168x16xf32>
    %c0_2 = arith.constant 0 : index
    %c0_3 = arith.constant 0 : index
    %3 = vector.load %arg16[%c0_2, %c0_3] : memref<168x16xf32, #tpu.memory_space<vmem>>, vector<168x16xf32>
    tpu.vector_store %arg16[%c0_2, %c0_3], %2 {strides = array<i32>} : memref<168x16xf32, #tpu.memory_space<vmem>>, vector<168x16xf32>,
    %cst_4 = arith.constant 0.000000e+00 : f32
    %4 = vector.broadcast %cst_4 : f32 to vector<88x32xf32>
    %c0_5 = arith.constant 0 : index
    %c0_6 = arith.constant 0 : index
    %5 = vector.load %arg17[%c0_5, %c0_6] : memref<88x32xf32, #tpu.memory_space<vmem>>, vector<88x32xf32>
    tpu.vector_store %arg17[%c0_5, %c0_6], %4 {strides = array<i32>} : memref<88x32xf32, #tpu.memory_space<vmem>>, vector<88x32xf32>,
    %cst_7 = arith.constant 0.000000e+00 : f32
    %6 = vector.broadcast %cst_7 : f32 to vector<48x64xf32>
    %c0_8 = arith.constant 0 : index
    %c0_9 = arith.constant 0 : index
    %7 = vector.load %arg18[%c0_8, %c0_9] : memref<48x64xf32, #tpu.memory_space<vmem>>, vector<48x64xf32>
    tpu.vector_store %arg18[%c0_8, %c0_9], %6 {strides = array<i32>} : memref<48x64xf32, #tpu.memory_space<vmem>>, vector<48x64xf32>,
    %cst_10 = arith.constant 0.000000e+00 : f32
    %8 = vector.broadcast %cst_10 : f32 to vector<28x64xf32>
    %c0_11 = arith.constant 0 : index
    %c0_12 = arith.constant 0 : index
    %9 = vector.load %arg19[%c0_11, %c0_12] : memref<28x64xf32, #tpu.memory_space<vmem>>, vector<28x64xf32>
    tpu.vector_store %arg19[%c0_11, %c0_12], %8 {strides = array<i32>} : memref<28x64xf32, #tpu.memory_space<vmem>>, vector<28x64xf32>,
    %c0_13 = arith.constant 0 : index
    %c0_14 = arith.constant 0 : index
    %10 = vector.load %arg0[%c0_13, %c0_14] : memref<320x5xf32, #tpu.memory_space<vmem>>, vector<320x5xf32>
    %c0_15 = arith.constant 0 : index
    %c0_16 = arith.constant 0 : index
    %11 = vector.load %arg1[%c0_15, %c0_16] : memref<320x5xf32, #tpu.memory_space<vmem>>, vector<320x5xf32>
    %12 = vector.extract_strided_slice %10 {offsets = [0, 2], sizes = [320, 1], strides = [1, 1]} : vector<320x5xf32> to vector<320x1xf32>
    %13 = vector.extract_strided_slice %11 {offsets = [0, 2], sizes = [320, 1], strides = [1, 1]} : vector<320x5xf32> to vector<320x1xf32>
    %14 = arith.mulf %12, %13 : vector<320x1xf32>
    %15 = vector.shape_cast %14 : vector<320x1xf32> to vector<1x320x1xf32>
    %cst_17 = arith.constant dense<0.000000e+00> : vector<1xf32>
    %16 = vector.multi_reduction <add>, %15, %cst_17 [1, 2] : vector<1x320x1xf32> to vector<1xf32>
    %17 = vector.shape_cast %16 : vector<1xf32> to vector<1x1x1xf32>
    %18 = vector.extract %17[0, 0, 0] : f32 from vector<1x1x1xf32>
    %19 = vector.broadcast %18 : f32 to vector<1x1xf32>
    %cst_18 = arith.constant 0.00714285718 : f32
    %20 = vector.broadcast %cst_18 : f32 to vector<1x1xf32>
    %21 = arith.mulf %19, %20 : vector<1x1xf32>
    %22 = vector.extract_strided_slice %10 {offsets = [0, 2], sizes = [320, 1], strides = [1, 1]} : vector<320x5xf32> to vector<320x1xf32>
    %23 = vector.broadcast %21 : vector<1x1xf32> to vector<320x1xf32>
    %24 = arith.subf %22, %23 : vector<320x1xf32>
    %25 = vector.extract_strided_slice %11 {offsets = [0, 2], sizes = [320, 1], strides = [1, 1]} : vector<320x5xf32> to vector<320x1xf32>
    %26 = arith.mulf %24, %25 : vector<320x1xf32>
    %27 = arith.mulf %26, %26 : vector<320x1xf32>
    %28 = vector.shape_cast %27 : vector<320x1xf32> to vector<1x320x1xf32>
    %cst_19 = arith.constant dense<0.000000e+00> : vector<1xf32>
    %29 = vector.multi_reduction <add>, %28, %cst_19 [1, 2] : vector<1x320x1xf32> to vector<1xf32>
    %30 = vector.shape_cast %29 : vector<1xf32> to vector<1x1x1xf32>
    %31 = vector.extract %30[0, 0, 0] : f32 from vector<1x1x1xf32>
    %32 = vector.broadcast %31 : f32 to vector<1x1xf32>
    %cst_20 = arith.constant 0.00714285718 : f32
    %33 = vector.broadcast %cst_20 : f32 to vector<1x1xf32>
    %34 = arith.mulf %32, %33 : vector<1x1xf32>
    %c0_21 = arith.constant 0 : index
    %35 = memref.load %arg2[%c0_21] : memref<4xf32, #tpu.memory_space<smem>>
    %cst_22 = arith.constant 9.99999974E-6 : f32
    %36 = vector.broadcast %cst_22 : f32 to vector<1x1xf32>
    %37 = arith.addf %34, %36 : vector<1x1xf32>
    %38 = math.rsqrt %37 : vector<1x1xf32>
    %39 = vector.broadcast %35 : f32 to vector<1x1xf32>
    %40 = arith.mulf %39, %38 : vector<1x1xf32>
    %c1 = arith.constant 1 : index
    %41 = memref.load %arg2[%c1] : memref<4xf32, #tpu.memory_space<smem>>
    %42 = arith.mulf %21, %40 : vector<1x1xf32>
    %43 = vector.broadcast %41 : f32 to vector<1x1xf32>
    %44 = arith.subf %43, %42 : vector<1x1xf32>
    %45 = vector.broadcast %40 : vector<1x1xf32> to vector<320x5xf32>
    %46 = arith.mulf %10, %45 : vector<320x5xf32>
    %47 = vector.broadcast %44 : vector<1x1xf32> to vector<320x5xf32>
    %48 = arith.mulf %11, %47 : vector<320x5xf32>
    %49 = arith.addf %46, %48 : vector<320x5xf32>
    %50 = arith.truncf %49 : vector<320x5xf32> to vector<320x5xbf16>
    %c0_23 = arith.constant 0 : index
    %c0_24 = arith.constant 0 : index
    %51 = vector.load %arg3[%c0_23, %c0_24] : memref<5x8xbf16, #tpu.memory_space<vmem>>, vector<5x8xbf16>
    %cst_25 = arith.constant dense<0.000000e+00> : vector<320x8xf32>
    %52 = tpu.matmul %50, %51, %cst_25 {dimension_numbers = #tpu.dot_dimension_numbers<[1], [0], [0], [1], [0, 0, 1, 1], [], []>} : vector<320x5xbf16>, vector<5x8xbf16>, vector<320x8xf32> -> vector<320x8xf32>
    %c0_26 = arith.constant 0 : index
    %c0_27 = arith.constant 0 : index
    %53 = vector.load %arg4[%c0_26, %c0_27] : memref<1x8xf32, #tpu.memory_space<vmem>>, vector<1x8xf32>
    %54 = vector.broadcast %53 : vector<1x8xf32> to vector<320x8xf32>
    %55 = arith.addf %52, %54 : vector<320x8xf32>
    %cst_28 = arith.constant 0.000000e+00 : f32
    %56 = vector.broadcast %cst_28 : f32 to vector<320x8xf32>
    %57 = arith.cmpf ogt, %55, %56 : vector<320x8xf32>
    %cst_29 = arith.constant 2.000000e-01 : f32
    %58 = vector.broadcast %cst_29 : f32 to vector<320x8xf32>
    %59 = arith.mulf %58, %55 : vector<320x8xf32>
    %60 = arith.select %57, %55, %59 : vector<320x8xi1>, vector<320x8xf32>
    %61 = vector.extract_strided_slice %11 {offsets = [0, 2], sizes = [320, 1], strides = [1, 1]} : vector<320x5xf32> to vector<320x1xf32>
    %cst_30 = arith.constant 5.000000e-01 : f32
    %62 = vector.broadcast %cst_30 : f32 to vector<320x1xf32>
    %63 = arith.cmpf ogt, %61, %62 : vector<320x1xf32>
    %cst_31 = arith.constant 0.000000e+00 : f32
    %64 = vector.shape_cast %63 : vector<320x1xi1> to vector<320x1xi1>
    %65 = vector.broadcast %64 : vector<320x1xi1> to vector<320x8xi1>
    %66 = vector.broadcast %cst_31 : f32 to vector<320x8xf32>
    %67 = arith.select %65, %60, %66 : vector<320x8xi1>, vector<320x8xf32>
    %c0_32 = arith.constant 0 : index
    %c0_33 = arith.constant 0 : index
    %68 = vector.load %arg15[%c0_32, %c0_33] : memref<328x8xf32, #tpu.memory_space<vmem>>, vector<320x8xf32>
    tpu.vector_store %arg15[%c0_32, %c0_33], %67 {strides = array<i32>} : memref<328x8xf32, #tpu.memory_space<vmem>>, vector<320x8xf32>,
    %c0_34 = arith.constant 0 : index
    %c0_35 = arith.constant 0 : index
    %69 = tpu.strided_load %arg15[%c0_34, %c0_35] {strides = array<i32: 2, 1>} : memref<328x8xf32, #tpu.memory_space<vmem>>, vector<160x8xf32>
    %70 = arith.truncf %69 : vector<160x8xf32> to vector<160x8xbf16>
    %c0_36 = arith.constant 0 : index
    %c0_37 = arith.constant 0 : index
    %71 = vector.load %arg20[%c0_36, %c0_37] : memref<160x40xbf16, #tpu.memory_space<vmem>>, vector<160x8xbf16>
    tpu.vector_store %arg20[%c0_36, %c0_37], %70 {strides = array<i32>} : memref<160x40xbf16, #tpu.memory_space<vmem>>, vector<160x8xbf16>,
    %c1_38 = arith.constant 1 : index
    %c0_39 = arith.constant 0 : index
    %72 = tpu.strided_load %arg15[%c1_38, %c0_39] {strides = array<i32: 2, 1>} : memref<328x8xf32, #tpu.memory_space<vmem>>, vector<160x8xf32>
    %73 = arith.truncf %72 : vector<160x8xf32> to vector<160x8xbf16>
    %c0_40 = arith.constant 0 : index
    %c8 = arith.constant 8 : index
    %74 = vector.load %arg20[%c0_40, %c8] : memref<160x40xbf16, #tpu.memory_space<vmem>>, vector<160x8xbf16>
    tpu.vector_store %arg20[%c0_40, %c8], %73 {strides = array<i32>} : memref<160x40xbf16, #tpu.memory_space<vmem>>, vector<160x8xbf16>,
    %c2 = arith.constant 2 : index
    %c0_41 = arith.constant 0 : index
    %75 = tpu.strided_load %arg15[%c2, %c0_41] {strides = array<i32: 2, 1>} : memref<328x8xf32, #tpu.memory_space<vmem>>, vector<160x8xf32>
    %76 = arith.truncf %75 : vector<160x8xf32> to vector<160x8xbf16>
    %c0_42 = arith.constant 0 : index
    %c16 = arith.constant 16 : index
    %77 = vector.load %arg20[%c0_42, %c16] : memref<160x40xbf16, #tpu.memory_space<vmem>>, vector<160x8xbf16>
    tpu.vector_store %arg20[%c0_42, %c16], %76 {strides = array<i32>} : memref<160x40xbf16, #tpu.memory_space<vmem>>, vector<160x8xbf16>,
    %c3 = arith.constant 3 : index
    %c0_43 = arith.constant 0 : index
    %78 = tpu.strided_load %arg15[%c3, %c0_43] {strides = array<i32: 2, 1>} : memref<328x8xf32, #tpu.memory_space<vmem>>, vector<160x8xf32>
    %79 = arith.truncf %78 : vector<160x8xf32> to vector<160x8xbf16>
    %c0_44 = arith.constant 0 : index
    %c24 = arith.constant 24 : index
    %80 = vector.load %arg20[%c0_44, %c24] : memref<160x40xbf16, #tpu.memory_space<vmem>>, vector<160x8xbf16>
    tpu.vector_store %arg20[%c0_44, %c24], %79 {strides = array<i32>} : memref<160x40xbf16, #tpu.memory_space<vmem>>, vector<160x8xbf16>,
    %c4 = arith.constant 4 : index
    %c0_45 = arith.constant 0 : index
    %81 = tpu.strided_load %arg15[%c4, %c0_45] {strides = array<i32: 2, 1>} : memref<328x8xf32, #tpu.memory_space<vmem>>, vector<160x8xf32>
    %82 = arith.truncf %81 : vector<160x8xf32> to vector<160x8xbf16>
    %c0_46 = arith.constant 0 : index
    %c32 = arith.constant 32 : index
    %83 = vector.load %arg20[%c0_46, %c32] : memref<160x40xbf16, #tpu.memory_space<vmem>>, vector<160x8xbf16>
    tpu.vector_store %arg20[%c0_46, %c32], %82 {strides = array<i32>} : memref<160x40xbf16, #tpu.memory_space<vmem>>, vector<160x8xbf16>,
    %c0_47 = arith.constant 0 : index
    %c0_48 = arith.constant 0 : index
    %84 = vector.load %arg20[%c0_47, %c0_48] : memref<160x40xbf16, #tpu.memory_space<vmem>>, vector<160x40xbf16>
    %c0_49 = arith.constant 0 : index
    %c0_50 = arith.constant 0 : index
    %85 = vector.load %arg5[%c0_49, %c0_50] : memref<40x16xbf16, #tpu.memory_space<vmem>>, vector<40x16xbf16>
    %cst_51 = arith.constant dense<0.000000e+00> : vector<160x16xf32>
    %86 = tpu.matmul %84, %85, %cst_51 {dimension_numbers = #tpu.dot_dimension_numbers<[1], [0], [0], [1], [0, 0, 1, 1], [], []>} : vector<160x40xbf16>, vector<40x16xbf16>, vector<160x16xf32> -> vector<160x16xf32>
    %87 = tpu.iota {dimensions = array<i32: 0>} : vector<160x16xi32>
    %88 = arith.sitofp %87 : vector<160x16xi32> to vector<160x16xf32>
    %cst_52 = arith.constant 5.000000e-01 : f32
    %89 = vector.broadcast %cst_52 : f32 to vector<160x16xf32>
    %90 = arith.addf %88, %89 : vector<160x16xf32>
    %cst_53 = arith.constant 1.250000e-02 : f32
    %91 = vector.broadcast %cst_53 : f32 to vector<160x16xf32>
    %92 = arith.mulf %90, %91 : vector<160x16xf32>
    %93 = math.floor %92 : vector<160x16xf32>
    %cst_54 = arith.constant 8.000000e+01 : f32
    %94 = vector.broadcast %cst_54 : f32 to vector<160x16xf32>
    %95 = arith.mulf %93, %94 : vector<160x16xf32>
    %96 = arith.subf %88, %95 : vector<160x16xf32>
    %cst_55 = arith.constant 3.500000e+01 : f32
    %97 = vector.broadcast %cst_55 : f32 to vector<160x16xf32>
    %98 = arith.cmpf olt, %96, %97 : vector<160x16xf32>
    %cst_56 = arith.constant 0.000000e+00 : f32
    %99 = vector.broadcast %cst_56 : f32 to vector<160x16xf32>
    %100 = arith.select %98, %86, %99 : vector<160x16xi1>, vector<160x16xf32>
    %cst_57 = arith.constant dense<0.000000e+00> : vector<16xf32>
    %101 = vector.multi_reduction <add>, %100, %cst_57 [0] : vector<160x16xf32> to vector<16xf32>
    %102 = vector.shape_cast %101 : vector<16xf32> to vector<1x16xf32>
    %cst_58 = arith.constant 0.0142857144 : f32
    %103 = vector.broadcast %cst_58 : f32 to vector<1x16xf32>
    %104 = arith.mulf %102, %103 : vector<1x16xf32>
    %105 = arith.mulf %100, %100 : vector<160x16xf32>
    %cst_59 = arith.constant dense<0.000000e+00> : vector<16xf32>
    %106 = vector.multi_reduction <add>, %105, %cst_59 [0] : vector<160x16xf32> to vector<16xf32>
    %107 = vector.shape_cast %106 : vector<16xf32> to vector<1x16xf32>
    %cst_60 = arith.constant 0.0142857144 : f32
    %108 = vector.broadcast %cst_60 : f32 to vector<1x16xf32>
    %109 = arith.mulf %107, %108 : vector<1x16xf32>
    %110 = arith.mulf %104, %104 : vector<1x16xf32>
    %111 = arith.subf %109, %110 : vector<1x16xf32>
    %cst_61 = arith.constant 0.000000e+00 : f32
    %112 = vector.broadcast %cst_61 : f32 to vector<1x16xf32>
    %113 = arith.maximumf %111, %112 : vector<1x16xf32>
    %c0_62 = arith.constant 0 : index
    %c0_63 = arith.constant 0 : index
    %114 = vector.load %arg6[%c0_62, %c0_63] : memref<2x16xf32, #tpu.memory_space<vmem>>, vector<1x16xf32>
    %cst_64 = arith.constant 9.99999974E-6 : f32
    %115 = vector.broadcast %cst_64 : f32 to vector<1x16xf32>
    %116 = arith.addf %113, %115 : vector<1x16xf32>
    %117 = math.rsqrt %116 : vector<1x16xf32>
    %118 = arith.mulf %114, %117 : vector<1x16xf32>
    %c1_65 = arith.constant 1 : index
    %c0_66 = arith.constant 0 : index
    %119 = vector.load %arg6[%c1_65, %c0_66] : memref<2x16xf32, #tpu.memory_space<vmem>>, vector<1x16xf32>
    %120 = arith.mulf %104, %118 : vector<1x16xf32>
    %121 = arith.subf %119, %120 : vector<1x16xf32>
    %122 = vector.broadcast %118 : vector<1x16xf32> to vector<160x16xf32>
    %123 = arith.mulf %86, %122 : vector<160x16xf32>
    %124 = vector.broadcast %121 : vector<1x16xf32> to vector<160x16xf32>
    %125 = arith.addf %123, %124 : vector<160x16xf32>
    %cst_67 = arith.constant 0.000000e+00 : f32
    %126 = vector.broadcast %cst_67 : f32 to vector<160x16xf32>
    %127 = arith.cmpf ogt, %125, %126 : vector<160x16xf32>
    %cst_68 = arith.constant 2.000000e-01 : f32
    %128 = vector.broadcast %cst_68 : f32 to vector<160x16xf32>
    %129 = arith.mulf %128, %125 : vector<160x16xf32>
    %130 = arith.select %127, %125, %129 : vector<160x16xi1>, vector<160x16xf32>
    %cst_69 = arith.constant 0.000000e+00 : f32
    %131 = vector.broadcast %cst_69 : f32 to vector<160x16xf32>
    %132 = arith.select %98, %130, %131 : vector<160x16xi1>, vector<160x16xf32>
    %c3_70 = arith.constant 3 : index
    %c0_71 = arith.constant 0 : index
    %133 = vector.load %arg16[%c3_70, %c0_71] : memref<168x16xf32, #tpu.memory_space<vmem>>, vector<160x16xf32>
    tpu.vector_store %arg16[%c3_70, %c0_71], %132 {strides = array<i32>} : memref<168x16xf32, #tpu.memory_space<vmem>>, vector<160x16xf32>,
    %c0_72 = arith.constant 0 : index
    %c0_73 = arith.constant 0 : index
    %134 = tpu.strided_load %arg16[%c0_72, %c0_73] {strides = array<i32: 2, 1>} : memref<168x16xf32, #tpu.memory_space<vmem>>, vector<80x16xf32>
    %135 = arith.truncf %134 : vector<80x16xf32> to vector<80x16xbf16>
    %c0_74 = arith.constant 0 : index
    %c0_75 = arith.constant 0 : index
    %136 = vector.load %arg21[%c0_74, %c0_75] : memref<80x80xbf16, #tpu.memory_space<vmem>>, vector<80x16xbf16>
    tpu.vector_store %arg21[%c0_74, %c0_75], %135 {strides = array<i32>} : memref<80x80xbf16, #tpu.memory_space<vmem>>, vector<80x16xbf16>,
    %c1_76 = arith.constant 1 : index
    %c0_77 = arith.constant 0 : index
    %137 = tpu.strided_load %arg16[%c1_76, %c0_77] {strides = array<i32: 2, 1>} : memref<168x16xf32, #tpu.memory_space<vmem>>, vector<80x16xf32>
    %138 = arith.truncf %137 : vector<80x16xf32> to vector<80x16xbf16>
    %c0_78 = arith.constant 0 : index
    %c16_79 = arith.constant 16 : index
    %139 = vector.load %arg21[%c0_78, %c16_79] : memref<80x80xbf16, #tpu.memory_space<vmem>>, vector<80x16xbf16>
    tpu.vector_store %arg21[%c0_78, %c16_79], %138 {strides = array<i32>} : memref<80x80xbf16, #tpu.memory_space<vmem>>, vector<80x16xbf16>,
    %c2_80 = arith.constant 2 : index
    %c0_81 = arith.constant 0 : index
    %140 = tpu.strided_load %arg16[%c2_80, %c0_81] {strides = array<i32: 2, 1>} : memref<168x16xf32, #tpu.memory_space<vmem>>, vector<80x16xf32>
    %141 = arith.truncf %140 : vector<80x16xf32> to vector<80x16xbf16>
    %c0_82 = arith.constant 0 : index
    %c32_83 = arith.constant 32 : index
    %142 = vector.load %arg21[%c0_82, %c32_83] : memref<80x80xbf16, #tpu.memory_space<vmem>>, vector<80x16xbf16>
    tpu.vector_store %arg21[%c0_82, %c32_83], %141 {strides = array<i32>} : memref<80x80xbf16, #tpu.memory_space<vmem>>, vector<80x16xbf16>,
    %c3_84 = arith.constant 3 : index
    %c0_85 = arith.constant 0 : index
    %143 = tpu.strided_load %arg16[%c3_84, %c0_85] {strides = array<i32: 2, 1>} : memref<168x16xf32, #tpu.memory_space<vmem>>, vector<80x16xf32>
    %144 = arith.truncf %143 : vector<80x16xf32> to vector<80x16xbf16>
    %c0_86 = arith.constant 0 : index
    %c48 = arith.constant 48 : index
    %145 = vector.load %arg21[%c0_86, %c48] : memref<80x80xbf16, #tpu.memory_space<vmem>>, vector<80x16xbf16>
    tpu.vector_store %arg21[%c0_86, %c48], %144 {strides = array<i32>} : memref<80x80xbf16, #tpu.memory_space<vmem>>, vector<80x16xbf16>,
    %c4_87 = arith.constant 4 : index
    %c0_88 = arith.constant 0 : index
    %146 = tpu.strided_load %arg16[%c4_87, %c0_88] {strides = array<i32: 2, 1>} : memref<168x16xf32, #tpu.memory_space<vmem>>, vector<80x16xf32>
    %147 = arith.truncf %146 : vector<80x16xf32> to vector<80x16xbf16>
    %c0_89 = arith.constant 0 : index
    %c64 = arith.constant 64 : index
    %148 = vector.load %arg21[%c0_89, %c64] : memref<80x80xbf16, #tpu.memory_space<vmem>>, vector<80x16xbf16>
    tpu.vector_store %arg21[%c0_89, %c64], %147 {strides = array<i32>} : memref<80x80xbf16, #tpu.memory_space<vmem>>, vector<80x16xbf16>,
    %c0_90 = arith.constant 0 : index
    %c0_91 = arith.constant 0 : index
    %149 = vector.load %arg21[%c0_90, %c0_91] : memref<80x80xbf16, #tpu.memory_space<vmem>>, vector<80x80xbf16>
    %c0_92 = arith.constant 0 : index
    %c0_93 = arith.constant 0 : index
    %150 = vector.load %arg7[%c0_92, %c0_93] : memref<80x32xbf16, #tpu.memory_space<vmem>>, vector<80x32xbf16>
    %cst_94 = arith.constant dense<0.000000e+00> : vector<80x32xf32>
    %151 = tpu.matmul %149, %150, %cst_94 {dimension_numbers = #tpu.dot_dimension_numbers<[1], [0], [0], [1], [0, 0, 1, 1], [], []>} : vector<80x80xbf16>, vector<80x32xbf16>, vector<80x32xf32> -> vector<80x32xf32>
    %152 = tpu.iota {dimensions = array<i32: 0>} : vector<80x32xi32>
    %153 = arith.sitofp %152 : vector<80x32xi32> to vector<80x32xf32>
    %cst_95 = arith.constant 5.000000e-01 : f32
    %154 = vector.broadcast %cst_95 : f32 to vector<80x32xf32>
    %155 = arith.addf %153, %154 : vector<80x32xf32>
    %cst_96 = arith.constant 2.500000e-02 : f32
    %156 = vector.broadcast %cst_96 : f32 to vector<80x32xf32>
    %157 = arith.mulf %155, %156 : vector<80x32xf32>
    %158 = math.floor %157 : vector<80x32xf32>
    %cst_97 = arith.constant 4.000000e+01 : f32
    %159 = vector.broadcast %cst_97 : f32 to vector<80x32xf32>
    %160 = arith.mulf %158, %159 : vector<80x32xf32>
    %161 = arith.subf %153, %160 : vector<80x32xf32>
    %cst_98 = arith.constant 1.900000e+01 : f32
    %162 = vector.broadcast %cst_98 : f32 to vector<80x32xf32>
    %163 = arith.cmpf olt, %161, %162 : vector<80x32xf32>
    %cst_99 = arith.constant 0.000000e+00 : f32
    %164 = vector.broadcast %cst_99 : f32 to vector<80x32xf32>
    %165 = arith.select %163, %151, %164 : vector<80x32xi1>, vector<80x32xf32>
    %cst_100 = arith.constant dense<0.000000e+00> : vector<32xf32>
    %166 = vector.multi_reduction <add>, %165, %cst_100 [0] : vector<80x32xf32> to vector<32xf32>
    %167 = vector.shape_cast %166 : vector<32xf32> to vector<1x32xf32>
    %cst_101 = arith.constant 0.0263157897 : f32
    %168 = vector.broadcast %cst_101 : f32 to vector<1x32xf32>
    %169 = arith.mulf %167, %168 : vector<1x32xf32>
    %170 = arith.mulf %165, %165 : vector<80x32xf32>
    %cst_102 = arith.constant dense<0.000000e+00> : vector<32xf32>
    %171 = vector.multi_reduction <add>, %170, %cst_102 [0] : vector<80x32xf32> to vector<32xf32>
    %172 = vector.shape_cast %171 : vector<32xf32> to vector<1x32xf32>
    %cst_103 = arith.constant 0.0263157897 : f32
    %173 = vector.broadcast %cst_103 : f32 to vector<1x32xf32>
    %174 = arith.mulf %172, %173 : vector<1x32xf32>
    %175 = arith.mulf %169, %169 : vector<1x32xf32>
    %176 = arith.subf %174, %175 : vector<1x32xf32>
    %cst_104 = arith.constant 0.000000e+00 : f32
    %177 = vector.broadcast %cst_104 : f32 to vector<1x32xf32>
    %178 = arith.maximumf %176, %177 : vector<1x32xf32>
    %c0_105 = arith.constant 0 : index
    %c0_106 = arith.constant 0 : index
    %179 = vector.load %arg8[%c0_105, %c0_106] : memref<2x32xf32, #tpu.memory_space<vmem>>, vector<1x32xf32>
    %cst_107 = arith.constant 9.99999974E-6 : f32
    %180 = vector.broadcast %cst_107 : f32 to vector<1x32xf32>
    %181 = arith.addf %178, %180 : vector<1x32xf32>
    %182 = math.rsqrt %181 : vector<1x32xf32>
    %183 = arith.mulf %179, %182 : vector<1x32xf32>
    %c1_108 = arith.constant 1 : index
    %c0_109 = arith.constant 0 : index
    %184 = vector.load %arg8[%c1_108, %c0_109] : memref<2x32xf32, #tpu.memory_space<vmem>>, vector<1x32xf32>
    %185 = arith.mulf %169, %183 : vector<1x32xf32>
    %186 = arith.subf %184, %185 : vector<1x32xf32>
    %187 = vector.broadcast %183 : vector<1x32xf32> to vector<80x32xf32>
    %188 = arith.mulf %151, %187 : vector<80x32xf32>
    %189 = vector.broadcast %186 : vector<1x32xf32> to vector<80x32xf32>
    %190 = arith.addf %188, %189 : vector<80x32xf32>
    %cst_110 = arith.constant 0.000000e+00 : f32
    %191 = vector.broadcast %cst_110 : f32 to vector<80x32xf32>
    %192 = arith.cmpf ogt, %190, %191 : vector<80x32xf32>
    %cst_111 = arith.constant 2.000000e-01 : f32
    %193 = vector.broadcast %cst_111 : f32 to vector<80x32xf32>
    %194 = arith.mulf %193, %190 : vector<80x32xf32>
    %195 = arith.select %192, %190, %194 : vector<80x32xi1>, vector<80x32xf32>
    %cst_112 = arith.constant 0.000000e+00 : f32
    %196 = vector.broadcast %cst_112 : f32 to vector<80x32xf32>
    %197 = arith.select %163, %195, %196 : vector<80x32xi1>, vector<80x32xf32>
    %c2_113 = arith.constant 2 : index
    %c0_114 = arith.constant 0 : index
    %198 = vector.load %arg17[%c2_113, %c0_114] : memref<88x32xf32, #tpu.memory_space<vmem>>, vector<80x32xf32>
    tpu.vector_store %arg17[%c2_113, %c0_114], %197 {strides = array<i32>} : memref<88x32xf32, #tpu.memory_space<vmem>>, vector<80x32xf32>,
    %c0_115 = arith.constant 0 : index
    %c0_116 = arith.constant 0 : index
    %199 = tpu.strided_load %arg17[%c0_115, %c0_116] {strides = array<i32: 2, 1>} : memref<88x32xf32, #tpu.memory_space<vmem>>, vector<40x32xf32>
    %200 = arith.truncf %199 : vector<40x32xf32> to vector<40x32xbf16>
    %c0_117 = arith.constant 0 : index
    %c0_118 = arith.constant 0 : index
    %201 = vector.load %arg22[%c0_117, %c0_118] : memref<40x160xbf16, #tpu.memory_space<vmem>>, vector<40x32xbf16>
    tpu.vector_store %arg22[%c0_117, %c0_118], %200 {strides = array<i32>} : memref<40x160xbf16, #tpu.memory_space<vmem>>, vector<40x32xbf16>,
    %c1_119 = arith.constant 1 : index
    %c0_120 = arith.constant 0 : index
    %202 = tpu.strided_load %arg17[%c1_119, %c0_120] {strides = array<i32: 2, 1>} : memref<88x32xf32, #tpu.memory_space<vmem>>, vector<40x32xf32>
    %203 = arith.truncf %202 : vector<40x32xf32> to vector<40x32xbf16>
    %c0_121 = arith.constant 0 : index
    %c32_122 = arith.constant 32 : index
    %204 = vector.load %arg22[%c0_121, %c32_122] : memref<40x160xbf16, #tpu.memory_space<vmem>>, vector<40x32xbf16>
    tpu.vector_store %arg22[%c0_121, %c32_122], %203 {strides = array<i32>} : memref<40x160xbf16, #tpu.memory_space<vmem>>, vector<40x32xbf16>,
    %c2_123 = arith.constant 2 : index
    %c0_124 = arith.constant 0 : index
    %205 = tpu.strided_load %arg17[%c2_123, %c0_124] {strides = array<i32: 2, 1>} : memref<88x32xf32, #tpu.memory_space<vmem>>, vector<40x32xf32>
    %206 = arith.truncf %205 : vector<40x32xf32> to vector<40x32xbf16>
    %c0_125 = arith.constant 0 : index
    %c64_126 = arith.constant 64 : index
    %207 = vector.load %arg22[%c0_125, %c64_126] : memref<40x160xbf16, #tpu.memory_space<vmem>>, vector<40x32xbf16>
    tpu.vector_store %arg22[%c0_125, %c64_126], %206 {strides = array<i32>} : memref<40x160xbf16, #tpu.memory_space<vmem>>, vector<40x32xbf16>,
    %c3_127 = arith.constant 3 : index
    %c0_128 = arith.constant 0 : index
    %208 = tpu.strided_load %arg17[%c3_127, %c0_128] {strides = array<i32: 2, 1>} : memref<88x32xf32, #tpu.memory_space<vmem>>, vector<40x32xf32>
    %209 = arith.truncf %208 : vector<40x32xf32> to vector<40x32xbf16>
    %c0_129 = arith.constant 0 : index
    %c96 = arith.constant 96 : index
    %210 = vector.load %arg22[%c0_129, %c96] : memref<40x160xbf16, #tpu.memory_space<vmem>>, vector<40x32xbf16>
    tpu.vector_store %arg22[%c0_129, %c96], %209 {strides = array<i32>} : memref<40x160xbf16, #tpu.memory_space<vmem>>, vector<40x32xbf16>,
    %c4_130 = arith.constant 4 : index
    %c0_131 = arith.constant 0 : index
    %211 = tpu.strided_load %arg17[%c4_130, %c0_131] {strides = array<i32: 2, 1>} : memref<88x32xf32, #tpu.memory_space<vmem>>, vector<40x32xf32>
    %212 = arith.truncf %211 : vector<40x32xf32> to vector<40x32xbf16>
    %c0_132 = arith.constant 0 : index
    %c128 = arith.constant 128 : index
    %213 = vector.load %arg22[%c0_132, %c128] : memref<40x160xbf16, #tpu.memory_space<vmem>>, vector<40x32xbf16>
    tpu.vector_store %arg22[%c0_132, %c128], %212 {strides = array<i32>} : memref<40x160xbf16, #tpu.memory_space<vmem>>, vector<40x32xbf16>,
    %c0_133 = arith.constant 0 : index
    %c0_134 = arith.constant 0 : index
    %214 = vector.load %arg22[%c0_133, %c0_134] : memref<40x160xbf16, #tpu.memory_space<vmem>>, vector<40x160xbf16>
    %c0_135 = arith.constant 0 : index
    %c0_136 = arith.constant 0 : index
    %215 = vector.load %arg9[%c0_135, %c0_136] : memref<160x64xbf16, #tpu.memory_space<vmem>>, vector<160x64xbf16>
    %cst_137 = arith.constant dense<0.000000e+00> : vector<40x64xf32>
    %216 = tpu.matmul %214, %215, %cst_137 {dimension_numbers = #tpu.dot_dimension_numbers<[1], [0], [0], [1], [0, 0, 1, 1], [], []>} : vector<40x160xbf16>, vector<160x64xbf16>, vector<40x64xf32> -> vector<40x64xf32>
    %217 = tpu.iota {dimensions = array<i32: 0>} : vector<40x64xi32>
    %218 = arith.sitofp %217 : vector<40x64xi32> to vector<40x64xf32>
    %cst_138 = arith.constant 5.000000e-01 : f32
    %219 = vector.broadcast %cst_138 : f32 to vector<40x64xf32>
    %220 = arith.addf %218, %219 : vector<40x64xf32>
    %cst_139 = arith.constant 5.000000e-02 : f32
    %221 = vector.broadcast %cst_139 : f32 to vector<40x64xf32>
    %222 = arith.mulf %220, %221 : vector<40x64xf32>
    %223 = math.floor %222 : vector<40x64xf32>
    %cst_140 = arith.constant 2.000000e+01 : f32
    %224 = vector.broadcast %cst_140 : f32 to vector<40x64xf32>
    %225 = arith.mulf %223, %224 : vector<40x64xf32>
    %226 = arith.subf %218, %225 : vector<40x64xf32>
    %cst_141 = arith.constant 1.000000e+01 : f32
    %227 = vector.broadcast %cst_141 : f32 to vector<40x64xf32>
    %228 = arith.cmpf olt, %226, %227 : vector<40x64xf32>
    %cst_142 = arith.constant 0.000000e+00 : f32
    %229 = vector.broadcast %cst_142 : f32 to vector<40x64xf32>
    %230 = arith.select %228, %216, %229 : vector<40x64xi1>, vector<40x64xf32>
    %cst_143 = arith.constant dense<0.000000e+00> : vector<64xf32>
    %231 = vector.multi_reduction <add>, %230, %cst_143 [0] : vector<40x64xf32> to vector<64xf32>
    %232 = vector.shape_cast %231 : vector<64xf32> to vector<1x64xf32>
    %cst_144 = arith.constant 5.000000e-02 : f32
    %233 = vector.broadcast %cst_144 : f32 to vector<1x64xf32>
    %234 = arith.mulf %232, %233 : vector<1x64xf32>
    %235 = arith.mulf %230, %230 : vector<40x64xf32>
    %cst_145 = arith.constant dense<0.000000e+00> : vector<64xf32>
    %236 = vector.multi_reduction <add>, %235, %cst_145 [0] : vector<40x64xf32> to vector<64xf32>
    %237 = vector.shape_cast %236 : vector<64xf32> to vector<1x64xf32>
    %cst_146 = arith.constant 5.000000e-02 : f32
    %238 = vector.broadcast %cst_146 : f32 to vector<1x64xf32>
    %239 = arith.mulf %237, %238 : vector<1x64xf32>
    %240 = arith.mulf %234, %234 : vector<1x64xf32>
    %241 = arith.subf %239, %240 : vector<1x64xf32>
    %cst_147 = arith.constant 0.000000e+00 : f32
    %242 = vector.broadcast %cst_147 : f32 to vector<1x64xf32>
    %243 = arith.maximumf %241, %242 : vector<1x64xf32>
    %c0_148 = arith.constant 0 : index
    %c0_149 = arith.constant 0 : index
    %244 = vector.load %arg10[%c0_148, %c0_149] : memref<2x64xf32, #tpu.memory_space<vmem>>, vector<1x64xf32>
    %cst_150 = arith.constant 9.99999974E-6 : f32
    %245 = vector.broadcast %cst_150 : f32 to vector<1x64xf32>
    %246 = arith.addf %243, %245 : vector<1x64xf32>
    %247 = math.rsqrt %246 : vector<1x64xf32>
    %248 = arith.mulf %244, %247 : vector<1x64xf32>
    %c1_151 = arith.constant 1 : index
    %c0_152 = arith.constant 0 : index
    %249 = vector.load %arg10[%c1_151, %c0_152] : memref<2x64xf32, #tpu.memory_space<vmem>>, vector<1x64xf32>
    %250 = arith.mulf %234, %248 : vector<1x64xf32>
    %251 = arith.subf %249, %250 : vector<1x64xf32>
    %252 = vector.broadcast %248 : vector<1x64xf32> to vector<40x64xf32>
    %253 = arith.mulf %216, %252 : vector<40x64xf32>
    %254 = vector.broadcast %251 : vector<1x64xf32> to vector<40x64xf32>
    %255 = arith.addf %253, %254 : vector<40x64xf32>
    %cst_153 = arith.constant 0.000000e+00 : f32
    %256 = vector.broadcast %cst_153 : f32 to vector<40x64xf32>
    %257 = arith.cmpf ogt, %255, %256 : vector<40x64xf32>
    %cst_154 = arith.constant 2.000000e-01 : f32
    %258 = vector.broadcast %cst_154 : f32 to vector<40x64xf32>
    %259 = arith.mulf %258, %255 : vector<40x64xf32>
    %260 = arith.select %257, %255, %259 : vector<40x64xi1>, vector<40x64xf32>
    %cst_155 = arith.constant 0.000000e+00 : f32
    %261 = vector.broadcast %cst_155 : f32 to vector<40x64xf32>
    %262 = arith.select %228, %260, %261 : vector<40x64xi1>, vector<40x64xf32>
    %c2_156 = arith.constant 2 : index
    %c0_157 = arith.constant 0 : index
    %263 = vector.load %arg18[%c2_156, %c0_157] : memref<48x64xf32, #tpu.memory_space<vmem>>, vector<40x64xf32>
    tpu.vector_store %arg18[%c2_156, %c0_157], %262 {strides = array<i32>} : memref<48x64xf32, #tpu.memory_space<vmem>>, vector<40x64xf32>,
    %c0_158 = arith.constant 0 : index
    %c0_159 = arith.constant 0 : index
    %264 = tpu.strided_load %arg18[%c0_158, %c0_159] {strides = array<i32: 2, 1>} : memref<48x64xf32, #tpu.memory_space<vmem>>, vector<20x64xf32>
    %265 = arith.truncf %264 : vector<20x64xf32> to vector<20x64xbf16>
    %c0_160 = arith.constant 0 : index
    %c0_161 = arith.constant 0 : index
    %266 = vector.load %arg23[%c0_160, %c0_161] : memref<20x320xbf16, #tpu.memory_space<vmem>>, vector<20x64xbf16>
    tpu.vector_store %arg23[%c0_160, %c0_161], %265 {strides = array<i32>} : memref<20x320xbf16, #tpu.memory_space<vmem>>, vector<20x64xbf16>,
    %c1_162 = arith.constant 1 : index
    %c0_163 = arith.constant 0 : index
    %267 = tpu.strided_load %arg18[%c1_162, %c0_163] {strides = array<i32: 2, 1>} : memref<48x64xf32, #tpu.memory_space<vmem>>, vector<20x64xf32>
    %268 = arith.truncf %267 : vector<20x64xf32> to vector<20x64xbf16>
    %c0_164 = arith.constant 0 : index
    %c64_165 = arith.constant 64 : index
    %269 = vector.load %arg23[%c0_164, %c64_165] : memref<20x320xbf16, #tpu.memory_space<vmem>>, vector<20x64xbf16>
    tpu.vector_store %arg23[%c0_164, %c64_165], %268 {strides = array<i32>} : memref<20x320xbf16, #tpu.memory_space<vmem>>, vector<20x64xbf16>,
    %c2_166 = arith.constant 2 : index
    %c0_167 = arith.constant 0 : index
    %270 = tpu.strided_load %arg18[%c2_166, %c0_167] {strides = array<i32: 2, 1>} : memref<48x64xf32, #tpu.memory_space<vmem>>, vector<20x64xf32>
    %271 = arith.truncf %270 : vector<20x64xf32> to vector<20x64xbf16>
    %c0_168 = arith.constant 0 : index
    %c128_169 = arith.constant 128 : index
    %272 = vector.load %arg23[%c0_168, %c128_169] : memref<20x320xbf16, #tpu.memory_space<vmem>>, vector<20x64xbf16>
    tpu.vector_store %arg23[%c0_168, %c128_169], %271 {strides = array<i32>} : memref<20x320xbf16, #tpu.memory_space<vmem>>, vector<20x64xbf16>,
    %c3_170 = arith.constant 3 : index
    %c0_171 = arith.constant 0 : index
    %273 = tpu.strided_load %arg18[%c3_170, %c0_171] {strides = array<i32: 2, 1>} : memref<48x64xf32, #tpu.memory_space<vmem>>, vector<20x64xf32>
    %274 = arith.truncf %273 : vector<20x64xf32> to vector<20x64xbf16>
    %c0_172 = arith.constant 0 : index
    %c192 = arith.constant 192 : index
    %275 = vector.load %arg23[%c0_172, %c192] : memref<20x320xbf16, #tpu.memory_space<vmem>>, vector<20x64xbf16>
    tpu.vector_store %arg23[%c0_172, %c192], %274 {strides = array<i32>} : memref<20x320xbf16, #tpu.memory_space<vmem>>, vector<20x64xbf16>,
    %c4_173 = arith.constant 4 : index
    %c0_174 = arith.constant 0 : index
    %276 = tpu.strided_load %arg18[%c4_173, %c0_174] {strides = array<i32: 2, 1>} : memref<48x64xf32, #tpu.memory_space<vmem>>, vector<20x64xf32>
    %277 = arith.truncf %276 : vector<20x64xf32> to vector<20x64xbf16>
    %c0_175 = arith.constant 0 : index
    %c256 = arith.constant 256 : index
    %278 = vector.load %arg23[%c0_175, %c256] : memref<20x320xbf16, #tpu.memory_space<vmem>>, vector<20x64xbf16>
    tpu.vector_store %arg23[%c0_175, %c256], %277 {strides = array<i32>} : memref<20x320xbf16, #tpu.memory_space<vmem>>, vector<20x64xbf16>,
    %c0_176 = arith.constant 0 : index
    %c0_177 = arith.constant 0 : index
    %279 = vector.load %arg23[%c0_176, %c0_177] : memref<20x320xbf16, #tpu.memory_space<vmem>>, vector<20x320xbf16>
    %c0_178 = arith.constant 0 : index
    %c0_179 = arith.constant 0 : index
    %280 = vector.load %arg11[%c0_178, %c0_179] : memref<320x64xbf16, #tpu.memory_space<vmem>>, vector<320x64xbf16>
    %cst_180 = arith.constant dense<0.000000e+00> : vector<20x64xf32>
    %281 = tpu.matmul %279, %280, %cst_180 {dimension_numbers = #tpu.dot_dimension_numbers<[1], [0], [0], [1], [0, 0, 1, 1], [], []>} : vector<20x320xbf16>, vector<320x64xbf16>, vector<20x64xf32> -> vector<20x64xf32>
    %282 = tpu.iota {dimensions = array<i32: 0>} : vector<20x64xi32>
    %283 = arith.sitofp %282 : vector<20x64xi32> to vector<20x64xf32>
    %cst_181 = arith.constant 5.000000e-01 : f32
    %284 = vector.broadcast %cst_181 : f32 to vector<20x64xf32>
    %285 = arith.addf %283, %284 : vector<20x64xf32>
    %cst_182 = arith.constant 1.000000e-01 : f32
    %286 = vector.broadcast %cst_182 : f32 to vector<20x64xf32>
    %287 = arith.mulf %285, %286 : vector<20x64xf32>
    %288 = math.floor %287 : vector<20x64xf32>
    %cst_183 = arith.constant 1.000000e+01 : f32
    %289 = vector.broadcast %cst_183 : f32 to vector<20x64xf32>
    %290 = arith.mulf %288, %289 : vector<20x64xf32>
    %291 = arith.subf %283, %290 : vector<20x64xf32>
    %cst_184 = arith.constant 5.000000e+00 : f32
    %292 = vector.broadcast %cst_184 : f32 to vector<20x64xf32>
    %293 = arith.cmpf olt, %291, %292 : vector<20x64xf32>
    %cst_185 = arith.constant 0.000000e+00 : f32
    %294 = vector.broadcast %cst_185 : f32 to vector<20x64xf32>
    %295 = arith.select %293, %281, %294 : vector<20x64xi1>, vector<20x64xf32>
    %cst_186 = arith.constant dense<0.000000e+00> : vector<64xf32>
    %296 = vector.multi_reduction <add>, %295, %cst_186 [0] : vector<20x64xf32> to vector<64xf32>
    %297 = vector.shape_cast %296 : vector<64xf32> to vector<1x64xf32>
    %cst_187 = arith.constant 1.000000e-01 : f32
    %298 = vector.broadcast %cst_187 : f32 to vector<1x64xf32>
    %299 = arith.mulf %297, %298 : vector<1x64xf32>
    %300 = arith.mulf %295, %295 : vector<20x64xf32>
    %cst_188 = arith.constant dense<0.000000e+00> : vector<64xf32>
    %301 = vector.multi_reduction <add>, %300, %cst_188 [0] : vector<20x64xf32> to vector<64xf32>
    %302 = vector.shape_cast %301 : vector<64xf32> to vector<1x64xf32>
    %cst_189 = arith.constant 1.000000e-01 : f32
    %303 = vector.broadcast %cst_189 : f32 to vector<1x64xf32>
    %304 = arith.mulf %302, %303 : vector<1x64xf32>
    %305 = arith.mulf %299, %299 : vector<1x64xf32>
    %306 = arith.subf %304, %305 : vector<1x64xf32>
    %cst_190 = arith.constant 0.000000e+00 : f32
    %307 = vector.broadcast %cst_190 : f32 to vector<1x64xf32>
    %308 = arith.maximumf %306, %307 : vector<1x64xf32>
    %c0_191 = arith.constant 0 : index
    %c0_192 = arith.constant 0 : index
    %309 = vector.load %arg12[%c0_191, %c0_192] : memref<2x64xf32, #tpu.memory_space<vmem>>, vector<1x64xf32>
    %cst_193 = arith.constant 9.99999974E-6 : f32
    %310 = vector.broadcast %cst_193 : f32 to vector<1x64xf32>
    %311 = arith.addf %308, %310 : vector<1x64xf32>
    %312 = math.rsqrt %311 : vector<1x64xf32>
    %313 = arith.mulf %309, %312 : vector<1x64xf32>
    %c1_194 = arith.constant 1 : index
    %c0_195 = arith.constant 0 : index
    %314 = vector.load %arg12[%c1_194, %c0_195] : memref<2x64xf32, #tpu.memory_space<vmem>>, vector<1x64xf32>
    %315 = arith.mulf %299, %313 : vector<1x64xf32>
    %316 = arith.subf %314, %315 : vector<1x64xf32>
    %317 = vector.broadcast %313 : vector<1x64xf32> to vector<20x64xf32>
    %318 = arith.mulf %281, %317 : vector<20x64xf32>
    %319 = vector.broadcast %316 : vector<1x64xf32> to vector<20x64xf32>
    %320 = arith.addf %318, %319 : vector<20x64xf32>
    %cst_196 = arith.constant 0.000000e+00 : f32
    %321 = vector.broadcast %cst_196 : f32 to vector<20x64xf32>
    %322 = arith.cmpf ogt, %320, %321 : vector<20x64xf32>
    %cst_197 = arith.constant 2.000000e-01 : f32
    %323 = vector.broadcast %cst_197 : f32 to vector<20x64xf32>
    %324 = arith.mulf %323, %320 : vector<20x64xf32>
    %325 = arith.select %322, %320, %324 : vector<20x64xi1>, vector<20x64xf32>
    %cst_198 = arith.constant 0.000000e+00 : f32
    %326 = vector.broadcast %cst_198 : f32 to vector<20x64xf32>
    %327 = arith.select %293, %325, %326 : vector<20x64xi1>, vector<20x64xf32>
    %c2_199 = arith.constant 2 : index
    %c0_200 = arith.constant 0 : index
    %328 = vector.load %arg19[%c2_199, %c0_200] : memref<28x64xf32, #tpu.memory_space<vmem>>, vector<20x64xf32>
    tpu.vector_store %arg19[%c2_199, %c0_200], %327 {strides = array<i32>} : memref<28x64xf32, #tpu.memory_space<vmem>>, vector<20x64xf32>,
    %cst_201 = arith.constant 0.000000e+00 : f32
    %329 = vector.broadcast %cst_201 : f32 to vector<10x1xf32>
    %c0_202 = arith.constant 0 : index
    %c0_203 = arith.constant 0 : index
    %330 = tpu.strided_load %arg19[%c0_202, %c0_203] {strides = array<i32: 2, 1>} : memref<28x64xf32, #tpu.memory_space<vmem>>, vector<10x64xf32>
    %c0_204 = arith.constant 0 : index
    %c0_205 = arith.constant 0 : index
    %331 = vector.load %arg13[%c0_204, %c0_205] : memref<5x64xf32, #tpu.memory_space<vmem>>, vector<1x64xf32>
    %332 = vector.broadcast %331 : vector<1x64xf32> to vector<10x64xf32>
    %333 = arith.mulf %330, %332 : vector<10x64xf32>
    %cst_206 = arith.constant dense<0.000000e+00> : vector<10xf32>
    %334 = vector.multi_reduction <add>, %333, %cst_206 [1] : vector<10x64xf32> to vector<10xf32>
    %335 = vector.shape_cast %334 : vector<10xf32> to vector<10x1xf32>
    %336 = arith.addf %329, %335 : vector<10x1xf32>
    %c1_207 = arith.constant 1 : index
    %c0_208 = arith.constant 0 : index
    %337 = tpu.strided_load %arg19[%c1_207, %c0_208] {strides = array<i32: 2, 1>} : memref<28x64xf32, #tpu.memory_space<vmem>>, vector<10x64xf32>
    %c1_209 = arith.constant 1 : index
    %c0_210 = arith.constant 0 : index
    %338 = vector.load %arg13[%c1_209, %c0_210] : memref<5x64xf32, #tpu.memory_space<vmem>>, vector<1x64xf32>
    %339 = vector.broadcast %338 : vector<1x64xf32> to vector<10x64xf32>
    %340 = arith.mulf %337, %339 : vector<10x64xf32>
    %cst_211 = arith.constant dense<0.000000e+00> : vector<10xf32>
    %341 = vector.multi_reduction <add>, %340, %cst_211 [1] : vector<10x64xf32> to vector<10xf32>
    %342 = vector.shape_cast %341 : vector<10xf32> to vector<10x1xf32>
    %343 = arith.addf %336, %342 : vector<10x1xf32>
    %c2_212 = arith.constant 2 : index
    %c0_213 = arith.constant 0 : index
    %344 = tpu.strided_load %arg19[%c2_212, %c0_213] {strides = array<i32: 2, 1>} : memref<28x64xf32, #tpu.memory_space<vmem>>, vector<10x64xf32>
    %c2_214 = arith.constant 2 : index
    %c0_215 = arith.constant 0 : index
    %345 = vector.load %arg13[%c2_214, %c0_215] : memref<5x64xf32, #tpu.memory_space<vmem>>, vector<1x64xf32>
    %346 = vector.broadcast %345 : vector<1x64xf32> to vector<10x64xf32>
    %347 = arith.mulf %344, %346 : vector<10x64xf32>
    %cst_216 = arith.constant dense<0.000000e+00> : vector<10xf32>
    %348 = vector.multi_reduction <add>, %347, %cst_216 [1] : vector<10x64xf32> to vector<10xf32>
    %349 = vector.shape_cast %348 : vector<10xf32> to vector<10x1xf32>
    %350 = arith.addf %343, %349 : vector<10x1xf32>
    %c3_217 = arith.constant 3 : index
    %c0_218 = arith.constant 0 : index
    %351 = tpu.strided_load %arg19[%c3_217, %c0_218] {strides = array<i32: 2, 1>} : memref<28x64xf32, #tpu.memory_space<vmem>>, vector<10x64xf32>
    %c3_219 = arith.constant 3 : index
    %c0_220 = arith.constant 0 : index
    %352 = vector.load %arg13[%c3_219, %c0_220] : memref<5x64xf32, #tpu.memory_space<vmem>>, vector<1x64xf32>
    %353 = vector.broadcast %352 : vector<1x64xf32> to vector<10x64xf32>
    %354 = arith.mulf %351, %353 : vector<10x64xf32>
    %cst_221 = arith.constant dense<0.000000e+00> : vector<10xf32>
    %355 = vector.multi_reduction <add>, %354, %cst_221 [1] : vector<10x64xf32> to vector<10xf32>
    %356 = vector.shape_cast %355 : vector<10xf32> to vector<10x1xf32>
    %357 = arith.addf %350, %356 : vector<10x1xf32>
    %c4_222 = arith.constant 4 : index
    %c0_223 = arith.constant 0 : index
    %358 = tpu.strided_load %arg19[%c4_222, %c0_223] {strides = array<i32: 2, 1>} : memref<28x64xf32, #tpu.memory_space<vmem>>, vector<10x64xf32>
    %c4_224 = arith.constant 4 : index
    %c0_225 = arith.constant 0 : index
    %359 = vector.load %arg13[%c4_224, %c0_225] : memref<5x64xf32, #tpu.memory_space<vmem>>, vector<1x64xf32>
    %360 = vector.broadcast %359 : vector<1x64xf32> to vector<10x64xf32>
    %361 = arith.mulf %358, %360 : vector<10x64xf32>
    %cst_226 = arith.constant dense<0.000000e+00> : vector<10xf32>
    %362 = vector.multi_reduction <add>, %361, %cst_226 [1] : vector<10x64xf32> to vector<10xf32>
    %363 = vector.shape_cast %362 : vector<10xf32> to vector<10x1xf32>
    %364 = arith.addf %357, %363 : vector<10x1xf32>
    %c2_227 = arith.constant 2 : index
    %365 = memref.load %arg2[%c2_227] : memref<4xf32, #tpu.memory_space<smem>>
    %366 = vector.broadcast %365 : f32 to vector<10x1xf32>
    %367 = arith.addf %364, %366 : vector<10x1xf32>
    %368 = math.absf %367 : vector<10x1xf32>
    %cst_228 = arith.constant 0.000000e+00 : f32
    %369 = vector.broadcast %cst_228 : f32 to vector<10x1xf32>
    %370 = arith.subf %369, %368 : vector<10x1xf32>
    %371 = math.exp %370 : vector<10x1xf32>
    %cst_229 = arith.constant 0.000000e+00 : f32
    %372 = vector.broadcast %cst_229 : f32 to vector<10x1xf32>
    %373 = arith.cmpf oge, %367, %372 : vector<10x1xf32>
    %cst_230 = arith.constant 1.000000e+00 : f32
    %374 = vector.broadcast %cst_230 : f32 to vector<10x1xf32>
    %375 = arith.addf %374, %371 : vector<10x1xf32>
    %cst_231 = arith.constant 1.000000e+00 : f32
    %376 = vector.broadcast %cst_231 : f32 to vector<10x1xf32>
    %377 = arith.divf %376, %375 : vector<10x1xf32>
    %cst_232 = arith.constant 1.000000e+00 : f32
    %378 = vector.broadcast %cst_232 : f32 to vector<10x1xf32>
    %379 = arith.addf %378, %371 : vector<10x1xf32>
    %380 = arith.divf %371, %379 : vector<10x1xf32>
    %381 = arith.select %373, %377, %380 : vector<10x1xi1>, vector<10x1xf32>
    %c0_233 = arith.constant 0 : index
    %c0_234 = arith.constant 0 : index
    %382 = vector.load %arg14[%c0_233, %c0_234] : memref<10x1xf32, #tpu.memory_space<vmem>>, vector<10x1xf32>
    tpu.vector_store %arg14[%c0_233, %c0_234], %381 {strides = array<i32>} : memref<10x1xf32, #tpu.memory_space<vmem>>, vector<10x1xf32>,
    return
  }
}

</mosaic_0001>

<bundles_post_ra>
// kernel: discriminator_forward.1
= control target key start
LH: loop header
LB: loop body
LE: loop exit
PB: predicated region body
PF: predicated region fallthrough
CT: control target
= control target key end

     0   :  { %19 = vsyncpa [#allocation12], 0  ;;  %s5224_s16 = smov [#allocation11]   ;;  %s8365_s0 = inlined_call_operand.vmem [shape: f32[320,5], index: 0, kind: input, shape index: {}]   ;;  %s8366_s1 = inlined_call_operand.vmem [shape: f32[320,5], index: 1, kind: input, shape index: {}]   ;;  %s8367_s2 = inlined_call_operand.vmem [shape: f32[4], index: 2, kind: input, shape index: {}]   ;;  %s8368_s3 = inlined_call_operand.vmem [shape: bf16[5,8], index: 3, kind: input, shape index: {}]   ;;  %s8369_s4 = inlined_call_operand.vmem [shape: f32[1,8], index: 4, kind: input, shape index: {}]   ;;  %s8370_s5 = inlined_call_operand.vmem [shape: bf16[40,16], index: 5, kind: input, shape index: {}]   ;;  %s8371_s6 = inlined_call_operand.vmem [shape: f32[2,16], index: 6, kind: input, shape index: {}]   ;;  %s8372_s7 = inlined_call_operand.vmem [shape: bf16[80,32], index: 7, kind: input, shape index: {}]   ;;  %s8373_s8 = inlined_call_operand.vmem [shape: f32[2,32], index: 8, kind: input, shape index: {}]   ;;  %s8374_s9 = inlined_call_operand.vmem [shape: bf16[160,64], index: 9, kind: input, shape index: {}]   ;;  %s8375_s10 = inlined_call_operand.vmem [shape: f32[2,64], index: 10, kind: input, shape index: {}]   ;;  %s8376_s11 = inlined_call_operand.vmem [shape: bf16[320,64], index: 11, kind: input, shape index: {}]   ;;  %s8377_s12 = inlined_call_operand.vmem [shape: f32[2,64], index: 12, kind: input, shape index: {}]   ;;  %s8378_s13 = inlined_call_operand.vmem [shape: f32[5,64], index: 13, kind: input, shape index: {}]   ;;  %s8379_s14 = inlined_call_operand.vmem [shape: f32[10,1], index: 14, kind: output, shape index: {}]  }
   0x1   :  { %s29_s15 = sshll.u32 %s8367_s2, 4  ;;  %s30_s15 = int_to_ptr.vmem [resolvable:$true] %s29_s15 }
   0x2   :  { %32 = dma.vmem_to_smem %s30_s15, 16, %s5224_s16, [#allocation12]  }
   0x3   :  { %5222 = dma.done.wait [#allocation12], 16  }
   0x4   :  { %5223 = vsyncadd [#allocation12], 4294967280 }
   0x5   :  { %59 = sfence }
   0x6   :  { %v5318_v0 = vld [vmem:[%s8365_s0] sm:$0xff]  ;;  %v5328_v2 = vld [vmem:[%s8365_s0 + $0x10] sm:$0xff]  ;;  %s5225_s24 = smov 126   ;;  %v5344_v6 = vld [vmem:[%s8365_s0 + $0x8] sm:$0xff]  ;;  %vm8454_vm0 = vcmask 7168   ;;  %s890_s21 = sld [smem:[#allocation11]] }
   0x7   :  { %v5323_v1 = vld [vmem:[%s8366_s1] sm:$0xff]  ;;  %v5335_v4 = vld [vmem:[%s8366_s1 + $0x10] sm:$0xff]  ;;  %v5349_v7 = vld [vmem:[%s8366_s1 + $0x8] sm:$0xff]  ;;  %s4745_s26 = sld [smem:[#allocation11 + $0x1]]  ;;  %s5230_s20 = smov 8  }
   0x8   :  { %v229_v3 = vmul.f32 %v5323_v1, %v5318_v0  ;;  %v231_v5 = vmul.f32 %v5335_v4, %v5328_v2  ;;  %v5354_v8 = vld [vmem:[%s8365_s0 + $0x18] sm:$0xff]  ;;  %v5364_v10 = vld [vmem:[%s8365_s0 + $0x20] sm:$0xff]  ;;  %v230_v13 = vmul.f32 %v5349_v7, %v5344_v6  ;;  %v5381_v15 = vld [vmem:[%s8365_s0 + $0x28] sm:$0xff]  ;;  %s5233_s22 = smov 32   ;;  %s5236_s15 = smov 96  }
   0x9   :  { %v5359_v9 = vld [vmem:[%s8366_s1 + $0x18] sm:$0xff]  ;;  %v5369_v11 = vld [vmem:[%s8366_s1 + $0x20] sm:$0xff]  ;;  %v5386_v16 = vld [vmem:[%s8366_s1 + $0x28] sm:$0xff] }
   0xa   :  { %309 = vrot.lane.b32.xlu0 %v229_v3, %s5225_s24  ;;  %313 = vrot.lane.b32.xlu1 %v231_v5, %s5225_s24  ;;  %v233_v12 = vmul.f32 %v5369_v11, %v5364_v10  ;;  %v232_v14 = vmul.f32 %v5359_v9, %v5354_v8  ;;  %v5393_v17 = vld [vmem:[%s8365_s0 + $0x30] sm:$0xff]  ;;  %v234_v19 = vmul.f32 %v5386_v16, %v5381_v15  ;;  %v5405_v20 = vld [vmem:[%s8365_s0 + $0x38] sm:$0xff] }
   0xb   :  { %v5398_v18 = vld [vmem:[%s8366_s1 + $0x30] sm:$0xff]  ;;  %v5410_v21 = vld [vmem:[%s8366_s1 + $0x38] sm:$0xff]  ;;  %v5420_v24 = vld [vmem:[%s8365_s0 + $0x40] sm:$0xff] }
   0xc   :  { %317 = vrot.lane.b32.xlu2 %v233_v12, %s5225_s24  ;;  %v235_v22 = vmul.f32 %v5398_v18, %v5393_v17  ;;  %v236_v23 = vmul.f32 %v5410_v21, %v5405_v20  ;;  %v5425_v25 = vld [vmem:[%s8366_s1 + $0x40] sm:$0xff]  ;;  %v5432_v26 = vld [vmem:[%s8365_s0 + $0x48] sm:$0xff]  ;;  %v5444_v29 = vld [vmem:[%s8365_s0 + $0x50] sm:$0xff] }
   0xd   :  { %v5437_v27 = vld [vmem:[%s8366_s1 + $0x48] sm:$0xff]  ;;  %v237_v28 = vmul.f32 %v5425_v25, %v5420_v24  ;;  %v5449_v30 = vld [vmem:[%s8366_s1 + $0x50] sm:$0xff]  ;;  %v5459_v33 = vld [vmem:[%s8365_s0 + $0x58] sm:$0xff] }
   0xe   :  { %v238_v31 = vmul.f32 %v5437_v27, %v5432_v26  ;;  %v239_v32 = vmul.f32 %v5449_v30, %v5444_v29  ;;  %v5464_v34 = vld [vmem:[%s8366_s1 + $0x58] sm:$0xff]  ;;  %v5471_v35 = vld [vmem:[%s8365_s0 + $0x60] sm:$0xff]  ;;  %v5483_v38 = vld [vmem:[%s8365_s0 + $0x68] sm:$0xff] }
   0xf   :  { %v5476_v36 = vld [vmem:[%s8366_s1 + $0x60] sm:$0xff]  ;;  %v240_v37 = vmul.f32 %v5464_v34, %v5459_v33  ;;  %v5488_v39 = vld [vmem:[%s8366_s1 + $0x68] sm:$0xff]  ;;  %v5498_v42 = vld [vmem:[%s8365_s0 + $0x70] sm:$0xff] }
  0x10   :  { %v241_v40 = vmul.f32 %v5476_v36, %v5471_v35  ;;  %v242_v41 = vmul.f32 %v5488_v39, %v5483_v38  ;;  %v5503_v43 = vld [vmem:[%s8366_s1 + $0x70] sm:$0xff]  ;;  %v5510_v44 = vld [vmem:[%s8365_s0 + $0x78] sm:$0xff]  ;;  %v5522_v47 = vld [vmem:[%s8365_s0 + $0x80] sm:$0xff] }
  0x11   :  { %8477 = vst [vmem:[#allocation14_spill] sm:$0xff] %v5510_v44  ;;  %v5515_v45 = vld [vmem:[%s8366_s1 + $0x78] sm:$0xff]  ;;  %v243_v46 = vmul.f32 %v5503_v43, %v5498_v42  ;;  %v5527_v48 = vld [vmem:[%s8366_s1 + $0x80] sm:$0xff]  ;;  %v5537_v51 = vld [vmem:[%s8365_s0 + $0x88] sm:$0xff] }
  0x12   :  { %311 = vrot.lane.b32.xlu0 %v230_v13, %s5225_s24  ;;  %315 = vrot.lane.b32.xlu1 %v232_v14, %s5225_s24  ;;  %8478 = vst [vmem:[#allocation15_spill] sm:$0xff] %v5515_v45  ;;  %v244_v49 = vmul.f32 %v5515_v45, %v5510_v44  ;;  %v245_v50 = vmul.f32 %v5527_v48, %v5522_v47  ;;  %v5542_v52 = vld [vmem:[%s8366_s1 + $0x88] sm:$0xff]  ;;  %v5549_v53 = vld [vmem:[%s8365_s0 + $0x90] sm:$0xff] }
  0x13   :  { %8479 = vst [vmem:[#allocation16_spill] sm:$0xff] %v5522_v47  ;;  %v5554_v54 = vld [vmem:[%s8366_s1 + $0x90] sm:$0xff]  ;;  %v246_v55 = vmul.f32 %v5542_v52, %v5537_v51  ;;  %v5561_v56 = vld [vmem:[%s8365_s0 + $0x98] sm:$0xff]  ;;  %v5576_v60 = vld [vmem:[%s8365_s0 + $0xa0] sm:$0xff] }
  0x14   :  { %319 = vrot.lane.b32.xlu2 %v234_v19, %s5225_s24  ;;  %8480 = vst [vmem:[#allocation17_spill] sm:$0xff] %v5527_v48  ;;  %v5566_v57 = vld [vmem:[%s8366_s1 + $0x98] sm:$0xff]  ;;  %v247_v58 = vmul.f32 %v5554_v54, %v5549_v53  ;;  %v5581_v61 = vld [vmem:[%s8366_s1 + $0xa0] sm:$0xff]  ;;  %v5588_v62 = vld [vmem:[%s8365_s0 + $0xa8] sm:$0xff] }
  0x15   :  { %8481 = vst [vmem:[#allocation18_spill] sm:$0xff] %v5537_v51  ;;  %v248_v59 = vmul.f32 %v5566_v57, %v5561_v56  ;;  %v5593_v63 = vld [vmem:[%s8366_s1 + $0xa8] sm:$0xff]  ;;  %v249_v3 = vmul.f32 %v5581_v61, %v5576_v60  ;;  %v5600_v5 = vld [vmem:[%s8365_s0 + $0xb0] sm:$0xff]  ;;  %v5615_v19 = vld [vmem:[%s8365_s0 + $0xb8] sm:$0xff] }
  0x16   :  { %8482 = vst [vmem:[#allocation19_spill] sm:$0xff] %v5542_v52  ;;  %v5605_v12 = vld [vmem:[%s8366_s1 + $0xb0] sm:$0xff]  ;;  %v250_v13 = vmul.f32 %v5593_v63, %v5588_v62 }
  0x17   :  { %8483 = vst [vmem:[#allocation20_spill] sm:$0xff] %v5561_v56  ;;  %v251_v14 = vmul.f32 %v5605_v12, %v5600_v5 }
  0x18   :  { %8484 = vst [vmem:[#allocation21_spill] sm:$0xff] %v5566_v57 }
  0x19   :  { %8485 = vst [vmem:[#allocation22_spill] sm:$0xff] %v5576_v60 }
  0x1a   :  { %321 = vrot.lane.b32.xlu0 %v235_v22, %s5225_s24  ;;  %323 = vrot.lane.b32.xlu1 %v236_v23, %s5225_s24  ;;  %8486 = vst [vmem:[#allocation23_spill] sm:$0xff] %v5581_v61  ;;  %v5620_v22 = vld [vmem:[%s8366_s1 + $0xb8] sm:$0xff]  ;;  %v5627_v23 = vld [vmem:[%s8365_s0 + $0xc0] sm:$0xff] }
  0x1b   :  { %8487 = vst [vmem:[#allocation24_spill] sm:$0xff] %v5600_v5 }
  0x1c   :  { %325 = vrot.lane.b32.xlu2 %v237_v28, %s5225_s24  ;;  %8488 = vst [vmem:[#allocation25_spill] sm:$0xff] %v5605_v12  ;;  %v5632_v28 = vld [vmem:[%s8366_s1 + $0xc0] sm:$0xff] }
  0x1d   :  { %8489 = vst [vmem:[#allocation26_spill] sm:$0xff] %v5615_v19 }
  0x1e   :  { %8490 = vst [vmem:[#allocation27_spill] sm:$0xff] %v5620_v22 }
  0x22   :  { %327 = vrot.lane.b32.xlu0 %v238_v31, %s5225_s24  ;;  %329 = vrot.lane.b32.xlu1 %v239_v32, %s5225_s24  ;;  %v252_v31 = vmul.f32 %v5620_v22, %v5615_v19  ;;  %v5639_v32 = vld [vmem:[%s8365_s0 + $0xc8] sm:$0xff] }
  0x23   :  { %8491 = vst [vmem:[#allocation28_spill] sm:$0xff] %v5639_v32  ;;  %v5795_v22 = vld [vmem:[%s8365_s0 + $0x128] sm:$0xff] }
  0x24   :  { %331 = vrot.lane.b32.xlu2 %v240_v37, %s5225_s24  ;;  %v5644_v37 = vld [vmem:[%s8366_s1 + $0xc8] sm:$0xff]  ;;  %8509 = vst [vmem:[#allocation46_spill] sm:$0xff] %v5795_v22 }
  0x25   :  { %8492 = vst [vmem:[#allocation29_spill] sm:$0xff] %v5644_v37 }
  0x2a   :  { %333 = vrot.lane.b32.xlu0 %v241_v40, %s5225_s24  ;;  %335 = vrot.lane.b32.xlu1 %v242_v41, %s5225_s24  ;;  %v253_v40 = vmul.f32 %v5632_v28, %v5627_v23  ;;  %v254_v41 = vmul.f32 %v5644_v37, %v5639_v32 }
  0x2c   :  { %337 = vrot.lane.b32.xlu2 %v243_v46, %s5225_s24  ;;  %v5654_v46 = vld [vmem:[%s8365_s0 + $0xd0] sm:$0xff] }
  0x2d   :  { %8493 = vst [vmem:[#allocation30_spill] sm:$0xff] %v5654_v46 }
  0x32   :  { %339 = vrot.lane.b32.xlu0 %v244_v49, %s5225_s24  ;;  %341 = vrot.lane.b32.xlu1 %v245_v50, %s5225_s24  ;;  %v5659_v49 = vld [vmem:[%s8366_s1 + $0xd0] sm:$0xff]  ;;  %v5666_v50 = vld [vmem:[%s8365_s0 + $0xd8] sm:$0xff] }
  0x33   :  { %8494 = vst [vmem:[#allocation31_spill] sm:$0xff] %v5659_v49 }
  0x34   :  { %343 = vrot.lane.b32.xlu2 %v246_v55, %s5225_s24  ;;  %v5671_v55 = vld [vmem:[%s8366_s1 + $0xd8] sm:$0xff] }
  0x3a   :  { %345 = vrot.lane.b32.xlu0 %v247_v58, %s5225_s24  ;;  %347 = vrot.lane.b32.xlu1 %v248_v59, %s5225_s24  ;;  %v255_v58 = vmul.f32 %v5659_v49, %v5654_v46  ;;  %v5678_v59 = vld [vmem:[%s8365_s0 + $0xe0] sm:$0xff]  ;;  %v5717_v49 = vld [vmem:[%s8365_s0 + $0xf8] sm:$0xff] }
  0x3b   :  { %8495 = vst [vmem:[#allocation32_spill] sm:$0xff] %v5678_v59  ;;  %v5756_v46 = vld [vmem:[%s8365_s0 + $0x110] sm:$0xff] }
  0x3c   :  { %349 = vrot.lane.b32.xlu2 %v249_v3, %s5225_s24  ;;  %v5683_v3 = vld [vmem:[%s8366_s1 + $0xe0] sm:$0xff]  ;;  %8499 = vst [vmem:[#allocation36_spill] sm:$0xff] %v5717_v49 }
  0x3d   :  { %8496 = vst [vmem:[#allocation33_spill] sm:$0xff] %v5683_v3 }
  0x3e   :  { %8503 = vst [vmem:[#allocation40_spill] sm:$0xff] %v5756_v46 }
  0x42   :  { %351 = vrot.lane.b32.xlu0 %v250_v13, %s5225_s24  ;;  %353 = vrot.lane.b32.xlu1 %v251_v14, %s5225_s24  ;;  %v256_v13 = vmul.f32 %v5671_v55, %v5666_v50  ;;  %v257_v14 = vmul.f32 %v5683_v3, %v5678_v59 }
  0x44   :  { %355 = vrot.lane.b32.xlu2 %v252_v31, %s5225_s24  ;;  %v5693_v31 = vld [vmem:[%s8365_s0 + $0xe8] sm:$0xff] }
  0x45   :  { %8497 = vst [vmem:[#allocation34_spill] sm:$0xff] %v5693_v31 }
  0x4a   :  { %357 = vrot.lane.b32.xlu0 %v253_v40, %s5225_s24  ;;  %359 = vrot.lane.b32.xlu1 %v254_v41, %s5225_s24  ;;  %v5698_v40 = vld [vmem:[%s8366_s1 + $0xe8] sm:$0xff]  ;;  %v5705_v41 = vld [vmem:[%s8365_s0 + $0xf0] sm:$0xff] }
  0x4b   :  { %8498 = vst [vmem:[#allocation35_spill] sm:$0xff] %v5698_v40  ;;  %v258_v3 = vmul.f32 %v5698_v40, %v5693_v31  ;;  %v5732_v40 = vld [vmem:[%s8365_s0 + $0x100] sm:$0xff] }
  0x4c   :  { %361 = vrot.lane.b32.xlu2 %v255_v58, %s5225_s24  ;;  %v5710_v58 = vld [vmem:[%s8366_s1 + $0xf0] sm:$0xff]  ;;  %8501 = vst [vmem:[#allocation38_spill] sm:$0xff] %v5732_v40  ;;  %v5737_v31 = vld [vmem:[%s8366_s1 + $0x100] sm:$0xff] }
  0x4d   :  { %8502 = vst [vmem:[#allocation39_spill] sm:$0xff] %v5737_v31 }
  0x52   :  { %363 = vrot.lane.b32.xlu0 %v256_v13, %s5225_s24  ;;  %365 = vrot.lane.b32.xlu1 %v257_v14, %s5225_s24  ;;  %v5722_v13 = vld [vmem:[%s8366_s1 + $0xf8] sm:$0xff]  ;;  %v259_v14 = vmul.f32 %v5710_v58, %v5705_v41 }
  0x53   :  { %8500 = vst [vmem:[#allocation37_spill] sm:$0xff] %v5722_v13  ;;  %v260_v59 = vmul.f32 %v5722_v13, %v5717_v49  ;;  %v5744_v13 = vld [vmem:[%s8365_s0 + $0x108] sm:$0xff]  ;;  %v261_v49 = vmul.f32 %v5737_v31, %v5732_v40  ;;  %v5771_v31 = vld [vmem:[%s8365_s0 + $0x118] sm:$0xff] }
  0x54   :  { %367 = vrot.lane.b32.xlu2 %v258_v3, %s5225_s24  ;;  %v5749_v3 = vld [vmem:[%s8366_s1 + $0x108] sm:$0xff]  ;;  %8505 = vst [vmem:[#allocation42_spill] sm:$0xff] %v5771_v31  ;;  %v5776_v40 = vld [vmem:[%s8366_s1 + $0x118] sm:$0xff] }
  0x55   :  { %8506 = vst [vmem:[#allocation43_spill] sm:$0xff] %v5776_v40 }
  0x5a   :  { %369 = vrot.lane.b32.xlu0 %v259_v14, %s5225_s24  ;;  %371 = vrot.lane.b32.xlu1 %v260_v59, %s5225_s24  ;;  %v5761_v59 = vld [vmem:[%s8366_s1 + $0x110] sm:$0xff]  ;;  %v262_v14 = vmul.f32 %v5749_v3, %v5744_v13 }
  0x5b   :  { %8504 = vst [vmem:[#allocation41_spill] sm:$0xff] %v5761_v59  ;;  %v263_v37 = vmul.f32 %v5761_v59, %v5756_v46  ;;  %v5783_v59 = vld [vmem:[%s8365_s0 + $0x120] sm:$0xff]  ;;  %v264_v46 = vmul.f32 %v5776_v40, %v5771_v31  ;;  %v5810_v40 = vld [vmem:[%s8365_s0 + $0x130] sm:$0xff] }
  0x5c   :  { %373 = vrot.lane.b32.xlu2 %v261_v49, %s5225_s24  ;;  %8507 = vst [vmem:[#allocation44_spill] sm:$0xff] %v5783_v59  ;;  %v5788_v49 = vld [vmem:[%s8366_s1 + $0x120] sm:$0xff]  ;;  %v5815_v31 = vld [vmem:[%s8366_s1 + $0x130] sm:$0xff] }
  0x5d   :  { %8508 = vst [vmem:[#allocation45_spill] sm:$0xff] %v5788_v49 }
  0x5e   :  { %8511 = vst [vmem:[#allocation48_spill] sm:$0xff] %v5810_v40 }
  0x5f   :  { %8512 = vst [vmem:[#allocation49_spill] sm:$0xff] %v5815_v31 }
  0x62   :  { %375 = vrot.lane.b32.xlu0 %v262_v14, %s5225_s24  ;;  %377 = vrot.lane.b32.xlu1 %v263_v37, %s5225_s24  ;;  %v5800_v37 = vld [vmem:[%s8366_s1 + $0x128] sm:$0xff]  ;;  %v265_v14 = vmul.f32 %v5788_v49, %v5783_v59 }
  0x63   :  { %8510 = vst [vmem:[#allocation47_spill] sm:$0xff] %v5800_v37  ;;  %v266_v32 = vmul.f32 %v5800_v37, %v5795_v22  ;;  %v5822_v37 = vld [vmem:[%s8365_s0 + $0x138] sm:$0xff]  ;;  %v267_v22 = vmul.f32 %v5815_v31, %v5810_v40 }
  0x64   :  { %379 = vrot.lane.b32.xlu2 %v264_v46, %s5225_s24  ;;  %8513 = vst [vmem:[#allocation50_spill] sm:$0xff] %v5822_v37  ;;  %v5827_v46 = vld [vmem:[%s8366_s1 + $0x138] sm:$0xff] }
  0x65   :  { %8514 = vst [vmem:[#allocation51_spill] sm:$0xff] %v5827_v46  ;;  %v268_v12 = vmul.f32 %v5827_v46, %v5822_v37 }
  0x66   :  { %v318_v19 = vpop.permute.xlu2 %317 }
  0x6a   :  { %381 = vrot.lane.b32.xlu0 %v265_v14, %s5225_s24  ;;  %383 = vrot.lane.b32.xlu1 %v266_v32, %s5225_s24 }
  0x6c   :  { %385 = vrot.lane.b32.xlu2 %v267_v22, %s5225_s24 }
  0x6e   :  { %v320_v14 = vpop.permute.xlu2 %319 }
  0x6f   :  { %v439_v49 = vsel %vm8454_vm0, %v320_v14, 0.0 }
  0x72   :  { %387 = vrot.lane.b32.xlu0 %v268_v12, %s5225_s24  ;;  %v437_v12 = vsel %vm8454_vm0, %v318_v19, 0.0 }
  0x76   :  { %v326_v32 = vpop.permute.xlu2 %325 }
  0x7c   :  { %v310_v61 = vpop.permute.xlu0 %309  ;;  %v314_v5 = vpop.permute.xlu1 %313 }
  0x7d   :  { %v430_v52 = vsel %vm8454_vm0, %v310_v61, 0.0  ;;  %v433_v40 = vsel %vm8454_vm0, %v314_v5, 0.0 }
  0x7e   :  { %v332_v57 = vpop.permute.xlu2 %331 }
  0x84   :  { %v312_v60 = vpop.permute.xlu0 %311  ;;  %v316_v51 = vpop.permute.xlu1 %315 }
  0x85   :  { %v431_v56 = vsel %vm8454_vm0, %v312_v60, 0.0  ;;  %v435_v46 = vsel %vm8454_vm0, %v316_v51, 0.0 }
  0x86   :  { %v432_v31 = vadd.f32 %v431_v56, %v430_v52  ;;  %v338_v59 = vpop.permute.xlu2 %337  ;;  %v445_v56 = vsel %vm8454_vm0, %v326_v32, 0.0 }
  0x88   :  { %v434_v22 = vadd.f32 %v433_v40, %v432_v31 }
  0x8a   :  { %v436_v37 = vadd.f32 %v435_v46, %v434_v22 }
  0x8c   :  { %v438_v48 = vadd.f32 %v437_v12, %v436_v37  ;;  %v322_v45 = vpop.permute.xlu0 %321  ;;  %v324_v47 = vpop.permute.xlu1 %323 }
  0x8d   :  { %v441_v61 = vsel %vm8454_vm0, %v322_v45, 0.0  ;;  %v443_v60 = vsel %vm8454_vm0, %v324_v47, 0.0 }
  0x8e   :  { %v440_v44 = vadd.f32 %v439_v49, %v438_v48  ;;  %v344_v22 = vpop.permute.xlu2 %343  ;;  %v451_v48 = vsel %vm8454_vm0, %v332_v57, 0.0 }
  0x90   :  { %v442_v52 = vadd.f32 %v441_v61, %v440_v44 }
  0x92   :  { %v444_v5 = vadd.f32 %v443_v60, %v442_v52  ;;  %v457_v60 = vsel %vm8454_vm0, %v338_v59, 0.0 }
  0x94   :  { %v446_v51 = vadd.f32 %v445_v56, %v444_v5  ;;  %v328_v31 = vpop.permute.xlu0 %327  ;;  %v330_v19 = vpop.permute.xlu1 %329 }
  0x95   :  { %v447_v40 = vsel %vm8454_vm0, %v328_v31, 0.0  ;;  %v449_v46 = vsel %vm8454_vm0, %v330_v19, 0.0 }
  0x96   :  { %v448_v37 = vadd.f32 %v447_v40, %v446_v51  ;;  %v350_v52 = vpop.permute.xlu2 %349 }
  0x98   :  { %v450_v14 = vadd.f32 %v449_v46, %v448_v37  ;;  %v463_v37 = vsel %vm8454_vm0, %v344_v22, 0.0 }
  0x9a   :  { %v452_v49 = vadd.f32 %v451_v48, %v450_v14 }
  0x9c   :  { %v334_v45 = vpop.permute.xlu0 %333  ;;  %v336_v44 = vpop.permute.xlu1 %335 }
  0x9d   :  { %v453_v47 = vsel %vm8454_vm0, %v334_v45, 0.0  ;;  %v455_v32 = vsel %vm8454_vm0, %v336_v44, 0.0 }
  0x9e   :  { %v454_v12 = vadd.f32 %v453_v47, %v452_v49  ;;  %v356_v48 = vpop.permute.xlu2 %355 }
  0xa0   :  { %v456_v61 = vadd.f32 %v455_v32, %v454_v12  ;;  %v469_v12 = vsel %vm8454_vm0, %v350_v52, 0.0 }
  0xa2   :  { %v458_v56 = vadd.f32 %v457_v60, %v456_v61 }
  0xa4   :  { %v340_v5 = vpop.permute.xlu0 %339  ;;  %v342_v31 = vpop.permute.xlu1 %341 }
  0xa5   :  { %v459_v51 = vsel %vm8454_vm0, %v340_v5, 0.0  ;;  %v461_v57 = vsel %vm8454_vm0, %v342_v31, 0.0 }
  0xa6   :  { %v460_v40 = vadd.f32 %v459_v51, %v458_v56  ;;  %v362_v51 = vpop.permute.xlu2 %361 }
  0xa8   :  { %v462_v19 = vadd.f32 %v461_v57, %v460_v40  ;;  %v475_v40 = vsel %vm8454_vm0, %v356_v48, 0.0 }
  0xaa   :  { %v464_v46 = vadd.f32 %v463_v37, %v462_v19 }
  0xac   :  { %v346_v14 = vpop.permute.xlu0 %345  ;;  %v348_v45 = vpop.permute.xlu1 %347 }
  0xad   :  { %v465_v49 = vsel %vm8454_vm0, %v346_v14, 0.0  ;;  %v467_v59 = vsel %vm8454_vm0, %v348_v45, 0.0 }
  0xae   :  { %v466_v47 = vadd.f32 %v465_v49, %v464_v46  ;;  %v368_v45 = vpop.permute.xlu2 %367 }
  0xb0   :  { %v468_v44 = vadd.f32 %v467_v59, %v466_v47  ;;  %v481_v47 = vsel %vm8454_vm0, %v362_v51, 0.0 }
  0xb2   :  { %v470_v32 = vadd.f32 %v469_v12, %v468_v44 }
  0xb4   :  { %v352_v61 = vpop.permute.xlu0 %351  ;;  %v354_v56 = vpop.permute.xlu1 %353 }
  0xb5   :  { %v471_v60 = vsel %vm8454_vm0, %v352_v61, 0.0  ;;  %v473_v22 = vsel %vm8454_vm0, %v354_v56, 0.0  ;;  %v487_v56 = vsel %vm8454_vm0, %v368_v45, 0.0 }
  0xb6   :  { %v472_v5 = vadd.f32 %v471_v60, %v470_v32 }
  0xb8   :  { %v474_v31 = vadd.f32 %v473_v22, %v472_v5  ;;  %v374_v5 = vpop.permute.xlu2 %373 }
  0xba   :  { %v476_v57 = vadd.f32 %v475_v40, %v474_v31 }
  0xbc   :  { %v358_v19 = vpop.permute.xlu0 %357  ;;  %v360_v46 = vpop.permute.xlu1 %359 }
  0xbd   :  { %v477_v37 = vsel %vm8454_vm0, %v358_v19, 0.0  ;;  %v479_v52 = vsel %vm8454_vm0, %v360_v46, 0.0  ;;  %v493_v46 = vsel %vm8454_vm0, %v374_v5, 0.0 }
  0xbe   :  { %v478_v14 = vadd.f32 %v477_v37, %v476_v57 }
  0xc0   :  { %v480_v49 = vadd.f32 %v479_v52, %v478_v14 }
  0xc2   :  { %v482_v59 = vadd.f32 %v481_v47, %v480_v49  ;;  %v380_v49 = vpop.permute.xlu2 %379 }
  0xc4   :  { %v364_v44 = vpop.permute.xlu0 %363  ;;  %v366_v32 = vpop.permute.xlu1 %365 }
  0xc5   :  { %v483_v12 = vsel %vm8454_vm0, %v364_v44, 0.0  ;;  %v485_v48 = vsel %vm8454_vm0, %v366_v32, 0.0  ;;  %v499_v32 = vsel %vm8454_vm0, %v380_v49, 0.0 }
  0xc6   :  { %v484_v61 = vadd.f32 %v483_v12, %v482_v59 }
  0xc8   :  { %v486_v60 = vadd.f32 %v485_v48, %v484_v61 }
  0xca   :  { %v488_v22 = vadd.f32 %v487_v56, %v486_v60 }
  0xcc   :  { %v370_v31 = vpop.permute.xlu0 %369  ;;  %v372_v57 = vpop.permute.xlu1 %371 }
  0xcd   :  { %v489_v40 = vsel %vm8454_vm0, %v370_v31, 0.0  ;;  %v491_v51 = vsel %vm8454_vm0, %v372_v57, 0.0  ;;  %v386_v31 = vpop.permute.xlu2 %385 }
  0xce   :  { %v490_v19 = vadd.f32 %v489_v40, %v488_v22  ;;  %v505_v57 = vsel %vm8454_vm0, %v386_v31, 0.0 }
  0xd0   :  { %v492_v37 = vadd.f32 %v491_v51, %v490_v19 }
  0xd2   :  { %v494_v14 = vadd.f32 %v493_v46, %v492_v37 }
  0xd4   :  { %v376_v52 = vpop.permute.xlu0 %375  ;;  %v378_v59 = vpop.permute.xlu1 %377 }
  0xd5   :  { %v495_v47 = vsel %vm8454_vm0, %v376_v52, 0.0  ;;  %v497_v45 = vsel %vm8454_vm0, %v378_v59, 0.0 }
  0xd6   :  { %v496_v44 = vadd.f32 %v495_v47, %v494_v14 }
  0xd8   :  { %v498_v12 = vadd.f32 %v497_v45, %v496_v44 }
  0xda   :  { %v500_v61 = vadd.f32 %v499_v32, %v498_v12 }
  0xdc   :  { %v382_v48 = vpop.permute.xlu0 %381  ;;  %v384_v56 = vpop.permute.xlu1 %383 }
  0xdd   :  { %v501_v60 = vsel %vm8454_vm0, %v382_v48, 0.0  ;;  %v503_v5 = vsel %vm8454_vm0, %v384_v56, 0.0 }
  0xde   :  { %v502_v22 = vadd.f32 %v501_v60, %v500_v61 }
  0xe0   :  { %v504_v40 = vadd.f32 %v503_v5, %v502_v22 }
  0xe2   :  { %v506_v19 = vadd.f32 %v505_v57, %v504_v40 }
  0xe4   :  { %v388_v51 = vpop.permute.xlu0 %387 }
  0xe5   :  { %v507_v37 = vsel %vm8454_vm0, %v388_v51, 0.0 }
  0xe6   :  { %v508_v46 = vadd.f32 %v507_v37, %v506_v19 }
  0xe8   :  { %509 = vadd.xlane.f32.xlu1 %v508_v46 }
 0x15b   :  { %v510_v14 = vpop.xlane.xlu1 %509 }
 0x15c   :  { %v511_v52 = vrot.slane %v510_v14, 4 }
 0x15e   :  { %v512_v49 = vadd.f32 %v511_v52, %v510_v14 }
 0x160   :  { %v513_v47 = vrot.slane %v512_v49, 2 }
 0x162   :  { %v514_v59 = vadd.f32 %v513_v47, %v512_v49 }
 0x164   :  { %v515_v44 = vrot.slane %v514_v59, 1 }
 0x166   :  { %v516_v45 = vadd.f32 %v515_v44, %v514_v59 }
 0x168   :  { %5085 = vpush %v516_v45 }
 0x199   :  { %s5086_s17 = spop %5085 }
 0x19a   :  { %v518_v12 = vstv %s5086_s17  ;;  %s5235_s17 = smov 64  }
 0x19b   :  { %v5875_v32 = vmul.f32 0.007142857, %v518_v12 }
 0x19d   :  { %v520_v61 = vsub.f32 %v5318_v0, %v5875_v32  ;;  %v531_v48 = vsub.f32 %v5459_v33, %v5875_v32  ;;  %v521_v60 = vsub.f32 %v5344_v6, %v5875_v32  ;;  %v522_v31 = vsub.f32 %v5328_v2, %v5875_v32 }
 0x19e   :  { %v538_v0 = vsub.f32 %v5549_v53, %v5875_v32  ;;  %v523_v33 = vsub.f32 %v5354_v8, %v5875_v32  ;;  %v541_v8 = vsub.f32 %v5588_v62, %v5875_v32  ;;  %v525_v37 = vsub.f32 %v5381_v15, %v5875_v32 }
 0x19f   :  { %v571_v56 = vmul.f32 %v531_v48, %v5464_v34  ;;  %v560_v22 = vmul.f32 %v520_v61, %v5323_v1  ;;  %v561_v5 = vmul.f32 %v521_v60, %v5349_v7  ;;  %v562_v6 = vmul.f32 %v522_v31, %v5335_v4 }
 0x1a0   :  { %v578_v1 = vmul.f32 %v538_v0, %v5554_v54  ;;  %v563_v2 = vmul.f32 %v523_v33, %v5359_v9  ;;  %v524_v7 = vsub.f32 %v5364_v10, %v5875_v32  ;;  %v581_v4 = vmul.f32 %v541_v8, %v5593_v63 }
 0x1a1   :  { %v611_v40 = vmul.f32 %v571_v56, %v571_v56  ;;  %v600_v57 = vmul.f32 %v560_v22, %v560_v22  ;;  %v601_v19 = vmul.f32 %v561_v5, %v561_v5  ;;  %v602_v53 = vmul.f32 %v562_v6, %v562_v6  ;;  %v8516_v5 = vld [vmem:[#allocation14_spill] sm:$0xff] }
 0x1a2   :  { %v618_v34 = vmul.f32 %v578_v1, %v578_v1  ;;  %v603_v51 = vmul.f32 %v563_v2, %v563_v2  ;;  %v564_v9 = vmul.f32 %v524_v7, %v5369_v11  ;;  %v565_v10 = vmul.f32 %v525_v37, %v5386_v16  ;;  %v8521_v2 = vld [vmem:[#allocation50_spill] sm:$0xff] }
 0x1a3   :  { %702 = vrot.lane.b32.xlu1 %v611_v40, %s5225_s24  ;;  %680 = vrot.lane.b32.xlu2 %v600_v57, %s5225_s24  ;;  %v621_v54 = vmul.f32 %v581_v4, %v581_v4  ;;  %v544_v62 = vsub.f32 %v5627_v23, %v5875_v32  ;;  %v526_v15 = vsub.f32 %v5393_v17, %v5875_v32  ;;  %v8517_v40 = vld [vmem:[#allocation16_spill] sm:$0xff]  ;;  %v8524_v4 = vld [vmem:[#allocation51_spill] sm:$0xff] }
 0x1a4   :  { %682 = vrot.lane.b32.xlu0 %v601_v19, %s5225_s24  ;;  %v604_v46 = vmul.f32 %v564_v9, %v564_v9  ;;  %v605_v14 = vmul.f32 %v565_v10, %v565_v10  ;;  %v527_v52 = vsub.f32 %v5405_v20, %v5875_v32  ;;  %v547_v17 = vsub.f32 %v5666_v50, %v5875_v32  ;;  %v8520_v19 = vld [vmem:[#allocation17_spill] sm:$0xff]  ;;  %v8525_v10 = vld [vmem:[#allocation19_spill] sm:$0xff] }
 0x1a5   :  { %v584_v11 = vmul.f32 %v544_v62, %v5632_v28  ;;  %v566_v16 = vmul.f32 %v526_v15, %v5398_v18  ;;  %v528_v20 = vsub.f32 %v5420_v24, %v5875_v32  ;;  %v529_v59 = vsub.f32 %v5432_v26, %v5875_v32 }
 0x1a6   :  { %v567_v63 = vmul.f32 %v527_v52, %v5410_v21  ;;  %v587_v18 = vmul.f32 %v547_v17, %v5671_v55  ;;  %v550_v24 = vsub.f32 %v5705_v41, %v5875_v32  ;;  %v530_v26 = vsub.f32 %v5444_v29, %v5875_v32  ;;  %v8527_v52 = vld [vmem:[#allocation22_spill] sm:$0xff] }
 0x1a7   :  { %v624_v23 = vmul.f32 %v584_v11, %v584_v11  ;;  %v606_v49 = vmul.f32 %v566_v16, %v566_v16  ;;  %v568_v21 = vmul.f32 %v528_v20, %v5425_v25  ;;  %v569_v28 = vmul.f32 %v529_v59, %v5437_v27  ;;  %v8530_v20 = vld [vmem:[#allocation25_spill] sm:$0xff] }
 0x1a8   :  { %v607_v47 = vmul.f32 %v567_v63, %v567_v63  ;;  %v627_v50 = vmul.f32 %v587_v18, %v587_v18  ;;  %v532_v12 = vsub.f32 %v5471_v35, %v5875_v32  ;;  %v590_v25 = vmul.f32 %v550_v24, %v5710_v58  ;;  %v8528_v63 = vld [vmem:[#allocation24_spill] sm:$0xff]  ;;  %v8531_v18 = vld [vmem:[#allocation26_spill] sm:$0xff]  ;;  %v8533_v24 = vld [vmem:[#allocation27_spill] sm:$0xff] }
 0x1a9   :  { %v608_v44 = vmul.f32 %v568_v21, %v568_v21  ;;  %v609_v45 = vmul.f32 %v569_v28, %v569_v28  ;;  %v570_v27 = vmul.f32 %v530_v26, %v5449_v30  ;;  %v553_v29 = vsub.f32 %v5744_v13, %v5875_v32 }
 0x1aa   :  { %v572_v55 = vmul.f32 %v532_v12, %v5476_v36  ;;  %v630_v41 = vmul.f32 %v590_v25, %v590_v25  ;;  %v533_v35 = vsub.f32 %v5483_v38, %v5875_v32  ;;  %v534_v60 = vsub.f32 %v5498_v42, %v5875_v32  ;;  %v8515_v38 = vld [vmem:[#allocation44_spill] sm:$0xff] }
 0x1ab   :  { %716 = vrot.lane.b32.xlu1 %v618_v34, %s5225_s24  ;;  %684 = vrot.lane.b32.xlu2 %v602_v53, %s5225_s24  ;;  %v610_v61 = vmul.f32 %v570_v27, %v570_v27  ;;  %v593_v30 = vmul.f32 %v553_v29, %v5749_v3  ;;  %v556_v22 = vsub.f32 %v8515_v38, %v5875_v32  ;;  %v8519_v3 = vld [vmem:[#allocation15_spill] sm:$0xff]  ;;  %v8522_v34 = vld [vmem:[#allocation18_spill] sm:$0xff]  ;;  %v8540_v38 = vld [vmem:[#allocation36_spill] sm:$0xff] }
 0x1ac   :  { %686 = vrot.lane.b32.xlu0 %v603_v51, %s5225_s24  ;;  %v612_v48 = vmul.f32 %v572_v55, %v572_v55  ;;  %v573_v36 = vmul.f32 %v533_v35, %v5488_v39  ;;  %v574_v58 = vmul.f32 %v534_v60, %v5503_v43  ;;  %v535_v42 = vsub.f32 %v8516_v5, %v5875_v32  ;;  %v8518_v39 = vld [vmem:[#allocation45_spill] sm:$0xff]  ;;  %v8523_v51 = vld [vmem:[#allocation20_spill] sm:$0xff]  ;;  %v8535_v27 = vld [vmem:[#allocation30_spill] sm:$0xff] }
 0x1ad   :  { %v633_v13 = vmul.f32 %v593_v30, %v593_v30  ;;  %v536_v57 = vsub.f32 %v8517_v40, %v5875_v32  ;;  %v596_v43 = vmul.f32 %v556_v22, %v8518_v39  ;;  %v559_v7 = vsub.f32 %v8521_v2, %v5875_v32  ;;  %v8537_v35 = vld [vmem:[#allocation31_spill] sm:$0xff]  ;;  %v8538_v60 = vld [vmem:[#allocation33_spill] sm:$0xff] }
 0x1ae   :  { %v613_v56 = vmul.f32 %v573_v36, %v573_v36  ;;  %v614_v31 = vmul.f32 %v574_v58, %v574_v58  ;;  %v575_v0 = vmul.f32 %v535_v42, %v8519_v3  ;;  %v537_v53 = vsub.f32 %v8522_v34, %v5875_v32  ;;  %v8539_v58 = vld [vmem:[#allocation34_spill] sm:$0xff]  ;;  %v8541_v42 = vld [vmem:[#allocation35_spill] sm:$0xff]  ;;  %v8542_v40 = vld [vmem:[#allocation37_spill] sm:$0xff] }
 0x1af   :  { %v576_v33 = vmul.f32 %v536_v57, %v8520_v19  ;;  %v636_v1 = vmul.f32 %v596_v43, %v596_v43  ;;  %v539_v37 = vsub.f32 %v8523_v51, %v5875_v32  ;;  %v599_v9 = vmul.f32 %v559_v7, %v8524_v4  ;;  %v8543_v43 = vld [vmem:[#allocation38_spill] sm:$0xff]  ;;  %v8544_v19 = vld [vmem:[#allocation40_spill] sm:$0xff]  ;;  %v8546_v7 = vld [vmem:[#allocation41_spill] sm:$0xff] }
 0x1b0   :  { %v615_v6 = vmul.f32 %v575_v0, %v575_v0  ;;  %v540_v11 = vsub.f32 %v8527_v52, %v5875_v32  ;;  %v543_v21 = vsub.f32 %v8531_v18, %v5875_v32  ;;  %v546_v55 = vsub.f32 %v8535_v27, %v5875_v32  ;;  %v8548_v4 = vld [vmem:[#allocation46_spill] sm:$0xff]  ;;  %v8551_v52 = vld [vmem:[#allocation48_spill] sm:$0xff] }
 0x1b1   :  { %v616_v8 = vmul.f32 %v576_v33, %v576_v33  ;;  %v639_v15 = vmul.f32 %v599_v9, %v599_v9  ;;  %v551_v22 = vsub.f32 %v8540_v38, %v5875_v32  ;;  %v552_v3 = vsub.f32 %v8543_v43, %v5875_v32 }
 0x1b2   :  { %v583_v26 = vmul.f32 %v543_v21, %v8533_v24  ;;  %v554_v33 = vsub.f32 %v8544_v19, %v5875_v32  ;;  %v557_v9 = vsub.f32 %v8548_v4, %v5875_v32 }
 0x1b3   :  { %722 = vrot.lane.b32.xlu1 %v621_v54, %s5225_s24  ;;  %688 = vrot.lane.b32.xlu2 %v604_v46, %s5225_s24  ;;  %v577_v54 = vmul.f32 %v537_v53, %v8525_v10  ;;  %v8526_v46 = vld [vmem:[#allocation21_spill] sm:$0xff]  ;;  %v591_v57 = vmul.f32 %v551_v22, %v8542_v40 }
 0x1b4   :  { %690 = vrot.lane.b32.xlu0 %v605_v14, %s5225_s24  ;;  %v579_v62 = vmul.f32 %v539_v37, %v8526_v46  ;;  %v623_v25 = vmul.f32 %v583_v26, %v583_v26  ;;  %v594_v34 = vmul.f32 %v554_v33, %v8546_v7 }
 0x1b5   :  { %v617_v14 = vmul.f32 %v577_v54, %v577_v54  ;;  %v631_v0 = vmul.f32 %v591_v57, %v591_v57  ;;  %v8549_v54 = vld [vmem:[#allocation43_spill] sm:$0xff] }
 0x1b6   :  { %v619_v16 = vmul.f32 %v579_v62, %v579_v62  ;;  %v634_v37 = vmul.f32 %v594_v34, %v594_v34  ;;  %v8550_v62 = vld [vmem:[#allocation47_spill] sm:$0xff] }
 0x1bb   :  { %728 = vrot.lane.b32.xlu1 %v624_v23, %s5225_s24  ;;  %692 = vrot.lane.b32.xlu2 %v606_v49, %s5225_s24  ;;  %v542_v23 = vsub.f32 %v8528_v63, %v5875_v32  ;;  %v8529_v49 = vld [vmem:[#allocation23_spill] sm:$0xff] }
 0x1bc   :  { %694 = vrot.lane.b32.xlu0 %v607_v47, %s5225_s24  ;;  %v580_v17 = vmul.f32 %v540_v11, %v8529_v49  ;;  %v558_v11 = vsub.f32 %v8551_v52, %v5875_v32 }
 0x1bd   :  { %v582_v47 = vmul.f32 %v542_v23, %v8530_v20  ;;  %v8552_v23 = vld [vmem:[#allocation49_spill] sm:$0xff] }
 0x1be   :  { %v620_v59 = vmul.f32 %v580_v17, %v580_v17  ;;  %v598_v49 = vmul.f32 %v558_v11, %v8552_v23 }
 0x1bf   :  { %v622_v28 = vmul.f32 %v582_v47, %v582_v47 }
 0x1c0   :  { %v638_v20 = vmul.f32 %v598_v49, %v598_v49 }
 0x1c3   :  { %734 = vrot.lane.b32.xlu1 %v627_v50, %s5225_s24  ;;  %696 = vrot.lane.b32.xlu2 %v608_v44, %s5225_s24  ;;  %v8532_v50 = vld [vmem:[#allocation28_spill] sm:$0xff] }
 0x1c4   :  { %698 = vrot.lane.b32.xlu0 %v609_v45, %s5225_s24  ;;  %v545_v44 = vsub.f32 %v8532_v50, %v5875_v32  ;;  %v8534_v45 = vld [vmem:[#allocation29_spill] sm:$0xff] }
 0x1c6   :  { %v585_v12 = vmul.f32 %v545_v44, %v8534_v45 }
 0x1cb   :  { %740 = vrot.lane.b32.xlu1 %v630_v41, %s5225_s24  ;;  %700 = vrot.lane.b32.xlu2 %v610_v61, %s5225_s24  ;;  %v625_v41 = vmul.f32 %v585_v12, %v585_v12  ;;  %v8536_v61 = vld [vmem:[#allocation32_spill] sm:$0xff] }
 0x1cc   :  { %704 = vrot.lane.b32.xlu0 %v612_v48, %s5225_s24  ;;  %v548_v29 = vsub.f32 %v8536_v61, %v5875_v32  ;;  %v586_v48 = vmul.f32 %v546_v55, %v8537_v35 }
 0x1ce   :  { %v588_v30 = vmul.f32 %v548_v29, %v8538_v60  ;;  %v626_v36 = vmul.f32 %v586_v48, %v586_v48 }
 0x1d3   :  { %746 = vrot.lane.b32.xlu1 %v633_v13, %s5225_s24  ;;  %706 = vrot.lane.b32.xlu2 %v613_v56, %s5225_s24  ;;  %v549_v13 = vsub.f32 %v8539_v58, %v5875_v32  ;;  %v628_v56 = vmul.f32 %v588_v30, %v588_v30 }
 0x1d4   :  { %708 = vrot.lane.b32.xlu0 %v614_v31, %s5225_s24 }
 0x1d5   :  { %v589_v31 = vmul.f32 %v549_v13, %v8541_v42 }
 0x1d7   :  { %v629_v39 = vmul.f32 %v589_v31, %v589_v31 }
 0x1db   :  { %752 = vrot.lane.b32.xlu1 %v636_v1, %s5225_s24  ;;  %710 = vrot.lane.b32.xlu2 %v615_v6, %s5225_s24  ;;  %v8545_v6 = vld [vmem:[#allocation39_spill] sm:$0xff] }
 0x1dc   :  { %712 = vrot.lane.b32.xlu0 %v616_v8, %s5225_s24  ;;  %v592_v2 = vmul.f32 %v552_v3, %v8545_v6  ;;  %v8547_v8 = vld [vmem:[#allocation42_spill] sm:$0xff] }
 0x1dd   :  { %v555_v51 = vsub.f32 %v8547_v8, %v5875_v32 }
 0x1de   :  { %v632_v53 = vmul.f32 %v592_v2, %v592_v2 }
 0x1df   :  { %v595_v46 = vmul.f32 %v555_v51, %v8549_v54 }
 0x1e3   :  { %758 = vrot.lane.b32.xlu1 %v639_v15, %s5225_s24  ;;  %714 = vrot.lane.b32.xlu2 %v617_v14, %s5225_s24  ;;  %v597_v15 = vmul.f32 %v557_v9, %v8550_v62  ;;  %v635_v14 = vmul.f32 %v595_v46, %v595_v46 }
 0x1e4   :  { %718 = vrot.lane.b32.xlu0 %v619_v16, %s5225_s24 }
 0x1e5   :  { %v637_v16 = vmul.f32 %v597_v15, %v597_v15 }
 0x1eb   :  { %720 = vrot.lane.b32.xlu2 %v620_v59, %s5225_s24 }
 0x1ec   :  { %724 = vrot.lane.b32.xlu0 %v622_v28, %s5225_s24 }
 0x1f3   :  { %726 = vrot.lane.b32.xlu2 %v623_v25, %s5225_s24 }
 0x1f4   :  { %730 = vrot.lane.b32.xlu0 %v625_v41, %s5225_s24 }
 0x1fb   :  { %732 = vrot.lane.b32.xlu2 %v626_v36, %s5225_s24 }
 0x1fc   :  { %736 = vrot.lane.b32.xlu0 %v628_v56, %s5225_s24 }
 0x1fd   :  { %v681_v5 = vpop.permute.xlu2 %680 }
 0x1fe   :  { %v800_v21 = vsel %vm8454_vm0, %v681_v5, 0.0 }
 0x203   :  { %738 = vrot.lane.b32.xlu2 %v629_v39, %s5225_s24 }
 0x204   :  { %742 = vrot.lane.b32.xlu0 %v631_v0, %s5225_s24 }
 0x205   :  { %v685_v1 = vpop.permute.xlu2 %684 }
 0x206   :  { %v803_v50 = vsel %vm8454_vm0, %v685_v1, 0.0 }
 0x20b   :  { %744 = vrot.lane.b32.xlu2 %v632_v53, %s5225_s24 }
 0x20c   :  { %748 = vrot.lane.b32.xlu0 %v634_v37, %s5225_s24 }
 0x20d   :  { %v689_v10 = vpop.permute.xlu2 %688 }
 0x20e   :  { %v807_v25 = vsel %vm8454_vm0, %v689_v10, 0.0 }
 0x213   :  { %750 = vrot.lane.b32.xlu2 %v635_v14, %s5225_s24 }
 0x214   :  { %754 = vrot.lane.b32.xlu0 %v637_v16, %s5225_s24 }
 0x215   :  { %v693_v63 = vpop.permute.xlu2 %692  ;;  %v703_v38 = vpop.permute.xlu1 %702 }
 0x216   :  { %v683_v17 = vpop.permute.xlu0 %682  ;;  %v811_v35 = vsel %vm8454_vm0, %v693_v63, 0.0  ;;  %v821_v39 = vsel %vm8454_vm0, %v703_v38, 0.0  ;;  %v6077_v38 = vld [vmem:[%s8366_s1] sm:$0xff] }
 0x217   :  { %v801_v18 = vsel %vm8454_vm0, %v683_v17, 0.0  ;;  %vm1350_vm2 = vcmp.gt.f32.partialorder %v6077_v38, 0.5 }
 0x218   :  { %v802_v28 = vadd.f32 %v801_v18, %v800_v21 }
 0x21a   :  { %v804_v26 = vadd.f32 %v803_v50, %v802_v28 }
 0x21b   :  { %756 = vrot.lane.b32.xlu2 %v638_v20, %s5225_s24 }
 0x21d   :  { %v697_v47 = vpop.permute.xlu2 %696  ;;  %v717_v3 = vpop.permute.xlu1 %716 }
 0x21e   :  { %v687_v59 = vpop.permute.xlu0 %686  ;;  %v815_v13 = vsel %vm8454_vm0, %v697_v47, 0.0  ;;  %v835_v62 = vsel %vm8454_vm0, %v717_v3, 0.0 }
 0x21f   :  { %v805_v44 = vsel %vm8454_vm0, %v687_v59, 0.0 }
 0x220   :  { %v806_v12 = vadd.f32 %v805_v44, %v804_v26 }
 0x222   :  { %v808_v55 = vadd.f32 %v807_v25, %v806_v12 }
 0x225   :  { %v701_v24 = vpop.permute.xlu2 %700  ;;  %v723_v53 = vpop.permute.xlu1 %722 }
 0x226   :  { %v691_v45 = vpop.permute.xlu0 %690  ;;  %v819_v42 = vsel %vm8454_vm0, %v701_v24, 0.0  ;;  %v841_v49 = vsel %vm8454_vm0, %v723_v53, 0.0 }
 0x227   :  { %v809_v27 = vsel %vm8454_vm0, %v691_v45, 0.0 }
 0x228   :  { %v810_v61 = vadd.f32 %v809_v27, %v808_v55 }
 0x22a   :  { %v812_v60 = vadd.f32 %v811_v35, %v810_v61 }
 0x22d   :  { %v707_v41 = vpop.permute.xlu2 %706  ;;  %v729_v15 = vpop.permute.xlu1 %728 }
 0x22e   :  { %v695_v29 = vpop.permute.xlu0 %694  ;;  %v825_v1 = vsel %vm8454_vm0, %v707_v41, 0.0  ;;  %v847_v44 = vsel %vm8454_vm0, %v729_v15, 0.0 }
 0x22f   :  { %v813_v48 = vsel %vm8454_vm0, %v695_v29, 0.0 }
 0x230   :  { %v814_v30 = vadd.f32 %v813_v48, %v812_v60  ;;  %v6068_v48 = vld [vmem:[%s8366_s1 + $0x8] sm:$0xff] }
 0x231   :  { %vm1351_vm1 = vcmp.gt.f32.partialorder %v6068_v48, 0.5 }
 0x232   :  { %v816_v22 = vadd.f32 %v815_v13, %v814_v30  ;;  %v5226_v30 = vmov 2  }
 0x233   :  { %5103 = vset.pattern.permute.xlu1 %v5226_v30  ;;  %5102 = vset.pattern.permute.xlu2 %v5226_v30 }
 0x234   :  { %5104 = vset.pattern.permute.xlu0 %v5226_v30  ;;  %v6184_v30 = vld [vmem:[%s8366_s1 + $0x40] sm:$0xff] }
 0x235   :  { %v711_v58 = vpop.permute.xlu2 %710  ;;  %v735_v18 = vpop.permute.xlu1 %734 }
 0x236   :  { %v699_v36 = vpop.permute.xlu0 %698  ;;  %v829_v8 = vsel %vm8454_vm0, %v711_v58, 0.0  ;;  %v853_v61 = vsel %vm8454_vm0, %v735_v18, 0.0  ;;  %v6122_v18 = vld [vmem:[%s8366_s1 + $0x60] sm:$0xff] }
 0x237   :  { %v817_v56 = vsel %vm8454_vm0, %v699_v36, 0.0  ;;  %v8418_v36 = vmov 0   ;;  %vm1362_vm7 = vcmp.gt.f32.partialorder %v6122_v18, 0.5 }
 0x238   :  { %v818_v5 = vadd.f32 %v817_v56, %v816_v22  ;;  %v1391_v58 = vsel %vm1351_vm1, 1, %v8418_v36  ;;  %vm1358_vm1 = vcmp.gt.f32.partialorder %v6184_v30, 0.5 }
 0x239   :  { %1434 = vperm.xlu1 %5103, %v1391_v58   ;;  %v6190_v58 = vld [vmem:[%s8366_s1 + $0xa0] sm:$0xff] }
 0x23a   :  { %v820_v31 = vadd.f32 %v819_v42, %v818_v5  ;;  %v6083_v42 = vld [vmem:[%s8366_s1 + $0x18] sm:$0xff] }
 0x23b   :  { %vm1353_vm3 = vcmp.gt.f32.partialorder %v6083_v42, 0.5 }
 0x23c   :  { %v822_v0 = vadd.f32 %v821_v39, %v820_v31  ;;  %v1390_v31 = vsel %vm1350_vm2, 1, %v8418_v36  ;;  %v1393_v39 = vsel %vm1353_vm3, 1, %v8418_v36  ;;  %vm1370_vm2 = vcmp.gt.f32.partialorder %v6190_v58, 0.5 }
 0x23d   :  { %v715_v57 = vpop.permute.xlu2 %714  ;;  %v741_v55 = vpop.permute.xlu1 %740  ;;  %1431 = vperm.xlu2 %5102, %v1390_v31   ;;  %v6205_v31 = vld [vmem:[%s8366_s1 + $0x50] sm:$0xff] }
 0x23e   :  { %v705_v40 = vpop.permute.xlu0 %704  ;;  %v833_v10 = vsel %vm8454_vm0, %v715_v57, 0.0  ;;  %v859_v57 = vsel %vm8454_vm0, %v741_v55, 0.0  ;;  %v6163_v55 = vld [vmem:[%s8366_s1 + $0x30] sm:$0xff] }
 0x23f   :  { %v823_v43 = vsel %vm8454_vm0, %v705_v40, 0.0  ;;  %vm1356_vm13 = vcmp.gt.f32.partialorder %v6163_v55, 0.5 }
 0x240   :  { %v824_v19 = vadd.f32 %v823_v43, %v822_v0 }
 0x241   :  { %1440 = vperm.xlu1 %5103, %v1393_v39   ;;  %v6211_v39 = vld [vmem:[%s8366_s1 + $0xa8] sm:$0xff] }
 0x242   :  { %v826_v2 = vadd.f32 %v825_v1, %v824_v19 }
 0x245   :  { %v721_v34 = vpop.permute.xlu2 %720  ;;  %v747_v40 = vpop.permute.xlu1 %746 }
 0x246   :  { %v709_v33 = vpop.permute.xlu0 %708  ;;  %v839_v63 = vsel %vm8454_vm0, %v721_v34, 0.0 }
 0x247   :  { %v827_v6 = vsel %vm8454_vm0, %v709_v33, 0.0 }
 0x248   :  { %v828_v7 = vadd.f32 %v827_v6, %v826_v2  ;;  %v6094_v6 = vld [vmem:[%s8366_s1 + $0x28] sm:$0xff] }
 0x249   :  { %vm1355_vm4 = vcmp.gt.f32.partialorder %v6094_v6, 0.5 }
 0x24a   :  { %v830_v37 = vadd.f32 %v829_v8, %v828_v7  ;;  %v865_v7 = vsel %vm8454_vm0, %v747_v40, 0.0  ;;  %v1395_v34 = vsel %vm1355_vm4, 1, %v8418_v36  ;;  %vm1360_vm4 = vcmp.gt.f32.partialorder %v6205_v31, 0.5 }
 0x24b   :  { %1446 = vperm.xlu1 %5103, %v1395_v34  }
 0x24d   :  { %v727_v46 = vpop.permute.xlu2 %726  ;;  %v753_v53 = vpop.permute.xlu1 %752 }
 0x24e   :  { %v713_v51 = vpop.permute.xlu0 %712  ;;  %v845_v28 = vsel %vm8454_vm0, %v727_v46, 0.0  ;;  %v871_v46 = vsel %vm8454_vm0, %v753_v53, 0.0  ;;  %v6232_v53 = vld [vmem:[%s8366_s1 + $0xc0] sm:$0xff] }
 0x24f   :  { %v831_v4 = vsel %vm8454_vm0, %v713_v51, 0.0 }
 0x250   :  { %v832_v9 = vadd.f32 %v831_v4, %v830_v37 }
 0x252   :  { %v834_v54 = vadd.f32 %v833_v10, %v832_v9 }
 0x254   :  { %v836_v52 = vadd.f32 %v835_v62, %v834_v54  ;;  %v6104_v54 = vld [vmem:[%s8366_s1 + $0x38] sm:$0xff] }
 0x255   :  { %v733_v17 = vpop.permute.xlu2 %732  ;;  %vm1357_vm5 = vcmp.gt.f32.partialorder %v6104_v54, 0.5 }
 0x256   :  { %v719_v14 = vpop.permute.xlu0 %718  ;;  %v851_v27 = vsel %vm8454_vm0, %v733_v17, 0.0  ;;  %v1397_v62 = vsel %vm1357_vm5, 1, %v8418_v36  ;;  %v6114_v17 = vld [vmem:[%s8366_s1 + $0x48] sm:$0xff]  ;;  %vm1371_vm5 = vcmp.gt.f32.partialorder %v6211_v39, 0.5 }
 0x257   :  { %v837_v11 = vsel %vm8454_vm0, %v719_v14, 0.0  ;;  %1452 = vperm.xlu1 %5103, %v1397_v62   ;;  %vm1359_vm6 = vcmp.gt.f32.partialorder %v6114_v17, 0.5 }
 0x258   :  { %v838_v16 = vadd.f32 %v837_v11, %v836_v52 }
 0x25a   :  { %v840_v23 = vadd.f32 %v839_v63, %v838_v16  ;;  %v759_v16 = vpop.permute.xlu1 %758 }
 0x25c   :  { %v842_v47 = vadd.f32 %v841_v49, %v840_v23 }
 0x25d   :  { %v739_v12 = vpop.permute.xlu2 %738 }
 0x25e   :  { %v725_v20 = vpop.permute.xlu0 %724  ;;  %v857_v56 = vsel %vm8454_vm0, %v739_v12, 0.0  ;;  %v6150_v12 = vld [vmem:[%s8366_s1 + $0x58] sm:$0xff] }
 0x25f   :  { %v843_v59 = vsel %vm8454_vm0, %v725_v20, 0.0  ;;  %v877_v20 = vsel %vm8454_vm0, %v759_v16, 0.0  ;;  %vm1361_vm11 = vcmp.gt.f32.partialorder %v6150_v12, 0.5 }
 0x260   :  { %v844_v21 = vadd.f32 %v843_v59, %v842_v47  ;;  %v1399_v59 = vsel %vm1359_vm6, 1, %v8418_v36 }
 0x261   :  { %1458 = vperm.xlu1 %5103, %v1399_v59  }
 0x262   :  { %v846_v50 = vadd.f32 %v845_v28, %v844_v21  ;;  %v6128_v21 = vld [vmem:[%s8366_s1 + $0x10] sm:$0xff]  ;;  %v1402_v28 = vsel %vm1362_vm7, 1, %v8418_v36 }
 0x263   :  { %vm1352_vm8 = vcmp.gt.f32.partialorder %v6128_v21, 0.5 }
 0x264   :  { %v848_v26 = vadd.f32 %v847_v44, %v846_v50  ;;  %v1392_v50 = vsel %vm1352_vm8, 1, %v8418_v36  ;;  %v6136_v44 = vld [vmem:[%s8366_s1 + $0x70] sm:$0xff]  ;;  %vm1374_vm8 = vcmp.gt.f32.partialorder %v6232_v53, 0.5 }
 0x265   :  { %v745_v22 = vpop.permute.xlu2 %744  ;;  %1437 = vperm.xlu2 %5102, %v1392_v50   ;;  %vm1364_vm9 = vcmp.gt.f32.partialorder %v6136_v44, 0.5  ;;  %v6297_v50 = vld [vmem:[%s8366_s1 + $0xd8] sm:$0xff] }
 0x266   :  { %v731_v24 = vpop.permute.xlu0 %730  ;;  %v863_v33 = vsel %vm8454_vm0, %v745_v22, 0.0  ;;  %v1410_v22 = vsel %vm1370_vm2, 1, %v8418_v36  ;;  %vm1377_vm2 = vcmp.gt.f32.partialorder %v6297_v50, 0.5 }
 0x267   :  { %v849_v45 = vsel %vm8454_vm0, %v731_v24, 0.0  ;;  %v6142_v24 = vld [vmem:[%s8366_s1 + $0x20] sm:$0xff] }
 0x268   :  { %v850_v25 = vadd.f32 %v849_v45, %v848_v26  ;;  %vm1354_vm10 = vcmp.gt.f32.partialorder %v6142_v24, 0.5  ;;  %v1404_v26 = vsel %vm1364_vm9, 1, %v8418_v36 }
 0x269   :  { %1467 = vperm.xlu1 %5103, %v1402_v28   ;;  %v1394_v45 = vsel %vm1354_vm10, 1, %v8418_v36 }
 0x26a   :  { %v852_v41 = vadd.f32 %v851_v27, %v850_v25  ;;  %v1401_v25 = vsel %vm1361_vm11, 1, %v8418_v36  ;;  %v6157_v27 = vld [vmem:[%s8366_s1 + $0x80] sm:$0xff] }
 0x26b   :  { %vm1366_vm12 = vcmp.gt.f32.partialorder %v6157_v27, 0.5 }
 0x26c   :  { %v854_v35 = vadd.f32 %v853_v61, %v852_v41  ;;  %v6169_v41 = vld [vmem:[%s8366_s1 + $0x88] sm:$0xff]  ;;  %v1406_v61 = vsel %vm1366_vm12, 1, %v8418_v36 }
 0x26d   :  { %v751_v2 = vpop.permute.xlu2 %750  ;;  %1443 = vperm.xlu2 %5102, %v1394_v45   ;;  %vm1367_vm14 = vcmp.gt.f32.partialorder %v6169_v41, 0.5  ;;  %v1048_v45 = vld [vmem:[%s8368_s3] sm:$0x7] }
 0x26e   :  { %v737_v29 = vpop.permute.xlu0 %736  ;;  %v869_v9 = vsel %vm8454_vm0, %v751_v2, 0.0  ;;  %v6220_v2 = vld [vmem:[%s8366_s1 + $0xd0] sm:$0xff] }
 0x26f   :  { %v855_v60 = vsel %vm8454_vm0, %v737_v29, 0.0  ;;  %v1396_v29 = vsel %vm1356_vm13, 1, %v8418_v36  ;;  %vm1376_vm6 = vcmp.gt.f32.partialorder %v6220_v2, 0.5 }
 0x270   :  { %v856_v13 = vadd.f32 %v855_v60, %v854_v35  ;;  %v1407_v35 = vsel %vm1367_vm14, 1, %v8418_v36  ;;  %v6178_v60 = vld [vmem:[%s8366_s1 + $0x90] sm:$0xff] }
 0x271   :  { %1473 = vperm.xlu1 %5103, %v1404_v26   ;;  %vm1368_vm15 = vcmp.gt.f32.partialorder %v6178_v60, 0.5  ;;  %v6303_v26 = vld [vmem:[%s8366_s1 + $0xe8] sm:$0xff] }
 0x272   :  { %v858_v5 = vadd.f32 %v857_v56, %v856_v13  ;;  %v1408_v13 = vsel %vm1368_vm15, 1, %v8418_v36  ;;  %v1398_v56 = vsel %vm1358_vm1, 1, %v8418_v36 }
 0x274   :  { %v860_v3 = vadd.f32 %v859_v57, %v858_v5  ;;  %v6199_v5 = vld [vmem:[%s8366_s1 + $0xb0] sm:$0xff] }
 0x275   :  { %v757_v15 = vpop.permute.xlu2 %756  ;;  %1449 = vperm.xlu2 %5102, %v1396_v29   ;;  %vm1372_vm3 = vcmp.gt.f32.partialorder %v6199_v5, 0.5 }
 0x276   :  { %v743_v43 = vpop.permute.xlu0 %742  ;;  %v875_v23 = vsel %vm8454_vm0, %v757_v15, 0.0 }
 0x277   :  { %v861_v0 = vsel %vm8454_vm0, %v743_v43, 0.0  ;;  %v1412_v43 = vsel %vm1372_vm3, 1, %v8418_v36  ;;  %vm1114_vm3 = vcmask 1041408  }
 0x278   :  { %v862_v19 = vadd.f32 %v861_v0, %v860_v3  ;;  %v1400_v3 = vsel %vm1360_vm4, 1, %v8418_v36  ;;  %vm1115_vm4 = vcmask 1042432  }
 0x279   :  { %1479 = vperm.xlu1 %5103, %v1406_v61  }
 0x27a   :  { %v864_v1 = vadd.f32 %v863_v33, %v862_v19  ;;  %v1411_v19 = vsel %vm1371_vm5, 1, %v8418_v36  ;;  %vm1379_vm5 = vcmp.gt.f32.partialorder %v6303_v26, 0.5 }
 0x27c   :  { %v866_v51 = vadd.f32 %v865_v7, %v864_v1  ;;  %v6226_v7 = vld [vmem:[%s8366_s1 + $0x68] sm:$0xff] }
 0x27d   :  { %1455 = vperm.xlu2 %5102, %v1398_v56   ;;  %vm1363_vm7 = vcmp.gt.f32.partialorder %v6226_v7, 0.5 }
 0x27e   :  { %v749_v8 = vpop.permute.xlu0 %748 }
 0x27f   :  { %v867_v37 = vsel %vm8454_vm0, %v749_v8, 0.0  ;;  %v1416_v8 = vsel %vm1376_vm6, 1, %v8418_v36 }
 0x280   :  { %v868_v4 = vadd.f32 %v867_v37, %v866_v51  ;;  %v1403_v51 = vsel %vm1363_vm7, 1, %v8418_v36 }
 0x281   :  { %1485 = vperm.xlu1 %5103, %v1408_v13  }
 0x282   :  { %v870_v10 = vadd.f32 %v869_v9, %v868_v4  ;;  %v1414_v4 = vsel %vm1374_vm8, 1, %v8418_v36  ;;  %v6241_v9 = vld [vmem:[%s8366_s1 + $0xf0] sm:$0xff] }
 0x283   :  { %vm1380_vm9 = vcmp.gt.f32.partialorder %v6241_v9, 0.5 }
 0x284   :  { %v872_v52 = vadd.f32 %v871_v46, %v870_v10  ;;  %v6247_v10 = vld [vmem:[%s8366_s1 + $0x78] sm:$0xff]  ;;  %v6253_v46 = vld [vmem:[%s8366_s1 + $0xc8] sm:$0xff]  ;;  %v1420_v62 = vsel %vm1380_vm9, 1, %v8418_v36 }
 0x285   :  { %1461 = vperm.xlu2 %5102, %v1400_v3   ;;  %vm1365_vm10 = vcmp.gt.f32.partialorder %v6247_v10, 0.5  ;;  %vm1375_vm11 = vcmp.gt.f32.partialorder %v6253_v46, 0.5  ;;  %v6320_v3 = vld [vmem:[%s8366_s1 + $0x100] sm:$0xff] }
 0x286   :  { %v755_v14 = vpop.permute.xlu0 %754  ;;  %v1405_v15 = vsel %vm1365_vm10, 1, %v8418_v36  ;;  %vm1382_vm7 = vcmp.gt.f32.partialorder %v6320_v3, 0.5 }
 0x287   :  { %v873_v11 = vsel %vm8454_vm0, %v755_v14, 0.0  ;;  %v1415_v14 = vsel %vm1375_vm11, 1, %v8418_v36 }
 0x288   :  { %v874_v63 = vadd.f32 %v873_v11, %v872_v52  ;;  %v6262_v52 = vld [vmem:[%s8366_s1 + $0x110] sm:$0xff]  ;;  %v6268_v11 = vld [vmem:[%s8366_s1 + $0x98] sm:$0xff] }
 0x289   :  { %1497 = vperm.xlu1 %5103, %v1412_v43   ;;  %vm1384_vm12 = vcmp.gt.f32.partialorder %v6262_v52, 0.5  ;;  %vm1369_vm13 = vcmp.gt.f32.partialorder %v6268_v11, 0.5  ;;  %v6314_v43 = vld [vmem:[%s8366_s1 + $0xf8] sm:$0xff] }
 0x28a   :  { %v876_v49 = vadd.f32 %v875_v23, %v874_v63  ;;  %v1424_v16 = vsel %vm1384_vm12, 1, %v8418_v36  ;;  %v1409_v63 = vsel %vm1369_vm13, 1, %v8418_v36  ;;  %v6276_v23 = vld [vmem:[%s8366_s1 + $0x130] sm:$0xff]  ;;  %vm1381_vm6 = vcmp.gt.f32.partialorder %v6314_v43, 0.5 }
 0x28b   :  { %8553 = vst [vmem:[#allocation44_spill] sm:$0xff] %v6276_v23  ;;  %vm1388_vm14 = vcmp.gt.f32.partialorder %v6276_v23, 0.5  ;;  %v8555_v23 = vmov 0  }
 0x28c   :  { %v878_v47 = vadd.f32 %v877_v20, %v876_v49  ;;  %v6282_v49 = vld [vmem:[%s8366_s1 + $0xb8] sm:$0xff]  ;;  %v6288_v20 = vld [vmem:[%s8366_s1 + $0xe0] sm:$0xff] }
 0x28d   :  { %1470 = vperm.xlu2 %5102, %v1403_v51   ;;  %vm1373_vm15 = vcmp.gt.f32.partialorder %v6282_v49, 0.5  ;;  %vm1378_vm1 = vcmp.gt.f32.partialorder %v6288_v20, 0.5  ;;  %v5165_v51 = vld [vmem:[%s8366_s1 + $0x108] sm:$0xff] }
 0x28e   :  { %879 = vadd.xlane.f32.xlu0 %v878_v47  ;;  %v1428_v47 = vsel %vm1388_vm14, 1, %v8418_v36  ;;  %v1413_v59 = vsel %vm1373_vm15, 1, %v8418_v36  ;;  %v1418_v28 = vsel %vm1378_vm1, 1, %v8418_v36  ;;  %vm1383_vm9 = vcmp.gt.f32.partialorder %v5165_v51, 0.5 }
 0x28f   :  { %vm1053_vm15 = vcmask 39936  }
 0x291   :  { %1509 = vperm.xlu1 %5103, %v1416_v8  }
 0x295   :  { %1476 = vperm.xlu2 %5102, %v1405_v15  }
 0x299   :  { %1521 = vperm.xlu1 %5103, %v1420_v62   ;;  %v1423_v62 = vsel %vm1383_vm9, 1, %v8418_v36 }
 0x29d   :  { %1488 = vperm.xlu2 %5102, %v1409_v63   ;;  %v6339_v63 = vld [vmem:[%s8366_s1 + $0x138] sm:$0xff] }
 0x29e   :  { %8554 = vst [vmem:[#allocation14_spill] sm:$0xff] %v6339_v63  ;;  %vm1389_vm13 = vcmp.gt.f32.partialorder %v6339_v63, 0.5 }
 0x2a1   :  { %1533 = vperm.xlu1 %5103, %v1424_v16   ;;  %v902_v16 = vstv %s890_s21  ;;  %s5231_s21 = smov 24  }
 0x2a2   :  { %1464 = vperm.xlu0 %5104, %v1401_v25   ;;  %v5228_v25 = vmov 65535  }
 0x2a3   :  { %v1116_v61 = vsel %vm1114_vm3, 4294967295, %v5228_v25  ;;  %v906_v25 = vstv %s4745_s26 }
 0x2a4   :  { %v1117_v13 = vsel %vm1115_vm4, %v1116_v61, 0 }
 0x2a5   :  { %1500 = vperm.xlu2 %5102, %v1413_v59   ;;  %v6345_v59 = vld [vmem:[%s8366_s1 + $0x120] sm:$0xff] }
 0x2a6   :  { %vm1386_vm14 = vcmp.gt.f32.partialorder %v6345_v59, 0.5 }
 0x2a7   :  { %v1426_v61 = vsel %vm1386_vm14, 1, %v8418_v36 }
 0x2a9   :  { %1545 = vperm.xlu1 %5103, %v1428_v47  }
 0x2aa   :  { %1482 = vperm.xlu0 %5104, %v1407_v35   ;;  %v1417_v35 = vsel %vm1377_vm2, 1, %v8418_v36  ;;  %vm61_vm2 = vcmask 64512  }
 0x2ad   :  { %1512 = vperm.xlu2 %5102, %v1417_v35   ;;  %v5168_v35 = vld [vmem:[%s8365_s0] sm:$0xff] }
 0x2b2   :  { %1491 = vperm.xlu0 %5104, %v1410_v22   ;;  %v1419_v22 = vsel %vm1379_vm5, 1, %v8418_v36 }
 0x2ba   :  { %1494 = vperm.xlu0 %5104, %v1411_v19   ;;  %v1422_v19 = vsel %vm1382_vm7, 1, %v8418_v36 }
 0x2c2   :  { %1503 = vperm.xlu0 %5104, %v1414_v4  }
 0x2ca   :  { %1506 = vperm.xlu0 %5104, %v1415_v14  }
 0x2d2   :  { %1515 = vperm.xlu0 %5104, %v1418_v28  }
 0x2da   :  { %1518 = vperm.xlu0 %5104, %v1419_v22  }
 0x2e2   :  { %1527 = vperm.xlu0 %5104, %v1422_v19   ;;  %v5172_v19 = vld [vmem:[%s8365_s0 + $0xc8] sm:$0xff] }
 0x2ea   :  { %1530 = vperm.xlu0 %5104, %v1423_v62   ;;  %v5175_v62 = vld [vmem:[%s8365_s0 + $0x100] sm:$0xff] }
 0x2f2   :  { %1539 = vperm.xlu0 %5104, %v1426_v61  }
 0x301   :  { %v880_v40 = vpop.xlane.xlu0 %879 }
 0x302   :  { %v881_v57 = vrot.slane %v880_v40, 4 }
 0x304   :  { %v882_v0 = vadd.f32 %v881_v57, %v880_v40  ;;  %v1119_v40 = vand.u32 %v1117_v13, %v1048_v45  ;;  %v1429_v45 = vsel %vm1389_vm13, 1, %v8418_v36 }
 0x306   :  { %v883_v33 = vrot.slane %v882_v0, 2  ;;  %1128 = vmatpush.bf16.msra.mxu0 %v1119_v40  ;;  %5082 = vmatpush.bf16.msra.mxu1 %v1119_v40 }
 0x307   :  { %5083 = vmatpush.bf16.msra.mxu2 %v1119_v40  ;;  %5084 = vmatpush.bf16.msra.mxu3 %v1119_v40 }
 0x308   :  { %v884_v1 = vadd.f32 %v883_v33, %v882_v0  ;;  %v1421_v0 = vsel %vm1381_vm6, 1, %v8418_v36 }
 0x309   :  { %1524 = vperm.xlu2 %5102, %v1421_v0  }
 0x30a   :  { %v885_v34 = vrot.slane %v884_v1, 1 }
 0x30c   :  { %v886_v37 = vadd.f32 %v885_v34, %v884_v1  ;;  %v6328_v34 = vld [vmem:[%s8366_s1 + $0x118] sm:$0xff] }
 0x30d   :  { %vm1385_vm8 = vcmp.gt.f32.partialorder %v6328_v34, 0.5 }
 0x30e   :  { %5087 = vpush %v886_v37  ;;  %v1425_v4 = vsel %vm1385_vm8, 1, %v8418_v36 }
 0x311   :  { %1536 = vperm.xlu2 %5102, %v1425_v4  }
 0x319   :  { %1548 = vperm.xlu2 %5102, %v1429_v45  }
 0x33f   :  { %s5088_s24 = spop %5087 }
 0x340   :  { %v888_v29 = vstv %s5088_s24 }
 0x341   :  { %v889_v56 = vmul.f32 0.007142857, %v888_v29 }
 0x343   :  { %v891_v57 = vadd.f32 1e-05, %v889_v56  ;;  %v6361_v56 = vld [vmem:[%s8366_s1 + $0x128] sm:$0xff]  ;;  %s5232_s1 = smov 16  }
 0x344   :  { %vm1387_vm1 = vcmp.gt.f32.partialorder %v6361_v56, 0.5 }
 0x345   :  { %5111 = vrsqrt.f32 %v891_v57  ;;  %vm898_vm11 = vweird.f32 %v891_v57 }
 0x34b   :  { %v5112_v33 = vpop.eup %5111 }
 0x34c   :  { %v893_v1 = vmul.f32 %v5112_v33, %v891_v57  ;;  %vm899_vm10 = vweird.f32 %v5112_v33  ;;  %v5171_v57 = vld [vmem:[%s8365_s0 + $0xc0] sm:$0xff] }
 0x34d   :  { %vm900_vm12 = vmor %vm898_vm11, %vm899_vm10 }
 0x34e   :  { %v894_v8 = vmul.f32 %v5112_v33, %v893_v1  ;;  %v5173_v1 = vld [vmem:[%s8365_s0 + $0xd0] sm:$0xff] }
 0x350   :  { %v895_v37 = vmul.f32 0.5, %v894_v8 }
 0x352   :  { %v896_v15 = vsub.f32 1.5, %v895_v37  ;;  %v5174_v37 = vld [vmem:[%s8365_s0 + $0xd8] sm:$0xff] }
 0x354   :  { %v897_v14 = vmul.f32 %v5112_v33, %v896_v15 }
 0x356   :  { %v901_v47 = vsel %vm900_vm12, %v5112_v33, %v897_v14  ;;  %v5176_v14 = vld [vmem:[%s8365_s0 + $0x108] sm:$0xff] }
 0x357   :  { %v6348_v28 = vmul.f32 %v902_v16, %v901_v47 }
 0x359   :  { %v905_v29 = vmul.f32 %v6348_v28, %v5875_v32  ;;  %v908_v13 = vmul.f32 %v5168_v35, %v6348_v28  ;;  %v5170_v32 = vld [vmem:[%s8365_s0 + $0x8] sm:$0xff]  ;;  %v932_v0 = vmul.f32 %v5171_v57, %v6348_v28  ;;  %v933_v33 = vmul.f32 %v5172_v19, %v6348_v28 }
 0x35a   :  { %v909_v40 = vmul.f32 %v5170_v32, %v6348_v28  ;;  %v934_v8 = vmul.f32 %v5173_v1, %v6348_v28  ;;  %v935_v4 = vmul.f32 %v5174_v37, %v6348_v28  ;;  %v940_v15 = vmul.f32 %v5175_v62, %v6348_v28 }
 0x35b   :  { %v6364_v22 = vsub.f32 %v906_v25, %v905_v29  ;;  %v941_v16 = vmul.f32 %v5176_v14, %v6348_v28 }
 0x35d   :  { %v948_v47 = vmul.f32 %v6077_v38, %v6364_v22  ;;  %v949_v45 = vmul.f32 %v6068_v48, %v6364_v22  ;;  %v972_v25 = vmul.f32 %v6232_v53, %v6364_v22  ;;  %v973_v61 = vmul.f32 %v6253_v46, %v6364_v22 }
 0x35e   :  { %v974_v29 = vmul.f32 %v6220_v2, %v6364_v22  ;;  %v975_v35 = vmul.f32 %v6297_v50, %v6364_v22  ;;  %v980_v32 = vmul.f32 %v6320_v3, %v6364_v22  ;;  %v981_v38 = vmul.f32 %v5165_v51, %v6364_v22 }
 0x35f   :  { %v988_v57 = vadd.f32 %v948_v47, %v908_v13  ;;  %v989_v19 = vadd.f32 %v949_v45, %v909_v40  ;;  %v1012_v48 = vadd.f32 %v972_v25, %v932_v0  ;;  %v1013_v1 = vadd.f32 %v973_v61, %v933_v33  ;;  %v5178_v40 = vld [vmem:[%s8365_s0 + $0x18] sm:$0xff]  ;;  %v5180_v33 = vld [vmem:[%s8365_s0 + $0xe8] sm:$0xff] }
 0x360   :  { %v1014_v37 = vadd.f32 %v974_v29, %v934_v8  ;;  %v1015_v53 = vadd.f32 %v975_v35, %v935_v4  ;;  %v1020_v62 = vadd.f32 %v980_v32, %v940_v15  ;;  %v1021_v14 = vadd.f32 %v981_v38, %v941_v16  ;;  %v5182_v16 = vld [vmem:[%s8365_s0 + $0x118] sm:$0xff]  ;;  %v5183_v38 = vld [vmem:[%s8365_s0 + $0x20] sm:$0xff] }
 0x361   :  { %v1028_v46 = vpack.c.bf16 %v989_v19, %v988_v57  ;;  %v1040_v36 = vpack.c.bf16 %v1013_v1, %v1012_v48  ;;  %v1427_v50 = vsel %vm1387_vm1, 1, %v8555_v23  ;;  %v950_v3 = vmul.f32 %v6128_v21, %v6364_v22  ;;  %v5184_v48 = vld [vmem:[%s8365_s0 + $0x28] sm:$0xff] }
 0x362   :  { %v1041_v63 = vpack.c.bf16 %v1015_v53, %v1014_v37  ;;  %v1044_v2 = vpack.c.bf16 %v1021_v14, %v1020_v62  ;;  %1542 = vperm.xlu0 %5104, %v1427_v50   ;;  %v951_v51 = vmul.f32 %v6083_v42, %v6364_v22  ;;  %v976_v13 = vmul.f32 %v6288_v20, %v6364_v22  ;;  %v5186_v53 = vld [vmem:[%s8365_s0 + $0xf8] sm:$0xff] }
 0x363   :  { %4746 = vmatmul.msk.bf16.vlgmr.msra.gmra.mxu0 %vm1053_vm15, %v1028_v46  ;;  %4758 = vmatmul.msk.bf16.vlgmr.msra.gmra.mxu1 %vm1053_vm15, %v1040_v36  ;;  %v977_v23 = vmul.f32 %v6303_v26, %v6364_v22  ;;  %v5177_v36 = vld [vmem:[%s8365_s0 + $0x10] sm:$0xff]  ;;  %v911_v21 = vmul.f32 %v5178_v40, %v6348_v28  ;;  %v982_v42 = vmul.f32 %v6262_v52, %v6364_v22  ;;  %v5179_v26 = vld [vmem:[%s8365_s0 + $0xe0] sm:$0xff] }
 0x364   :  { %4759 = vmatmul.msk.bf16.vlgmr.msra.gmra.mxu2 %vm1053_vm15, %v1041_v63  ;;  %4762 = vmatmul.msk.bf16.vlgmr.msra.gmra.mxu3 %vm1053_vm15, %v1044_v2  ;;  %v910_v63 = vmul.f32 %v5177_v36, %v6348_v28  ;;  %v983_v20 = vmul.f32 %v6328_v34, %v6364_v22  ;;  %v936_v0 = vmul.f32 %v5179_v26, %v6348_v28  ;;  %v5181_v52 = vld [vmem:[%s8365_s0 + $0x110] sm:$0xff] }
 0x365   :  { %v937_v8 = vmul.f32 %v5180_v33, %v6348_v28  ;;  %v991_v15 = vadd.f32 %v951_v51, %v911_v21  ;;  %v942_v34 = vmul.f32 %v5181_v52, %v6348_v28  ;;  %v943_v47 = vmul.f32 %v5182_v16, %v6348_v28  ;;  %v5187_v51 = vld [vmem:[%s8365_s0 + $0x120] sm:$0xff]  ;;  %v5190_v21 = vld [vmem:[%s8365_s0 + $0x48] sm:$0xff] }
 0x366   :  { %v990_v4 = vadd.f32 %v950_v3, %v910_v63  ;;  %v1016_v45 = vadd.f32 %v976_v13, %v936_v0  ;;  %v952_v35 = vmul.f32 %v6142_v24, %v6364_v22  ;;  %v953_v32 = vmul.f32 %v6094_v6, %v6364_v22  ;;  %v5185_v24 = vld [vmem:[%s8365_s0 + $0xf0] sm:$0xff]  ;;  %v5194_v16 = vld [vmem:[%s8365_s0 + $0x68] sm:$0xff] }
 0x367   :  { %v1017_v25 = vadd.f32 %v977_v23, %v937_v8  ;;  %v1022_v61 = vadd.f32 %v982_v42, %v942_v34  ;;  %v1023_v29 = vadd.f32 %v983_v20, %v943_v47  ;;  %v912_v57 = vmul.f32 %v5183_v38, %v6348_v28  ;;  %v5188_v23 = vld [vmem:[%s8365_s0 + $0x40] sm:$0xff]  ;;  %v5192_v8 = vld [vmem:[%s8365_s0 + $0x58] sm:$0xff] }
 0x368   :  { %v1029_v19 = vpack.c.bf16 %v991_v15, %v990_v4  ;;  %v913_v1 = vmul.f32 %v5184_v48, %v6348_v28  ;;  %v938_v6 = vmul.f32 %v5185_v24, %v6348_v28  ;;  %v939_v62 = vmul.f32 %v5186_v53, %v6348_v28 }
 0x369   :  { %v1042_v37 = vpack.c.bf16 %v1017_v25, %v1016_v45  ;;  %v978_v14 = vmul.f32 %v6241_v9, %v6364_v22  ;;  %v1045_v46 = vpack.c.bf16 %v1023_v29, %v1022_v61  ;;  %v6474_v2 = vadd.f32 %v952_v35, %v912_v57  ;;  %v5195_v35 = vld [vmem:[%s8365_s0 + $0x70] sm:$0xff] }
 0x36a   :  { %v6476_v50 = vadd.f32 %v953_v32, %v913_v1  ;;  %v979_v3 = vmul.f32 %v6314_v43, %v6364_v22  ;;  %v944_v13 = vmul.f32 %v5187_v51, %v6348_v28  ;;  %v916_v9 = vmul.f32 %v5188_v23, %v6348_v28  ;;  %v5189_v43 = vld [vmem:[%s8365_s0 + $0x128] sm:$0xff]  ;;  %v5199_v51 = vld [vmem:[%s8365_s0 + $0x90] sm:$0xff] }
 0x36b   :  { %v956_v36 = vmul.f32 %v6184_v30, %v6364_v22  ;;  %v957_v63 = vmul.f32 %v6114_v17, %v6364_v22  ;;  %v6496_v40 = vmul.f32 %v5189_v43, %v6348_v28  ;;  %v917_v42 = vmul.f32 %v5190_v21, %v6348_v28  ;;  %v5191_v30 = vld [vmem:[%s8365_s0 + $0x50] sm:$0xff] }
 0x36c   :  { %v918_v20 = vmul.f32 %v5191_v30, %v6348_v28  ;;  %v958_v17 = vmul.f32 %v6205_v31, %v6364_v22  ;;  %v6508_v26 = vadd.f32 %v978_v14, %v938_v6  ;;  %v984_v0 = vmul.f32 %v6345_v59, %v6364_v22  ;;  %v5193_v59 = vld [vmem:[%s8365_s0 + $0x60] sm:$0xff]  ;;  %v5198_v6 = vld [vmem:[%s8365_s0 + $0x88] sm:$0xff] }
 0x36d   :  { %v6512_v33 = vadd.f32 %v956_v36, %v916_v9  ;;  %v919_v4 = vmul.f32 %v5192_v8, %v6348_v28  ;;  %v6519_v15 = vadd.f32 %v957_v63, %v917_v42  ;;  %v959_v31 = vmul.f32 %v6150_v12, %v6364_v22 }
 0x36e   :  { %v6523_v52 = vadd.f32 %v958_v17, %v918_v20  ;;  %v920_v34 = vmul.f32 %v5193_v59, %v6348_v28  ;;  %v921_v47 = vmul.f32 %v5194_v16, %v6348_v28  ;;  %v960_v12 = vmul.f32 %v6122_v18, %v6364_v22  ;;  %v5196_v18 = vld [vmem:[%s8365_s0 + $0x78] sm:$0xff]  ;;  %v5202_v20 = vld [vmem:[%s8365_s0 + $0xa8] sm:$0xff] }
 0x36f   :  { %v961_v45 = vmul.f32 %v6226_v7, %v6364_v22  ;;  %v1019_v25 = vadd.f32 %v979_v3, %v939_v62  ;;  %v1032_v61 = vpack.c.bf16 %v6519_v15, %v6512_v33  ;;  %v6541_v29 = vadd.f32 %v959_v31, %v919_v4  ;;  %v5203_v31 = vld [vmem:[%s8365_s0 + $0xb0] sm:$0xff] }
 0x370   :  { %v922_v32 = vmul.f32 %v5195_v35, %v6348_v28  ;;  %v6547_v38 = vadd.f32 %v960_v12, %v920_v34  ;;  %v923_v7 = vmul.f32 %v5196_v18, %v6348_v28  ;;  %v963_v1 = vmul.f32 %v6247_v10, %v6364_v22  ;;  %v5204_v34 = vld [vmem:[%s8365_s0 + $0xb8] sm:$0xff] }
 0x371   :  { %v6549_v57 = vadd.f32 %v961_v45, %v921_v47  ;;  %v1033_v48 = vpack.c.bf16 %v6541_v29, %v6523_v52  ;;  %v925_v53 = vmul.f32 %v5198_v6, %v6348_v28  ;;  %v964_v10 = vmul.f32 %v6157_v27, %v6364_v22  ;;  %v5205_v6 = vld [vmem:[%s8365_s0 + $0x30] sm:$0xff] }
 0x372   :  { %v965_v14 = vmul.f32 %v6169_v41, %v6364_v22  ;;  %v6579_v3 = vadd.f32 %v963_v1, %v923_v7  ;;  %v926_v23 = vmul.f32 %v5199_v51, %v6348_v28  ;;  %v966_v9 = vmul.f32 %v6178_v60, %v6364_v22  ;;  %v5200_v41 = vld [vmem:[%s8365_s0 + $0x98] sm:$0xff]  ;;  %v5201_v60 = vld [vmem:[%s8365_s0 + $0xa0] sm:$0xff]  ;;  %v6644_v7 = vpop.permute.xlu1 %1434 }
 0x373   :  { %4747 = vmatmul.msk.bf16.gmra.mxu0 %vm1053_vm15, %v1029_v19  ;;  %v962_v19 = vmul.f32 %v6136_v44, %v6364_v22  ;;  %v1034_v44 = vpack.c.bf16 %v6549_v57, %v6547_v38  ;;  %v1024_v36 = vadd.f32 %v984_v0, %v944_v13  ;;  %v967_v21 = vmul.f32 %v6268_v11, %v6364_v22 }
 0x374   :  { %4760 = vmatmul.msk.bf16.gmra.mxu2 %vm1053_vm15, %v1042_v37  ;;  %4763 = vmatmul.msk.bf16.gmra.mxu3 %vm1053_vm15, %v1045_v46  ;;  %v5197_v37 = vld [vmem:[%s8365_s0 + $0x80] sm:$0xff]  ;;  %v985_v46 = vmul.f32 %v6361_v56, %v6364_v22  ;;  %v6589_v27 = vadd.f32 %v965_v14, %v925_v53  ;;  %v927_v56 = vmul.f32 %v5200_v41, %v6348_v28  ;;  %v5207_v14 = vld [vmem:[%s8365_s0 + $0x130] sm:$0xff]  ;;  %v8421_v33 = vmov 0.0  }
 0x375   :  { %v924_v24 = vmul.f32 %v5197_v37, %v6348_v28  ;;  %v6571_v62 = vadd.f32 %v962_v19, %v922_v32  ;;  %v6599_v42 = vadd.f32 %v966_v9, %v926_v23  ;;  %v928_v13 = vmul.f32 %v5201_v60, %v6348_v28  ;;  %v8557_v37 = vld [vmem:[#allocation14_spill] sm:$0xff]  ;;  %62 = vst.msk [vmem:[#allocation2] sm:$0xff] %vm61_vm2, %v8421_v33 }
 0x376   :  { %v929_v17 = vmul.f32 %v5202_v20, %v6348_v28  ;;  %v968_v11 = vmul.f32 %v6190_v58, %v6364_v22  ;;  %v969_v0 = vmul.f32 %v6211_v39, %v6364_v22  ;;  %v1025_v8 = vadd.f32 %v985_v46, %v6496_v40  ;;  %v5208_v46 = vld [vmem:[%s8365_s0 + $0x138] sm:$0xff]  ;;  %v6686_v20 = vpop.permute.xlu0 %1464  ;;  %63 = vst.msk [vmem:[#allocation2 + $0x8] sm:$0xff] %vm61_vm2, %v8421_v33 }
 0x377   :  { %v6587_v63 = vadd.f32 %v964_v10, %v924_v24  ;;  %v1035_v43 = vpack.c.bf16 %v6579_v3, %v6571_v62  ;;  %v6616_v4 = vadd.f32 %v967_v21, %v927_v56  ;;  %v930_v59 = vmul.f32 %v5203_v31, %v6348_v28  ;;  %64 = vst.msk [vmem:[#allocation2 + $0x10] sm:$0xff] %vm61_vm2, %v8421_v33 }
 0x378   :  { %v931_v16 = vmul.f32 %v5204_v34, %v6348_v28  ;;  %v6626_v58 = vadd.f32 %v968_v11, %v928_v13  ;;  %v6628_v47 = vadd.f32 %v969_v0, %v929_v17  ;;  %v970_v39 = vmul.f32 %v6199_v5, %v6364_v22  ;;  %65 = vst.msk [vmem:[#allocation2 + $0x18] sm:$0xff] %vm61_vm2, %v8421_v33 }
 0x379   :  { %v1036_v30 = vpack.c.bf16 %v6589_v27, %v6587_v63  ;;  %v971_v40 = vmul.f32 %v6282_v49, %v6364_v22  ;;  %v1037_v12 = vpack.c.bf16 %v6616_v4, %v6599_v42  ;;  %v1030_v18 = vpack.c.bf16 %v6476_v50, %v6474_v2  ;;  %v6656_v50 = vpop.permute.xlu2 %1431  ;;  %66 = vst.msk [vmem:[#allocation2 + $0x20] sm:$0xff] %vm61_vm2, %v8421_v33 }
 0x37a   :  { %v1038_v45 = vpack.c.bf16 %v6628_v47, %v6626_v58  ;;  %v6638_v35 = vadd.f32 %v970_v39, %v930_v59  ;;  %v1043_v5 = vpack.c.bf16 %v1019_v25, %v6508_v26  ;;  %v1046_v19 = vpack.c.bf16 %v1025_v8, %v1024_v36  ;;  %v8556_v26 = vld [vmem:[#allocation44_spill] sm:$0xff]  ;;  %v6670_v10 = vpop.permute.xlu1 %1440  ;;  %67 = vst.msk [vmem:[#allocation2 + $0x28] sm:$0xff] %vm61_vm2, %v8421_v33 }
 0x37b   :  { %v6640_v32 = vadd.f32 %v971_v40, %v931_v16  ;;  %v954_v1 = vmul.f32 %v6163_v55, %v6364_v22  ;;  %v955_v2 = vmul.f32 %v6104_v54, %v6364_v22  ;;  %v986_v25 = vmul.f32 %v8556_v26, %v6364_v22  ;;  %v5206_v55 = vld [vmem:[%s8365_s0 + $0x38] sm:$0xff]  ;;  %68 = vst.msk [vmem:[#allocation2 + $0x30] sm:$0xff] %vm61_vm2, %v8421_v33 }
 0x37c   :  { %v987_v24 = vmul.f32 %v8557_v37, %v6364_v22  ;;  %v914_v53 = vmul.f32 %v5205_v6, %v6348_v28  ;;  %v915_v54 = vmul.f32 %v5206_v55, %v6348_v28  ;;  %v946_v22 = vmul.f32 %v5207_v14, %v6348_v28  ;;  %69 = vst.msk [vmem:[#allocation2 + $0x38] sm:$0xff] %vm61_vm2, %v8421_v33 }
 0x37d   :  { %v1039_v49 = vpack.c.bf16 %v6640_v32, %v6638_v35  ;;  %v947_v51 = vmul.f32 %v5208_v46, %v6348_v28  ;;  %70 = vst.msk [vmem:[#allocation2 + $0x40] sm:$0xff] %vm61_vm2, %v8421_v33  ;;  %vm1550_vm5 = vcmp.eq.s32.totalorder %v6656_v50, 1  ;;  %vm1551_vm7 = vcmp.eq.s32.totalorder %v6644_v7, 1 }
 0x37e   :  { %v994_v23 = vadd.f32 %v954_v1, %v914_v53  ;;  %v995_v9 = vadd.f32 %v955_v2, %v915_v54  ;;  %v1026_v36 = vadd.f32 %v986_v25, %v946_v22  ;;  %v6692_v28 = vpop.permute.xlu0 %1482  ;;  %71 = vst.msk [vmem:[#allocation2 + $0x48] sm:$0xff] %vm61_vm2, %v8421_v33 }
 0x37f   :  { %v1027_v41 = vadd.f32 %v987_v24, %v947_v51  ;;  %72 = vst.msk [vmem:[#allocation2 + $0x50] sm:$0xff] %vm61_vm2, %v8421_v33 }
 0x380   :  { %v1031_v56 = vpack.c.bf16 %v995_v9, %v994_v23  ;;  %73 = vst.msk [vmem:[#allocation2 + $0x58] sm:$0xff] %vm61_vm2, %v8421_v33 }
 0x381   :  { %v1047_v21 = vpack.c.bf16 %v1027_v41, %v1026_v36  ;;  %v6681_v60 = vpop.permute.xlu2 %1437  ;;  %74 = vst.msk [vmem:[#allocation2 + $0x60] sm:$0xff] %vm61_vm2, %v8421_v33 }
 0x382   :  { %v6684_v13 = vpop.permute.xlu1 %1446  ;;  %75 = vst.msk [vmem:[#allocation2 + $0x68] sm:$0xff] %vm61_vm2, %v8421_v33 }
 0x383   :  { %4748 = vmatmul.msk.bf16.gmra.mxu0 %vm1053_vm15, %v1030_v18  ;;  %76 = vst.msk [vmem:[#allocation2 + $0x70] sm:$0xff] %vm61_vm2, %v8421_v33 }
 0x384   :  { %4761 = vmatmul.msk.bf16.gmra.mxu2 %vm1053_vm15, %v1043_v5  ;;  %4764 = vmatmul.msk.bf16.gmra.mxu3 %vm1053_vm15, %v1046_v19  ;;  %77 = vst.msk [vmem:[#allocation2 + $0x78] sm:$0xff] %vm61_vm2, %v8421_v33 }
 0x385   :  { %78 = vst.msk [vmem:[#allocation2 + $0x80] sm:$0xff] %vm61_vm2, %v8421_v33 }
 0x386   :  { %v6702_v31 = vpop.permute.xlu0 %1491  ;;  %79 = vst.msk [vmem:[#allocation2 + $0x88] sm:$0xff] %vm61_vm2, %v8421_v33 }
 0x387   :  { %80 = vst.msk [vmem:[#allocation2 + $0x90] sm:$0xff] %vm61_vm2, %v8421_v33 }
 0x388   :  { %81 = vst.msk [vmem:[#allocation2 + $0x98] sm:$0xff] %vm61_vm2, %v8421_v33 }
 0x389   :  { %v6688_v17 = vpop.permute.xlu2 %1443  ;;  %82 = vst.msk [vmem:[#allocation2 + $0xa0] sm:$0xff] %vm61_vm2, %v8421_v33 }
 0x38a   :  { %v6690_v11 = vpop.permute.xlu1 %1452  ;;  %83 = vst.msk [vmem:[#allocation2 + $0xa8] sm:$0xff] %vm61_vm2, %v8421_v33 }
 0x38b   :  { %84 = vst.msk [vmem:[#allocation2 + $0xb0] sm:$0xff] %vm61_vm2, %v8421_v33 }
 0x38c   :  { %85 = vst.msk [vmem:[#allocation2 + $0xb8] sm:$0xff] %vm61_vm2, %v8421_v33 }
 0x38d   :  { %86 = vst.msk [vmem:[#allocation2 + $0xc0] sm:$0xff] %vm61_vm2, %v8421_v33 }
 0x38e   :  { %v6712_v16 = vpop.permute.xlu0 %1494  ;;  %87 = vst.msk [vmem:[#allocation2 + $0xc8] sm:$0xff] %vm61_vm2, %v8421_v33 }
 0x38f   :  { %88 = vst.msk [vmem:[#allocation2 + $0xd0] sm:$0xff] %vm61_vm2, %v8421_v33 }
 0x390   :  { %89 = vst.msk [vmem:[#allocation2 + $0xd8] sm:$0xff] %vm61_vm2, %v8421_v33 }
 0x391   :  { %v6698_v0 = vpop.permute.xlu2 %1449  ;;  %90 = vst.msk [vmem:[#allocation2 + $0xe0] sm:$0xff] %vm61_vm2, %v8421_v33 }
 0x392   :  { %v6700_v8 = vpop.permute.xlu1 %1458  ;;  %91 = vst.msk [vmem:[#allocation2 + $0xe8] sm:$0xff] %vm61_vm2, %v8421_v33 }
 0x393   :  { %4749 = vmatmul.msk.bf16.gmra.mxu0 %vm1053_vm15, %v1031_v56  ;;  %92 = vst.msk [vmem:[#allocation2 + $0xf0] sm:$0xff] %vm61_vm2, %v8421_v33 }
 0x394   :  { %4765 = vmatmul.msk.bf16.gmra.mxu3 %vm1053_vm15, %v1047_v21  ;;  %93 = vst.msk [vmem:[#allocation2 + $0xf8] sm:$0xff] %vm61_vm2, %v8421_v33 }
 0x395   :  { %94 = vst.msk [vmem:[#allocation2 + $0x100] sm:$0xff] %vm61_vm2, %v8421_v33 }
 0x396   :  { %95 = vst.msk [vmem:[#allocation2 + $0x108] sm:$0xff] %vm61_vm2, %v8421_v33 }
 0x397   :  { %96 = vst.msk [vmem:[#allocation2 + $0x110] sm:$0xff] %vm61_vm2, %v8421_v33 }
 0x398   :  { %97 = vst.msk [vmem:[#allocation2 + $0x118] sm:$0xff] %vm61_vm2, %v8421_v33 }
 0x399   :  { %v6704_v59 = vpop.permute.xlu2 %1455  ;;  %98 = vst.msk [vmem:[#allocation2 + $0x120] sm:$0xff] %vm61_vm2, %v8421_v33 }
 0x39a   :  { %v6710_v34 = vpop.permute.xlu1 %1467  ;;  %99 = vst.msk [vmem:[#allocation2 + $0x128] sm:$0xff] %vm61_vm2, %v8421_v33 }
 0x39b   :  { %100 = vst.msk [vmem:[#allocation2 + $0x130] sm:$0xff] %vm61_vm2, %v8421_v33 }
 0x39c   :  { %101 = vst.msk [vmem:[#allocation2 + $0x138] sm:$0xff] %vm61_vm2, %v8421_v33 }
 0x39d   :  { %102 = vst.msk [vmem:[#allocation2 + $0x140] sm:$0xff] %vm61_vm2, %v8421_v33 }
 0x3a1   :  { %v6720_v15 = vpop.permute.xlu2 %1461 }
 0x3a2   :  { %v6726_v52 = vpop.permute.xlu1 %1473 }
 0x3a3   :  { %4750 = vmatmul.msk.bf16.gmra.mxu0 %vm1053_vm15, %v1032_v61  ;;  %v6734_v61 = vpop.permute.xlu0 %1503 }
 0x3a4   :  { %vm1574_vm6 = vcmp.eq.s32.totalorder %v6734_v61, 1 }
 0x3a9   :  { %v6750_v29 = vpop.permute.xlu2 %1470 }
 0x3aa   :  { %v6756_v38 = vpop.permute.xlu1 %1479 }
 0x3ab   :  { %v6764_v57 = vpop.permute.xlu0 %1506 }
 0x3ac   :  { %vm1575_vm13 = vcmp.eq.s32.totalorder %v6764_v57, 1 }
 0x3b3   :  { %4751 = vmatmul.msk.bf16.gmra.mxu0 %vm1053_vm15, %v1033_v48  ;;  %v6776_v48 = vpop.permute.xlu2 %1476  ;;  %v6794_v39 = vpop.permute.xlu0 %1515 }
 0x3bb   :  { %v6806_v62 = vpop.permute.xlu2 %1488  ;;  %v6825_v40 = vpop.permute.xlu0 %1518 }
 0x3c3   :  { %4752 = vmatmul.msk.bf16.gmra.mxu0 %vm1053_vm15, %v1034_v44  ;;  %v6782_v44 = vpop.permute.xlu1 %1485  ;;  %v6839_v25 = vpop.permute.xlu2 %1500 }
 0x3c4   :  { %v1528_v50 = vpop.permute.xlu0 %1527 }
 0x3c5   :  { %vm1582_vm14 = vcmp.eq.s32.totalorder %v1528_v50, 1 }
 0x3cb   :  { %v6812_v3 = vpop.permute.xlu1 %1497 }
 0x3d3   :  { %4753 = vmatmul.msk.bf16.gmra.mxu0 %vm1053_vm15, %v1035_v43  ;;  %v6819_v43 = vld [vmem:[%s8369_s4] ss:$0 sm:$0xff]  ;;  %v1510_v6 = vpop.permute.xlu1 %1509 }
 0x3d4   :  { %vm1576_vm8 = vcmp.eq.s32.totalorder %v1510_v6, 1 }
 0x3e0   :  { %v1130_v18 = vpop.f32.mrf.mxu0  ;;  %v1190_v5 = vpop.f32.mrf.mxu1 }
 0x3e1   :  { %v1131_v19 = vadd.f32 %v6819_v43, %v1130_v18  ;;  %v1191_v1 = vadd.f32 %v6819_v43, %v1190_v5 }
 0x3e3   :  { %vm1230_vm3 = vcmp.gt.f32.partialorder %v1131_v19, 0.0  ;;  %v1270_v2 = vmul.f32 0.2, %v1131_v19  ;;  %vm1254_vm4 = vcmp.gt.f32.partialorder %v1191_v1, 0.0  ;;  %v1294_v26 = vmul.f32 0.2, %v1191_v1  ;;  %4754 = vmatmul.msk.bf16.gmra.mxu0 %vm1053_vm15, %v1036_v30 }
 0x3e5   :  { %v1310_v37 = vsel %vm1230_vm3, %v1131_v19, %v1270_v2  ;;  %v1334_v24 = vsel %vm1254_vm4, %v1191_v1, %v1294_v26  ;;  %v1513_v1 = vpop.permute.xlu2 %1512 }
 0x3e6   :  { %v1590_v53 = vsel %vm1550_vm5, %v1310_v37, 0.0  ;;  %v1614_v55 = vsel %vm1574_vm6, %v1334_v24, 0.0  ;;  %vm1577_vm5 = vcmp.eq.s32.totalorder %v1513_v1, 1 }
 0x3e7   :  { %1630 = vst.msk [vmem:[#allocation2] sm:$0xff] %vm61_vm2, %v1590_v53  ;;  %v1195_v54 = vpop.f32.mrf.mxu2  ;;  %v1210_v14 = vpop.f32.mrf.mxu3 }
 0x3e8   :  { %1654 = vst.msk [vmem:[#allocation2 + $0xc0] sm:$0xff] %vm61_vm2, %v1614_v55  ;;  %v1196_v63 = vadd.f32 %v6819_v43, %v1195_v54  ;;  %v1211_v27 = vadd.f32 %v6819_v43, %v1210_v14  ;;  %v1132_v30 = vpop.f32.mrf.mxu0  ;;  %v1192_v22 = vpop.f32.mrf.mxu1 }
 0x3e9   :  { %v1133_v46 = vadd.f32 %v6819_v43, %v1132_v30  ;;  %v1193_v51 = vadd.f32 %v6819_v43, %v1192_v22  ;;  %v6859_v55 = vpop.permute.xlu1 %1521 }
 0x3ea   :  { %vm1256_vm9 = vcmp.gt.f32.partialorder %v1196_v63, 0.0  ;;  %v1296_v23 = vmul.f32 0.2, %v1196_v63  ;;  %vm1262_vm10 = vcmp.gt.f32.partialorder %v1211_v27, 0.0  ;;  %v1302_v9 = vmul.f32 0.2, %v1211_v27 }
 0x3eb   :  { %vm1231_vm11 = vcmp.gt.f32.partialorder %v1133_v46, 0.0  ;;  %v1271_v36 = vmul.f32 0.2, %v1133_v46  ;;  %vm1255_vm12 = vcmp.gt.f32.partialorder %v1193_v51, 0.0  ;;  %v1295_v41 = vmul.f32 0.2, %v1193_v51 }
 0x3ec   :  { %v1336_v56 = vsel %vm1256_vm9, %v1196_v63, %v1296_v23  ;;  %v1342_v21 = vsel %vm1262_vm10, %v1211_v27, %v1302_v9  ;;  %v1531_v63 = vpop.permute.xlu0 %1530  ;;  %vm1553_vm10 = vcmp.eq.s32.totalorder %v6670_v10, 1 }
 0x3ed   :  { %v1616_v61 = vsel %vm1576_vm8, %v1336_v56, 0.0  ;;  %v1622_v18 = vsel %vm1582_vm14, %v1342_v21, 0.0  ;;  %v1311_v5 = vsel %vm1231_vm11, %v1133_v46, %v1271_v36  ;;  %v1335_v19 = vsel %vm1255_vm12, %v1193_v51, %v1295_v41 }
 0x3ee   :  { %1656 = vst.msk [vmem:[#allocation2 + $0xd0] sm:$0xff] %vm61_vm2, %v1616_v61  ;;  %v1591_v2 = vsel %vm1551_vm7, %v1311_v5, 0.0  ;;  %v1615_v26 = vsel %vm1575_vm13, %v1335_v19, 0.0  ;;  %vm1583_vm6 = vcmp.eq.s32.totalorder %v1531_v63, 1  ;;  %vm1552_vm7 = vcmp.eq.s32.totalorder %v6681_v60, 1  ;;  %v6873_v61 = vpop.permute.xlu2 %1524 }
 0x3ef   :  { %1662 = vst.msk [vmem:[#allocation2 + $0x100] sm:$0xff] %vm61_vm2, %v1622_v18  ;;  %v1197_v37 = vpop.f32.mrf.mxu2  ;;  %v1212_v24 = vpop.f32.mrf.mxu3  ;;  %vm1578_vm13 = vcmp.eq.s32.totalorder %v6794_v39, 1  ;;  %vm1729_vm14 = vcmask 60416  }
 0x3f0   :  { %1631 = vst.msk [vmem:[#allocation2 + $0x8] sm:$0xff] %vm61_vm2, %v1591_v2  ;;  %v1198_v57 = vadd.f32 %v6819_v43, %v1197_v37  ;;  %v1213_v6 = vadd.f32 %v6819_v43, %v1212_v24  ;;  %v1135_v53 = vpop.f32.mrf.mxu0 }
 0x3f1   :  { %1655 = vst.msk [vmem:[#allocation2 + $0xc8] sm:$0xff] %vm61_vm2, %v1615_v26  ;;  %v1136_v54 = vadd.f32 %v6819_v43, %v1135_v53  ;;  %v1534_v26 = vpop.permute.xlu1 %1533 }
 0x3f2   :  { %vm1257_vm1 = vcmp.gt.f32.partialorder %v1198_v57, 0.0  ;;  %v1297_v7 = vmul.f32 0.2, %v1198_v57  ;;  %vm1263_vm3 = vcmp.gt.f32.partialorder %v1213_v6, 0.0  ;;  %v1303_v14 = vmul.f32 0.2, %v1213_v6 }
 0x3f3   :  { %vm1232_vm4 = vcmp.gt.f32.partialorder %v1136_v54, 0.0  ;;  %v1272_v27 = vmul.f32 0.2, %v1136_v54  ;;  %4755 = vmatmul.msk.bf16.gmra.mxu0 %vm1053_vm15, %v1037_v12  ;;  %vm1584_vm12 = vcmp.eq.s32.totalorder %v1534_v26, 1 }
 0x3f4   :  { %v1337_v30 = vsel %vm1257_vm1, %v1198_v57, %v1297_v7  ;;  %v1343_v22 = vsel %vm1263_vm3, %v1213_v6, %v1303_v14 }
 0x3f5   :  { %v1617_v50 = vsel %vm1577_vm5, %v1337_v30, 0.0  ;;  %v1623_v46 = vsel %vm1583_vm6, %v1343_v22, 0.0  ;;  %v1312_v51 = vsel %vm1232_vm4, %v1136_v54, %v1272_v27  ;;  %vm1554_vm4 = vcmp.eq.s32.totalorder %v6688_v17, 1 }
 0x3f6   :  { %1657 = vst.msk [vmem:[#allocation2 + $0xd8] sm:$0xff] %vm61_vm2, %v1617_v50  ;;  %v1592_v23 = vsel %vm1552_vm7, %v1312_v51, 0.0  ;;  %vm1579_vm7 = vcmp.eq.s32.totalorder %v6825_v40, 1 }
 0x3f7   :  { %1663 = vst.msk [vmem:[#allocation2 + $0x108] sm:$0xff] %vm61_vm2, %v1623_v46  ;;  %v1200_v9 = vpop.f32.mrf.mxu2  ;;  %v1215_v36 = vpop.f32.mrf.mxu3  ;;  %v1751_v41 = vld [vmem:[#allocation2 + $0x1] ss:$2 sm:$0xff]  ;;  %v1670_v24 = vld [vmem:[#allocation2] ss:$2 sm:$0xff] }
 0x3f8   :  { %1632 = vst.msk [vmem:[#allocation2 + $0x10] sm:$0xff] %vm61_vm2, %v1592_v23  ;;  %v1201_v42 = vadd.f32 %v6819_v43, %v1200_v9  ;;  %v1216_v4 = vadd.f32 %v6819_v43, %v1215_v36  ;;  %v1137_v12 = vpop.f32.mrf.mxu0  ;;  %v2097_v56 = vld [vmem:[#allocation2 + $0xc3] ss:$2 sm:$0xff]  ;;  %v1790_v21 = vpack.c.bf16 %v1751_v41, %v1751_v41  ;;  %v1694_v53 = vld [vmem:[#allocation2 + $0xc0] ss:$2 sm:$0xff]  ;;  %v1709_v27 = vpack.c.bf16 %v1670_v24, %v1670_v24 }
 0x3f9   :  { %v1775_v60 = vld [vmem:[#allocation2 + $0xc1] ss:$2 sm:$0xff]  ;;  %v1138_v18 = vadd.f32 %v6819_v43, %v1137_v12  ;;  %v2124_v5 = vpack.c.bf16 %v2097_v56, %v2097_v56  ;;  %v1936_v63 = vld [vmem:[#allocation2 + $0xc2] ss:$2 sm:$0xff]  ;;  %v1721_v46 = vpack.c.bf16 %v1694_v53, %v1694_v53 }
 0x3fa   :  { %v1802_v19 = vpack.c.bf16 %v1775_v60, %v1775_v60  ;;  %vm1258_vm8 = vcmp.gt.f32.partialorder %v1201_v42, 0.0  ;;  %v1298_v1 = vmul.f32 0.2, %v1201_v42  ;;  %vm1264_vm9 = vcmp.gt.f32.partialorder %v1216_v4, 0.0  ;;  %1830 = vrot.lane.b32.xlu2 %v1790_v21, %s5230_s20  ;;  %1730 = vst.msk [vmem:[#allocation7] sm:$0xf] %vm1729_vm14, %v1709_v27  ;;  %v1537_v21 = vpop.permute.xlu2 %1536 }
 0x3fb   :  { %v1304_v2 = vmul.f32 0.2, %v1216_v4  ;;  %vm1233_vm11 = vcmp.gt.f32.partialorder %v1138_v18, 0.0  ;;  %v1273_v37 = vmul.f32 0.2, %v1138_v18  ;;  %2176 = vrot.lane.b32.xlu1 %v2124_v5, %s5231_s21  ;;  %v1963_v36 = vpack.c.bf16 %v1936_v63, %v1936_v63 }
 0x3fc   :  { %1854 = vrot.lane.b32.xlu0 %v1802_v19, %s5230_s20  ;;  %v1338_v57 = vsel %vm1258_vm8, %v1201_v42, %v1298_v1  ;;  %1742 = vst.msk [vmem:[#allocation7 + $0x30] sm:$0xf] %vm1729_vm14, %v1721_v46  ;;  %vm1585_vm6 = vcmp.eq.s32.totalorder %v1537_v21, 1 }
 0x3fd   :  { %v1344_v6 = vsel %vm1264_vm9, %v1216_v4, %v1304_v2  ;;  %v1618_v54 = vsel %vm1578_vm13, %v1338_v57, 0.0  ;;  %v1313_v14 = vsel %vm1233_vm11, %v1138_v18, %v1273_v37  ;;  %v1777_v22 = vld [vmem:[#allocation2 + $0xd1] ss:$2 sm:$0xff]  ;;  %v1696_v41 = vld [vmem:[#allocation2 + $0xd0] ss:$2 sm:$0xff] }
 0x3fe   :  { %v1624_v7 = vsel %vm1584_vm12, %v1344_v6, 0.0  ;;  %1658 = vst.msk [vmem:[#allocation2 + $0xe0] sm:$0xff] %vm61_vm2, %v1618_v54  ;;  %v1593_v30 = vsel %vm1553_vm10, %v1313_v14, 0.0  ;;  %v1803_v10 = vpack.c.bf16 %v1777_v22, %v1777_v22  ;;  %v1722_v4 = vpack.c.bf16 %v1696_v41, %v1696_v41  ;;  %v1702_v12 = vld [vmem:[#allocation2 + $0x100] ss:$2 sm:$0xff]  ;;  %v1540_v6 = vpop.permute.xlu0 %1539 }
 0x3ff   :  { %1664 = vst.msk [vmem:[#allocation2 + $0x110] sm:$0xff] %vm61_vm2, %v1624_v7  ;;  %v1202_v50 = vpop.f32.mrf.mxu2  ;;  %v1217_v39 = vpop.f32.mrf.mxu3  ;;  %v1912_v24 = vld [vmem:[#allocation2 + $0x2] ss:$2 sm:$0xff]  ;;  %v1725_v57 = vpack.c.bf16 %v1702_v12, %v1702_v12  ;;  %vm1555_vm10 = vcmp.eq.s32.totalorder %v6684_v13, 1  ;;  %vm1580_vm12 = vcmp.eq.s32.totalorder %v6859_v55, 1  ;;  %vm1586_vm13 = vcmp.eq.s32.totalorder %v1540_v6, 1 }
 0x400   :  { %1633 = vst.msk [vmem:[#allocation2 + $0x18] sm:$0xff] %vm61_vm2, %v1593_v30  ;;  %v1203_v51 = vadd.f32 %v6819_v43, %v1202_v50  ;;  %v1218_v23 = vadd.f32 %v6819_v43, %v1217_v39  ;;  %v1140_v9 = vpop.f32.mrf.mxu0  ;;  %v1951_v63 = vpack.c.bf16 %v1912_v24, %v1912_v24  ;;  %v2073_v41 = vld [vmem:[#allocation2 + $0x3] ss:$2 sm:$0xff] }
 0x401   :  { %v1141_v42 = vadd.f32 %v6819_v43, %v1140_v9  ;;  %1743 = vst.msk [vmem:[#allocation7 + $0x34] sm:$0xf] %vm1729_vm14, %v1722_v4 }
 0x402   :  { %vm1259_vm1 = vcmp.gt.f32.partialorder %v1203_v51, 0.0  ;;  %v1299_v56 = vmul.f32 0.2, %v1203_v51  ;;  %vm1265_vm3 = vcmp.gt.f32.partialorder %v1218_v23, 0.0  ;;  %v1305_v60 = vmul.f32 0.2, %v1218_v23  ;;  %2015 = vrot.lane.b32.xlu2 %v1963_v36, %s5232_s1 }
 0x403   :  { %vm1234_vm5 = vcmp.gt.f32.partialorder %v1141_v42, 0.0  ;;  %v1274_v18 = vmul.f32 0.2, %v1141_v42  ;;  %1856 = vrot.lane.b32.xlu1 %v1803_v10, %s5230_s20  ;;  %4756 = vmatmul.msk.bf16.gmra.mxu0 %vm1053_vm15, %v1038_v45  ;;  %v2234_v45 = vld [vmem:[#allocation2 + $0x4] ss:$2 sm:$0xff] }
 0x404   :  { %v1339_v5 = vsel %vm1259_vm1, %v1203_v51, %v1299_v56  ;;  %v1345_v19 = vsel %vm1265_vm3, %v1218_v23, %v1305_v60  ;;  %v2273_v17 = vpack.c.bf16 %v2234_v45, %v2234_v45  ;;  %1746 = vst.msk [vmem:[#allocation7 + $0x40] sm:$0xf] %vm1729_vm14, %v1725_v57 }
 0x405   :  { %v1619_v1 = vsel %vm1579_vm7, %v1339_v5, 0.0  ;;  %v1625_v2 = vsel %vm1585_vm6, %v1345_v19, 0.0  ;;  %v1314_v26 = vsel %vm1234_vm5, %v1141_v42, %v1274_v18  ;;  %v1938_v37 = vld [vmem:[#allocation2 + $0xd2] ss:$2 sm:$0xff]  ;;  %v2112_v19 = vpack.c.bf16 %v2073_v41, %v2073_v41  ;;  %v2099_v45 = vld [vmem:[#allocation2 + $0xd3] ss:$2 sm:$0xff] }
 0x406   :  { %1659 = vst.msk [vmem:[#allocation2 + $0xe8] sm:$0xff] %vm61_vm2, %v1619_v1  ;;  %v1594_v58 = vsel %vm1554_vm4, %v1314_v26, 0.0  ;;  %v1964_v47 = vpack.c.bf16 %v1938_v37, %v1938_v37  ;;  %v1543_v1 = vpop.permute.xlu0 %1542  ;;  %vm1556_vm4 = vcmp.eq.s32.totalorder %v6698_v0, 1  ;;  %vm1581_vm6 = vcmp.eq.s32.totalorder %v6873_v61, 1 }
 0x407   :  { %1665 = vst.msk [vmem:[#allocation2 + $0x118] sm:$0xff] %vm61_vm2, %v1625_v2  ;;  %v1205_v40 = vpop.f32.mrf.mxu2  ;;  %v1220_v53 = vpop.f32.mrf.mxu3  ;;  %v1672_v39 = vld [vmem:[#allocation2 + $0x10] ss:$2 sm:$0xff]  ;;  %v1753_v4 = vld [vmem:[#allocation2 + $0x11] ss:$2 sm:$0xff]  ;;  %vm1587_vm7 = vcmp.eq.s32.totalorder %v1543_v1, 1 }
 0x408   :  { %1634 = vst.msk [vmem:[#allocation2 + $0x20] sm:$0xff] %vm61_vm2, %v1594_v58  ;;  %v1206_v54 = vadd.f32 %v6819_v43, %v1205_v40  ;;  %v1221_v7 = vadd.f32 %v6819_v43, %v1220_v53  ;;  %2017 = vrot.lane.b32.xlu0 %v1964_v47, %s5232_s1  ;;  %v1142_v14 = vpop.f32.mrf.mxu0  ;;  %v1710_v42 = vpack.c.bf16 %v1672_v39, %v1672_v39 }
 0x409   :  { %v1143_v27 = vadd.f32 %v6819_v43, %v1142_v14  ;;  %v1791_v13 = vpack.c.bf16 %v1753_v4, %v1753_v4 }
 0x40a   :  { %vm1260_vm8 = vcmp.gt.f32.partialorder %v1206_v54, 0.0  ;;  %v1300_v30 = vmul.f32 0.2, %v1206_v54  ;;  %vm1266_vm9 = vcmp.gt.f32.partialorder %v1221_v7, 0.0  ;;  %v1306_v22 = vmul.f32 0.2, %v1221_v7  ;;  %1991 = vrot.lane.b32.xlu2 %v1951_v63, %s5232_s1 }
 0x40b   :  { %vm1235_vm11 = vcmp.gt.f32.partialorder %v1143_v27, 0.0  ;;  %v1275_v50 = vmul.f32 0.2, %v1143_v27  ;;  %2313 = vrot.lane.b32.xlu1 %v2273_v17, %s5233_s22  ;;  %1731 = vst.msk [vmem:[#allocation7 + $0x4] sm:$0xf] %vm1729_vm14, %v1710_v42  ;;  %v2125_v63 = vpack.c.bf16 %v2099_v45, %v2099_v45  ;;  %v1546_v17 = vpop.permute.xlu1 %1545 }
 0x40c   :  { %v1340_v46 = vsel %vm1260_vm8, %v1206_v54, %v1300_v30  ;;  %v1346_v51 = vsel %vm1266_vm9, %v1221_v7, %v1306_v22  ;;  %vm1588_vm9 = vcmp.eq.s32.totalorder %v1546_v17, 1 }
 0x40d   :  { %v1620_v23 = vsel %vm1580_vm12, %v1340_v46, 0.0  ;;  %v1626_v9 = vsel %vm1586_vm13, %v1346_v51, 0.0  ;;  %v1315_v36 = vsel %vm1235_vm11, %v1143_v27, %v1275_v50  ;;  %v1698_v26 = vld [vmem:[#allocation2 + $0xe0] ss:$2 sm:$0xff] }
 0x40e   :  { %1660 = vst.msk [vmem:[#allocation2 + $0xf0] sm:$0xff] %vm61_vm2, %v1620_v23  ;;  %v1595_v10 = vsel %vm1555_vm10, %v1315_v36, 0.0  ;;  %v1723_v6 = vpack.c.bf16 %v1698_v26, %v1698_v26  ;;  %v1704_v7 = vld [vmem:[#allocation2 + $0x110] ss:$2 sm:$0xff]  ;;  %vm1557_vm10 = vcmp.eq.s32.totalorder %v6690_v11, 1 }
 0x40f   :  { %1666 = vst.msk [vmem:[#allocation2 + $0x120] sm:$0xff] %vm61_vm2, %v1626_v9  ;;  %v1207_v12 = vpop.f32.mrf.mxu2  ;;  %v1222_v56 = vpop.f32.mrf.mxu3  ;;  %v2075_v60 = vld [vmem:[#allocation2 + $0x13] ss:$2 sm:$0xff]  ;;  %v1914_v32 = vld [vmem:[#allocation2 + $0x12] ss:$2 sm:$0xff]  ;;  %v1726_v27 = vpack.c.bf16 %v1704_v7, %v1704_v7 }
 0x410   :  { %1635 = vst.msk [vmem:[#allocation2 + $0x28] sm:$0xff] %vm61_vm2, %v1595_v10  ;;  %v1208_v55 = vadd.f32 %v6819_v43, %v1207_v12  ;;  %v1223_v21 = vadd.f32 %v6819_v43, %v1222_v56  ;;  %v1145_v18 = vpop.f32.mrf.mxu0  ;;  %v2113_v5 = vpack.c.bf16 %v2075_v60, %v2075_v60  ;;  %v1952_v22 = vpack.c.bf16 %v1914_v32, %v1914_v32  ;;  %v2236_v36 = vld [vmem:[#allocation2 + $0x14] ss:$2 sm:$0xff] }
 0x411   :  { %v1146_v2 = vadd.f32 %v6819_v43, %v1145_v18  ;;  %1744 = vst.msk [vmem:[#allocation7 + $0x38] sm:$0xf] %vm1729_vm14, %v1723_v6 }
 0x412   :  { %vm1261_vm1 = vcmp.gt.f32.partialorder %v1208_v55, 0.0  ;;  %v1301_v37 = vmul.f32 0.2, %v1208_v55  ;;  %vm1267_vm3 = vcmp.gt.f32.partialorder %v1223_v21, 0.0  ;;  %v1307_v24 = vmul.f32 0.2, %v1223_v21  ;;  %2154 = vrot.lane.b32.xlu0 %v2113_v5, %s5231_s21  ;;  %2152 = vrot.lane.b32.xlu2 %v2112_v19, %s5231_s21 }
 0x413   :  { %vm1236_vm5 = vcmp.gt.f32.partialorder %v1146_v2, 0.0  ;;  %v1276_v57 = vmul.f32 0.2, %v1146_v2  ;;  %1832 = vrot.lane.b32.xlu1 %v1791_v13, %s5230_s20  ;;  %4757 = vmatmul.msk.bf16.gmra.mxu0 %vm1053_vm15, %v1039_v49  ;;  %1747 = vst.msk [vmem:[#allocation7 + $0x44] sm:$0xf] %vm1729_vm14, %v1726_v27 }
 0x414   :  { %v1341_v58 = vsel %vm1261_vm1, %v1208_v55, %v1301_v37  ;;  %v1347_v47 = vsel %vm1267_vm3, %v1223_v21, %v1307_v24  ;;  %v2274_v55 = vpack.c.bf16 %v2236_v36, %v2236_v36  ;;  %v1549_v21 = vpop.permute.xlu2 %1548  ;;  %vm1558_vm1 = vcmp.eq.s32.totalorder %v6704_v59, 1 }
 0x415   :  { %v1621_v40 = vsel %vm1581_vm6, %v1341_v58, 0.0  ;;  %v1627_v53 = vsel %vm1587_vm7, %v1347_v47, 0.0  ;;  %v1316_v54 = vsel %vm1236_vm5, %v1146_v2, %v1276_v57  ;;  %vm1589_vm13 = vcmp.eq.s32.totalorder %v1549_v21, 1 }
 0x416   :  { %1661 = vst.msk [vmem:[#allocation2 + $0xf8] sm:$0xff] %vm61_vm2, %v1621_v40  ;;  %v1596_v35 = vsel %vm1556_vm4, %v1316_v54, 0.0  ;;  %vm1559_vm4 = vcmp.eq.s32.totalorder %v6700_v8, 1  ;;  %vm1560_vm6 = vcmp.eq.s32.totalorder %v6720_v15, 1 }
 0x417   :  { %1667 = vst.msk [vmem:[#allocation2 + $0x128] sm:$0xff] %vm61_vm2, %v1627_v53  ;;  %v1225_v49 = vpop.f32.mrf.mxu3  ;;  %v1674_v0 = vld [vmem:[#allocation2 + $0x20] ss:$2 sm:$0xff]  ;;  %v1755_v42 = vld [vmem:[#allocation2 + $0x21] ss:$2 sm:$0xff] }
 0x418   :  { %1636 = vst.msk [vmem:[#allocation2 + $0x30] sm:$0xff] %vm61_vm2, %v1596_v35  ;;  %v1226_v61 = vadd.f32 %v6819_v43, %v1225_v49  ;;  %v1147_v14 = vpop.f32.mrf.mxu0  ;;  %v1711_v46 = vpack.c.bf16 %v1674_v0, %v1674_v0  ;;  %v1792_v18 = vpack.c.bf16 %v1755_v42, %v1755_v42 }
 0x419   :  { %v1148_v30 = vadd.f32 %v6819_v43, %v1147_v14 }
 0x41a   :  { %vm1268_vm15 = vcmp.gt.f32.partialorder %v1226_v61, 0.0  ;;  %v1308_v50 = vmul.f32 0.2, %v1226_v61  ;;  %2178 = vrot.lane.b32.xlu2 %v2125_v63, %s5231_s21  ;;  %1732 = vst.msk [vmem:[#allocation7 + $0x8] sm:$0xf] %vm1729_vm14, %v1711_v46 }
 0x41b   :  { %vm1237_vm8 = vcmp.gt.f32.partialorder %v1148_v30, 0.0  ;;  %v1277_v39 = vmul.f32 0.2, %v1148_v30  ;;  %1993 = vrot.lane.b32.xlu1 %v1952_v22, %s5232_s1 }
 0x41c   :  { %v1348_v51 = vsel %vm1268_vm15, %v1226_v61, %v1308_v50  ;;  %vm1561_vm15 = vcmp.eq.s32.totalorder %v6686_v20, 1 }
 0x41d   :  { %v1628_v23 = vsel %vm1588_vm9, %v1348_v51, 0.0  ;;  %v1317_v9 = vsel %vm1237_vm8, %v1148_v30, %v1277_v39  ;;  %v1700_v19 = vld [vmem:[#allocation2 + $0xf0] ss:$2 sm:$0xff]  ;;  %vm1562_vm9 = vcmp.eq.s32.totalorder %v6710_v34, 1 }
 0x41e   :  { %1668 = vst.msk [vmem:[#allocation2 + $0x130] sm:$0xff] %vm61_vm2, %v1628_v23  ;;  %v1597_v41 = vsel %vm1557_vm10, %v1317_v9, 0.0  ;;  %v1724_v2 = vpack.c.bf16 %v1700_v19, %v1700_v19  ;;  %v1706_v13 = vld [vmem:[#allocation2 + $0x120] ss:$2 sm:$0xff] }
 0x41f   :  { %1637 = vst.msk [vmem:[#allocation2 + $0x38] sm:$0xff] %vm61_vm2, %v1597_v41  ;;  %v1227_v10 = vpop.f32.mrf.mxu3  ;;  %v1916_v4 = vld [vmem:[#allocation2 + $0x22] ss:$2 sm:$0xff]  ;;  %v2077_v57 = vld [vmem:[#allocation2 + $0x23] ss:$2 sm:$0xff]  ;;  %v1727_v6 = vpack.c.bf16 %v1706_v13, %v1706_v13 }
 0x420   :  { %v1228_v12 = vadd.f32 %v6819_v43, %v1227_v10  ;;  %v1150_v56 = vpop.f32.mrf.mxu0  ;;  %v1953_v60 = vpack.c.bf16 %v1916_v4, %v1916_v4  ;;  %1745 = vst.msk [vmem:[#allocation7 + $0x3c] sm:$0xf] %vm1729_vm14, %v1724_v2  ;;  %v2238_v47 = vld [vmem:[#allocation2 + $0x24] ss:$2 sm:$0xff]  ;;  %v2114_v40 = vpack.c.bf16 %v2077_v57, %v2077_v57 }
 0x421   :  { %v1151_v11 = vadd.f32 %v6819_v43, %v1150_v56  ;;  %v2275_v54 = vpack.c.bf16 %v2238_v47, %v2238_v47  ;;  %1748 = vst.msk [vmem:[#allocation7 + $0x48] sm:$0xf] %vm1729_vm14, %v1727_v6 }
 0x422   :  { %vm1269_vm11 = vcmp.gt.f32.partialorder %v1228_v12, 0.0  ;;  %v1309_v5 = vmul.f32 0.2, %v1228_v12  ;;  %1995 = vrot.lane.b32.xlu0 %v1953_v60, %s5232_s1  ;;  %2315 = vrot.lane.b32.xlu2 %v2274_v55, %s5233_s22 }
 0x423   :  { %vm1238_vm12 = vcmp.gt.f32.partialorder %v1151_v11, 0.0  ;;  %v1278_v1 = vmul.f32 0.2, %v1151_v11  ;;  %1834 = vrot.lane.b32.xlu1 %v1792_v18, %s5230_s20 }
 0x424   :  { %v1349_v26 = vsel %vm1269_vm11, %v1228_v12, %v1309_v5  ;;  %vm1563_vm11 = vcmp.eq.s32.totalorder %v6750_v29, 1 }
 0x425   :  { %v1629_v37 = vsel %vm1589_vm13, %v1349_v26, 0.0  ;;  %v1318_v24 = vsel %vm1238_vm12, %v1151_v11, %v1278_v1  ;;  %vm1890_vm12 = vcmask 126016  }
 0x426   :  { %1669 = vst.msk [vmem:[#allocation2 + $0x138] sm:$0xff] %vm61_vm2, %v1629_v37  ;;  %v1598_v58 = vsel %vm1558_vm1, %v1318_v24, 0.0  ;;  %v1676_v59 = vld [vmem:[#allocation2 + $0x30] ss:$2 sm:$0xff]  ;;  %v1757_v49 = vld [vmem:[#allocation2 + $0x31] ss:$2 sm:$0xff] }
 0x427   :  { %1638 = vst.msk [vmem:[#allocation2 + $0x40] sm:$0xff] %vm61_vm2, %v1598_v58  ;;  %v1712_v35 = vpack.c.bf16 %v1676_v59, %v1676_v59  ;;  %v1793_v22 = vpack.c.bf16 %v1757_v49, %v1757_v49  ;;  %vm1564_vm1 = vcmp.eq.s32.totalorder %v6726_v52, 1 }
 0x428   :  { %v1152_v45 = vpop.f32.mrf.mxu0 }
 0x429   :  { %v1153_v53 = vadd.f32 %v6819_v43, %v1152_v45  ;;  %1733 = vst.msk [vmem:[#allocation7 + $0xc] sm:$0xf] %vm1729_vm14, %v1712_v35 }
 0x42a   :  { %2156 = vrot.lane.b32.xlu2 %v2114_v40, %s5231_s21 }
 0x42b   :  { %vm1239_vm3 = vcmp.gt.f32.partialorder %v1153_v53, 0.0  ;;  %v1279_v7 = vmul.f32 0.2, %v1153_v53  ;;  %2317 = vrot.lane.b32.xlu1 %v2275_v54, %s5233_s22 }
 0x42d   :  { %v1319_v32 = vsel %vm1239_vm3, %v1153_v53, %v1279_v7  ;;  %v1708_v0 = vld [vmem:[#allocation2 + $0x130] ss:$2 sm:$0xff] }
 0x42e   :  { %v1599_v61 = vsel %vm1559_vm4, %v1319_v32, 0.0  ;;  %v2079_v14 = vld [vmem:[#allocation2 + $0x33] ss:$2 sm:$0xff]  ;;  %v1918_v63 = vld [vmem:[#allocation2 + $0x32] ss:$2 sm:$0xff]  ;;  %v1728_v8 = vpack.c.bf16 %v1708_v0, %v1708_v0  ;;  %vm1565_vm4 = vcmp.eq.s32.totalorder %v6776_v48, 1 }
 0x42f   :  { %1639 = vst.msk [vmem:[#allocation2 + $0x48] sm:$0xff] %vm61_vm2, %v1599_v61  ;;  %v2115_v27 = vpack.c.bf16 %v2079_v14, %v2079_v14  ;;  %v1954_v17 = vpack.c.bf16 %v1918_v63, %v1918_v63  ;;  %v2240_v51 = vld [vmem:[#allocation2 + $0x34] ss:$2 sm:$0xff] }
 0x430   :  { %v1155_v30 = vpop.f32.mrf.mxu0  ;;  %1749 = vst.msk [vmem:[#allocation7 + $0x4c] sm:$0xf] %vm1729_vm14, %v1728_v8  ;;  %v2276_v42 = vpack.c.bf16 %v2240_v51, %v2240_v51 }
 0x431   :  { %v1156_v50 = vadd.f32 %v6819_v43, %v1155_v30  ;;  %2158 = vrot.lane.b32.xlu0 %v2115_v27, %s5231_s21 }
 0x432   :  { %1836 = vrot.lane.b32.xlu2 %v1793_v22, %s5230_s20 }
 0x433   :  { %vm1240_vm5 = vcmp.gt.f32.partialorder %v1156_v50, 0.0  ;;  %v1280_v39 = vmul.f32 0.2, %v1156_v50  ;;  %1997 = vrot.lane.b32.xlu1 %v1954_v17, %s5232_s1 }
 0x435   :  { %v1320_v46 = vsel %vm1240_vm5, %v1156_v50, %v1280_v39  ;;  %vm2051_vm5 = vcmask 191616  }
 0x436   :  { %v1600_v23 = vsel %vm1560_vm6, %v1320_v46, 0.0  ;;  %v1759_v9 = vld [vmem:[#allocation2 + $0x41] ss:$2 sm:$0xff]  ;;  %v1678_v4 = vld [vmem:[#allocation2 + $0x40] ss:$2 sm:$0xff] }
 0x437   :  { %1640 = vst.msk [vmem:[#allocation2 + $0x50] sm:$0xff] %vm61_vm2, %v1600_v23  ;;  %v1794_v36 = vpack.c.bf16 %v1759_v9, %v1759_v9  ;;  %v1713_v56 = vpack.c.bf16 %v1678_v4, %v1678_v4 }
 0x438   :  { %v1157_v41 = vpop.f32.mrf.mxu0 }
 0x439   :  { %v1158_v10 = vadd.f32 %v6819_v43, %v1157_v41  ;;  %1734 = vst.msk [vmem:[#allocation7 + $0x10] sm:$0xf] %vm1729_vm14, %v1713_v56 }
 0x43a   :  { %2319 = vrot.lane.b32.xlu2 %v2276_v42, %s5233_s22 }
 0x43b   :  { %vm1241_vm7 = vcmp.gt.f32.partialorder %v1158_v10, 0.0  ;;  %v1281_v12 = vmul.f32 0.2, %v1158_v10  ;;  %1838 = vrot.lane.b32.xlu1 %v1794_v36, %s5230_s20 }
 0x43d   :  { %v1321_v15 = vsel %vm1241_vm7, %v1158_v10, %v1281_v12  ;;  %vm1566_vm7 = vcmp.eq.s32.totalorder %v6756_v38, 1 }
 0x43e   :  { %v1601_v60 = vsel %vm1561_vm15, %v1321_v15, 0.0  ;;  %v1920_v55 = vld [vmem:[#allocation2 + $0x42] ss:$2 sm:$0xff]  ;;  %v2081_v5 = vld [vmem:[#allocation2 + $0x43] ss:$2 sm:$0xff]  ;;  %vm2212_vm15 = vcmask 257216  }
 0x43f   :  { %v2242_v21 = vld [vmem:[#allocation2 + $0x44] ss:$2 sm:$0xff]  ;;  %1641 = vst.msk [vmem:[#allocation2 + $0x58] sm:$0xff] %vm61_vm2, %v1601_v60  ;;  %v1955_v11 = vpack.c.bf16 %v1920_v55, %v1920_v55  ;;  %v2116_v1 = vpack.c.bf16 %v2081_v5, %v2081_v5 }
 0x440   :  { %v2277_v18 = vpack.c.bf16 %v2242_v21, %v2242_v21  ;;  %v1160_v19 = vpop.f32.mrf.mxu0 }
 0x441   :  { %v1161_v2 = vadd.f32 %v6819_v43, %v1160_v19  ;;  %1999 = vrot.lane.b32.xlu0 %v1955_v11, %s5232_s1 }
 0x442   :  { %2160 = vrot.lane.b32.xlu2 %v2116_v1, %s5231_s21 }
 0x443   :  { %vm1242_vm8 = vcmp.gt.f32.partialorder %v1161_v2, 0.0  ;;  %v1282_v20 = vmul.f32 0.2, %v1161_v2  ;;  %2321 = vrot.lane.b32.xlu1 %v2277_v18, %s5233_s22 }
 0x445   :  { %v1322_v13 = vsel %vm1242_vm8, %v1161_v2, %v1282_v20 }
 0x446   :  { %v1602_v26 = vsel %vm1562_vm9, %v1322_v13, 0.0  ;;  %v1761_v37 = vld [vmem:[#allocation2 + $0x51] ss:$2 sm:$0xff]  ;;  %v1680_v58 = vld [vmem:[#allocation2 + $0x50] ss:$2 sm:$0xff]  ;;  %vm1567_vm9 = vcmp.eq.s32.totalorder %v6692_v28, 1 }
 0x447   :  { %1642 = vst.msk [vmem:[#allocation2 + $0x60] sm:$0xff] %vm61_vm2, %v1602_v26  ;;  %v1795_v24 = vpack.c.bf16 %v1761_v37, %v1761_v37  ;;  %v1714_v45 = vpack.c.bf16 %v1680_v58, %v1680_v58 }
 0x448   :  { %v1162_v57 = vpop.f32.mrf.mxu0 }
 0x449   :  { %v1163_v6 = vadd.f32 %v6819_v43, %v1162_v57  ;;  %1735 = vst.msk [vmem:[#allocation7 + $0x14] sm:$0xf] %vm1729_vm14, %v1714_v45 }
 0x44a   :  { %1840 = vrot.lane.b32.xlu2 %v1795_v24, %s5230_s20 }
 0x44b   :  { %vm1243_vm10 = vcmp.gt.f32.partialorder %v1163_v6, 0.0  ;;  %v1283_v47 = vmul.f32 0.2, %v1163_v6 }
 0x44d   :  { %v1323_v40 = vsel %vm1243_vm10, %v1163_v6, %v1283_v47 }
 0x44e   :  { %v1603_v34 = vsel %vm1563_vm11, %v1323_v40, 0.0  ;;  %v2083_v53 = vld [vmem:[#allocation2 + $0x53] ss:$2 sm:$0xff]  ;;  %v1922_v54 = vld [vmem:[#allocation2 + $0x52] ss:$2 sm:$0xff]  ;;  %vm2515_vm11 = vcmask 1043456  }
 0x44f   :  { %1643 = vst.msk [vmem:[#allocation2 + $0x68] sm:$0xff] %vm61_vm2, %v1603_v34  ;;  %v2117_v59 = vpack.c.bf16 %v2083_v53, %v2083_v53  ;;  %v1956_v7 = vpack.c.bf16 %v1922_v54, %v1922_v54  ;;  %v2244_v35 = vld [vmem:[#allocation2 + $0x54] ss:$2 sm:$0xff]  ;;  %v2418_v40 = vld [vmem:[%s8370_s5 + $0x10] sm:$0xf] }
 0x450   :  { %v1165_v32 = vpop.f32.mrf.mxu0  ;;  %v2278_v49 = vpack.c.bf16 %v2244_v35, %v2244_v35  ;;  %v2478_v34 = vunpack.c.l.b16 %v2418_v40 }
 0x451   :  { %v1166_v61 = vadd.f32 %v6819_v43, %v1165_v32  ;;  %2162 = vrot.lane.b32.xlu0 %v2117_v59, %s5231_s21  ;;  %2001 = vrot.lane.b32.xlu1 %v1956_v7, %s5232_s1 }
 0x452   :  { %2323 = vrot.lane.b32.xlu2 %v2278_v49, %s5233_s22  ;;  %v2481_v59 = vpack.c.b16 %v2478_v34, %v2478_v34 }
 0x453   :  { %vm1244_vm13 = vcmp.gt.f32.partialorder %v1166_v61, 0.0  ;;  %v1284_v29 = vmul.f32 0.2, %v1166_v61 }
 0x454   :  { %v1831_v14 = vpop.permute.xlu2 %1830 }
 0x455   :  { %v1324_v63 = vsel %vm1244_vm13, %v1166_v61, %v1284_v29  ;;  %1891 = vst.msk [vmem:[#allocation7] sm:$0xf] %vm1890_vm12, %v1831_v14  ;;  %vm1568_vm13 = vcmp.eq.s32.totalorder %v6782_v44, 1  ;;  %v2517_v61 = vsel %vm2515_vm11, %v2481_v59, 0  ;;  %v5034_v14 = vld [vmem:[%s8370_s5 + $0x8] sm:$0xff]  ;;  %vm1572_vm11 = vcmp.eq.s32.totalorder %v6812_v3, 1 }
 0x456   :  { %v1604_v27 = vsel %vm1564_vm1, %v1324_v63, 0.0  ;;  %v1763_v17 = vld [vmem:[#allocation2 + $0x61] ss:$2 sm:$0xff]  ;;  %v1682_v0 = vld [vmem:[#allocation2 + $0x60] ss:$2 sm:$0xff]  ;;  %2524 = vmatpush.bf16.msrb.mxu1 %v2517_v61  ;;  %vm2373_vm1 = vcmask 322816  }
 0x457   :  { %1644 = vst.msk [vmem:[#allocation2 + $0x70] sm:$0xff] %vm61_vm2, %v1604_v27  ;;  %v1796_v30 = vpack.c.bf16 %v1763_v17, %v1763_v17  ;;  %v1715_v39 = vpack.c.bf16 %v1682_v0, %v1682_v0 }
 0x458   :  { %v1167_v22 = vpop.f32.mrf.mxu0 }
 0x459   :  { %v1168_v50 = vadd.f32 %v6819_v43, %v1167_v22  ;;  %1842 = vrot.lane.b32.xlu1 %v1796_v30, %s5230_s20  ;;  %1736 = vst.msk [vmem:[#allocation7 + $0x18] sm:$0xf] %vm1729_vm14, %v1715_v39  ;;  %v5033_v22 = vld [vmem:[%s8370_s5] sm:$0xff] }
 0x45a   :  { %2525 = vmatpush.bf16.msrb.mxu1 %v5034_v14 }
 0x45b   :  { %vm1245_vm3 = vcmp.gt.f32.partialorder %v1168_v50, 0.0  ;;  %v1285_v8 = vmul.f32 0.2, %v1168_v50 }
 0x45c   :  { %v2016_v46 = vpop.permute.xlu2 %2015 }
 0x45d   :  { %v1325_v52 = vsel %vm1245_vm3, %v1168_v50, %v1285_v8 }
 0x45e   :  { %v1605_v51 = vsel %vm1565_vm4, %v1325_v52, 0.0  ;;  %v1924_v23 = vld [vmem:[#allocation2 + $0x62] ss:$2 sm:$0xff]  ;;  %v2085_v42 = vld [vmem:[#allocation2 + $0x63] ss:$2 sm:$0xff]  ;;  %vm1569_vm4 = vcmp.eq.s32.totalorder %v6806_v62, 1  ;;  %2526 = vmatpush.bf16.msrb.mxu1 %v5033_v22 }
 0x45f   :  { %v2246_v9 = vld [vmem:[#allocation2 + $0x64] ss:$2 sm:$0xff]  ;;  %1645 = vst.msk [vmem:[#allocation2 + $0x78] sm:$0xff] %vm61_vm2, %v1605_v51  ;;  %v1957_v36 = vpack.c.bf16 %v1924_v23, %v1924_v23  ;;  %v2118_v4 = vpack.c.bf16 %v2085_v42, %v2085_v42  ;;  %v7043_v62 = vld [vmem:[%s8369_s4] ss:$0 sm:$0xff] }
 0x460   :  { %v2279_v41 = vpack.c.bf16 %v2246_v9, %v2246_v9  ;;  %v1170_v10 = vpop.f32.mrf.mxu0 }
 0x461   :  { %v1171_v12 = vadd.f32 %v6819_v43, %v1170_v10  ;;  %2003 = vrot.lane.b32.xlu0 %v1957_v36, %s5232_s1  ;;  %2164 = vrot.lane.b32.xlu2 %v2118_v4, %s5231_s21 }
 0x462   :  { %2325 = vrot.lane.b32.xlu1 %v2279_v41, %s5233_s22 }
 0x463   :  { %vm1246_vm6 = vcmp.gt.f32.partialorder %v1171_v12, 0.0  ;;  %v1286_v48 = vmul.f32 0.2, %v1171_v12 }
 0x464   :  { %v1992_v56 = vpop.permute.xlu2 %1991 }
 0x465   :  { %v1326_v15 = vsel %vm1246_vm6, %v1171_v12, %v1286_v48  ;;  %2052 = vst.msk [vmem:[#allocation7] sm:$0xf] %vm2051_vm5, %v1992_v56 }
 0x466   :  { %v1606_v60 = vsel %vm1566_vm7, %v1326_v15, 0.0  ;;  %v1765_v55 = vld [vmem:[#allocation2 + $0x71] ss:$2 sm:$0xff]  ;;  %v1684_v19 = vld [vmem:[#allocation2 + $0x70] ss:$2 sm:$0xff]  ;;  %vm1570_vm7 = vcmp.eq.s32.totalorder %v6702_v31, 1 }
 0x467   :  { %1646 = vst.msk [vmem:[#allocation2 + $0x80] sm:$0xff] %vm61_vm2, %v1606_v60  ;;  %v1797_v21 = vpack.c.bf16 %v1765_v55, %v1765_v55  ;;  %v1716_v37 = vpack.c.bf16 %v1684_v19, %v1684_v19 }
 0x468   :  { %v1172_v11 = vpop.f32.mrf.mxu0 }
 0x469   :  { %v1173_v18 = vadd.f32 %v6819_v43, %v1172_v11  ;;  %1844 = vrot.lane.b32.xlu2 %v1797_v21, %s5230_s20  ;;  %1737 = vst.msk [vmem:[#allocation7 + $0x1c] sm:$0xf] %vm1729_vm14, %v1716_v37 }
 0x46b   :  { %vm1247_vm8 = vcmp.gt.f32.partialorder %v1173_v18, 0.0  ;;  %v1287_v5 = vmul.f32 0.2, %v1173_v18 }
 0x46c   :  { %v2153_v1 = vpop.permute.xlu2 %2152 }
 0x46d   :  { %v1327_v38 = vsel %vm1247_vm8, %v1173_v18, %v1287_v5  ;;  %v2177_v2 = vpop.permute.xlu1 %2176  ;;  %2213 = vst.msk [vmem:[#allocation7] sm:$0xf] %vm2212_vm15, %v2153_v1 }
 0x46e   :  { %v1855_v20 = vpop.permute.xlu0 %1854  ;;  %v1607_v13 = vsel %vm1567_vm9, %v1327_v38, 0.0  ;;  %v2087_v26 = vld [vmem:[#allocation2 + $0x73] ss:$2 sm:$0xff]  ;;  %v1926_v57 = vld [vmem:[#allocation2 + $0x72] ss:$2 sm:$0xff]  ;;  %vm1571_vm9 = vcmp.eq.s32.totalorder %v6712_v16, 1 }
 0x46f   :  { %1903 = vst.msk [vmem:[#allocation7 + $0x30] sm:$0xf] %vm1890_vm12, %v1855_v20  ;;  %v2119_v24 = vpack.c.bf16 %v2087_v26, %v2087_v26  ;;  %v2248_v6 = vld [vmem:[#allocation2 + $0x74] ss:$2 sm:$0xff]  ;;  %v1958_v47 = vpack.c.bf16 %v1926_v57, %v1926_v57 }
 0x470   :  { %1647 = vst.msk [vmem:[#allocation2 + $0x88] sm:$0xff] %vm61_vm2, %v1607_v13  ;;  %v1175_v58 = vpop.f32.mrf.mxu0  ;;  %v2280_v28 = vpack.c.bf16 %v2248_v6, %v2248_v6 }
 0x471   :  { %2064 = vst.msk [vmem:[#allocation7 + $0x30] sm:$0xf] %vm2051_vm5, %v2016_v46  ;;  %v1176_v45 = vadd.f32 %v6819_v43, %v1175_v58  ;;  %2166 = vrot.lane.b32.xlu0 %v2119_v24, %s5231_s21  ;;  %2005 = vrot.lane.b32.xlu1 %v1958_v47, %s5232_s1 }
 0x472   :  { %2225 = vst.msk [vmem:[#allocation7 + $0x30] sm:$0xf] %vm2212_vm15, %v2177_v2  ;;  %2327 = vrot.lane.b32.xlu2 %v2280_v28, %s5233_s22 }
 0x473   :  { %vm1248_vm10 = vcmp.gt.f32.partialorder %v1176_v45, 0.0  ;;  %v1288_v53 = vmul.f32 0.2, %v1176_v45 }
 0x474   :  { %v2179_v54 = vpop.permute.xlu2 %2178 }
 0x475   :  { %v1328_v7 = vsel %vm1248_vm10, %v1176_v45, %v1288_v53  ;;  %v1857_v35 = vpop.permute.xlu1 %1856 }
 0x476   :  { %v1608_v32 = vsel %vm1568_vm13, %v1328_v7, 0.0  ;;  %1904 = vst.msk [vmem:[#allocation7 + $0x34] sm:$0xf] %vm1890_vm12, %v1857_v35  ;;  %vm2484_vm13 = vcmask 326656  }
 0x477   :  { %v1767_v49 = vld [vmem:[#allocation2 + $0x81] ss:$2 sm:$0xff]  ;;  %1648 = vst.msk [vmem:[#allocation2 + $0x90] sm:$0xff] %vm61_vm2, %v1608_v32  ;;  %v1686_v44 = vld [vmem:[#allocation2 + $0x80] ss:$2 sm:$0xff] }
 0x478   :  { %v1798_v29 = vpack.c.bf16 %v1767_v49, %v1767_v49  ;;  %v1177_v63 = vpop.f32.mrf.mxu0  ;;  %v1717_v50 = vpack.c.bf16 %v1686_v44, %v1686_v44 }
 0x479   :  { %v1178_v27 = vadd.f32 %v6819_v43, %v1177_v63 }
 0x47a   :  { %v2018_v17 = vpop.permute.xlu0 %2017  ;;  %1846 = vrot.lane.b32.xlu1 %v1798_v29, %s5230_s20  ;;  %1738 = vst.msk [vmem:[#allocation7 + $0x20] sm:$0xf] %vm1729_vm14, %v1717_v50 }
 0x47b   :  { %vm1249_vm3 = vcmp.gt.f32.partialorder %v1178_v27, 0.0  ;;  %v1289_v30 = vmul.f32 0.2, %v1178_v27  ;;  %2065 = vst.msk [vmem:[#allocation7 + $0x34] sm:$0xf] %vm2051_vm5, %v2018_v17 }
 0x47c   :  { %2226 = vst.msk [vmem:[#allocation7 + $0x34] sm:$0xf] %vm2212_vm15, %v2179_v54  ;;  %v2316_v0 = vpop.permute.xlu2 %2315 }
 0x47d   :  { %v1329_v43 = vsel %vm1249_vm3, %v1178_v27, %v1289_v30  ;;  %v2314_v8 = vpop.permute.xlu1 %2313 }
 0x47e   :  { %v1609_v39 = vsel %vm1569_vm4, %v1329_v43, 0.0  ;;  %2374 = vst.msk [vmem:[#allocation7] sm:$0xf] %vm2373_vm1, %v2314_v8  ;;  %v1928_v46 = vld [vmem:[#allocation2 + $0x82] ss:$2 sm:$0xff]  ;;  %vm1573_vm4 = vcmp.eq.s32.totalorder %v6839_v25, 1 }
 0x47f   :  { %1649 = vst.msk [vmem:[#allocation2 + $0x98] sm:$0xff] %vm61_vm2, %v1609_v39  ;;  %v1959_v52 = vpack.c.bf16 %v1928_v46, %v1928_v46  ;;  %v2250_v51 = vld [vmem:[#allocation2 + $0x84] ss:$2 sm:$0xff]  ;;  %v2089_v23 = vld [vmem:[#allocation2 + $0x83] ss:$2 sm:$0xff] }
 0x480   :  { %v1180_v9 = vpop.f32.mrf.mxu0  ;;  %v2281_v36 = vpack.c.bf16 %v2250_v51, %v2250_v51  ;;  %v2120_v41 = vpack.c.bf16 %v2089_v23, %v2089_v23 }
 0x481   :  { %v1181_v42 = vadd.f32 %v7043_v62, %v1180_v9  ;;  %2007 = vrot.lane.b32.xlu0 %v1959_v52, %s5232_s1 }
 0x482   :  { %2329 = vrot.lane.b32.xlu1 %v2281_v36, %s5233_s22  ;;  %2168 = vrot.lane.b32.xlu2 %v2120_v41, %s5231_s21  ;;  %v2258_v41 = vld [vmem:[#allocation2 + $0xc4] ss:$2 sm:$0xff] }
 0x483   :  { %vm1250_vm6 = vcmp.gt.f32.partialorder %v1181_v42, 0.0  ;;  %v1290_v10 = vmul.f32 0.2, %v1181_v42 }
 0x484   :  { %v2157_v4 = vpop.permute.xlu2 %2156  ;;  %v2155_v31 = vpop.permute.xlu0 %2154 }
 0x485   :  { %v1330_v12 = vsel %vm1250_vm6, %v1181_v42, %v1290_v10  ;;  %v1833_v48 = vpop.permute.xlu1 %1832  ;;  %v2260_v42 = vld [vmem:[#allocation2 + $0xd4] ss:$2 sm:$0xff] }
 0x486   :  { %v1610_v56 = vsel %vm1570_vm7, %v1330_v12, 0.0  ;;  %1892 = vst.msk [vmem:[#allocation7 + $0x4] sm:$0xf] %vm1890_vm12, %v1833_v48  ;;  %v1769_v15 = vld [vmem:[#allocation2 + $0x91] ss:$2 sm:$0xff]  ;;  %v2285_v12 = vpack.c.bf16 %v2258_v41, %v2258_v41  ;;  %v2286_v48 = vpack.c.bf16 %v2260_v42, %v2260_v42 }
 0x487   :  { %1650 = vst.msk [vmem:[#allocation2 + $0xa0] sm:$0xff] %vm61_vm2, %v1610_v56  ;;  %v1799_v60 = vpack.c.bf16 %v1769_v15, %v1769_v15  ;;  %v1688_v18 = vld [vmem:[#allocation2 + $0x90] ss:$2 sm:$0xff] }
 0x488   :  { %v1182_v55 = vpop.f32.mrf.mxu0  ;;  %v1718_v20 = vpack.c.bf16 %v1688_v18, %v1688_v18  ;;  %v1779_v18 = vld [vmem:[#allocation2 + $0xe1] ss:$2 sm:$0xff] }
 0x489   :  { %v1183_v21 = vadd.f32 %v7043_v62, %v1182_v55  ;;  %v1781_v55 = vld [vmem:[#allocation2 + $0xf1] ss:$2 sm:$0xff] }
 0x48a   :  { %1848 = vrot.lane.b32.xlu2 %v1799_v60, %s5230_s20  ;;  %1739 = vst.msk [vmem:[#allocation7 + $0x24] sm:$0xf] %vm1729_vm14, %v1718_v20  ;;  %v1942_v20 = vld [vmem:[#allocation2 + $0xf2] ss:$2 sm:$0xff] }
 0x48b   :  { %vm1251_vm8 = vcmp.gt.f32.partialorder %v1183_v21, 0.0  ;;  %v1291_v11 = vmul.f32 0.2, %v1183_v21 }
 0x48c   :  { %v1837_v5 = vpop.permute.xlu2 %1836 }
 0x48d   :  { %v1331_v19 = vsel %vm1251_vm8, %v1183_v21, %v1291_v11  ;;  %v1994_v1 = vpop.permute.xlu1 %1993  ;;  %1894 = vst.msk [vmem:[#allocation7 + $0xc] sm:$0xf] %vm1890_vm12, %v1837_v5  ;;  %v1940_v11 = vld [vmem:[#allocation2 + $0xe2] ss:$2 sm:$0xff]  ;;  %v1805_v5 = vpack.c.bf16 %v1781_v55, %v1781_v55 }
 0x48e   :  { %v1611_v38 = vsel %vm1571_vm9, %v1331_v19, 0.0  ;;  %2053 = vst.msk [vmem:[#allocation7 + $0x4] sm:$0xf] %vm2051_vm5, %v1994_v1  ;;  %v2091_v2 = vld [vmem:[#allocation2 + $0x93] ss:$2 sm:$0xff]  ;;  %v1804_v19 = vpack.c.bf16 %v1779_v18, %v1779_v18 }
 0x48f   :  { %1651 = vst.msk [vmem:[#allocation2 + $0xa8] sm:$0xff] %vm61_vm2, %v1611_v38  ;;  %v2121_v13 = vpack.c.bf16 %v2091_v2, %v2091_v2  ;;  %v1930_v26 = vld [vmem:[#allocation2 + $0x92] ss:$2 sm:$0xff]  ;;  %v2101_v38 = vld [vmem:[#allocation2 + $0xe3] ss:$2 sm:$0xff] }
 0x490   :  { %v2252_v37 = vld [vmem:[#allocation2 + $0x94] ss:$2 sm:$0xff]  ;;  %2214 = vst.msk [vmem:[#allocation7 + $0x4] sm:$0xf] %vm2212_vm15, %v2155_v31  ;;  %v1185_v24 = vpop.f32.mrf.mxu0  ;;  %v1960_v57 = vpack.c.bf16 %v1930_v26, %v1930_v26  ;;  %v1965_v31 = vpack.c.bf16 %v1940_v11, %v1940_v11  ;;  %v2103_v2 = vld [vmem:[#allocation2 + $0xf3] ss:$2 sm:$0xff] }
 0x491   :  { %v2282_v16 = vpack.c.bf16 %v2252_v37, %v2252_v37  ;;  %2375 = vst.msk [vmem:[#allocation7 + $0x4] sm:$0xf] %vm2373_vm1, %v2316_v0  ;;  %v1186_v6 = vadd.f32 %v7043_v62, %v1185_v24  ;;  %2170 = vrot.lane.b32.xlu0 %v2121_v13, %s5231_s21  ;;  %v2126_v13 = vpack.c.bf16 %v2101_v38, %v2101_v38 }
 0x492   :  { %2009 = vrot.lane.b32.xlu1 %v1960_v57, %s5232_s1  ;;  %v2127_v26 = vpack.c.bf16 %v2103_v2, %v2103_v2  ;;  %v1966_v37 = vpack.c.bf16 %v1942_v20, %v1942_v20 }
 0x493   :  { %2331 = vrot.lane.b32.xlu2 %v2282_v16, %s5233_s22  ;;  %vm1252_vm10 = vcmp.gt.f32.partialorder %v1186_v6, 0.0  ;;  %v1292_v58 = vmul.f32 0.2, %v1186_v6 }
 0x494   :  { %v2320_v47 = vpop.permute.xlu2 %2319  ;;  %v1996_v45 = vpop.permute.xlu0 %1995 }
 0x495   :  { %v1332_v28 = vsel %vm1252_vm10, %v1186_v6, %v1292_v58  ;;  %v1835_v40 = vpop.permute.xlu1 %1834  ;;  %v2264_v6 = vld [vmem:[#allocation2 + $0xf4] ss:$2 sm:$0xff]  ;;  %v1783_v58 = vld [vmem:[#allocation2 + $0x101] ss:$2 sm:$0xff] }
 0x496   :  { %v1612_v34 = vsel %vm1572_vm11, %v1332_v28, 0.0  ;;  %1893 = vst.msk [vmem:[#allocation7 + $0x8] sm:$0xf] %vm1890_vm12, %v1835_v40  ;;  %v1771_v53 = vld [vmem:[#allocation2 + $0xa1] ss:$2 sm:$0xff]  ;;  %v2288_v28 = vpack.c.bf16 %v2264_v6, %v2264_v6 }
 0x497   :  { %1652 = vst.msk [vmem:[#allocation2 + $0xb0] sm:$0xff] %vm61_vm2, %v1612_v34  ;;  %v1800_v54 = vpack.c.bf16 %v1771_v53, %v1771_v53  ;;  %v1690_v3 = vld [vmem:[#allocation2 + $0xa0] ss:$2 sm:$0xff] }
 0x498   :  { %2054 = vst.msk [vmem:[#allocation7 + $0x8] sm:$0xf] %vm2051_vm5, %v1996_v45  ;;  %v1187_v59 = vpop.f32.mrf.mxu0  ;;  %v5023_v7 = vld [vmem:[#allocation7] sm:$0xff]  ;;  %v1719_v49 = vpack.c.bf16 %v1690_v3, %v1690_v3  ;;  %v1806_v45 = vpack.c.bf16 %v1783_v58, %v1783_v58  ;;  %v1944_v53 = vld [vmem:[#allocation2 + $0x102] ss:$2 sm:$0xff] }
 0x499   :  { %2215 = vst.msk [vmem:[#allocation7 + $0x8] sm:$0xf] %vm2212_vm15, %v2157_v4  ;;  %v1188_v35 = vadd.f32 %v7043_v62, %v1187_v59  ;;  %4814 = vmatmul.msk.bf16.vlgmr.msrb.gmra.mxu1 %vm2484_vm13, %v5023_v7  ;;  %v1946_v59 = vld [vmem:[#allocation2 + $0x112] ss:$2 sm:$0xff]  ;;  %v1785_v7 = vld [vmem:[#allocation2 + $0x111] ss:$2 sm:$0xff] }
 0x49a   :  { %1850 = vrot.lane.b32.xlu1 %v1800_v54, %s5230_s20  ;;  %1740 = vst.msk [vmem:[#allocation7 + $0x28] sm:$0xf] %vm1729_vm14, %v1719_v49  ;;  %v1968_v3 = vpack.c.bf16 %v1946_v59, %v1946_v59 }
 0x49b   :  { %vm1253_vm3 = vcmp.gt.f32.partialorder %v1188_v35, 0.0  ;;  %v1293_v32 = vmul.f32 0.2, %v1188_v35 }
 0x49c   :  { %v2161_v61 = vpop.permute.xlu2 %2160 }
 0x49d   :  { %v1333_v29 = vsel %vm1253_vm3, %v1188_v35, %v1293_v32  ;;  %v2318_v14 = vpop.permute.xlu1 %2317  ;;  %v1967_v35 = vpack.c.bf16 %v1944_v53, %v1944_v53  ;;  %v1807_v32 = vpack.c.bf16 %v1785_v7, %v1785_v7 }
 0x49e   :  { %v1613_v63 = vsel %vm1573_vm4, %v1333_v29, 0.0  ;;  %2376 = vst.msk [vmem:[#allocation7 + $0x8] sm:$0xf] %vm2373_vm1, %v2318_v14  ;;  %v1932_v27 = vld [vmem:[#allocation2 + $0xa2] ss:$2 sm:$0xff] }
 0x49f   :  { %1653 = vst.msk [vmem:[#allocation2 + $0xb8] sm:$0xff] %vm61_vm2, %v1613_v63  ;;  %v1961_v17 = vpack.c.bf16 %v1932_v27, %v1932_v27  ;;  %v2254_v44 = vld [vmem:[#allocation2 + $0xa4] ss:$2 sm:$0xff]  ;;  %v2093_v30 = vld [vmem:[#allocation2 + $0xa3] ss:$2 sm:$0xff]  ;;  %vm8463_vm2 = vcmask 130048  }
 0x4a0   :  { %v2283_v22 = vpack.c.bf16 %v2254_v44, %v2254_v44  ;;  %v2122_v50 = vpack.c.bf16 %v2093_v30, %v2093_v30  ;;  %v2107_v29 = vld [vmem:[#allocation2 + $0x113] ss:$2 sm:$0xff]  ;;  %v2266_v63 = vld [vmem:[#allocation2 + $0x104] ss:$2 sm:$0xff]  ;;  %v2105_v27 = vld [vmem:[#allocation2 + $0x103] ss:$2 sm:$0xff] }
 0x4a1   :  { %2011 = vrot.lane.b32.xlu0 %v1961_v17, %s5232_s1  ;;  %v2129_v17 = vpack.c.bf16 %v2107_v29, %v2107_v29  ;;  %v2289_v44 = vpack.c.bf16 %v2266_v63, %v2266_v63  ;;  %v2128_v30 = vpack.c.bf16 %v2105_v27, %v2105_v27  ;;  %104 = vst.msk [vmem:[#allocation3] sm:$0xff] %vm8463_vm2, %v8421_v33 }
 0x4a2   :  { %2333 = vrot.lane.b32.xlu1 %v2283_v22, %s5233_s22  ;;  %2172 = vrot.lane.b32.xlu2 %v2122_v50, %s5231_s21  ;;  %v1787_v50 = vld [vmem:[#allocation2 + $0x121] ss:$2 sm:$0xff]  ;;  %105 = vst.msk [vmem:[#allocation3 + $0x8] sm:$0xff] %vm8463_vm2, %v8421_v33 }
 0x4a3   :  { %v2159_v25 = vpop.permute.xlu0 %2158  ;;  %106 = vst.msk [vmem:[#allocation3 + $0x10] sm:$0xff] %vm8463_vm2, %v8421_v33 }
 0x4a4   :  { %v1841_v0 = vpop.permute.xlu2 %1840  ;;  %107 = vst.msk [vmem:[#allocation3 + $0x18] sm:$0xff] %vm8463_vm2, %v8421_v33 }
 0x4a5   :  { %v1998_v43 = vpop.permute.xlu1 %1997  ;;  %1896 = vst.msk [vmem:[#allocation7 + $0x14] sm:$0xf] %vm1890_vm12, %v1841_v0  ;;  %v2268_v0 = vld [vmem:[#allocation2 + $0x114] ss:$2 sm:$0xff] }
 0x4a6   :  { %2055 = vst.msk [vmem:[#allocation7 + $0xc] sm:$0xf] %vm2051_vm5, %v1998_v43  ;;  %v2095_v8 = vld [vmem:[#allocation2 + $0xb3] ss:$2 sm:$0xff]  ;;  %v1934_v39 = vld [vmem:[#allocation2 + $0xb2] ss:$2 sm:$0xff]  ;;  %v1808_v43 = vpack.c.bf16 %v1787_v50, %v1787_v50 }
 0x4a7   :  { %2216 = vst.msk [vmem:[#allocation7 + $0xc] sm:$0xf] %vm2212_vm15, %v2159_v25  ;;  %v2123_v46 = vpack.c.bf16 %v2095_v8, %v2095_v8  ;;  %v1962_v52 = vpack.c.bf16 %v1934_v39, %v1934_v39  ;;  %v1773_v51 = vld [vmem:[#allocation2 + $0xb1] ss:$2 sm:$0xff]  ;;  %v1692_v9 = vld [vmem:[#allocation2 + $0xb0] ss:$2 sm:$0xff]  ;;  %v2290_v39 = vpack.c.bf16 %v2268_v0, %v2268_v0 }
 0x4a8   :  { %2377 = vst.msk [vmem:[#allocation7 + $0xc] sm:$0xf] %vm2373_vm1, %v2320_v47  ;;  %v1801_v23 = vpack.c.bf16 %v1773_v51, %v1773_v51  ;;  %v1720_v36 = vpack.c.bf16 %v1692_v9, %v1692_v9  ;;  %v2256_v10 = vld [vmem:[#allocation2 + $0xb4] ss:$2 sm:$0xff]  ;;  %v2262_v47 = vld [vmem:[#allocation2 + $0xe4] ss:$2 sm:$0xff] }
 0x4a9   :  { %2174 = vrot.lane.b32.xlu0 %v2123_v46, %s5231_s21  ;;  %v2284_v56 = vpack.c.bf16 %v2256_v10, %v2256_v10  ;;  %v2287_v40 = vpack.c.bf16 %v2262_v47, %v2262_v47  ;;  %v1789_v25 = vld [vmem:[#allocation2 + $0x131] ss:$2 sm:$0xff]  ;;  %v1950_v51 = vld [vmem:[#allocation2 + $0x132] ss:$2 sm:$0xff]  ;;  %108 = vst.msk [vmem:[#allocation3 + $0x20] sm:$0xff] %vm8463_vm2, %v8421_v33 }
 0x4aa   :  { %2013 = vrot.lane.b32.xlu1 %v1962_v52, %s5232_s1  ;;  %1852 = vrot.lane.b32.xlu2 %v1801_v23, %s5230_s20  ;;  %1741 = vst.msk [vmem:[#allocation7 + $0x2c] sm:$0xf] %vm1729_vm14, %v1720_v36  ;;  %v1809_v8 = vpack.c.bf16 %v1789_v25, %v1789_v25  ;;  %v2109_v9 = vld [vmem:[#allocation2 + $0x123] ss:$2 sm:$0xff]  ;;  %v1948_v36 = vld [vmem:[#allocation2 + $0x122] ss:$2 sm:$0xff]  ;;  %v1970_v41 = vpack.c.bf16 %v1950_v51, %v1950_v51 }
 0x4ab   :  { %v1969_v42 = vpack.c.bf16 %v1948_v36, %v1948_v36  ;;  %109 = vst.msk [vmem:[#allocation3 + $0x28] sm:$0xff] %vm8463_vm2, %v8421_v33 }
 0x4ac   :  { %v2324_v60 = vpop.permute.xlu2 %2323  ;;  %110 = vst.msk [vmem:[#allocation3 + $0x30] sm:$0xff] %vm8463_vm2, %v8421_v33 }
 0x4ad   :  { %v1839_v62 = vpop.permute.xlu1 %1838  ;;  %111 = vst.msk [vmem:[#allocation3 + $0x38] sm:$0xff] %vm8463_vm2, %v8421_v33 }
 0x4ae   :  { %1895 = vst.msk [vmem:[#allocation7 + $0x10] sm:$0xf] %vm1890_vm12, %v1839_v62  ;;  %v2130_v62 = vpack.c.bf16 %v2109_v9, %v2109_v9 }
 0x4af   :  { %v5024_v4 = vld [vmem:[#allocation7 + $0x8] sm:$0xff]  ;;  %112 = vst.msk [vmem:[#allocation3 + $0x40] sm:$0xff] %vm8463_vm2, %v8421_v33 }
 0x4b0   :  { %4815 = vmatmul.msk.bf16.gmra.mxu1 %vm2484_vm13, %v5024_v4  ;;  %v2270_v4 = vld [vmem:[#allocation2 + $0x124] ss:$2 sm:$0xff]  ;;  %113 = vst.msk [vmem:[#allocation3 + $0x48] sm:$0xff] %vm8463_vm2, %v8421_v33 }
 0x4b1   :  { %2337 = vrot.lane.b32.xlu0 %v2285_v12, %s5233_s22  ;;  %v2272_v12 = vld [vmem:[#allocation2 + $0x134] ss:$2 sm:$0xff]  ;;  %114 = vst.msk [vmem:[#allocation3 + $0x50] sm:$0xff] %vm8463_vm2, %v8421_v33 }
 0x4b2   :  { %2339 = vrot.lane.b32.xlu1 %v2286_v48, %s5233_s22  ;;  %2335 = vrot.lane.b32.xlu2 %v2284_v56, %s5233_s22  ;;  %v2111_v48 = vld [vmem:[#allocation2 + $0x133] ss:$2 sm:$0xff]  ;;  %115 = vst.msk [vmem:[#allocation3 + $0x58] sm:$0xff] %vm8463_vm2, %v8421_v33 }
 0x4b3   :  { %v2000_v15 = vpop.permute.xlu0 %1999  ;;  %v2131_v55 = vpack.c.bf16 %v2111_v48, %v2111_v48  ;;  %116 = vst.msk [vmem:[#allocation3 + $0x60] sm:$0xff] %vm8463_vm2, %v8421_v33 }
 0x4b4   :  { %2056 = vst.msk [vmem:[#allocation7 + $0x10] sm:$0xf] %vm2051_vm5, %v2000_v15  ;;  %v2291_v15 = vpack.c.bf16 %v2270_v4, %v2270_v4 }
 0x4b5   :  { %2217 = vst.msk [vmem:[#allocation7 + $0x10] sm:$0xf] %vm2212_vm15, %v2161_v61  ;;  %v2322_v21 = vpop.permute.xlu1 %2321 }
 0x4b6   :  { %2378 = vst.msk [vmem:[#allocation7 + $0x10] sm:$0xf] %vm2373_vm1, %v2322_v21 }
 0x4b7   :  { %117 = vst.msk [vmem:[#allocation3 + $0x68] sm:$0xff] %vm8463_vm2, %v8421_v33 }
 0x4b8   :  { %118 = vst.msk [vmem:[#allocation3 + $0x70] sm:$0xff] %vm8463_vm2, %v8421_v33 }
 0x4b9   :  { %1860 = vrot.lane.b32.xlu0 %v1805_v5, %s5230_s20  ;;  %119 = vst.msk [vmem:[#allocation3 + $0x78] sm:$0xff] %vm8463_vm2, %v8421_v33 }
 0x4ba   :  { %2019 = vrot.lane.b32.xlu1 %v1965_v31, %s5232_s1  ;;  %1858 = vrot.lane.b32.xlu2 %v1804_v19, %s5230_s20  ;;  %120 = vst.msk [vmem:[#allocation3 + $0x80] sm:$0xff] %vm8463_vm2, %v8421_v33 }
 0x4bb   :  { %v2165_v1 = vpop.permute.xlu2 %2164  ;;  %121 = vst.msk [vmem:[#allocation3 + $0x88] sm:$0xff] %vm8463_vm2, %v8421_v33 }
 0x4bc   :  { %122 = vst.msk [vmem:[#allocation3 + $0x90] sm:$0xff] %vm8463_vm2, %v8421_v33 }
 0x4bd   :  { %123 = vst.msk [vmem:[#allocation3 + $0x98] sm:$0xff] %vm8463_vm2, %v8421_v33 }
 0x4be   :  { %124 = vst.msk [vmem:[#allocation3 + $0xa0] sm:$0xff] %vm8463_vm2, %v8421_v33 }
 0x4c1   :  { %2180 = vrot.lane.b32.xlu0 %v2126_v13, %s5231_s21 }
 0x4c2   :  { %2182 = vrot.lane.b32.xlu1 %v2127_v26, %s5231_s21  ;;  %2021 = vrot.lane.b32.xlu2 %v1966_v37, %s5232_s1 }
 0x4c3   :  { %v2163_v24 = vpop.permute.xlu0 %2162  ;;  %v2002_v57 = vpop.permute.xlu1 %2001 }
 0x4c4   :  { %2057 = vst.msk [vmem:[#allocation7 + $0x14] sm:$0xf] %vm2051_vm5, %v2002_v57  ;;  %v1845_v16 = vpop.permute.xlu2 %1844 }
 0x4c5   :  { %2218 = vst.msk [vmem:[#allocation7 + $0x14] sm:$0xf] %vm2212_vm15, %v2163_v24 }
 0x4c6   :  { %2379 = vst.msk [vmem:[#allocation7 + $0x14] sm:$0xf] %vm2373_vm1, %v2324_v60  ;;  %v2292_v60 = vpack.c.bf16 %v2272_v12, %v2272_v12 }
 0x4c7   :  { %1898 = vst.msk [vmem:[#allocation7 + $0x1c] sm:$0xf] %vm1890_vm12, %v1845_v16 }
 0x4c9   :  { %2343 = vrot.lane.b32.xlu0 %v2288_v28, %s5233_s22 }
 0x4ca   :  { %1862 = vrot.lane.b32.xlu1 %v1806_v45, %s5230_s20  ;;  %2341 = vrot.lane.b32.xlu2 %v2287_v40, %s5233_s22 }
 0x4cb   :  { %v1843_v34 = vpop.permute.xlu1 %1842 }
 0x4cc   :  { %1897 = vst.msk [vmem:[#allocation7 + $0x18] sm:$0xf] %vm1890_vm12, %v1843_v34  ;;  %v2328_v61 = vpop.permute.xlu2 %2327 }
 0x4cd   :  { %v5025_v54 = vld [vmem:[#allocation7 + $0x10] sm:$0xff] }
 0x4ce   :  { %4816 = vmatmul.msk.bf16.gmra.mxu1 %vm2484_vm13, %v5025_v54 }
 0x4d1   :  { %2023 = vrot.lane.b32.xlu0 %v1967_v35, %s5232_s1 }
 0x4d2   :  { %2025 = vrot.lane.b32.xlu1 %v1968_v3, %s5232_s1  ;;  %1864 = vrot.lane.b32.xlu2 %v1807_v32, %s5230_s20 }
 0x4d3   :  { %v2004_v49 = vpop.permute.xlu0 %2003 }
 0x4d4   :  { %2058 = vst.msk [vmem:[#allocation7 + $0x18] sm:$0xf] %vm2051_vm5, %v2004_v49  ;;  %v2326_v14 = vpop.permute.xlu1 %2325 }
 0x4d5   :  { %2219 = vst.msk [vmem:[#allocation7 + $0x18] sm:$0xf] %vm2212_vm15, %v2165_v1 }
 0x4d6   :  { %2380 = vst.msk [vmem:[#allocation7 + $0x18] sm:$0xf] %vm2373_vm1, %v2326_v14 }
 0x4d9   :  { %2186 = vrot.lane.b32.xlu0 %v2129_v17, %s5231_s21 }
 0x4da   :  { %2345 = vrot.lane.b32.xlu1 %v2289_v44, %s5233_s22  ;;  %2184 = vrot.lane.b32.xlu2 %v2128_v30, %s5231_s21 }
 0x4dc   :  { %v2169_v22 = vpop.permute.xlu2 %2168 }
 0x4e1   :  { %1866 = vrot.lane.b32.xlu0 %v1808_v43, %s5230_s20 }
 0x4e2   :  { %1868 = vrot.lane.b32.xlu1 %v1809_v8, %s5230_s20  ;;  %2347 = vrot.lane.b32.xlu2 %v2290_v39, %s5233_s22 }
 0x4e3   :  { %v2167_v46 = vpop.permute.xlu0 %2166  ;;  %v2006_v52 = vpop.permute.xlu1 %2005 }
 0x4e4   :  { %2059 = vst.msk [vmem:[#allocation7 + $0x1c] sm:$0xf] %vm2051_vm5, %v2006_v52  ;;  %v1849_v23 = vpop.permute.xlu2 %1848 }
 0x4e5   :  { %2220 = vst.msk [vmem:[#allocation7 + $0x1c] sm:$0xf] %vm2212_vm15, %v2167_v46 }
 0x4e6   :  { %2381 = vst.msk [vmem:[#allocation7 + $0x1c] sm:$0xf] %vm2373_vm1, %v2328_v61 }
 0x4e7   :  { %1900 = vst.msk [vmem:[#allocation7 + $0x24] sm:$0xf] %vm1890_vm12, %v1849_v23 }
 0x4e9   :  { %2029 = vrot.lane.b32.xlu0 %v1970_v41, %s5232_s1 }
 0x4ea   :  { %2188 = vrot.lane.b32.xlu1 %v2130_v62, %s5231_s21  ;;  %2027 = vrot.lane.b32.xlu2 %v1969_v42, %s5232_s1  ;;  %v2578_v62 = vlaneseq }
 0x4ec   :  { %v1847_v10 = vpop.permute.xlu1 %1846 }
 0x4ed   :  { %1899 = vst.msk [vmem:[#allocation7 + $0x20] sm:$0xf] %vm1890_vm12, %v1847_v10  ;;  %v5026_v56 = vld [vmem:[#allocation7 + $0x18] sm:$0xff]  ;;  %v2332_v11 = vpop.permute.xlu2 %2331  ;;  %v7241_v10 = vshrl.u32 %v2578_v62, 7 }
 0x4ee   :  { %4817 = vmatmul.msk.bf16.gmra.mxu1 %vm2484_vm13, %v5026_v56 }
 0x4ef   :  { %v2580_v4 = vadd.s32 8, %v7241_v10  ;;  %v2581_v12 = vadd.s32 16, %v7241_v10  ;;  %v7246_v48 = vcvt.s32.f32 %v7241_v10 }
 0x4f1   :  { %2349 = vrot.lane.b32.xlu0 %v2291_v15, %s5233_s22  ;;  %8558 = vst [vmem:[#allocation16_spill] sm:$0xff] %v7246_v48  ;;  %v7248_v56 = vcvt.s32.f32 %v2580_v4  ;;  %v2582_v15 = vadd.s32 24, %v7241_v10 }
 0x4f2   :  { %2351 = vrot.lane.b32.xlu1 %v2292_v60, %s5233_s22  ;;  %2190 = vrot.lane.b32.xlu2 %v2131_v55, %s5231_s21  ;;  %v7253_v55 = vcvt.s32.f32 %v2581_v12 }
 0x4f3   :  { %v2008_v21 = vpop.permute.xlu0 %2007  ;;  %8559 = vst [vmem:[#allocation45_spill] sm:$0xff] %v7248_v56 }
 0x4f4   :  { %2060 = vst.msk [vmem:[#allocation7 + $0x20] sm:$0xf] %vm2051_vm5, %v2008_v21  ;;  %v2330_v18 = vpop.permute.xlu1 %2329  ;;  %v7256_v21 = vadd.f32 0.5, %v7246_v48 }
 0x4f5   :  { %2221 = vst.msk [vmem:[#allocation7 + $0x20] sm:$0xf] %vm2212_vm15, %v2169_v22 }
 0x4f6   :  { %2382 = vst.msk [vmem:[#allocation7 + $0x20] sm:$0xf] %vm2373_vm1, %v2330_v18  ;;  %v7261_v18 = vcvt.s32.f32 %v2582_v15 }
 0x4f7   :  { %8560 = vst [vmem:[#allocation15_spill] sm:$0xff] %v7253_v55 }
 0x4f8   :  { %8561 = vst [vmem:[#allocation17_spill] sm:$0xff] %v7256_v21 }
 0x4f9   :  { %8563 = vst [vmem:[#allocation18_spill] sm:$0xff] %v7261_v18 }
 0x4fc   :  { %v2173_v5 = vpop.permute.xlu2 %2172 }
 0x503   :  { %v2171_v31 = vpop.permute.xlu0 %2170 }
 0x504   :  { %v2010_v19 = vpop.permute.xlu1 %2009  ;;  %v1853_v1 = vpop.permute.xlu2 %1852 }
 0x505   :  { %2061 = vst.msk [vmem:[#allocation7 + $0x24] sm:$0xf] %vm2051_vm5, %v2010_v19  ;;  %v2583_v19 = vadd.s32 32, %v7241_v10 }
 0x506   :  { %2222 = vst.msk [vmem:[#allocation7 + $0x24] sm:$0xf] %vm2212_vm15, %v2171_v31  ;;  %v2639_v31 = vmul.f32 0.0125, %v7256_v21 }
 0x507   :  { %2383 = vst.msk [vmem:[#allocation7 + $0x24] sm:$0xf] %vm2373_vm1, %v2332_v11  ;;  %v7259_v11 = vadd.f32 0.5, %v7248_v56 }
 0x508   :  { %1902 = vst.msk [vmem:[#allocation7 + $0x2c] sm:$0xf] %vm1890_vm12, %v1853_v1 }
 0x509   :  { %8562 = vst [vmem:[#allocation50_spill] sm:$0xff] %v7259_v11  ;;  %v2640_v1 = vmul.f32 0.0125, %v7259_v11 }
 0x50c   :  { %v1851_v38 = vpop.permute.xlu1 %1850  ;;  %v2336_v2 = vpop.permute.xlu2 %2335 }
 0x50d   :  { %1901 = vst.msk [vmem:[#allocation7 + $0x28] sm:$0xf] %vm1890_vm12, %v1851_v38  ;;  %v7270_v38 = vadd.f32 0.5, %v7261_v18 }
 0x50e   :  { %v5027_v20 = vld [vmem:[#allocation7 + $0x20] sm:$0xff] }
 0x50f   :  { %4818 = vmatmul.msk.bf16.gmra.mxu1 %vm2484_vm13, %v5027_v20  ;;  %8565 = vst [vmem:[#allocation51_spill] sm:$0xff] %v7270_v38 }
 0x513   :  { %v2012_v13 = vpop.permute.xlu0 %2011 }
 0x514   :  { %2062 = vst.msk [vmem:[#allocation7 + $0x28] sm:$0xf] %vm2051_vm5, %v2012_v13  ;;  %v2334_v26 = vpop.permute.xlu1 %2333  ;;  %v1859_v37 = vpop.permute.xlu2 %1858  ;;  %v2659_v13 = vfloor.f32 %v2639_v31 }
 0x515   :  { %2223 = vst.msk [vmem:[#allocation7 + $0x28] sm:$0xf] %vm2212_vm15, %v2173_v5  ;;  %v7264_v5 = vadd.f32 0.5, %v7253_v55 }
 0x516   :  { %2384 = vst.msk [vmem:[#allocation7 + $0x28] sm:$0xf] %vm2373_vm1, %v2334_v26  ;;  %v7210_v14 = vpop.f32.mrf.mxu1  ;;  %v7275_v26 = vcvt.s32.f32 %v2583_v19  ;;  %v2588_v19 = vadd.s32 72, %v7241_v10 }
 0x517   :  { %1905 = vst.msk [vmem:[#allocation7 + $0x38] sm:$0xf] %vm1890_vm12, %v1859_v37  ;;  %v2641_v20 = vmul.f32 0.0125, %v7264_v5  ;;  %v2584_v37 = vadd.s32 40, %v7241_v10 }
 0x518   :  { %8564 = vst [vmem:[#allocation20_spill] sm:$0xff] %v7264_v5 }
 0x519   :  { %8566 = vst [vmem:[#allocation19_spill] sm:$0xff] %v7275_v26 }
 0x51b   :  { %v2175_v24 = vpop.permute.xlu0 %2174 }
 0x51c   :  { %v2014_v57 = vpop.permute.xlu1 %2013  ;;  %v2022_v16 = vpop.permute.xlu2 %2021 }
 0x51d   :  { %2063 = vst.msk [vmem:[#allocation7 + $0x2c] sm:$0xf] %vm2051_vm5, %v2014_v57  ;;  %v2642_v57 = vmul.f32 0.0125, %v7270_v38 }
 0x51e   :  { %2224 = vst.msk [vmem:[#allocation7 + $0x2c] sm:$0xf] %vm2212_vm15, %v2175_v24  ;;  %v7216_v22 = vpop.f32.mrf.mxu1  ;;  %v2660_v24 = vfloor.f32 %v2640_v1 }
 0x51f   :  { %2385 = vst.msk [vmem:[#allocation7 + $0x2c] sm:$0xf] %vm2373_vm1, %v2336_v2 }
 0x523   :  { %v2338_v6 = vpop.permute.xlu0 %2337 }
 0x524   :  { %2386 = vst.msk [vmem:[#allocation7 + $0x30] sm:$0xf] %vm2373_vm1, %v2338_v6  ;;  %v2340_v58 = vpop.permute.xlu1 %2339  ;;  %v2342_v47 = vpop.permute.xlu2 %2341  ;;  %v2679_v6 = vmul.f32 80.0, %v2659_v13 }
 0x525   :  { %2387 = vst.msk [vmem:[#allocation7 + $0x34] sm:$0xf] %vm2373_vm1, %v2340_v58  ;;  %v7280_v58 = vadd.f32 0.5, %v7275_v26 }
 0x526   :  { %v5028_v28 = vld [vmem:[#allocation7 + $0x28] sm:$0xff] }
 0x527   :  { %4819 = vmatmul.msk.bf16.gmra.mxu1 %vm2484_vm13, %v5028_v28  ;;  %8567 = vst [vmem:[#allocation21_spill] sm:$0xff] %v7280_v58  ;;  %v2585_v28 = vadd.s32 48, %v7241_v10 }
 0x52b   :  { %v1861_v45 = vpop.permute.xlu0 %1860 }
 0x52c   :  { %1906 = vst.msk [vmem:[#allocation7 + $0x3c] sm:$0xf] %vm1890_vm12, %v1861_v45  ;;  %v2020_v40 = vpop.permute.xlu1 %2019  ;;  %v1865_v34 = vpop.permute.xlu2 %1864  ;;  %v5029_v59 = vld [vmem:[#allocation7 + $0x30] sm:$0xff]  ;;  %v2680_v45 = vmul.f32 80.0, %v2660_v24 }
 0x52d   :  { %2067 = vst.msk [vmem:[#allocation7 + $0x3c] sm:$0xf] %vm2051_vm5, %v2022_v16  ;;  %v7222_v8 = vpop.f32.mrf.mxu1  ;;  %v2661_v16 = vfloor.f32 %v2641_v20 }
 0x52e   :  { %2066 = vst.msk [vmem:[#allocation7 + $0x38] sm:$0xf] %vm2051_vm5, %v2020_v40  ;;  %v2662_v40 = vfloor.f32 %v2642_v57 }
 0x52f   :  { %1908 = vst.msk [vmem:[#allocation7 + $0x44] sm:$0xf] %vm1890_vm12, %v1865_v34 }
 0x533   :  { %v2181_v53 = vpop.permute.xlu0 %2180 }
 0x534   :  { %2227 = vst.msk [vmem:[#allocation7 + $0x38] sm:$0xf] %vm2212_vm15, %v2181_v53  ;;  %v2183_v54 = vpop.permute.xlu1 %2182  ;;  %v2185_v3 = vpop.permute.xlu2 %2184  ;;  %v2681_v53 = vmul.f32 80.0, %v2661_v16 }
 0x535   :  { %2388 = vst.msk [vmem:[#allocation7 + $0x38] sm:$0xf] %vm2373_vm1, %v2342_v47  ;;  %v7228_v52 = vpop.f32.mrf.mxu1  ;;  %v7282_v47 = vcvt.s32.f32 %v2584_v37 }
 0x536   :  { %2228 = vst.msk [vmem:[#allocation7 + $0x3c] sm:$0xf] %vm2212_vm15, %v2183_v54  ;;  %v2699_v54 = vsub.f32 %v7246_v48, %v2679_v6 }
 0x537   :  { %4820 = vmatmul.msk.bf16.gmra.mxu1 %vm2484_vm13, %v5029_v59  ;;  %8568 = vst [vmem:[#allocation22_spill] sm:$0xff] %v7282_v47  ;;  %v2643_v59 = vmul.f32 0.0125, %v7280_v58 }
 0x538   :  { %vm7297_vm14 = vcmp.lt.f32.partialorder %v2699_v54, 35.0 }
 0x53b   :  { %v2344_v7 = vpop.permute.xlu0 %2343 }
 0x53c   :  { %2389 = vst.msk [vmem:[#allocation7 + $0x3c] sm:$0xf] %vm2373_vm1, %v2344_v7  ;;  %v1863_v35 = vpop.permute.xlu1 %1862  ;;  %v2348_v29 = vpop.permute.xlu2 %2347  ;;  %v7290_v7 = vadd.f32 0.5, %v7282_v47 }
 0x53d   :  { %1907 = vst.msk [vmem:[#allocation7 + $0x40] sm:$0xf] %vm1890_vm12, %v1863_v35  ;;  %v7292_v35 = vcvt.s32.f32 %v2585_v28 }
 0x53e   :  { %8569 = vst [vmem:[#allocation24_spill] sm:$0xff] %v7290_v7 }
 0x53f   :  { %8570 = vst [vmem:[#allocation23_spill] sm:$0xff] %v7292_v35 }
 0x543   :  { %v2024_v32 = vpop.permute.xlu0 %2023  ;;  %v5030_v61 = vld [vmem:[#allocation7 + $0x38] sm:$0xff] }
 0x544   :  { %2068 = vst.msk [vmem:[#allocation7 + $0x40] sm:$0xf] %vm2051_vm5, %v2024_v32  ;;  %v2026_v49 = vpop.permute.xlu1 %2025  ;;  %v2028_v17 = vpop.permute.xlu2 %2027  ;;  %v2682_v32 = vmul.f32 80.0, %v2662_v40 }
 0x545   :  { %2229 = vst.msk [vmem:[#allocation7 + $0x40] sm:$0xf] %vm2212_vm15, %v2185_v3  ;;  %v2700_v3 = vsub.f32 %v7248_v56, %v2680_v45  ;;  %v7348_v45 = vadd.s32 80, %v7241_v10 }
 0x546   :  { %2069 = vst.msk [vmem:[#allocation7 + $0x44] sm:$0xf] %vm2051_vm5, %v2026_v49  ;;  %v2701_v49 = vsub.f32 %v7253_v55, %v2681_v53 }
 0x547   :  { %4821 = vmatmul.msk.bf16.gmra.mxu1 %vm2484_vm13, %v5030_v61  ;;  %v2586_v61 = vadd.s32 56, %v7241_v10 }
 0x54b   :  { %v2187_v63 = vpop.permute.xlu0 %2186  ;;  %v7231_v23 = vpop.f32.mrf.mxu1 }
 0x54c   :  { %2230 = vst.msk [vmem:[#allocation7 + $0x44] sm:$0xf] %vm2212_vm15, %v2187_v63  ;;  %v2346_v27 = vpop.permute.xlu1 %2345  ;;  %v2191_v0 = vpop.permute.xlu2 %2190  ;;  %v2663_v63 = vfloor.f32 %v2643_v59  ;;  %v7352_v59 = vcvt.s32.f32 %v2588_v19 }
 0x54d   :  { %2391 = vst.msk [vmem:[#allocation7 + $0x44] sm:$0xf] %vm2373_vm1, %v2348_v29 }
 0x54e   :  { %2390 = vst.msk [vmem:[#allocation7 + $0x40] sm:$0xf] %vm2373_vm1, %v2346_v27  ;;  %v2644_v27 = vmul.f32 0.0125, %v7290_v7 }
 0x54f   :  { %8584 = vst [vmem:[#allocation30_spill] sm:$0xff] %v7352_v59 }
 0x550   :  { %v2664_v62 = vfloor.f32 %v2644_v27 }
 0x552   :  { %v2684_v57 = vmul.f32 80.0, %v2664_v62  ;;  %v8428_v62 = vcvt.s32.f32 %v7348_v45 }
 0x553   :  { %v1867_v44 = vpop.permute.xlu0 %1866  ;;  %v7233_v9 = vpop.f32.mrf.mxu1 }
 0x554   :  { %1909 = vst.msk [vmem:[#allocation7 + $0x48] sm:$0xf] %vm1890_vm12, %v1867_v44  ;;  %v1869_v30 = vpop.permute.xlu1 %1868  ;;  %v2629_v33 = vadd.f32 0.5, %v8428_v62 }
 0x555   :  { %2070 = vst.msk [vmem:[#allocation7 + $0x48] sm:$0xf] %vm2051_vm5, %v2028_v17  ;;  %v5031_v50 = vld [vmem:[#allocation7 + $0x40] sm:$0xff]  ;;  %v7303_v17 = vadd.f32 0.5, %v7292_v35 }
 0x556   :  { %1910 = vst.msk [vmem:[#allocation7 + $0x4c] sm:$0xf] %vm1890_vm12, %v1869_v30  ;;  %vm7305_vm12 = vcmp.lt.f32.partialorder %v2700_v3, 35.0  ;;  %v2587_v30 = vadd.s32 64, %v7241_v10 }
 0x557   :  { %4822 = vmatmul.msk.bf16.gmra.mxu1 %vm2484_vm13, %v5031_v50  ;;  %8573 = vst [vmem:[#allocation25_spill] sm:$0xff] %v7303_v17  ;;  %v2702_v50 = vsub.f32 %v7261_v18, %v2682_v32  ;;  %v2645_v4 = vmul.f32 0.0125, %v7303_v17 }
 0x558   :  { %v7326_v12 = vcvt.s32.f32 %v2587_v30 }
 0x559   :  { %v2665_v16 = vfloor.f32 %v2645_v4  ;;  %v7370_v4 = vadd.s32 96, %v7241_v10 }
 0x55a   :  { %8579 = vst [vmem:[#allocation28_spill] sm:$0xff] %v7326_v12  ;;  %v7345_v28 = vadd.f32 0.5, %v7326_v12 }
 0x55b   :  { %v2030_v25 = vpop.permute.xlu0 %2029 }
 0x55c   :  { %2071 = vst.msk [vmem:[#allocation7 + $0x4c] sm:$0xf] %vm2051_vm5, %v2030_v25  ;;  %v2189_v43 = vpop.permute.xlu1 %2188  ;;  %vm7316_vm5 = vcmp.lt.f32.partialorder %v2701_v49, 35.0 }
 0x55d   :  { %2232 = vst.msk [vmem:[#allocation7 + $0x4c] sm:$0xf] %vm2212_vm15, %v2191_v0  ;;  %v2739_v0 = vsel %vm7297_vm14, %v7210_v14, 0.0  ;;  %v2741_v20 = vsel %vm7316_vm5, %v7222_v8, 0.0 }
 0x55e   :  { %2231 = vst.msk [vmem:[#allocation7 + $0x48] sm:$0xf] %vm2212_vm15, %v2189_v43  ;;  %v2805_v15 = vmul.f32 %v2739_v0, %v2739_v0  ;;  %vm7328_vm15 = vcmp.lt.f32.partialorder %v2702_v50, 35.0  ;;  %v2759_v40 = vsel %vm8463_vm2, %v2739_v0, 0.0  ;;  %v2807_v54 = vmul.f32 %v2741_v20, %v2741_v20 }
 0x55f   :  { %v2742_v6 = vsel %vm7328_vm15, %v7228_v52, 0.0  ;;  %8583 = vst [vmem:[#allocation29_spill] sm:$0xff] %v7345_v28  ;;  %v2704_v50 = vsub.f32 %v7282_v47, %v2684_v57  ;;  %v2685_v0 = vmul.f32 80.0, %v2665_v16  ;;  %v7382_v16 = vadd.s32 104, %v7241_v10 }
 0x560   :  { %v2825_v53 = vsel %vm8463_vm2, %v2805_v15, 0.0  ;;  %v2808_v27 = vmul.f32 %v2742_v6, %v2742_v6  ;;  %v2828_v19 = vsel %vm8463_vm2, %v2807_v54, 0.0  ;;  %v8588_v54 = vmov 0 }
 0x561   :  { %vm7385_vm6 = vcmp.lt.f32.partialorder %v2704_v50, 35.0  ;;  %v7394_v57 = vadd.s32 112, %v7241_v10 }
 0x562   :  { %v8589_v54 = vsel %vm7385_vm6, 4294967295, %v8588_v54 }
 0x563   :  { %v2350_v39 = vpop.permute.xlu0 %2349 }
 0x564   :  { %2392 = vst.msk [vmem:[#allocation7 + $0x48] sm:$0xf] %vm2373_vm1, %v2350_v39  ;;  %v2352_v46 = vpop.permute.xlu1 %2351  ;;  %v7320_v39 = vcvt.s32.f32 %v2586_v61 }
 0x565   :  { %2393 = vst.msk [vmem:[#allocation7 + $0x4c] sm:$0xf] %vm2373_vm1, %v2352_v46  ;;  %v2740_v46 = vsel %vm7305_vm12, %v7216_v22, 0.0 }
 0x566   :  { %8578 = vst [vmem:[#allocation26_spill] sm:$0xff] %v7320_v39  ;;  %v2806_v1 = vmul.f32 %v2740_v46, %v2740_v46  ;;  %v7337_v13 = vadd.f32 0.5, %v7320_v39  ;;  %v2760_v37 = vsel %vm8463_vm2, %v2740_v46, 0.0  ;;  %v2762_v46 = vsel %vm8463_vm2, %v2741_v20, 0.0 }
 0x567   :  { %v2761_v32 = vadd.f32 %v2760_v37, %v2759_v40  ;;  %v7375_v37 = vadd.f32 0.5, %v7352_v59 }
 0x568   :  { %8582 = vst [vmem:[#allocation27_spill] sm:$0xff] %v7337_v13  ;;  %v2826_v49 = vsel %vm8463_vm2, %v2806_v1, 0.0  ;;  %v2646_v61 = vmul.f32 0.0125, %v7337_v13  ;;  %v2764_v1 = vsel %vm8463_vm2, %v2742_v6, 0.0  ;;  %v2705_v6 = vsub.f32 %v7292_v35, %v2685_v0 }
 0x569   :  { %v2827_v15 = vadd.f32 %v2826_v49, %v2825_v53  ;;  %8587 = vst [vmem:[#allocation32_spill] sm:$0xff] %v7375_v37  ;;  %v2763_v40 = vadd.f32 %v2762_v46, %v2761_v32  ;;  %v2830_v53 = vsel %vm8463_vm2, %v2808_v27, 0.0  ;;  %v2648_v27 = vmul.f32 0.0125, %v7375_v37 }
 0x56a   :  { %v2666_v20 = vfloor.f32 %v2646_v61  ;;  %v2744_v61 = vsel %vm7385_vm6, %v7233_v9, 0.0  ;;  %vm7406_vm7 = vcmp.lt.f32.partialorder %v2705_v6, 35.0  ;;  %v7418_v37 = vadd.s32 128, %v7241_v10 }
 0x56b   :  { %v7235_v36 = vpop.f32.mrf.mxu1  ;;  %v2829_v47 = vadd.f32 %v2828_v19, %v2827_v15  ;;  %v8591_v15 = vmov 0  ;;  %v7411_v19 = vadd.s32 120, %v7241_v10  ;;  %v2768_v6 = vsel %vm8463_vm2, %v2744_v61, 0.0 }
 0x56c   :  { %v5032_v51 = vld [vmem:[#allocation7 + $0x48] sm:$0xff]  ;;  %v2686_v18 = vmul.f32 80.0, %v2666_v20  ;;  %v8592_v15 = vsel %vm7406_vm7, 4294967295, %v8591_v15  ;;  %v8593_v20 = vcvt.s32.f32 %v7370_v4  ;;  %v2810_v48 = vmul.f32 %v2744_v61, %v2744_v61 }
 0x56d   :  { %4823 = vmatmul.msk.bf16.gmra.mxu1 %vm2484_vm13, %v5032_v51  ;;  %v2683_v51 = vmul.f32 80.0, %v2663_v63  ;;  %v7359_v63 = vadd.s32 88, %v7241_v10  ;;  %v2831_v35 = vadd.f32 %v2830_v53, %v2829_v47  ;;  %v2668_v53 = vfloor.f32 %v2648_v27 }
 0x56e   :  { %v8448_v61 = vcvt.s32.f32 %v7418_v37 }
 0x56f   :  { %v2703_v24 = vsub.f32 %v7275_v26, %v2683_v51  ;;  %v2647_v51 = vmul.f32 0.0125, %v7345_v28  ;;  %v2765_v26 = vadd.f32 %v2764_v1, %v2763_v40  ;;  %v8590_v0 = vcvt.s32.f32 %v7359_v63 }
 0x570   :  { %v2631_v40 = vadd.f32 0.5, %v8593_v20  ;;  %v2706_v28 = vsub.f32 %v7320_v39, %v2686_v18  ;;  %v2745_v20 = vsel %vm7406_vm7, %v7235_v36, 0.0  ;;  %v8595_v18 = vcvt.s32.f32 %v7394_v57 }
 0x571   :  { %vm7361_vm1 = vcmp.lt.f32.partialorder %v2703_v24, 35.0  ;;  %v2667_v49 = vfloor.f32 %v2647_v51  ;;  %v2630_v51 = vadd.f32 0.5, %v8590_v0  ;;  %v2688_v13 = vmul.f32 80.0, %v2668_v53 }
 0x572   :  { %v2743_v24 = vsel %vm7361_vm1, %v7231_v23, 0.0  ;;  %v2651_v0 = vmul.f32 0.0125, %v2631_v40  ;;  %vm7438_vm8 = vcmp.lt.f32.partialorder %v2706_v28, 35.0  ;;  %v8605_v21 = vcvt.s32.f32 %v7359_v63 }
 0x573   :  { %v7237_v41 = vpop.f32.mrf.mxu1  ;;  %v2809_v32 = vmul.f32 %v2743_v24, %v2743_v24  ;;  %v2766_v46 = vsel %vm8463_vm2, %v2743_v24, 0.0  ;;  %v2687_v1 = vmul.f32 80.0, %v2667_v49  ;;  %v2649_v24 = vmul.f32 0.0125, %v2629_v33 }
 0x574   :  { %v2767_v62 = vadd.f32 %v2766_v46, %v2765_v26  ;;  %v2650_v55 = vmul.f32 0.0125, %v2630_v51  ;;  %v8594_v49 = vcvt.s32.f32 %v7382_v16  ;;  %v2633_v51 = vadd.f32 0.5, %v8595_v18 }
 0x575   :  { %v2832_v47 = vsel %vm8463_vm2, %v2809_v32, 0.0  ;;  %v7429_v32 = vadd.s32 136, %v7241_v10  ;;  %v2707_v27 = vsub.f32 %v7326_v12, %v2687_v1  ;;  %v2669_v46 = vfloor.f32 %v2649_v24 }
 0x576   :  { %v2632_v33 = vadd.f32 0.5, %v8594_v49  ;;  %v2833_v39 = vadd.f32 %v2832_v47, %v2831_v35  ;;  %v7436_v49 = vadd.s32 144, %v7241_v10  ;;  %v2769_v56 = vadd.f32 %v2768_v6, %v2767_v62 }
 0x577   :  { %v8596_v26 = vmov 0  ;;  %v2670_v17 = vfloor.f32 %v2650_v55  ;;  %v2834_v1 = vsel %vm8463_vm2, %v2810_v48, 0.0  ;;  %v2811_v24 = vmul.f32 %v2745_v20, %v2745_v20 }
 0x578   :  { %v8597_v26 = vsel %vm7438_vm8, 4294967295, %v8596_v26  ;;  %v2652_v7 = vmul.f32 0.0125, %v2632_v33  ;;  %v8598_v35 = vcvt.s32.f32 %v7411_v19  ;;  %vm7448_vm9 = vcmp.lt.f32.partialorder %v2707_v27, 35.0 }
 0x579   :  { %v8599_v18 = vmov 0  ;;  %v2689_v28 = vmul.f32 80.0, %v2669_v46  ;;  %v2671_v62 = vfloor.f32 %v2651_v0  ;;  %v2653_v6 = vmul.f32 0.0125, %v2633_v51 }
 0x57a   :  { %v2634_v47 = vadd.f32 0.5, %v8598_v35  ;;  %v8600_v18 = vsel %vm7448_vm9, 4294967295, %v8599_v18  ;;  %v2746_v55 = vsel %vm7438_vm8, %v7237_v41, 0.0  ;;  %v2708_v48 = vsub.f32 %v7352_v59, %v2688_v13 }
 0x57b   :  { %v2635_v33 = vadd.f32 0.5, %v8448_v61  ;;  %v8453_v35 = vcvt.s32.f32 %v7436_v49  ;;  %v2835_v12 = vadd.f32 %v2834_v1, %v2833_v39  ;;  %v2770_v27 = vsel %vm8463_vm2, %v2745_v20, 0.0 }
 0x57c   :  { %v2690_v53 = vmul.f32 80.0, %v2670_v17  ;;  %v2672_v58 = vfloor.f32 %v2652_v7  ;;  %v2836_v46 = vsel %vm8463_vm2, %v2811_v24, 0.0  ;;  %v2654_v51 = vmul.f32 0.0125, %v2634_v47 }
 0x57d   :  { %v8601_v38 = vcvt.s32.f32 %v7429_v32  ;;  %v2812_v59 = vmul.f32 %v2746_v55, %v2746_v55  ;;  %v8602_v61 = vcvt.s32.f32 %v7348_v45  ;;  %v2691_v39 = vmul.f32 80.0, %v2671_v62 }
 0x57e   :  { %v2673_v1 = vfloor.f32 %v2653_v6  ;;  %vm7470_vm10 = vcmp.lt.f32.partialorder %v2708_v48, 35.0  ;;  %v8603_v17 = vmov 0  ;;  %v2655_v7 = vmul.f32 0.0125, %v2635_v33 }
 0x57f   :  { %v2636_v13 = vadd.f32 0.5, %v8601_v38  ;;  %v7468_v5 = vsub.f32 %v8602_v61, %v2689_v28  ;;  %v8604_v17 = vsel %vm7470_vm10, 4294967295, %v8603_v17  ;;  %v2637_v20 = vadd.f32 0.5, %v8453_v35 }
 0x580   :  { %v7477_v24 = vadd.s32 152, %v7241_v10  ;;  %v2771_v47 = vadd.f32 %v2770_v27, %v2769_v56  ;;  %v7481_v45 = vsub.f32 %v8605_v21, %v2690_v53  ;;  %v2692_v61 = vmul.f32 80.0, %v2672_v58 }
 0x581   :  { %v2837_v28 = vadd.f32 %v2836_v46, %v2835_v12  ;;  %v2772_v62 = vsel %vm8463_vm2, %v2746_v55, 0.0  ;;  %v2674_v6 = vfloor.f32 %v2654_v51  ;;  %v2656_v48 = vmul.f32 0.0125, %v2636_v13 }
 0x582   :  { %vm8460_vm11 = vcmp.lt.f32.partialorder %v7468_v5, 35.0  ;;  %v8606_v10 = vcvt.s32.f32 %v7370_v4  ;;  %v2693_v27 = vmul.f32 80.0, %v2673_v1  ;;  %v2838_v21 = vsel %vm8463_vm2, %v2812_v59, 0.0 }
 0x583   :  { %v2675_v58 = vfloor.f32 %v2655_v7  ;;  %v2657_v12 = vmul.f32 0.0125, %v2637_v20  ;;  %v8456_v53 = vcvt.s32.f32 %v7477_v24  ;;  %vm8459_vm13 = vcmp.lt.f32.partialorder %v7481_v45, 35.0 }
 0x584   :  { %v7490_v56 = vsub.f32 %v8606_v10, %v2691_v39  ;;  %v8607_v51 = vcvt.s32.f32 %v7382_v16  ;;  %v2694_v39 = vmul.f32 80.0, %v2674_v6  ;;  %v2676_v1 = vfloor.f32 %v2656_v48 }
 0x585   :  { %v2773_v7 = vadd.f32 %v2772_v62, %v2771_v47  ;;  %v2839_v20 = vadd.f32 %v2838_v21, %v2837_v28  ;;  %v2677_v10 = vfloor.f32 %v2657_v12  ;;  %v8609_v28 = vcvt.s32.f32 %v7411_v19 }
 0x586   :  { %v7501_v4 = vsub.f32 %v8607_v51, %v2692_v61  ;;  %vm8455_vm3 = vcmp.lt.f32.partialorder %v7490_v56, 35.0  ;;  %v2695_v61 = vmul.f32 80.0, %v2675_v58  ;;  %v2638_v51 = vadd.f32 0.5, %v8456_v53 }
 0x587   :  { %v7521_v62 = vsub.f32 %v8609_v28, %v2694_v39  ;;  %v2697_v19 = vmul.f32 80.0, %v2677_v10  ;;  %v8611_v28 = vcvt.s32.f32 %v7429_v32 }
 0x588   :  { %vm8457_vm4 = vcmp.lt.f32.partialorder %v7501_v4, 35.0 }
 0x589   :  { %vm8614_vm8 = vcmp.lt.f32.partialorder %v7521_v62, 35.0 }
 0x58c   :  { %v7239_v42 = vpop.f32.mrf.mxu1 }
 0x58d   :  { %v2747_v0 = vsel %vm7448_vm9, %v7239_v42, 0.0 }
 0x58e   :  { %v2813_v38 = vmul.f32 %v2747_v0, %v2747_v0  ;;  %v2774_v55 = vsel %vm8463_vm2, %v2747_v0, 0.0  ;;  %v8608_v0 = vcvt.s32.f32 %v7394_v57 }
 0x58f   :  { %v2775_v35 = vadd.f32 %v2774_v55, %v2773_v7  ;;  %v8610_v55 = vcvt.s32.f32 %v7418_v37 }
 0x590   :  { %v2840_v46 = vsel %vm8463_vm2, %v2813_v38, 0.0  ;;  %v7509_v38 = vsub.f32 %v8608_v0, %v2693_v27  ;;  %v2696_v27 = vmul.f32 80.0, %v2676_v1 }
 0x591   :  { %v2841_v6 = vadd.f32 %v2840_v46, %v2839_v20  ;;  %v7533_v46 = vsub.f32 %v8610_v55, %v2695_v61 }
 0x592   :  { %vm8458_vm0 = vcmp.lt.f32.partialorder %v7509_v38, 35.0  ;;  %v7542_v53 = vsub.f32 %v8611_v28, %v2696_v27 }
 0x593   :  { %vm8615_vm7 = vcmp.lt.f32.partialorder %v7533_v46, 35.0 }
 0x594   :  { %v7251_v60 = vpop.f32.mrf.mxu1 }
 0x595   :  { %v2748_v33 = vsel %vm7470_vm10, %v7251_v60, 0.0 }
 0x596   :  { %v2814_v13 = vmul.f32 %v2748_v33, %v2748_v33  ;;  %v2776_v47 = vsel %vm8463_vm2, %v2748_v33, 0.0 }
 0x597   :  { %v2777_v39 = vadd.f32 %v2776_v47, %v2775_v35 }
 0x598   :  { %v2842_v57 = vsel %vm8463_vm2, %v2814_v13, 0.0  ;;  %v2658_v13 = vmul.f32 0.0125, %v2638_v51 }
 0x599   :  { %v2843_v1 = vadd.f32 %v2842_v57, %v2841_v6 }
 0x5a4   :  { %v7272_v2 = vpop.f32.mrf.mxu1 }
 0x5a5   :  { %v2749_v59 = vsel %vm8460_vm11, %v7272_v2, 0.0 }
 0x5a6   :  { %v2815_v48 = vmul.f32 %v2749_v59, %v2749_v59  ;;  %v2778_v21 = vsel %vm8463_vm2, %v2749_v59, 0.0 }
 0x5a7   :  { %v2779_v37 = vadd.f32 %v2778_v21, %v2777_v39 }
 0x5a8   :  { %v2844_v59 = vsel %vm8463_vm2, %v2815_v48, 0.0  ;;  %v2678_v48 = vfloor.f32 %v2658_v13 }
 0x5a9   :  { %v2845_v32 = vadd.f32 %v2844_v59, %v2843_v1 }
 0x5aa   :  { %v2698_v1 = vmul.f32 80.0, %v2678_v48 }
 0x5ac   :  { %v7285_v34 = vpop.f32.mrf.mxu1 }
 0x5ad   :  { %v2750_v16 = vsel %vm8459_vm13, %v7285_v34, 0.0 }
 0x5ae   :  { %v2816_v58 = vmul.f32 %v2750_v16, %v2750_v16  ;;  %v2780_v7 = vsel %vm8463_vm2, %v2750_v16, 0.0  ;;  %v8612_v16 = vcvt.s32.f32 %v7436_v49 }
 0x5af   :  { %v2781_v47 = vadd.f32 %v2780_v7, %v2779_v37 }
 0x5b0   :  { %v2846_v61 = vsel %vm8463_vm2, %v2816_v58, 0.0  ;;  %v7552_v6 = vsub.f32 %v8612_v16, %v2697_v19 }
 0x5b2   :  { %vm8465_vm13 = vcmp.lt.f32.partialorder %v7552_v6, 35.0  ;;  %vm8617_vm6 = vcmp.lt.f32.partialorder %v7552_v6, 35.0 }
 0x5b4   :  { %v7311_v25 = vpop.f32.mrf.mxu1 }
 0x5b5   :  { %v2751_v12 = vsel %vm8455_vm3, %v7311_v25, 0.0  ;;  %vm8468_vm3 = vcmp.lt.f32.partialorder %v7521_v62, 35.0 }
 0x5b6   :  { %v2817_v20 = vmul.f32 %v2751_v12, %v2751_v12  ;;  %v2782_v51 = vsel %vm8463_vm2, %v2751_v12, 0.0  ;;  %v2847_v12 = vadd.f32 %v2846_v61, %v2845_v32 }
 0x5b7   :  { %v2783_v55 = vadd.f32 %v2782_v51, %v2781_v47  ;;  %v8613_v47 = vcvt.s32.f32 %v7477_v24 }
 0x5b8   :  { %v2848_v27 = vsel %vm8463_vm2, %v2817_v20, 0.0 }
 0x5b9   :  { %v2849_v59 = vadd.f32 %v2848_v27, %v2847_v12  ;;  %v7580_v27 = vsub.f32 %v8613_v47, %v2698_v1 }
 0x5bb   :  { %vm8464_vm11 = vcmp.lt.f32.partialorder %v7580_v27, 35.0 }
 0x5bc   :  { %v7354_v3 = vpop.f32.mrf.mxu1 }
 0x5bd   :  { %v2752_v33 = vsel %vm8457_vm4, %v7354_v3, 0.0  ;;  %vm8467_vm4 = vcmp.lt.f32.partialorder %v7533_v46, 35.0 }
 0x5be   :  { %v2818_v10 = vmul.f32 %v2752_v33, %v2752_v33  ;;  %v2784_v21 = vsel %vm8463_vm2, %v2752_v33, 0.0 }
 0x5bf   :  { %v2785_v7 = vadd.f32 %v2784_v21, %v2783_v55 }
 0x5c0   :  { %v2850_v49 = vsel %vm8463_vm2, %v2818_v10, 0.0 }
 0x5c1   :  { %v2851_v10 = vadd.f32 %v2850_v49, %v2849_v59 }
 0x5c4   :  { %v7397_v50 = vpop.f32.mrf.mxu1 }
 0x5c5   :  { %v2753_v35 = vsel %vm8458_vm0, %v7397_v50, 0.0  ;;  %vm8466_vm0 = vcmp.lt.f32.partialorder %v7542_v53, 35.0 }
 0x5c6   :  { %v2819_v58 = vmul.f32 %v2753_v35, %v2753_v35  ;;  %v2786_v13 = vsel %vm8463_vm2, %v2753_v35, 0.0 }
 0x5c7   :  { %v2787_v51 = vadd.f32 %v2786_v13, %v2785_v7 }
 0x5c8   :  { %v2852_v20 = vsel %vm8463_vm2, %v2819_v58, 0.0 }
 0x5c9   :  { %v2853_v21 = vadd.f32 %v2852_v20, %v2851_v10 }
 0x5cc   :  { %v7443_v40 = vpop.f32.mrf.mxu1 }
 0x5cd   :  { %v2754_v57 = vsel %vm8468_vm3, %v7443_v40, 0.0  ;;  %vm8616_vm3 = vcmp.lt.f32.partialorder %v7542_v53, 35.0 }
 0x5ce   :  { %v2820_v39 = vmul.f32 %v2754_v57, %v2754_v57  ;;  %v2788_v28 = vsel %vm8463_vm2, %v2754_v57, 0.0 }
 0x5cf   :  { %v2789_v57 = vadd.f32 %v2788_v28, %v2787_v51 }
 0x5d0   :  { %v2854_v16 = vsel %vm8463_vm2, %v2820_v39, 0.0 }
 0x5d1   :  { %v2855_v49 = vadd.f32 %v2854_v16, %v2853_v21 }
 0x5d4   :  { %v7493_v63 = vpop.f32.mrf.mxu1 }
 0x5d5   :  { %v2755_v19 = vsel %vm8467_vm4, %v7493_v63, 0.0 }
 0x5d6   :  { %v2821_v37 = vmul.f32 %v2755_v19, %v2755_v19  ;;  %v2790_v48 = vsel %vm8463_vm2, %v2755_v19, 0.0 }
 0x5d7   :  { %v2791_v13 = vadd.f32 %v2790_v48, %v2789_v57 }
 0x5d8   :  { %v2856_v58 = vsel %vm8463_vm2, %v2821_v37, 0.0 }
 0x5d9   :  { %v2857_v19 = vadd.f32 %v2856_v58, %v2855_v49 }
 0x5dc   :  { %v7538_v0 = vpop.f32.mrf.mxu1 }
 0x5dd   :  { %v2756_v33 = vsel %vm8466_vm0, %v7538_v0, 0.0 }
 0x5de   :  { %v2822_v32 = vmul.f32 %v2756_v33, %v2756_v33  ;;  %v2792_v12 = vsel %vm8463_vm2, %v2756_v33, 0.0 }
 0x5df   :  { %v2793_v7 = vadd.f32 %v2792_v12, %v2791_v13 }
 0x5e0   :  { %v2858_v59 = vsel %vm8463_vm2, %v2822_v32, 0.0 }
 0x5e1   :  { %v2859_v20 = vadd.f32 %v2858_v59, %v2857_v19 }
 0x5ea   :  { %v7571_v61 = vpop.f32.mrf.mxu1 }
 0x5eb   :  { %v2757_v35 = vsel %vm8465_vm13, %v7571_v61, 0.0 }
 0x5ec   :  { %v2823_v55 = vmul.f32 %v2757_v35, %v2757_v35  ;;  %v2794_v39 = vsel %vm8463_vm2, %v2757_v35, 0.0 }
 0x5ed   :  { %v2795_v28 = vadd.f32 %v2794_v39, %v2793_v7 }
 0x5ee   :  { %v2860_v24 = vsel %vm8463_vm2, %v2823_v55, 0.0 }
 0x5ef   :  { %v2861_v51 = vadd.f32 %v2860_v24, %v2859_v20 }
 0x5f2   :  { %v2575_v1 = vpop.f32.mrf.mxu1 }
 0x5f3   :  { %v2758_v37 = vsel %vm8464_vm11, %v2575_v1, 0.0 }
 0x5f4   :  { %v2796_v33 = vsel %vm8463_vm2, %v2758_v37, 0.0  ;;  %v2824_v10 = vmul.f32 %v2758_v37, %v2758_v37 }
 0x5f5   :  { %v2797_v16 = vadd.f32 %v2796_v33, %v2795_v28 }
 0x5f6   :  { %v2862_v48 = vsel %vm8463_vm2, %v2824_v10, 0.0 }
 0x5f7   :  { %v2798_v35 = vrot.slane %v2797_v16, 4  ;;  %v2863_v32 = vadd.f32 %v2862_v48, %v2861_v51 }
 0x5f9   :  { %v2799_v47 = vadd.f32 %v2798_v35, %v2797_v16  ;;  %v2864_v21 = vrot.slane %v2863_v32, 4  ;;  %v2874_v35 = vld [vmem:[%s8371_s6] sm:$0x1] }
 0x5fb   :  { %v2800_v57 = vrot.slane %v2799_v47, 2  ;;  %v2865_v58 = vadd.f32 %v2864_v21, %v2863_v32 }
 0x5fd   :  { %v2801_v12 = vadd.f32 %v2800_v57, %v2799_v47  ;;  %v2866_v55 = vrot.slane %v2865_v58, 2 }
 0x5ff   :  { %v2802_v49 = vrot.slane %v2801_v12, 1  ;;  %v2867_v13 = vadd.f32 %v2866_v55, %v2865_v58 }
 0x601   :  { %v2803_v59 = vadd.f32 %v2802_v49, %v2801_v12  ;;  %v2868_v39 = vrot.slane %v2867_v13, 1 }
 0x603   :  { %v2804_v19 = vmul.f32 0.014285714, %v2803_v59  ;;  %v2869_v7 = vadd.f32 %v2868_v39, %v2867_v13 }
 0x605   :  { %v2870_v11 = vmul.f32 0.014285714, %v2869_v7  ;;  %v2871_v37 = vmul.f32 %v2804_v19, %v2804_v19 }
 0x607   :  { %v2872_v24 = vsub.f32 %v2870_v11, %v2871_v37  ;;  %v2887_v11 = vld [vmem:[%s8371_s6 + $0x1] sm:$0x1]  ;;  %s5234_s6 = smov 48  }
 0x609   :  { %v2873_v20 = vmax.f32 %v2872_v24, 0.0 }
 0x60b   :  { %v2875_v28 = vadd.f32 1e-05, %v2873_v20 }
 0x60d   :  { %5113 = vrsqrt.f32 %v2875_v28  ;;  %vm2882_vm11 = vweird.f32 %v2875_v28 }
 0x613   :  { %v5114_v33 = vpop.eup %5113 }
 0x614   :  { %v2877_v10 = vmul.f32 %v5114_v33, %v2875_v28  ;;  %vm2883_vm2 = vweird.f32 %v5114_v33 }
 0x615   :  { %vm2884_vm13 = vmor %vm2882_vm11, %vm2883_vm2 }
 0x616   :  { %v2878_v51 = vmul.f32 %v5114_v33, %v2877_v10 }
 0x618   :  { %v2879_v16 = vmul.f32 0.5, %v2878_v51 }
 0x61a   :  { %v2880_v48 = vsub.f32 1.5, %v2879_v16 }
 0x61c   :  { %v2881_v32 = vmul.f32 %v5114_v33, %v2880_v48 }
 0x61e   :  { %v2885_v47 = vsel %vm2884_vm13, %v5114_v33, %v2881_v32 }
 0x61f   :  { %v2886_v21 = vmul.f32 %v2885_v47, %v2874_v35 }
 0x621   :  { %v2888_v57 = vmul.f32 %v2886_v21, %v2804_v19  ;;  %v7598_v58 = vperm.slane %v2886_v21, 0 }
 0x623   :  { %v2889_v12 = vsub.f32 %v2887_v11, %v2888_v57  ;;  %v2906_v55 = vmul.f32 %v7598_v58, %v7443_v40  ;;  %v2907_v49 = vmul.f32 %v7598_v58, %v7493_v63  ;;  %v2908_v13 = vmul.f32 %v7598_v58, %v7538_v0 }
 0x624   :  { %v2909_v59 = vmul.f32 %v7598_v58, %v7571_v61  ;;  %v2910_v39 = vmul.f32 %v7598_v58, %v2575_v1  ;;  %v2892_v19 = vmul.f32 %v7598_v58, %v7216_v22  ;;  %v2893_v37 = vmul.f32 %v7598_v58, %v7222_v8 }
 0x625   :  { %v7611_v7 = vperm.slane %v2889_v12, 0  ;;  %v2894_v40 = vmul.f32 %v7598_v58, %v7228_v52  ;;  %v2891_v63 = vmul.f32 %v7598_v58, %v7210_v14  ;;  %v2895_v0 = vmul.f32 %v7598_v58, %v7231_v23 }
 0x626   :  { %v2896_v61 = vmul.f32 %v7598_v58, %v7233_v9  ;;  %v2897_v22 = vmul.f32 %v7598_v58, %v7235_v36  ;;  %v2898_v1 = vmul.f32 %v7598_v58, %v7237_v41  ;;  %v2900_v29 = vmul.f32 %v7598_v58, %v7251_v60 }
 0x627   :  { %v2927_v8 = vadd.f32 %v7611_v7, %v2906_v55  ;;  %v2928_v24 = vadd.f32 %v7611_v7, %v2907_v49  ;;  %v2929_v52 = vadd.f32 %v7611_v7, %v2908_v13  ;;  %v2930_v14 = vadd.f32 %v7611_v7, %v2909_v59 }
 0x628   :  { %v2931_v20 = vadd.f32 %v7611_v7, %v2910_v39  ;;  %v2913_v23 = vadd.f32 %v7611_v7, %v2892_v19  ;;  %v2914_v9 = vadd.f32 %v7611_v7, %v2893_v37  ;;  %v2915_v28 = vadd.f32 %v7611_v7, %v2894_v40 }
 0x629   :  { %vm2947_vm2 = vcmp.gt.f32.partialorder %v2927_v8, 0.0  ;;  %vm2948_vm11 = vcmp.gt.f32.partialorder %v2928_v24, 0.0  ;;  %vm2949_vm13 = vcmp.gt.f32.partialorder %v2929_v52, 0.0  ;;  %vm2950_vm0 = vcmp.gt.f32.partialorder %v2930_v14, 0.0 }
 0x62a   :  { %vm2951_vm4 = vcmp.gt.f32.partialorder %v2931_v20, 0.0  ;;  %v2967_v36 = vmul.f32 0.2, %v2927_v8  ;;  %v2968_v41 = vmul.f32 0.2, %v2928_v24  ;;  %v2912_v16 = vadd.f32 %v7611_v7, %v2891_v63 }
 0x62b   :  { %v2969_v33 = vmul.f32 0.2, %v2929_v52  ;;  %v2970_v10 = vmul.f32 0.2, %v2930_v14  ;;  %v2971_v51 = vmul.f32 0.2, %v2931_v20  ;;  %v2916_v62 = vadd.f32 %v7611_v7, %v2895_v0 }
 0x62c   :  { %v2987_v48 = vsel %vm2947_vm2, %v2927_v8, %v2967_v36  ;;  %v2988_v35 = vsel %vm2948_vm11, %v2928_v24, %v2968_v41  ;;  %vm2934_vm10 = vcmp.gt.f32.partialorder %v2914_v9, 0.0  ;;  %vm2935_vm9 = vcmp.gt.f32.partialorder %v2915_v28, 0.0 }
 0x62d   :  { %v2989_v32 = vsel %vm2949_vm13, %v2929_v52, %v2969_v33  ;;  %v2990_v47 = vsel %vm2950_vm0, %v2930_v14, %v2970_v10  ;;  %v2991_v21 = vsel %vm2951_vm4, %v2931_v20, %v2971_v51  ;;  %v3007_v11 = vsel %vm8614_vm8, %v2987_v48, 0.0 }
 0x62e   :  { %v3008_v57 = vsel %vm8615_vm7, %v2988_v35, 0.0  ;;  %v3009_v12 = vsel %vm8616_vm3, %v2989_v32, 0.0  ;;  %v3010_v55 = vsel %vm8617_vm6, %v2990_v47, 0.0  ;;  %vm8618_vm2 = vcmp.lt.f32.partialorder %v7580_v27, 35.0 }
 0x62f   :  { %v3011_v49 = vsel %vm8618_vm2, %v2991_v21, 0.0  ;;  %vm8619_vm11 = vcmask 130048   ;;  %v2953_v13 = vmul.f32 0.2, %v2913_v23  ;;  %v2954_v59 = vmul.f32 0.2, %v2914_v9 }
 0x630   :  { %3027 = vst.msk [vmem:[#allocation3 + $0x7b] sm:$0xff] %vm8619_vm11, %v3007_v11  ;;  %vm8620_vm13 = vmmov %vm8619_vm11  ;;  %vm2932_vm0 = vcmp.gt.f32.partialorder %v2912_v16, 0.0  ;;  %v2955_v46 = vmul.f32 0.2, %v2915_v28  ;;  %v2952_v53 = vmul.f32 0.2, %v2912_v16  ;;  %v2917_v39 = vadd.f32 %v7611_v7, %v2896_v61 }
 0x631   :  { %3028 = vst.msk [vmem:[#allocation3 + $0x83] sm:$0xff] %vm8620_vm13, %v3008_v57  ;;  %vm8621_vm8 = vmmov %vm8619_vm11  ;;  %v2918_v6 = vadd.f32 %v7611_v7, %v2897_v22  ;;  %vm8623_vm7 = vcmp.gt.f32.partialorder %v2913_v23, 0.0  ;;  %v2974_v19 = vsel %vm2934_vm10, %v2914_v9, %v2954_v59  ;;  %vm2936_vm3 = vcmp.gt.f32.partialorder %v2916_v62, 0.0 }
 0x632   :  { %3029 = vst.msk [vmem:[#allocation3 + $0x8b] sm:$0xff] %vm8621_vm8, %v3009_v12  ;;  %vm8622_vm6 = vmmov %vm8621_vm8  ;;  %v2973_v27 = vsel %vm8623_vm7, %v2913_v23, %v2953_v13  ;;  %v2956_v37 = vmul.f32 0.2, %v2916_v62  ;;  %v2975_v40 = vsel %vm2935_vm9, %v2915_v28, %v2955_v46  ;;  %v2994_v0 = vsel %vm7316_vm5, %v2974_v19, 0.0 }
 0x633   :  { %3030 = vst.msk [vmem:[#allocation3 + $0x93] sm:$0xff] %vm8622_vm6, %v3010_v55  ;;  %vm8624_vm4 = vmmov %vm8622_vm6  ;;  %v2993_v63 = vsel %vm7305_vm12, %v2973_v27, 0.0  ;;  %v2972_v61 = vsel %vm2932_vm0, %v2912_v16, %v2952_v53  ;;  %v2995_v22 = vsel %vm7328_vm15, %v2975_v40, 0.0  ;;  %vm2937_vm10 = vcmp.gt.f32.partialorder %v2917_v39, 0.0 }
 0x634   :  { %3031 = vst.msk [vmem:[#allocation3 + $0x9b] sm:$0xff] %vm8624_vm4, %v3011_v49  ;;  %vm8625_vm2 = vmmov %vm8624_vm4  ;;  %v2992_v8 = vsel %vm7297_vm14, %v2972_v61, 0.0  ;;  %v2957_v24 = vmul.f32 0.2, %v2917_v39  ;;  %v2976_v52 = vsel %vm2936_vm3, %v2916_v62, %v2956_v37  ;;  %v2919_v44 = vadd.f32 %v7611_v7, %v2898_v1 }
 0x635   :  { %3013 = vst.msk [vmem:[#allocation3 + $0xb] sm:$0xff] %vm8625_vm2, %v2993_v63  ;;  %vm8626_vm11 = vmmov %vm8625_vm2  ;;  %vm2938_vm12 = vcmp.gt.f32.partialorder %v2918_v6, 0.0  ;;  %v2958_v43 = vmul.f32 0.2, %v2918_v6  ;;  %v2996_v31 = vsel %vm7361_vm1, %v2976_v52, 0.0  ;;  %v2899_v20 = vmul.f32 %v7598_v58, %v7239_v42 }
 0x636   :  { %3014 = vst.msk [vmem:[#allocation3 + $0x13] sm:$0xff] %vm8626_vm11, %v2994_v0  ;;  %vm8627_vm5 = vmmov %vm8625_vm2  ;;  %v2977_v14 = vsel %vm2937_vm10, %v2917_v39, %v2957_v24  ;;  %vm8629_vm15 = vnez %v8589_v54  ;;  %vm2939_vm9 = vcmp.gt.f32.partialorder %v2919_v44, 0.0  ;;  %v2959_v1 = vmul.f32 0.2, %v2919_v44 }
 0x637   :  { %3015 = vst.msk [vmem:[#allocation3 + $0x1b] sm:$0xff] %vm8627_vm5, %v2995_v22  ;;  %vm8628_vm14 = vmmov %vm8625_vm2  ;;  %v2997_v23 = vsel %vm8629_vm15, %v2977_v14, 0.0  ;;  %v2978_v9 = vsel %vm2938_vm12, %v2918_v6, %v2958_v43  ;;  %vm8631_vm0 = vnez %v8592_v15  ;;  %v2920_v28 = vadd.f32 %v7611_v7, %v2899_v20 }
 0x638   :  { %3012 = vst.msk [vmem:[#allocation3 + $0x3] sm:$0xff] %vm8628_vm14, %v2992_v8  ;;  %vm8630_vm13 = vmmov %vm8625_vm2  ;;  %v2998_v30 = vsel %vm8631_vm0, %v2978_v9, 0.0  ;;  %v2921_v42 = vadd.f32 %v7611_v7, %v2900_v29  ;;  %v2979_v60 = vsel %vm2939_vm9, %v2919_v44, %v2959_v1  ;;  %vm8633_vm8 = vnez %v8597_v26 }
 0x639   :  { %3016 = vst.msk [vmem:[#allocation3 + $0x23] sm:$0xff] %vm8630_vm13, %v2996_v31  ;;  %vm8632_vm1 = vmmov %vm8625_vm2  ;;  %v2999_v36 = vsel %vm8633_vm8, %v2979_v60, 0.0  ;;  %vm2940_vm7 = vcmp.gt.f32.partialorder %v2920_v28, 0.0  ;;  %v2960_v54 = vmul.f32 0.2, %v2920_v28  ;;  %v2901_v10 = vmul.f32 %v7598_v58, %v7272_v2 }
 0x63a   :  { %3017 = vst.msk [vmem:[#allocation3 + $0x2b] sm:$0xff] %vm8632_vm1, %v2997_v23  ;;  %vm8634_vm6 = vmmov %vm8632_vm1  ;;  %vm2941_vm4 = vcmp.gt.f32.partialorder %v2921_v42, 0.0  ;;  %v2961_v41 = vmul.f32 0.2, %v2921_v42  ;;  %v2902_v26 = vmul.f32 %v7598_v58, %v7285_v34  ;;  %v2904_v32 = vmul.f32 %v7598_v58, %v7354_v3 }
 0x63b   :  { %3018 = vst.msk [vmem:[#allocation3 + $0x33] sm:$0xff] %vm8634_vm6, %v2998_v30  ;;  %vm8635_vm3 = vmmov %vm8632_vm1  ;;  %v2980_v33 = vsel %vm2940_vm7, %v2920_v28, %v2960_v54  ;;  %v2922_v11 = vadd.f32 %v7611_v7, %v2901_v10  ;;  %v2905_v57 = vmul.f32 %v7598_v58, %v7397_v50  ;;  %vm8636_vm2 = vnez %v8600_v18  ;;  %v3050_v9 = vld [vmem:[#allocation3 + $0x90] ss:$2 sm:$0xff] }
 0x63c   :  { %3019 = vst.msk [vmem:[#allocation3 + $0x3b] sm:$0xff] %vm8635_vm3, %v2999_v36  ;;  %v2981_v35 = vsel %vm2941_vm4, %v2921_v42, %v2961_v41  ;;  %v3000_v55 = vsel %vm8636_vm2, %v2980_v33, 0.0  ;;  %v2923_v49 = vadd.f32 %v7611_v7, %v2902_v26  ;;  %v2903_v34 = vmul.f32 %v7598_v58, %v7311_v25  ;;  %vm8638_vm11 = vmmov %vm8632_vm1  ;;  %v3048_v42 = vld [vmem:[#allocation3 + $0x80] ss:$2 sm:$0xff] }
 0x63d   :  { %vm8637_vm10 = vnez %v8604_v17  ;;  %v2925_v13 = vadd.f32 %v7611_v7, %v2904_v32  ;;  %v2926_v59 = vadd.f32 %v7611_v7, %v2905_v57  ;;  %3020 = vst.msk [vmem:[#allocation3 + $0x43] sm:$0xff] %vm8638_vm11, %v3000_v55  ;;  %vm2942_vm12 = vcmp.gt.f32.partialorder %v2922_v11, 0.0  ;;  %vm8639_vm5 = vmmov %vm8632_vm1 }
 0x63e   :  { %v3075_v15 = vld [vmem:[#allocation3 + $0x11] ss:$2 sm:$0xff]  ;;  %v3156_v12 = vld [vmem:[#allocation3 + $0x12] ss:$2 sm:$0xff]  ;;  %v3001_v50 = vsel %vm8637_vm10, %v2981_v35, 0.0  ;;  %v2924_v18 = vadd.f32 %v7611_v7, %v2903_v34  ;;  %vm2943_vm14 = vcmp.gt.f32.partialorder %v2923_v49, 0.0  ;;  %vm8642_vm8 = vmmov %vm8635_vm3  ;;  %v3060_v54 = vpack.c.bf16 %v3050_v9, %v3050_v9 }
 0x63f   :  { %v3093_v51 = vpack.c.bf16 %v3075_v15, %v3075_v15  ;;  %v3154_v16 = vld [vmem:[#allocation3 + $0x2] ss:$2 sm:$0xff]  ;;  %v3073_v48 = vld [vmem:[#allocation3 + $0x1] ss:$2 sm:$0xff]  ;;  %v3174_v46 = vpack.c.bf16 %v3156_v12, %v3156_v12  ;;  %3021 = vst.msk [vmem:[#allocation3 + $0x4b] sm:$0xff] %vm8639_vm5, %v3001_v50  ;;  %vm2945_vm15 = vcmp.gt.f32.partialorder %v2925_v13, 0.0  ;;  %vm8644_vm7 = vmmov %vm8635_vm3  ;;  %v3059_v33 = vpack.c.bf16 %v3048_v42, %v3048_v42 }
 0x640   :  { %v3173_v47 = vpack.c.bf16 %v3154_v16, %v3154_v16  ;;  %v3092_v21 = vpack.c.bf16 %v3073_v48, %v3073_v48  ;;  %v3237_v2 = vld [vmem:[#allocation3 + $0x13] ss:$2 sm:$0xff]  ;;  %v3235_v3 = vld [vmem:[#allocation3 + $0x3] ss:$2 sm:$0xff]  ;;  %v2962_v58 = vmul.f32 0.2, %v2922_v11  ;;  %vm8646_vm4 = vmmov %vm8639_vm5 }
 0x641   :  { %3114 = vrot.lane.b32.xlu0 %v3093_v51, %s5232_s1  ;;  %v3255_v62 = vpack.c.bf16 %v3237_v2, %v3237_v2  ;;  %v3254_v25 = vpack.c.bf16 %v3235_v3, %v3235_v3  ;;  %v2963_v53 = vmul.f32 0.2, %v2923_v49  ;;  %vm2946_vm9 = vcmp.gt.f32.partialorder %v2926_v59, 0.0  ;;  %v3032_v0 = vld [vmem:[#allocation3] ss:$2 sm:$0xff]  ;;  %vm8648_vm11 = vmmov %vm8646_vm4  ;;  %v5043_v9 = vld [vmem:[%s8372_s7 + $0x18] sm:$0xff] }
 0x642   :  { %3193 = vrot.lane.b32.xlu1 %v3173_v47, %s5233_s22  ;;  %3112 = vrot.lane.b32.xlu2 %v3092_v21, %s5232_s1  ;;  %v2965_v17 = vmul.f32 0.2, %v2925_v13  ;;  %v2966_v39 = vmul.f32 0.2, %v2926_v59  ;;  %v2982_v6 = vsel %vm2942_vm12, %v2922_v11, %v2962_v58  ;;  %vm2944_vm13 = vcmp.gt.f32.partialorder %v2924_v18, 0.0  ;;  %vm8649_vm12 = vmmov %vm8646_vm4 }
 0x643   :  { %v2983_v27 = vsel %vm2943_vm14, %v2923_v49, %v2963_v53  ;;  %v2964_v19 = vmul.f32 0.2, %v2924_v18  ;;  %vm8640_vm0 = vcmp.lt.f32.partialorder %v7468_v5, 35.0  ;;  %vm8641_vm1 = vcmp.lt.f32.partialorder %v7481_v45, 35.0  ;;  %v3034_v8 = vld [vmem:[#allocation3 + $0x10] ss:$2 sm:$0xff] }
 0x644   :  { %v3002_v7 = vsel %vm8640_vm0, %v2982_v6, 0.0  ;;  %v3003_v37 = vsel %vm8641_vm1, %v2983_v27, 0.0  ;;  %v2985_v40 = vsel %vm2945_vm15, %v2925_v13, %v2965_v17  ;;  %v2986_v63 = vsel %vm2946_vm9, %v2926_v59, %v2966_v39  ;;  %v3038_v52 = vld [vmem:[#allocation3 + $0x30] ss:$2 sm:$0xff]  ;;  %v3036_v43 = vld [vmem:[#allocation3 + $0x20] ss:$2 sm:$0xff] }
 0x645   :  { %3022 = vst.msk [vmem:[#allocation3 + $0x53] sm:$0xff] %vm8642_vm8, %v3002_v7  ;;  %vm8643_vm6 = vcmp.lt.f32.partialorder %v7501_v4, 35.0  ;;  %v2984_v22 = vsel %vm2944_vm13, %v2924_v18, %v2964_v19  ;;  %vm8645_vm3 = vcmp.lt.f32.partialorder %v7509_v38, 35.0  ;;  %vm8647_vm2 = vcmp.lt.f32.partialorder %v7490_v56, 35.0  ;;  %v3318_v4 = vld [vmem:[#allocation3 + $0x14] ss:$2 sm:$0xff] }
 0x646   :  { %v3005_v61 = vsel %vm8643_vm6, %v2985_v40, 0.0  ;;  %3023 = vst.msk [vmem:[#allocation3 + $0x5b] sm:$0xff] %vm8644_vm7, %v3003_v37  ;;  %v3006_v5 = vsel %vm8645_vm3, %v2986_v63, 0.0  ;;  %v3004_v45 = vsel %vm8647_vm2, %v2984_v22, 0.0  ;;  %v3051_v24 = vpack.c.bf16 %v3032_v0, %v3032_v0  ;;  %v3077_v14 = vld [vmem:[#allocation3 + $0x21] ss:$2 sm:$0xff] }
 0x647   :  { %3025 = vst.msk [vmem:[#allocation3 + $0x6b] sm:$0xff] %vm8646_vm4, %v3005_v61  ;;  %vm3061_vm10 = vcmask 125952   ;;  %v3052_v44 = vpack.c.bf16 %v3034_v8, %v3034_v8  ;;  %v3316_v31 = vld [vmem:[#allocation3 + $0x4] ss:$2 sm:$0xff]  ;;  %v3054_v20 = vpack.c.bf16 %v3038_v52, %v3038_v52  ;;  %v3336_v38 = vpack.c.bf16 %v3318_v4, %v3318_v4  ;;  %v3079_v15 = vld [vmem:[#allocation3 + $0x31] ss:$2 sm:$0xff] }
 0x648   :  { %3026 = vst.msk [vmem:[#allocation3 + $0x73] sm:$0xff] %vm8648_vm11, %v3006_v5  ;;  %v3053_v29 = vpack.c.bf16 %v3036_v43, %v3036_v43  ;;  %v3040_v23 = vld [vmem:[#allocation3 + $0x40] ss:$2 sm:$0xff]  ;;  %v3094_v56 = vpack.c.bf16 %v3077_v14, %v3077_v14  ;;  %v3335_v1 = vpack.c.bf16 %v3316_v31, %v3316_v31  ;;  %v3095_v35 = vpack.c.bf16 %v3079_v15, %v3079_v15  ;;  %v3241_v47 = vld [vmem:[#allocation3 + $0x33] ss:$2 sm:$0xff] }
 0x649   :  { %3274 = vrot.lane.b32.xlu0 %v3254_v25, %s5234_s6  ;;  %3024 = vst.msk [vmem:[#allocation3 + $0x63] sm:$0xff] %vm8649_vm12, %v3004_v45  ;;  %v3055_v30 = vpack.c.bf16 %v3040_v23, %v3040_v23  ;;  %v3158_v36 = vld [vmem:[#allocation3 + $0x22] ss:$2 sm:$0xff]  ;;  %v3160_v41 = vld [vmem:[#allocation3 + $0x32] ss:$2 sm:$0xff]  ;;  %v3257_v57 = vpack.c.bf16 %v3241_v47, %v3241_v47  ;;  %vm3142_vm5 = vcmask 257152  }
 0x64a   :  { %3276 = vrot.lane.b32.xlu1 %v3255_v62, %s5234_s6  ;;  %3195 = vrot.lane.b32.xlu2 %v3174_v46, %s5233_s22  ;;  %3062 = vst.msk [vmem:[#allocation8] sm:$0xf] %vm3061_vm10, %v3051_v24  ;;  %v3175_v10 = vpack.c.bf16 %v3158_v36, %v3158_v36  ;;  %v3176_v48 = vpack.c.bf16 %v3160_v41, %v3160_v41  ;;  %v3320_v21 = vld [vmem:[#allocation3 + $0x24] ss:$2 sm:$0xff]  ;;  %v3239_v11 = vld [vmem:[#allocation3 + $0x23] ss:$2 sm:$0xff] }
 0x64b   :  { %3063 = vst.msk [vmem:[#allocation8 + $0x4] sm:$0xf] %vm3061_vm10, %v3052_v44  ;;  %v3337_v2 = vpack.c.bf16 %v3320_v21, %v3320_v21  ;;  %v3256_v12 = vpack.c.bf16 %v3239_v11, %v3239_v11  ;;  %v3081_v55 = vld [vmem:[#allocation3 + $0x41] ss:$2 sm:$0xff]  ;;  %v3322_v34 = vld [vmem:[#allocation3 + $0x34] ss:$2 sm:$0xff] }
 0x64c   :  { %3065 = vst.msk [vmem:[#allocation8 + $0xc] sm:$0xf] %vm3061_vm10, %v3054_v20  ;;  %v3096_v3 = vpack.c.bf16 %v3081_v55, %v3081_v55  ;;  %v3338_v13 = vpack.c.bf16 %v3322_v34, %v3322_v34  ;;  %v3243_v18 = vld [vmem:[#allocation3 + $0x43] ss:$2 sm:$0xff]  ;;  %v3162_v62 = vld [vmem:[#allocation3 + $0x42] ss:$2 sm:$0xff] }
 0x64d   :  { %v3042_v28 = vld [vmem:[#allocation3 + $0x50] ss:$2 sm:$0xff]  ;;  %3064 = vst.msk [vmem:[#allocation8 + $0x8] sm:$0xf] %vm3061_vm10, %v3053_v29  ;;  %v3083_v49 = vld [vmem:[#allocation3 + $0x51] ss:$2 sm:$0xff]  ;;  %v3258_v25 = vpack.c.bf16 %v3243_v18, %v3243_v18  ;;  %v3177_v58 = vpack.c.bf16 %v3162_v62, %v3162_v62 }
 0x64e   :  { %v3056_v60 = vpack.c.bf16 %v3042_v28, %v3042_v28  ;;  %3066 = vst.msk [vmem:[#allocation8 + $0x10] sm:$0xf] %vm3061_vm10, %v3055_v30  ;;  %v3097_v50 = vpack.c.bf16 %v3083_v49, %v3083_v49  ;;  %v3164_v59 = vld [vmem:[#allocation3 + $0x52] ss:$2 sm:$0xff]  ;;  %v3245_v39 = vld [vmem:[#allocation3 + $0x53] ss:$2 sm:$0xff] }
 0x64f   :  { %v3046_v16 = vld [vmem:[#allocation3 + $0x70] ss:$2 sm:$0xff]  ;;  %3071 = vst.msk [vmem:[#allocation8 + $0x24] sm:$0xf] %vm3061_vm10, %v3060_v54  ;;  %v3178_v46 = vpack.c.bf16 %v3164_v59, %v3164_v59  ;;  %v3259_v19 = vpack.c.bf16 %v3245_v39, %v3245_v39  ;;  %v3087_v7 = vld [vmem:[#allocation3 + $0x71] ss:$2 sm:$0xff] }
 0x650   :  { %3067 = vst.msk [vmem:[#allocation8 + $0x14] sm:$0xf] %vm3061_vm10, %v3056_v60  ;;  %v3044_v51 = vld [vmem:[#allocation3 + $0x60] ss:$2 sm:$0xff]  ;;  %v3058_v32 = vpack.c.bf16 %v3046_v16, %v3046_v16  ;;  %v3085_v40 = vld [vmem:[#allocation3 + $0x61] ss:$2 sm:$0xff]  ;;  %v3099_v63 = vpack.c.bf16 %v3087_v7, %v3087_v7 }
 0x651   :  { %3357 = vrot.lane.b32.xlu0 %v3336_v38, %s5235_s17  ;;  %v3057_v26 = vpack.c.bf16 %v3044_v51, %v3044_v51  ;;  %3070 = vst.msk [vmem:[#allocation8 + $0x20] sm:$0xf] %vm3061_vm10, %v3059_v33  ;;  %v3324_v53 = vld [vmem:[#allocation3 + $0x44] ss:$2 sm:$0xff]  ;;  %v3326_v17 = vld [vmem:[#allocation3 + $0x54] ss:$2 sm:$0xff]  ;;  %v3098_v61 = vpack.c.bf16 %v3085_v40, %v3085_v40 }
 0x652   :  { %3116 = vrot.lane.b32.xlu1 %v3094_v56, %s5232_s1  ;;  %3355 = vrot.lane.b32.xlu2 %v3335_v1, %s5235_s17  ;;  %3069 = vst.msk [vmem:[#allocation8 + $0x1c] sm:$0xf] %vm3061_vm10, %v3058_v32  ;;  %v3339_v6 = vpack.c.bf16 %v3324_v53, %v3324_v53  ;;  %v3340_v27 = vpack.c.bf16 %v3326_v17, %v3326_v17  ;;  %v3166_v37 = vld [vmem:[#allocation3 + $0x62] ss:$2 sm:$0xff]  ;;  %v3247_v22 = vld [vmem:[#allocation3 + $0x63] ss:$2 sm:$0xff] }
 0x653   :  { %3068 = vst.msk [vmem:[#allocation8 + $0x18] sm:$0xf] %vm3061_vm10, %v3057_v26  ;;  %v3179_v0 = vpack.c.bf16 %v3166_v37, %v3166_v37  ;;  %v3249_v8 = vld [vmem:[#allocation3 + $0x73] ss:$2 sm:$0xff]  ;;  %v3168_v5 = vld [vmem:[#allocation3 + $0x72] ss:$2 sm:$0xff]  ;;  %v3260_v45 = vpack.c.bf16 %v3247_v22, %v3247_v22 }
 0x654   :  { %v3261_v24 = vpack.c.bf16 %v3249_v8, %v3249_v8  ;;  %v3180_v52 = vpack.c.bf16 %v3168_v5, %v3168_v5  ;;  %v3330_v4 = vld [vmem:[#allocation3 + $0x74] ss:$2 sm:$0xff]  ;;  %v3089_v43 = vld [vmem:[#allocation3 + $0x81] ss:$2 sm:$0xff]  ;;  %v3328_v14 = vld [vmem:[#allocation3 + $0x64] ss:$2 sm:$0xff] }
 0x655   :  { %v5044_v44 = vld [vmem:[%s8372_s7 + $0x20] sm:$0xff]  ;;  %v3342_v31 = vpack.c.bf16 %v3330_v4, %v3330_v4  ;;  %v3100_v20 = vpack.c.bf16 %v3089_v43, %v3089_v43  ;;  %v3341_v38 = vpack.c.bf16 %v3328_v14, %v3328_v14  ;;  %v3170_v29 = vld [vmem:[#allocation3 + $0x82] ss:$2 sm:$0xff]  ;;  %v3251_v54 = vld [vmem:[#allocation3 + $0x83] ss:$2 sm:$0xff]  ;;  %vm3223_vm14 = vcmask 388352  }
 0x656   :  { %3490 = vmatpush.bf16.msrb.mxu2 %v5044_v44  ;;  %v3172_v23 = vld [vmem:[#allocation3 + $0x92] ss:$2 sm:$0xff]  ;;  %v3091_v56 = vld [vmem:[#allocation3 + $0x91] ss:$2 sm:$0xff]  ;;  %v3181_v1 = vpack.c.bf16 %v3170_v29, %v3170_v29  ;;  %v5042_v41 = vld [vmem:[%s8372_s7 + $0x10] sm:$0xff]  ;;  %vm3304_vm15 = vcmask 519552  }
 0x657   :  { %v3182_v30 = vpack.c.bf16 %v3172_v23, %v3172_v23  ;;  %v3101_v28 = vpack.c.bf16 %v3091_v56, %v3091_v56  ;;  %v3253_v60 = vld [vmem:[#allocation3 + $0x93] ss:$2 sm:$0xff]  ;;  %v3332_v36 = vld [vmem:[#allocation3 + $0x84] ss:$2 sm:$0xff]  ;;  %v3334_v16 = vld [vmem:[#allocation3 + $0x94] ss:$2 sm:$0xff] }
 0x658   :  { %v3263_v15 = vpack.c.bf16 %v3253_v60, %v3253_v60  ;;  %v3343_v33 = vpack.c.bf16 %v3332_v36, %v3332_v36  ;;  %v3344_v26 = vpack.c.bf16 %v3334_v16, %v3334_v16  ;;  %vm3385_vm9 = vcmask 650752   ;;  %v8653_v36 = vld [vmem:[#allocation20_spill] sm:$0xff] }
 0x659   :  { %3197 = vrot.lane.b32.xlu0 %v3175_v10, %s5233_s22  ;;  %v3262_v10 = vpack.c.bf16 %v3251_v54, %v3251_v54  ;;  %vm3471_vm13 = vcmask 654336   ;;  %vm8474_vm0 = vcmask 261120   ;;  %v8650_v5 = vmov 0.0  }
 0x65a   :  { %3199 = vrot.lane.b32.xlu1 %v3176_v48, %s5233_s22  ;;  %3118 = vrot.lane.b32.xlu2 %v3095_v35, %s5232_s1  ;;  %v5041_v48 = vld [vmem:[%s8372_s7 + $0x8] sm:$0xff]  ;;  %v5040_v35 = vld [vmem:[%s8372_s7] sm:$0xff]  ;;  %126 = vst.msk [vmem:[#allocation4] sm:$0xff] %vm8474_vm0, %v8650_v5  ;;  %v3523_v54 = vmul.f32 0.025, %v8653_v36 }
 0x65b   :  { %3491 = vmatpush.bf16.msrb.mxu2 %v5043_v9  ;;  %127 = vst.msk [vmem:[#allocation4 + $0x8] sm:$0xff] %vm8474_vm0, %v8650_v5 }
 0x65c   :  { %128 = vst.msk [vmem:[#allocation4 + $0x10] sm:$0xff] %vm8474_vm0, %v8650_v5 }
 0x65d   :  { %129 = vst.msk [vmem:[#allocation4 + $0x18] sm:$0xff] %vm8474_vm0, %v8650_v5 }
 0x65e   :  { %130 = vst.msk [vmem:[#allocation4 + $0x20] sm:$0xff] %vm8474_vm0, %v8650_v5 }
 0x65f   :  { %3492 = vmatpush.bf16.msrb.mxu2 %v5042_v41  ;;  %131 = vst.msk [vmem:[#allocation4 + $0x28] sm:$0xff] %vm8474_vm0, %v8650_v5 }
 0x660   :  { %132 = vst.msk [vmem:[#allocation4 + $0x30] sm:$0xff] %vm8474_vm0, %v8650_v5 }
 0x661   :  { %3280 = vrot.lane.b32.xlu0 %v3257_v57, %s5234_s6  ;;  %133 = vst.msk [vmem:[#allocation4 + $0x38] sm:$0xff] %vm8474_vm0, %v8650_v5 }
 0x662   :  { %3359 = vrot.lane.b32.xlu1 %v3337_v2, %s5235_s17  ;;  %3278 = vrot.lane.b32.xlu2 %v3256_v12, %s5234_s6  ;;  %134 = vst.msk [vmem:[#allocation4 + $0x40] sm:$0xff] %vm8474_vm0, %v8650_v5 }
 0x663   :  { %3493 = vmatpush.bf16.msrb.mxu2 %v5041_v48  ;;  %135 = vst.msk [vmem:[#allocation4 + $0x48] sm:$0xff] %vm8474_vm0, %v8650_v5  ;;  %v3533_v48 = vfloor.f32 %v3523_v54 }
 0x664   :  { %136 = vst.msk [vmem:[#allocation4 + $0x50] sm:$0xff] %vm8474_vm0, %v8650_v5 }
 0x667   :  { %3494 = vmatpush.bf16.msrb.mxu2 %v5040_v35 }
 0x669   :  { %3120 = vrot.lane.b32.xlu0 %v3096_v3, %s5232_s1 }
 0x66a   :  { %3122 = vrot.lane.b32.xlu1 %v3097_v50, %s5232_s1  ;;  %3361 = vrot.lane.b32.xlu2 %v3338_v13, %s5235_s17 }
 0x671   :  { %3203 = vrot.lane.b32.xlu0 %v3178_v46, %s5233_s22 }
 0x672   :  { %3282 = vrot.lane.b32.xlu1 %v3258_v25, %s5234_s6  ;;  %3201 = vrot.lane.b32.xlu2 %v3177_v58, %s5233_s22 }
 0x679   :  { %3363 = vrot.lane.b32.xlu0 %v3339_v6, %s5235_s17 }
 0x67a   :  { %3365 = vrot.lane.b32.xlu1 %v3340_v27, %s5235_s17  ;;  %3284 = vrot.lane.b32.xlu2 %v3259_v19, %s5234_s6 }
 0x681   :  { %3126 = vrot.lane.b32.xlu0 %v3099_v63, %s5232_s1 }
 0x682   :  { %3205 = vrot.lane.b32.xlu1 %v3179_v0, %s5233_s22  ;;  %3124 = vrot.lane.b32.xlu2 %v3098_v61, %s5232_s1 }
 0x689   :  { %3286 = vrot.lane.b32.xlu0 %v3260_v45, %s5234_s6 }
 0x68a   :  { %3288 = vrot.lane.b32.xlu1 %v3261_v24, %s5234_s6  ;;  %3207 = vrot.lane.b32.xlu2 %v3180_v52, %s5233_s22 }
 0x691   :  { %3369 = vrot.lane.b32.xlu0 %v3342_v31, %s5235_s17 }
 0x692   :  { %3128 = vrot.lane.b32.xlu1 %v3100_v20, %s5232_s1  ;;  %3367 = vrot.lane.b32.xlu2 %v3341_v38, %s5235_s17 }
 0x699   :  { %3209 = vrot.lane.b32.xlu0 %v3181_v1, %s5233_s22 }
 0x69a   :  { %3211 = vrot.lane.b32.xlu1 %v3182_v30, %s5233_s22  ;;  %3130 = vrot.lane.b32.xlu2 %v3101_v28, %s5232_s1  ;;  %v8651_v30 = vld [vmem:[#allocation50_spill] sm:$0xff] }
 0x69b   :  { %v3522_v28 = vmul.f32 0.025, %v8651_v30 }
 0x69c   :  { %v3113_v42 = vpop.permute.xlu2 %3112 }
 0x69d   :  { %3143 = vst.msk [vmem:[#allocation8] sm:$0xf] %vm3142_vm5, %v3113_v42  ;;  %v8652_v42 = vld [vmem:[#allocation17_spill] sm:$0xff]  ;;  %v3532_v41 = vfloor.f32 %v3522_v28 }
 0x69e   :  { %v3521_v60 = vmul.f32 0.025, %v8652_v42 }
 0x6a1   :  { %3292 = vrot.lane.b32.xlu0 %v3263_v15, %s5234_s6  ;;  %v8654_v15 = vld [vmem:[#allocation51_spill] sm:$0xff] }
 0x6a2   :  { %3371 = vrot.lane.b32.xlu1 %v3343_v33, %s5235_s17  ;;  %3290 = vrot.lane.b32.xlu2 %v3262_v10, %s5234_s6  ;;  %v3524_v33 = vmul.f32 0.025, %v8654_v15  ;;  %v3531_v10 = vfloor.f32 %v3521_v60  ;;  %v8676_v60 = vld [vmem:[#allocation23_spill] sm:$0xff] }
 0x6a4   :  { %v3196_v51 = vpop.permute.xlu2 %3195 }
 0x6aa   :  { %3373 = vrot.lane.b32.xlu2 %v3344_v26, %s5235_s17  ;;  %v3542_v26 = vmul.f32 40.0, %v3532_v41 }
 0x6ac   :  { %v3356_v32 = vpop.permute.xlu2 %3355 }
 0x6b3   :  { %v3115_v47 = vpop.permute.xlu0 %3114 }
 0x6b4   :  { %3144 = vst.msk [vmem:[#allocation8 + $0x4] sm:$0xf] %vm3142_vm5, %v3115_v47  ;;  %v3194_v21 = vpop.permute.xlu1 %3193  ;;  %v3119_v11 = vpop.permute.xlu2 %3118  ;;  %v8656_v47 = vld [vmem:[#allocation24_spill] sm:$0xff] }
 0x6b5   :  { %3224 = vst.msk [vmem:[#allocation8] sm:$0xf] %vm3223_vm14, %v3194_v21  ;;  %v3526_v21 = vmul.f32 0.025, %v8656_v47  ;;  %v8678_v47 = vmov 0 }
 0x6b6   :  { %3225 = vst.msk [vmem:[#allocation8 + $0x4] sm:$0xf] %vm3223_vm14, %v3196_v51  ;;  %v8655_v51 = vld [vmem:[#allocation21_spill] sm:$0xff] }
 0x6b7   :  { %3146 = vst.msk [vmem:[#allocation8 + $0xc] sm:$0xf] %vm3142_vm5, %v3119_v11  ;;  %v3525_v16 = vmul.f32 0.025, %v8655_v51  ;;  %v3541_v11 = vmul.f32 40.0, %v3531_v10  ;;  %v8677_v10 = vld [vmem:[#allocation32_spill] sm:$0xff] }
 0x6bb   :  { %v3275_v57 = vpop.permute.xlu0 %3274 }
 0x6bc   :  { %3305 = vst.msk [vmem:[#allocation8] sm:$0xf] %vm3304_vm15, %v3275_v57  ;;  %v3277_v2 = vpop.permute.xlu1 %3276  ;;  %v3279_v12 = vpop.permute.xlu2 %3278  ;;  %v3535_v57 = vfloor.f32 %v3525_v16  ;;  %v3530_v16 = vmul.f32 0.025, %v8677_v10 }
 0x6bd   :  { %3386 = vst.msk [vmem:[#allocation8] sm:$0xf] %vm3385_vm9, %v3356_v32  ;;  %v3534_v32 = vfloor.f32 %v3524_v33 }
 0x6be   :  { %3306 = vst.msk [vmem:[#allocation8 + $0x4] sm:$0xf] %vm3304_vm15, %v3277_v2  ;;  %v3543_v2 = vmul.f32 40.0, %v3533_v48 }
 0x6c3   :  { %v3358_v55 = vpop.permute.xlu0 %3357 }
 0x6c4   :  { %3387 = vst.msk [vmem:[#allocation8 + $0x4] sm:$0xf] %vm3385_vm9, %v3358_v55  ;;  %v3117_v49 = vpop.permute.xlu1 %3116  ;;  %v3362_v34 = vpop.permute.xlu2 %3361 }
 0x6c5   :  { %3145 = vst.msk [vmem:[#allocation8 + $0x8] sm:$0xf] %vm3142_vm5, %v3117_v49  ;;  %v8658_v49 = vld [vmem:[#allocation45_spill] sm:$0xff] }
 0x6cb   :  { %v3198_v3 = vpop.permute.xlu0 %3197  ;;  %v5035_v50 = vld [vmem:[#allocation8] sm:$0xff] }
 0x6cc   :  { %3226 = vst.msk [vmem:[#allocation8 + $0x8] sm:$0xf] %vm3223_vm14, %v3198_v3  ;;  %v3200_v13 = vpop.permute.xlu1 %3199  ;;  %v3202_v59 = vpop.permute.xlu2 %3201  ;;  %4864 = vmatmul.msk.bf16.vlgmr.msrb.gmra.mxu2 %vm3471_vm13, %v5035_v50  ;;  %v3544_v3 = vmul.f32 40.0, %v3534_v32  ;;  %v3536_v50 = vfloor.f32 %v3526_v21  ;;  %v8680_v21 = vld [vmem:[#allocation26_spill] sm:$0xff] }
 0x6cd   :  { %3307 = vst.msk [vmem:[#allocation8 + $0x8] sm:$0xf] %vm3304_vm15, %v3279_v12  ;;  %v8657_v12 = vld [vmem:[#allocation25_spill] sm:$0xff] }
 0x6ce   :  { %3227 = vst.msk [vmem:[#allocation8 + $0xc] sm:$0xf] %vm3223_vm14, %v3200_v13  ;;  %v3527_v55 = vmul.f32 0.025, %v8657_v12  ;;  %v8659_v13 = vld [vmem:[#allocation27_spill] sm:$0xff] }
 0x6d3   :  { %v3281_v18 = vpop.permute.xlu0 %3280 }
 0x6d4   :  { %3308 = vst.msk [vmem:[#allocation8 + $0xc] sm:$0xf] %vm3304_vm15, %v3281_v18  ;;  %v3360_v62 = vpop.permute.xlu1 %3359  ;;  %v3285_v46 = vpop.permute.xlu2 %3284  ;;  %v8660_v18 = vld [vmem:[#allocation16_spill] sm:$0xff] }
 0x6d5   :  { %3389 = vst.msk [vmem:[#allocation8 + $0xc] sm:$0xf] %vm3385_vm9, %v3362_v34  ;;  %v3552_v34 = vsub.f32 %v8658_v49, %v3542_v26 }
 0x6d6   :  { %3388 = vst.msk [vmem:[#allocation8 + $0x8] sm:$0xf] %vm3385_vm9, %v3360_v62  ;;  %v3551_v62 = vsub.f32 %v8660_v18, %v3541_v11 }
 0x6d7   :  { %vm7883_vm1 = vcmp.lt.f32.partialorder %v3552_v34, 19.0 }
 0x6d8   :  { %vm7888_vm8 = vcmp.lt.f32.partialorder %v3551_v62, 19.0 }
 0x6db   :  { %v3121_v25 = vpop.permute.xlu0 %3120 }
 0x6dc   :  { %3147 = vst.msk [vmem:[#allocation8 + $0x10] sm:$0xf] %vm3142_vm5, %v3121_v25  ;;  %v3123_v58 = vpop.permute.xlu1 %3122  ;;  %v3125_v53 = vpop.permute.xlu2 %3124  ;;  %v8661_v25 = vld [vmem:[#allocation15_spill] sm:$0xff] }
 0x6dd   :  { %3228 = vst.msk [vmem:[#allocation8 + $0x10] sm:$0xf] %vm3223_vm14, %v3202_v59  ;;  %v5036_v17 = vld [vmem:[#allocation8 + $0x8] sm:$0xff]  ;;  %v3528_v59 = vmul.f32 0.025, %v8659_v13 }
 0x6de   :  { %3148 = vst.msk [vmem:[#allocation8 + $0x14] sm:$0xf] %vm3142_vm5, %v3123_v58  ;;  %4865 = vmatmul.msk.bf16.gmra.mxu2 %vm3471_vm13, %v5036_v17  ;;  %v3553_v58 = vsub.f32 %v8661_v25, %v3543_v2  ;;  %v3537_v17 = vfloor.f32 %v3527_v55 }
 0x6df   :  { %3149 = vst.msk [vmem:[#allocation8 + $0x18] sm:$0xf] %vm3142_vm5, %v3125_v53 }
 0x6e0   :  { %vm7896_vm6 = vcmp.lt.f32.partialorder %v3553_v58, 19.0 }
 0x6e3   :  { %v3204_v39 = vpop.permute.xlu0 %3203 }
 0x6e4   :  { %3229 = vst.msk [vmem:[#allocation8 + $0x14] sm:$0xf] %vm3223_vm14, %v3204_v39  ;;  %v3283_v6 = vpop.permute.xlu1 %3282  ;;  %v3208_v27 = vpop.permute.xlu2 %3207  ;;  %v8662_v39 = vld [vmem:[#allocation29_spill] sm:$0xff] }
 0x6e5   :  { %3310 = vst.msk [vmem:[#allocation8 + $0x14] sm:$0xf] %vm3304_vm15, %v3285_v46  ;;  %v3545_v46 = vmul.f32 40.0, %v3535_v57 }
 0x6e6   :  { %3309 = vst.msk [vmem:[#allocation8 + $0x10] sm:$0xf] %vm3304_vm15, %v3283_v6  ;;  %v3529_v6 = vmul.f32 0.025, %v8662_v39 }
 0x6eb   :  { %v3364_v19 = vpop.permute.xlu0 %3363 }
 0x6ec   :  { %3390 = vst.msk [vmem:[#allocation8 + $0x10] sm:$0xf] %vm3385_vm9, %v3364_v19  ;;  %v3366_v7 = vpop.permute.xlu1 %3365  ;;  %v3368_v37 = vpop.permute.xlu2 %3367  ;;  %v8665_v19 = vld [vmem:[#allocation18_spill] sm:$0xff] }
 0x6ed   :  { %3391 = vst.msk [vmem:[#allocation8 + $0x14] sm:$0xf] %vm3385_vm9, %v3366_v7  ;;  %v3554_v7 = vsub.f32 %v8665_v19, %v3544_v3 }
 0x6ef   :  { %vm7900_vm7 = vcmp.lt.f32.partialorder %v3554_v7, 19.0 }
 0x6f3   :  { %v3127_v40 = vpop.permute.xlu0 %3126 }
 0x6f4   :  { %3150 = vst.msk [vmem:[#allocation8 + $0x1c] sm:$0xf] %vm3142_vm5, %v3127_v40  ;;  %v3206_v63 = vpop.permute.xlu1 %3205  ;;  %v3131_v0 = vpop.permute.xlu2 %3130  ;;  %v5037_v61 = vld [vmem:[#allocation8 + $0x10] sm:$0xff]  ;;  %v3538_v40 = vfloor.f32 %v3528_v59  ;;  %v3540_v59 = vfloor.f32 %v3530_v16 }
 0x6f5   :  { %3231 = vst.msk [vmem:[#allocation8 + $0x1c] sm:$0xf] %vm3223_vm14, %v3208_v27  ;;  %4866 = vmatmul.msk.bf16.gmra.mxu2 %vm3471_vm13, %v5037_v61 }
 0x6f6   :  { %3230 = vst.msk [vmem:[#allocation8 + $0x18] sm:$0xf] %vm3223_vm14, %v3206_v63 }
 0x6f7   :  { %3152 = vst.msk [vmem:[#allocation8 + $0x24] sm:$0xf] %vm3142_vm5, %v3131_v0  ;;  %v8668_v0 = vld [vmem:[#allocation19_spill] sm:$0xff] }
 0x6f8   :  { %v3555_v61 = vsub.f32 %v8668_v0, %v3545_v46 }
 0x6fa   :  { %vm7911_vm3 = vcmp.lt.f32.partialorder %v3555_v61, 19.0 }
 0x6fb   :  { %v3287_v22 = vpop.permute.xlu0 %3286 }
 0x6fc   :  { %3311 = vst.msk [vmem:[#allocation8 + $0x18] sm:$0xf] %vm3304_vm15, %v3287_v22  ;;  %v3289_v8 = vpop.permute.xlu1 %3288  ;;  %v3291_v52 = vpop.permute.xlu2 %3290 }
 0x6fd   :  { %3392 = vst.msk [vmem:[#allocation8 + $0x18] sm:$0xf] %vm3385_vm9, %v3368_v37  ;;  %v3546_v37 = vmul.f32 40.0, %v3536_v50  ;;  %v8683_v50 = vld [vmem:[#allocation28_spill] sm:$0xff] }
 0x6fe   :  { %3312 = vst.msk [vmem:[#allocation8 + $0x1c] sm:$0xf] %vm3304_vm15, %v3289_v8 }
 0x703   :  { %v3370_v45 = vpop.permute.xlu0 %3369 }
 0x704   :  { %3393 = vst.msk [vmem:[#allocation8 + $0x1c] sm:$0xf] %vm3385_vm9, %v3370_v45  ;;  %v3129_v24 = vpop.permute.xlu1 %3128  ;;  %v3374_v31 = vpop.permute.xlu2 %3373  ;;  %v3547_v45 = vmul.f32 40.0, %v3537_v17 }
 0x705   :  { %3151 = vst.msk [vmem:[#allocation8 + $0x20] sm:$0xf] %vm3142_vm5, %v3129_v24  ;;  %v3539_v24 = vfloor.f32 %v3529_v6 }
 0x706   :  { %v3557_v54 = vsub.f32 %v8676_v60, %v3547_v45 }
 0x707   :  { %v3549_v33 = vmul.f32 40.0, %v3539_v24 }
 0x708   :  { %vm7934_vm2 = vcmp.lt.f32.partialorder %v3557_v54, 19.0 }
 0x709   :  { %v3559_v13 = vsub.f32 %v8683_v50, %v3549_v33 }
 0x70b   :  { %v3210_v4 = vpop.permute.xlu0 %3209  ;;  %v5038_v44 = vld [vmem:[#allocation8 + $0x18] sm:$0xff]  ;;  %vm7954_vm11 = vcmp.lt.f32.partialorder %v3559_v13, 19.0 }
 0x70c   :  { %3232 = vst.msk [vmem:[#allocation8 + $0x20] sm:$0xf] %vm3223_vm14, %v3210_v4  ;;  %v3212_v43 = vpop.permute.xlu1 %3211  ;;  %4867 = vmatmul.msk.bf16.gmra.mxu2 %vm3471_vm13, %v5038_v44  ;;  %v8673_v44 = vld [vmem:[#allocation22_spill] sm:$0xff] }
 0x70d   :  { %3313 = vst.msk [vmem:[#allocation8 + $0x20] sm:$0xf] %vm3304_vm15, %v3291_v52 }
 0x70e   :  { %3233 = vst.msk [vmem:[#allocation8 + $0x24] sm:$0xf] %vm3223_vm14, %v3212_v43  ;;  %v3556_v43 = vsub.f32 %v8673_v44, %v3546_v37  ;;  %v3550_v44 = vmul.f32 40.0, %v3540_v59 }
 0x710   :  { %vm7923_vm4 = vcmp.lt.f32.partialorder %v3556_v43, 19.0 }
 0x711   :  { %v8679_v47 = vsel %vm7923_vm4, 4294967295, %v8678_v47 }
 0x713   :  { %v3293_v14 = vpop.permute.xlu0 %3292 }
 0x714   :  { %3314 = vst.msk [vmem:[#allocation8 + $0x24] sm:$0xf] %vm3304_vm15, %v3293_v14  ;;  %v3372_v20 = vpop.permute.xlu1 %3371  ;;  %v3548_v14 = vmul.f32 40.0, %v3538_v40 }
 0x715   :  { %3395 = vst.msk [vmem:[#allocation8 + $0x24] sm:$0xf] %vm3385_vm9, %v3374_v31 }
 0x716   :  { %3394 = vst.msk [vmem:[#allocation8 + $0x20] sm:$0xf] %vm3385_vm9, %v3372_v20  ;;  %v3558_v11 = vsub.f32 %v8680_v21, %v3548_v14  ;;  %v8688_v21 = vld [vmem:[#allocation30_spill] sm:$0xff] }
 0x718   :  { %vm7945_vm10 = vcmp.lt.f32.partialorder %v3558_v11, 19.0  ;;  %v3560_v11 = vsub.f32 %v8688_v21, %v3550_v44 }
 0x71a   :  { %vm7975_vm12 = vcmp.lt.f32.partialorder %v3560_v11, 19.0 }
 0x71d   :  { %v5039_v38 = vld [vmem:[#allocation8 + $0x20] sm:$0xff] }
 0x71e   :  { %4868 = vmatmul.msk.bf16.gmra.mxu2 %vm3471_vm13, %v5039_v38  ;;  %v8674_v38 = vmov 0 }
 0x71f   :  { %v8675_v38 = vsel %vm7911_vm3, 4294967295, %v8674_v38 }
 0x74f   :  { %v7857_v29 = vpop.f32.mrf.mxu2 }
 0x750   :  { %v3571_v4 = vsel %vm7888_vm8, %v7857_v29, 0.0 }
 0x751   :  { %v3607_v48 = vmul.f32 %v3571_v4, %v3571_v4  ;;  %v3581_v57 = vsel %vm8474_vm0, %v3571_v4, 0.0 }
 0x753   :  { %v3617_v62 = vsel %vm8474_vm0, %v3607_v48, 0.0 }
 0x757   :  { %v7859_v23 = vpop.f32.mrf.mxu2 }
 0x758   :  { %v3572_v22 = vsel %vm7883_vm1, %v7859_v23, 0.0 }
 0x759   :  { %v3608_v31 = vmul.f32 %v3572_v22, %v3572_v22  ;;  %v3582_v26 = vsel %vm8474_vm0, %v3572_v22, 0.0 }
 0x75a   :  { %v3583_v46 = vadd.f32 %v3582_v26, %v3581_v57 }
 0x75b   :  { %v3618_v2 = vsel %vm8474_vm0, %v3608_v31, 0.0 }
 0x75c   :  { %v3619_v37 = vadd.f32 %v3618_v2, %v3617_v62 }
 0x761   :  { %v7861_v56 = vpop.f32.mrf.mxu2 }
 0x762   :  { %v3573_v20 = vsel %vm7896_vm6, %v7861_v56, 0.0 }
 0x763   :  { %v3609_v32 = vmul.f32 %v3573_v20, %v3573_v20  ;;  %v3584_v34 = vsel %vm8474_vm0, %v3573_v20, 0.0 }
 0x764   :  { %v3585_v40 = vadd.f32 %v3584_v34, %v3583_v46 }
 0x765   :  { %v3620_v17 = vsel %vm8474_vm0, %v3609_v32, 0.0 }
 0x766   :  { %v3621_v43 = vadd.f32 %v3620_v17, %v3619_v37 }
 0x769   :  { %v7863_v1 = vpop.f32.mrf.mxu2 }
 0x76a   :  { %v3574_v28 = vsel %vm7900_vm7, %v7863_v1, 0.0 }
 0x76b   :  { %v3610_v12 = vmul.f32 %v3574_v28, %v3574_v28  ;;  %v3586_v39 = vsel %vm8474_vm0, %v3574_v28, 0.0 }
 0x76c   :  { %v3587_v14 = vadd.f32 %v3586_v39, %v3585_v40 }
 0x76d   :  { %v3622_v61 = vsel %vm8474_vm0, %v3610_v12, 0.0 }
 0x76e   :  { %v3623_v33 = vadd.f32 %v3622_v61, %v3621_v43 }
 0x778   :  { %v7865_v9 = vpop.f32.mrf.mxu2 }
 0x779   :  { %v3575_v55 = vsel %vm7911_vm3, %v7865_v9, 0.0 }
 0x77a   :  { %v3611_v6 = vmul.f32 %v3575_v55, %v3575_v55  ;;  %v3588_v45 = vsel %vm8474_vm0, %v3575_v55, 0.0 }
 0x77b   :  { %v3589_v10 = vadd.f32 %v3588_v45, %v3587_v14 }
 0x77c   :  { %v3624_v20 = vsel %vm8474_vm0, %v3611_v6, 0.0 }
 0x77d   :  { %v3625_v57 = vadd.f32 %v3624_v20, %v3623_v33 }
 0x780   :  { %v7872_v35 = vpop.f32.mrf.mxu2 }
 0x781   :  { %v3576_v58 = vsel %vm7923_vm4, %v7872_v35, 0.0  ;;  %vm8691_vm4 = vcmask 261120  }
 0x782   :  { %v3612_v24 = vmul.f32 %v3576_v58, %v3576_v58  ;;  %v3590_v28 = vsel %vm8474_vm0, %v3576_v58, 0.0 }
 0x783   :  { %v3591_v2 = vadd.f32 %v3590_v28, %v3589_v10 }
 0x784   :  { %v3626_v48 = vsel %vm8474_vm0, %v3612_v24, 0.0 }
 0x785   :  { %v3627_v50 = vadd.f32 %v3626_v48, %v3625_v57 }
 0x78f   :  { %v7880_v53 = vpop.f32.mrf.mxu2 }
 0x790   :  { %v3577_v22 = vsel %vm7934_vm2, %v7880_v53, 0.0 }
 0x791   :  { %v3613_v60 = vmul.f32 %v3577_v22, %v3577_v22  ;;  %v3592_v26 = vsel %vm8474_vm0, %v3577_v22, 0.0 }
 0x792   :  { %v3593_v13 = vadd.f32 %v3592_v26, %v3591_v2 }
 0x793   :  { %v3628_v12 = vsel %vm8474_vm0, %v3613_v60, 0.0 }
 0x794   :  { %v3629_v58 = vadd.f32 %v3628_v12, %v3627_v50 }
 0x797   :  { %v7919_v41 = vpop.f32.mrf.mxu2 }
 0x798   :  { %v3578_v31 = vsel %vm7945_vm10, %v7919_v41, 0.0 }
 0x799   :  { %v3614_v32 = vmul.f32 %v3578_v31, %v3578_v31  ;;  %v3594_v55 = vsel %vm8474_vm0, %v3578_v31, 0.0 }
 0x79a   :  { %v3595_v17 = vadd.f32 %v3594_v55, %v3593_v13 }
 0x79b   :  { %v3630_v59 = vsel %vm8474_vm0, %v3614_v32, 0.0 }
 0x79c   :  { %v3631_v37 = vadd.f32 %v3630_v59, %v3629_v58 }
 0x7a1   :  { %v7963_v54 = vpop.f32.mrf.mxu2 }
 0x7a2   :  { %v3579_v16 = vsel %vm7954_vm11, %v7963_v54, 0.0 }
 0x7a3   :  { %v3615_v34 = vmul.f32 %v3579_v16, %v3579_v16  ;;  %v3596_v62 = vsel %vm8474_vm0, %v3579_v16, 0.0 }
 0x7a4   :  { %v3597_v40 = vadd.f32 %v3596_v62, %v3595_v17 }
 0x7a5   :  { %v3632_v39 = vsel %vm8474_vm0, %v3615_v34, 0.0 }
 0x7a6   :  { %v3633_v24 = vadd.f32 %v3632_v39, %v3631_v37  ;;  %v3646_v39 = vld [vmem:[%s8373_s8] sm:$0x1] }
 0x7a9   :  { %v3518_v6 = vpop.f32.mrf.mxu2 }
 0x7aa   :  { %v3580_v61 = vsel %vm7975_vm12, %v3518_v6, 0.0 }
 0x7ab   :  { %v3598_v22 = vsel %vm8474_vm0, %v3580_v61, 0.0  ;;  %v3616_v45 = vmul.f32 %v3580_v61, %v3580_v61 }
 0x7ac   :  { %v3599_v44 = vadd.f32 %v3598_v22, %v3597_v40  ;;  %v3659_v22 = vld [vmem:[%s8373_s8 + $0x1] sm:$0x1] }
 0x7ad   :  { %v3634_v43 = vsel %vm8474_vm0, %v3616_v45, 0.0 }
 0x7ae   :  { %v3600_v14 = vrot.slane %v3599_v44, 4  ;;  %v3635_v31 = vadd.f32 %v3634_v43, %v3633_v24 }
 0x7b0   :  { %v3601_v20 = vadd.f32 %v3600_v14, %v3599_v44  ;;  %v3636_v28 = vrot.slane %v3635_v31, 4 }
 0x7b2   :  { %v3602_v60 = vrot.slane %v3601_v20, 2  ;;  %v3637_v33 = vadd.f32 %v3636_v28, %v3635_v31 }
 0x7b4   :  { %v3603_v10 = vadd.f32 %v3602_v60, %v3601_v20  ;;  %v3638_v16 = vrot.slane %v3637_v33, 2 }
 0x7b6   :  { %v3604_v48 = vrot.slane %v3603_v10, 1  ;;  %v3639_v26 = vadd.f32 %v3638_v16, %v3637_v33 }
 0x7b8   :  { %v3605_v32 = vadd.f32 %v3604_v48, %v3603_v10  ;;  %v3640_v21 = vrot.slane %v3639_v26, 1 }
 0x7ba   :  { %v3606_v11 = vmul.f32 0.02631579, %v3605_v32  ;;  %v3641_v57 = vadd.f32 %v3640_v21, %v3639_v26 }
 0x7bc   :  { %v3642_v2 = vmul.f32 0.02631579, %v3641_v57  ;;  %v3643_v12 = vmul.f32 %v3606_v11, %v3606_v11 }
 0x7be   :  { %v3644_v55 = vsub.f32 %v3642_v2, %v3643_v12 }
 0x7c0   :  { %v3645_v34 = vmax.f32 %v3644_v55, 0.0 }
 0x7c2   :  { %v3647_v50 = vadd.f32 1e-05, %v3645_v34 }
 0x7c4   :  { %5115 = vrsqrt.f32 %v3647_v50  ;;  %vm3654_vm14 = vweird.f32 %v3647_v50 }
 0x7ca   :  { %v5116_v13 = vpop.eup %5115 }
 0x7cb   :  { %v3649_v59 = vmul.f32 %v5116_v13, %v3647_v50  ;;  %vm3655_vm5 = vweird.f32 %v5116_v13 }
 0x7cc   :  { %vm3656_vm15 = vmor %vm3654_vm14, %vm3655_vm5 }
 0x7cd   :  { %v3650_v62 = vmul.f32 %v5116_v13, %v3649_v59 }
 0x7cf   :  { %v3651_v58 = vmul.f32 0.5, %v3650_v62 }
 0x7d1   :  { %v3652_v17 = vsub.f32 1.5, %v3651_v58 }
 0x7d3   :  { %v3653_v37 = vmul.f32 %v5116_v13, %v3652_v17 }
 0x7d5   :  { %v3657_v40 = vsel %vm3656_vm15, %v5116_v13, %v3653_v37 }
 0x7d6   :  { %v3658_v61 = vmul.f32 %v3657_v40, %v3646_v39 }
 0x7d8   :  { %v3660_v45 = vmul.f32 %v3658_v61, %v3606_v11  ;;  %v3662_v24 = vperm.slane %v3658_v61, 0 }
 0x7da   :  { %v3661_v44 = vsub.f32 %v3659_v22, %v3660_v45  ;;  %v3669_v43 = vmul.f32 %v3662_v24, %v7880_v53  ;;  %v3670_v14 = vmul.f32 %v3662_v24, %v7919_v41  ;;  %v3671_v31 = vmul.f32 %v3662_v24, %v7963_v54 }
 0x7db   :  { %v3672_v20 = vmul.f32 %v3662_v24, %v3518_v6  ;;  %v3664_v60 = vmul.f32 %v3662_v24, %v7859_v23  ;;  %v3665_v33 = vmul.f32 %v3662_v24, %v7861_v56  ;;  %v3666_v10 = vmul.f32 %v3662_v24, %v7863_v1 }
 0x7dc   :  { %v3673_v28 = vperm.slane %v3661_v44, 0  ;;  %v3663_v16 = vmul.f32 %v3662_v24, %v7857_v29  ;;  %v3668_v48 = vmul.f32 %v3662_v24, %v7872_v35  ;;  %v3667_v26 = vmul.f32 %v3662_v24, %v7865_v9 }
 0x7de   :  { %v3680_v32 = vadd.f32 %v3673_v28, %v3669_v43  ;;  %v3681_v53 = vadd.f32 %v3673_v28, %v3670_v14  ;;  %v3682_v21 = vadd.f32 %v3673_v28, %v3671_v31  ;;  %v3683_v41 = vadd.f32 %v3673_v28, %v3672_v20 }
 0x7df   :  { %v3675_v11 = vadd.f32 %v3673_v28, %v3664_v60  ;;  %v3676_v54 = vadd.f32 %v3673_v28, %v3665_v33  ;;  %v3677_v6 = vadd.f32 %v3673_v28, %v3666_v10  ;;  %v3674_v57 = vadd.f32 %v3673_v28, %v3663_v16 }
 0x7e0   :  { %vm3690_vm9 = vcmp.gt.f32.partialorder %v3680_v32, 0.0  ;;  %vm3691_vm13 = vcmp.gt.f32.partialorder %v3681_v53, 0.0  ;;  %vm3692_vm5 = vcmp.gt.f32.partialorder %v3682_v21, 0.0  ;;  %vm3693_vm14 = vcmp.gt.f32.partialorder %v3683_v41, 0.0 }
 0x7e1   :  { %v3700_v23 = vmul.f32 0.2, %v3680_v32  ;;  %v3701_v56 = vmul.f32 0.2, %v3681_v53  ;;  %v3702_v1 = vmul.f32 0.2, %v3682_v21  ;;  %v3679_v29 = vadd.f32 %v3673_v28, %v3668_v48 }
 0x7e2   :  { %v3703_v2 = vmul.f32 0.2, %v3683_v41  ;;  %vm3685_vm15 = vcmp.gt.f32.partialorder %v3675_v11, 0.0  ;;  %vm3686_vm0 = vcmp.gt.f32.partialorder %v3676_v54, 0.0  ;;  %vm3687_vm3 = vcmp.gt.f32.partialorder %v3677_v6, 0.0 }
 0x7e3   :  { %v3710_v9 = vsel %vm3690_vm9, %v3680_v32, %v3700_v23  ;;  %v3711_v35 = vsel %vm3691_vm13, %v3681_v53, %v3701_v56  ;;  %v3712_v12 = vsel %vm3692_vm5, %v3682_v21, %v3702_v1  ;;  %v3695_v55 = vmul.f32 0.2, %v3675_v11  ;;  %vm8692_vm9 = vmmov %vm8691_vm4 }
 0x7e4   :  { %v3713_v34 = vsel %vm3693_vm14, %v3683_v41, %v3703_v2  ;;  %v3720_v50 = vsel %vm7934_vm2, %v3710_v9, 0.0  ;;  %v3721_v13 = vsel %vm7945_vm10, %v3711_v35, 0.0  ;;  %v3722_v59 = vsel %vm7954_vm11, %v3712_v12, 0.0  ;;  %vm8693_vm10 = vmmov %vm8691_vm4  ;;  %v5056_v41 = vld [vmem:[%s8374_s9 + $0x38] sm:$0xff] }
 0x7e5   :  { %v3723_v62 = vsel %vm7975_vm12, %v3713_v34, 0.0  ;;  %3730 = vst.msk [vmem:[#allocation4 + $0x32] sm:$0xff] %vm8691_vm4, %v3720_v50  ;;  %v3696_v58 = vmul.f32 0.2, %v3676_v54  ;;  %v3697_v17 = vmul.f32 0.2, %v3677_v6  ;;  %v3705_v39 = vsel %vm3685_vm15, %v3675_v11, %v3695_v55  ;;  %4015 = vmatpush.bf16.msrb.mxu3 %v5056_v41 }
 0x7e6   :  { %3731 = vst.msk [vmem:[#allocation4 + $0x3a] sm:$0xff] %vm8692_vm9, %v3721_v13  ;;  %v3715_v3 = vsel %vm7883_vm1, %v3705_v39, 0.0  ;;  %vm3684_vm2 = vcmp.gt.f32.partialorder %v3674_v57, 0.0  ;;  %v3694_v37 = vmul.f32 0.2, %v3674_v57  ;;  %vm3689_vm13 = vcmp.gt.f32.partialorder %v3679_v29, 0.0  ;;  %vm8694_vm1 = vmmov %vm8691_vm4 }
 0x7e7   :  { %3732 = vst.msk [vmem:[#allocation4 + $0x42] sm:$0xff] %vm8693_vm10, %v3722_v59  ;;  %v3706_v7 = vsel %vm3686_vm0, %v3676_v54, %v3696_v58  ;;  %v3707_v4 = vsel %vm3687_vm3, %v3677_v6, %v3697_v17  ;;  %v3699_v46 = vmul.f32 0.2, %v3679_v29  ;;  %v3678_v40 = vadd.f32 %v3673_v28, %v3667_v26  ;;  %vm8695_vm3 = vmmov %vm8694_vm1  ;;  %v5055_v6 = vld [vmem:[%s8374_s9 + $0x30] sm:$0xff] }
 0x7e8   :  { %3733 = vst.msk [vmem:[#allocation4 + $0x4a] sm:$0xff] %vm8691_vm4, %v3723_v62  ;;  %v3716_v61 = vsel %vm7896_vm6, %v3706_v7, 0.0  ;;  %v3717_v27 = vsel %vm7900_vm7, %v3707_v4, 0.0  ;;  %v3704_v22 = vsel %vm3684_vm2, %v3674_v57, %v3694_v37  ;;  %vm8696_vm11 = vnez %v8679_v47  ;;  %vm8697_vm12 = vmmov %vm8694_vm1  ;;  %v5054_v62 = vld [vmem:[%s8374_s9 + $0x28] sm:$0xff] }
 0x7e9   :  { %3725 = vst.msk [vmem:[#allocation4 + $0xa] sm:$0xff] %vm8694_vm1, %v3715_v3  ;;  %v3714_v45 = vsel %vm7888_vm8, %v3704_v22, 0.0  ;;  %v3709_v24 = vsel %vm3689_vm13, %v3679_v29, %v3699_v46  ;;  %vm3688_vm0 = vcmp.gt.f32.partialorder %v3678_v40, 0.0  ;;  %v3698_v44 = vmul.f32 0.2, %v3678_v40  ;;  %vm8698_vm6 = vmmov %vm8694_vm1  ;;  %4016 = vmatpush.bf16.msrb.mxu3 %v5055_v6 }
 0x7ea   :  { %3726 = vst.msk [vmem:[#allocation4 + $0x12] sm:$0xff] %vm8695_vm3, %v3716_v61  ;;  %v3719_v43 = vsel %vm8696_vm11, %v3709_v24, 0.0  ;;  %vm8699_vm7 = vnez %v8675_v38  ;;  %vm8700_vm5 = vmmov %vm8694_vm1  ;;  %vm3748_vm8 = vcmask 257024   ;;  %vm3789_vm15 = vcmask 519424  }
 0x7eb   :  { %3727 = vst.msk [vmem:[#allocation4 + $0x1a] sm:$0xff] %vm8697_vm12, %v3717_v27  ;;  %v3708_v8 = vsel %vm3688_vm0, %v3678_v40, %v3698_v44  ;;  %vm8701_vm14 = vmmov %vm8694_vm1  ;;  %vm3830_vm9 = vcmask 781824   ;;  %vm3871_vm2 = vcmask 1044224  }
 0x7ec   :  { %3724 = vst.msk [vmem:[#allocation4 + $0x2] sm:$0xff] %vm8698_vm6, %v3714_v45  ;;  %v3718_v52 = vsel %vm8699_vm7, %v3708_v8, 0.0  ;;  %vm8702_vm13 = vmmov %vm8694_vm1 }
 0x7ed   :  { %3729 = vst.msk [vmem:[#allocation4 + $0x2a] sm:$0xff] %vm8700_vm5, %v3719_v43  ;;  %4017 = vmatpush.bf16.msrb.mxu3 %v5054_v62  ;;  %v3843_v46 = vld [vmem:[#allocation4 + $0x33] ss:$2 sm:$0xff]  ;;  %v3802_v40 = vld [vmem:[#allocation4 + $0x32] ss:$2 sm:$0xff]  ;;  %vm8703_vm10 = vmmov %vm8694_vm1 }
 0x7ee   :  { %3728 = vst.msk [vmem:[#allocation4 + $0x22] sm:$0xff] %vm8701_vm14, %v3718_v52  ;;  %v3884_v63 = vld [vmem:[#allocation4 + $0x34] ss:$2 sm:$0xff]  ;;  %v3849_v27 = vpack.c.bf16 %v3843_v46, %v3843_v46  ;;  %v3808_v22 = vpack.c.bf16 %v3802_v40, %v3802_v40  ;;  %vm8704_vm4 = vmmov %vm8694_vm1  ;;  %vm137_vm1 = vcmask 523264  }
 0x7ef   :  { %v3890_v14 = vpack.c.bf16 %v3884_v63, %v3884_v63  ;;  %v3742_v31 = vld [vmem:[#allocation4 + $0x40] ss:$2 sm:$0xff]  ;;  %v3845_v24 = vld [vmem:[#allocation4 + $0x43] ss:$2 sm:$0xff]  ;;  %138 = vst.msk [vmem:[#allocation5] sm:$0xff] %vm137_vm1, %v8650_v5 }
 0x7f0   :  { %v3747_v20 = vpack.c.bf16 %v3742_v31, %v3742_v31  ;;  %v3886_v26 = vld [vmem:[#allocation4 + $0x44] ss:$2 sm:$0xff]  ;;  %v3763_v44 = vld [vmem:[#allocation4 + $0x41] ss:$2 sm:$0xff]  ;;  %v3850_v8 = vpack.c.bf16 %v3845_v24, %v3845_v24  ;;  %139 = vst.msk [vmem:[#allocation5 + $0x8] sm:$0xff] %vm137_vm1, %v8650_v5 }
 0x7f1   :  { %3895 = vst.msk [vmem:[#allocation9 + $0x1c] sm:$0xf] %vm3748_vm8, %v3890_v14  ;;  %v3891_v56 = vpack.c.bf16 %v3886_v26, %v3886_v26  ;;  %v3804_v45 = vld [vmem:[#allocation4 + $0x42] ss:$2 sm:$0xff]  ;;  %v3768_v52 = vpack.c.bf16 %v3763_v44, %v3763_v44 }
 0x7f2   :  { %v3757_v47 = vld [vmem:[#allocation4 + $0x11] ss:$2 sm:$0xff]  ;;  %v3736_v48 = vld [vmem:[#allocation4 + $0x10] ss:$2 sm:$0xff]  ;;  %3753 = vst.msk [vmem:[#allocation9 + $0x20] sm:$0xf] %vm3748_vm8, %v3747_v20  ;;  %v3809_v43 = vpack.c.bf16 %v3804_v45, %v3804_v45 }
 0x7f3   :  { %v3765_v28 = vpack.c.bf16 %v3757_v47, %v3757_v47  ;;  %v3796_v60 = vld [vmem:[#allocation4 + $0x2] ss:$2 sm:$0xff]  ;;  %v3755_v33 = vld [vmem:[#allocation4 + $0x1] ss:$2 sm:$0xff]  ;;  %v3744_v32 = vpack.c.bf16 %v3736_v48, %v3736_v48  ;;  %v3798_v9 = vld [vmem:[#allocation4 + $0x12] ss:$2 sm:$0xff] }
 0x7f4   :  { %v3805_v10 = vpack.c.bf16 %v3796_v60, %v3796_v60  ;;  %v3764_v16 = vpack.c.bf16 %v3755_v33, %v3755_v33  ;;  %v3734_v38 = vld [vmem:[#allocation4] ss:$2 sm:$0xff]  ;;  %v3837_v21 = vld [vmem:[#allocation4 + $0x3] ss:$2 sm:$0xff]  ;;  %v3740_v11 = vld [vmem:[#allocation4 + $0x30] ss:$2 sm:$0xff]  ;;  %v3806_v59 = vpack.c.bf16 %v3798_v9, %v3798_v9 }
 0x7f5   :  { %3776 = vrot.lane.b32.xlu1 %v3765_v28, %s5233_s22  ;;  %v3743_v53 = vpack.c.bf16 %v3734_v38, %v3734_v38  ;;  %v3839_v54 = vld [vmem:[#allocation4 + $0x13] ss:$2 sm:$0xff]  ;;  %3750 = vst.msk [vmem:[#allocation9 + $0x8] sm:$0xf] %vm3748_vm8, %v3744_v32  ;;  %v3746_v57 = vpack.c.bf16 %v3740_v11, %v3740_v11  ;;  %v3738_v23 = vld [vmem:[#allocation4 + $0x20] ss:$2 sm:$0xff]  ;;  %v3846_v50 = vpack.c.bf16 %v3837_v21, %v3837_v21 }
 0x7f6   :  { %3815 = vrot.lane.b32.xlu2 %v3805_v10, %s5235_s17  ;;  %3774 = vrot.lane.b32.xlu0 %v3764_v16, %s5233_s22  ;;  %v3745_v1 = vpack.c.bf16 %v3738_v23, %v3738_v23  ;;  %v3878_v29 = vld [vmem:[#allocation4 + $0x4] ss:$2 sm:$0xff]  ;;  %v3880_v2 = vld [vmem:[#allocation4 + $0x14] ss:$2 sm:$0xff]  ;;  %3896 = vst.msk [vmem:[#allocation9 + $0x24] sm:$0xf] %vm3748_vm8, %v3891_v56  ;;  %v3847_v13 = vpack.c.bf16 %v3839_v54, %v3839_v54 }
 0x7f7   :  { %3749 = vst.msk [vmem:[#allocation9] sm:$0xf] %vm3748_vm8, %v3743_v53  ;;  %v3887_v35 = vpack.c.bf16 %v3878_v29, %v3878_v29  ;;  %v3888_v12 = vpack.c.bf16 %v3880_v2, %v3880_v2  ;;  %v3882_v55 = vld [vmem:[#allocation4 + $0x24] ss:$2 sm:$0xff]  ;;  %v3761_v58 = vld [vmem:[#allocation4 + $0x31] ss:$2 sm:$0xff] }
 0x7f8   :  { %3752 = vst.msk [vmem:[#allocation9 + $0x18] sm:$0xf] %vm3748_vm8, %v3746_v57  ;;  %v3889_v34 = vpack.c.bf16 %v3882_v55, %v3882_v55  ;;  %v3800_v17 = vld [vmem:[#allocation4 + $0x22] ss:$2 sm:$0xff]  ;;  %v3759_v39 = vld [vmem:[#allocation4 + $0x21] ss:$2 sm:$0xff]  ;;  %v3767_v3 = vpack.c.bf16 %v3761_v58, %v3761_v58 }
 0x7f9   :  { %3751 = vst.msk [vmem:[#allocation9 + $0x10] sm:$0xf] %vm3748_vm8, %v3745_v1  ;;  %v3807_v37 = vpack.c.bf16 %v3800_v17, %v3800_v17  ;;  %v3766_v7 = vpack.c.bf16 %v3759_v39, %v3759_v39  ;;  %v3841_v4 = vld [vmem:[#allocation4 + $0x23] ss:$2 sm:$0xff]  ;;  %v5050_v47 = vld [vmem:[%s8374_s9 + $0x8] sm:$0xff] }
 0x7fa   :  { %3892 = vst.msk [vmem:[#allocation9 + $0x4] sm:$0xf] %vm3748_vm8, %v3887_v35  ;;  %v3848_v61 = vpack.c.bf16 %v3841_v4, %v3841_v4  ;;  %v5053_v63 = vld [vmem:[%s8374_s9 + $0x20] sm:$0xff]  ;;  %v5052_v14 = vld [vmem:[%s8374_s9 + $0x18] sm:$0xff]  ;;  %v5051_v31 = vld [vmem:[%s8374_s9 + $0x10] sm:$0xff] }
 0x7fb   :  { %3893 = vst.msk [vmem:[#allocation9 + $0xc] sm:$0xf] %vm3748_vm8, %v3888_v12  ;;  %4018 = vmatpush.bf16.msrb.mxu3 %v5053_v63  ;;  %v5049_v20 = vld [vmem:[%s8374_s9] sm:$0xff]  ;;  %v5058_v28 = vld [vmem:[%s8374_s9 + $0x48] sm:$0xff]  ;;  %v4062_v45 = vmul.f32 0.05, %v8651_v30 }
 0x7fc   :  { %3894 = vst.msk [vmem:[#allocation9 + $0x14] sm:$0xf] %vm3748_vm8, %v3889_v34  ;;  %v5057_v48 = vld [vmem:[%s8374_s9 + $0x40] sm:$0xff]  ;;  %v4881_v58 = vld [vmem:[#allocation9 + $0x18] sm:$0xf0]  ;;  %vm147_vm8 = vcmask 519168  }
 0x7fd   :  { %3856 = vrot.lane.b32.xlu1 %v3846_v50, %s5236_s15  ;;  %140 = vst.msk [vmem:[#allocation5 + $0x10] sm:$0xff] %vm137_vm1, %v8650_v5  ;;  %v4067_v44 = vfloor.f32 %v4062_v45 }
 0x7fe   :  { %3858 = vrot.lane.b32.xlu2 %v3847_v13, %s5236_s15  ;;  %3817 = vrot.lane.b32.xlu0 %v3806_v59, %s5235_s17  ;;  %141 = vst.msk [vmem:[#allocation5 + $0x18] sm:$0xff] %vm137_vm1, %v8650_v5 }
 0x7ff   :  { %4019 = vmatpush.bf16.msrb.mxu3 %v5052_v14  ;;  %142 = vst.msk [vmem:[#allocation5 + $0x20] sm:$0xff] %vm137_vm1, %v8650_v5 }
 0x800   :  { %143 = vst.msk [vmem:[#allocation5 + $0x28] sm:$0xff] %vm137_vm1, %v8650_v5 }
 0x801   :  { %v5045_v50 = vld [vmem:[#allocation9 + $0x4] sm:$0xf]  ;;  %144 = vst.msk [vmem:[#allocation6] sm:$0xff] %vm137_vm1, %v8650_v5 }
 0x802   :  { %v4873_v13 = vld [vmem:[#allocation9 + $0x8] sm:$0xf0]  ;;  %145 = vst.msk [vmem:[#allocation6 + $0x8] sm:$0xff] %vm137_vm1, %v8650_v5 }
 0x803   :  { %4020 = vmatpush.bf16.msrb.mxu3 %v5051_v31  ;;  %v4876_v59 = vor.u32 %v5045_v50, %v4873_v13  ;;  %v5047_v62 = vld [vmem:[#allocation9 + $0x14] sm:$0xf]  ;;  %146 = vst.msk [vmem:[#allocation6 + $0x10] sm:$0xff] %vm137_vm1, %v8650_v5  ;;  %v4063_v31 = vmul.f32 0.05, %v8653_v36 }
 0x804   :  { %v4884_v17 = vor.u32 %v5047_v62, %v4881_v58 }
 0x805   :  { %3780 = vrot.lane.b32.xlu1 %v3767_v3, %s5233_s22 }
 0x806   :  { %3819 = vrot.lane.b32.xlu2 %v3807_v37, %s5235_s17  ;;  %3778 = vrot.lane.b32.xlu0 %v3766_v7, %s5233_s22 }
 0x807   :  { %4021 = vmatpush.bf16.msrb.mxu3 %v5050_v47 }
 0x80b   :  { %4022 = vmatpush.bf16.msrb.mxu3 %v5049_v20 }
 0x80d   :  { %3860 = vrot.lane.b32.xlu1 %v3848_v61, %s5236_s15  ;;  %v4061_v61 = vmul.f32 0.05, %v8652_v42 }
 0x80e   :  { %3862 = vrot.lane.b32.xlu2 %v3849_v27, %s5236_s15  ;;  %3821 = vrot.lane.b32.xlu0 %v3808_v22, %s5235_s17 }
 0x80f   :  { %4044 = vmatpush.bf16.msra.mxu3 %v5058_v28  ;;  %v4066_v22 = vfloor.f32 %v4061_v61  ;;  %v5065_v28 = vld [vmem:[%s8376_s11 + $0x18] sm:$0xff] }
 0x811   :  { %v4071_v24 = vmul.f32 20.0, %v4066_v22 }
 0x813   :  { %4045 = vmatpush.bf16.msra.mxu3 %v5057_v48 }
 0x815   :  { %3823 = vrot.lane.b32.xlu1 %v3809_v43, %s5235_s17 }
 0x816   :  { %3864 = vrot.lane.b32.xlu2 %v3850_v8, %s5236_s15  ;;  %3782 = vrot.lane.b32.xlu0 %v3768_v52, %s5233_s22  ;;  %v4076_v8 = vsub.f32 %v8660_v18, %v4071_v24  ;;  %v4072_v52 = vmul.f32 20.0, %v4067_v44 }
 0x818   :  { %vm8127_vm0 = vcmp.lt.f32.partialorder %v4076_v8, 10.0  ;;  %v4077_v5 = vsub.f32 %v8658_v49, %v4072_v52 }
 0x81a   :  { %vm8136_vm3 = vcmp.lt.f32.partialorder %v4077_v5, 10.0 }
 0x850   :  { %v3816_v60 = vpop.permute.xlu2 %3815 }
 0x858   :  { %v3859_v16 = vpop.permute.xlu2 %3858 }
 0x860   :  { %v3820_v32 = vpop.permute.xlu2 %3819 }
 0x867   :  { %v3777_v33 = vpop.permute.xlu1 %3776 }
 0x868   :  { %3791 = vst.msk [vmem:[#allocation9 + $0x8] sm:$0xf] %vm3789_vm15, %v3777_v33  ;;  %v3775_v10 = vpop.permute.xlu0 %3774  ;;  %v3863_v57 = vpop.permute.xlu2 %3862 }
 0x869   :  { %3790 = vst.msk [vmem:[#allocation9] sm:$0xf] %vm3789_vm15, %v3775_v10 }
 0x86a   :  { %3831 = vst.msk [vmem:[#allocation9] sm:$0xf] %vm3830_vm9, %v3816_v60  ;;  %v4064_v60 = vmul.f32 0.05, %v8654_v15 }
 0x86f   :  { %v3857_v38 = vpop.permute.xlu1 %3856 }
 0x870   :  { %3872 = vst.msk [vmem:[#allocation9] sm:$0xf] %vm3871_vm2, %v3857_v38  ;;  %v3818_v26 = vpop.permute.xlu0 %3817  ;;  %v3865_v9 = vpop.permute.xlu2 %3864 }
 0x871   :  { %3832 = vst.msk [vmem:[#allocation9 + $0x8] sm:$0xf] %vm3830_vm9, %v3818_v26 }
 0x872   :  { %3873 = vst.msk [vmem:[#allocation9 + $0x8] sm:$0xf] %vm3871_vm2, %v3859_v16  ;;  %v4068_v16 = vfloor.f32 %v4063_v31 }
 0x874   :  { %v4073_v15 = vmul.f32 20.0, %v4068_v16 }
 0x877   :  { %v3781_v53 = vpop.permute.xlu1 %3780  ;;  %v4871_v21 = vld [vmem:[#allocation9] sm:$0xf] }
 0x878   :  { %3793 = vst.msk [vmem:[#allocation9 + $0x18] sm:$0xf] %vm3789_vm15, %v3781_v53  ;;  %v3779_v41 = vpop.permute.xlu0 %3778  ;;  %v4069_v53 = vfloor.f32 %v4064_v60 }
 0x879   :  { %3792 = vst.msk [vmem:[#allocation9 + $0x10] sm:$0xf] %vm3789_vm15, %v3779_v41  ;;  %v5046_v11 = vld [vmem:[#allocation9 + $0x4] sm:$0xf0] }
 0x87a   :  { %3833 = vst.msk [vmem:[#allocation9 + $0x10] sm:$0xf] %vm3830_vm9, %v3820_v32  ;;  %v4872_v54 = vor.u32 %v5046_v11, %v4871_v21 }
 0x87c   :  { %4023 = vmatmul.bf16.vlgmr.msrb.gmra.mxu3 %v4872_v54 }
 0x87f   :  { %v3861_v6 = vpop.permute.xlu1 %3860 }
 0x880   :  { %3874 = vst.msk [vmem:[#allocation9 + $0x10] sm:$0xf] %vm3871_vm2, %v3861_v6  ;;  %v3822_v23 = vpop.permute.xlu0 %3821 }
 0x881   :  { %3834 = vst.msk [vmem:[#allocation9 + $0x18] sm:$0xf] %vm3830_vm9, %v3822_v23  ;;  %v4065_v23 = vmul.f32 0.05, %v8655_v51 }
 0x882   :  { %3875 = vst.msk [vmem:[#allocation9 + $0x18] sm:$0xf] %vm3871_vm2, %v3863_v57  ;;  %v4074_v57 = vmul.f32 20.0, %v4069_v53 }
 0x887   :  { %v3824_v56 = vpop.permute.xlu1 %3823  ;;  %v4879_v1 = vld [vmem:[#allocation9 + $0x10] sm:$0xf] }
 0x888   :  { %v3783_v29 = vpop.permute.xlu0 %3782 }
 0x889   :  { %3794 = vst.msk [vmem:[#allocation9 + $0x20] sm:$0xf] %vm3789_vm15, %v3783_v29  ;;  %v5048_v2 = vld [vmem:[#allocation9 + $0x14] sm:$0xf0]  ;;  %v4070_v29 = vfloor.f32 %v4065_v23 }
 0x88a   :  { %3835 = vst.msk [vmem:[#allocation9 + $0x20] sm:$0xf] %vm3830_vm9, %v3824_v56  ;;  %v4880_v35 = vor.u32 %v5048_v2, %v4879_v1  ;;  %v4078_v56 = vsub.f32 %v8661_v25, %v4073_v15  ;;  %v4079_v1 = vsub.f32 %v8665_v19, %v4074_v57 }
 0x88b   :  { %3876 = vst.msk [vmem:[#allocation9 + $0x20] sm:$0xf] %vm3871_vm2, %v3865_v9 }
 0x88c   :  { %4028 = vmatmul.bf16.gmra.mxu3 %v4880_v35  ;;  %vm8155_vm11 = vcmp.lt.f32.partialorder %v4078_v56, 10.0  ;;  %vm8159_vm12 = vcmp.lt.f32.partialorder %v4079_v1, 10.0  ;;  %v4131_v1 = vld [vmem:[%s8375_s10] sm:$0x1] }
 0x892   :  { %v3901_v12 = vld [vmem:[#allocation9 + $0x20] sm:$0xff] }
 0x893   :  { %v3935_v55 = vunpack.c.l.b16 %v3901_v12  ;;  %v3936_v39 = vunpack.c.h.b16 %v3901_v12 }
 0x895   :  { %v3941_v34 = vpack.c.b16 %v3935_v55, %v3935_v55  ;;  %v3942_v3 = vpack.c.b16 %v3936_v39, %v3936_v39  ;;  %v4075_v55 = vmul.f32 20.0, %v4070_v29 }
 0x897   :  { %v4080_v13 = vsub.f32 %v8668_v0, %v4075_v55 }
 0x899   :  { %vm8172_vm6 = vcmp.lt.f32.partialorder %v4080_v13, 10.0 }
 0x89c   :  { %4033 = vmatmul.bf16.gmra.mxu3 %v3941_v34 }
 0x8ac   :  { %4925 = vmatmul.msk.bf16.vlgmr.msra.gmra.mxu3 %vm8702_vm13, %v4876_v59 }
 0x8bc   :  { %4926 = vmatmul.msk.bf16.gmra.mxu3 %vm8703_vm10, %v4884_v17 }
 0x8cc   :  { %4927 = vmatmul.msk.bf16.gmra.mxu3 %vm8704_vm4, %v3942_v3  ;;  %vm4194_vm4 = vcmask 517120  }
 0x8ff   :  { %v4024_v37 = vpop.f32.mrf.mxu3 }
 0x907   :  { %v4026_v7 = vpop.f32.mrf.mxu3 }
 0x90f   :  { %v4029_v4 = vpop.f32.mrf.mxu3 }
 0x917   :  { %v4031_v46 = vpop.f32.mrf.mxu3 }
 0x91f   :  { %v4034_v40 = vpop.f32.mrf.mxu3 }
 0x927   :  { %v4036_v27 = vpop.f32.mrf.mxu3 }
 0x92f   :  { %v4047_v43 = vpop.f32.mrf.mxu3 }
 0x930   :  { %v8125_v63 = vadd.f32 %v4047_v43, %v4024_v37 }
 0x932   :  { %v4086_v47 = vsel %vm8127_vm0, %v8125_v63, 0.0 }
 0x933   :  { %v4107_v10 = vmul.f32 %v4086_v47, %v4086_v47  ;;  %v4091_v38 = vsel %vm137_vm1, %v4086_v47, 0.0 }
 0x935   :  { %v4112_v41 = vsel %vm137_vm1, %v4107_v10, 0.0 }
 0x937   :  { %v4049_v20 = vpop.f32.mrf.mxu3 }
 0x938   :  { %v8141_v33 = vadd.f32 %v4049_v20, %v4026_v7 }
 0x93a   :  { %v4087_v48 = vsel %vm8136_vm3, %v8141_v33, 0.0 }
 0x93b   :  { %v4092_v26 = vsel %vm137_vm1, %v4087_v48, 0.0  ;;  %v4108_v32 = vmul.f32 %v4087_v48, %v4087_v48 }
 0x93c   :  { %v4093_v21 = vadd.f32 %v4092_v26, %v4091_v38 }
 0x93d   :  { %v4113_v11 = vsel %vm137_vm1, %v4108_v32, 0.0 }
 0x93e   :  { %v4114_v54 = vadd.f32 %v4113_v11, %v4112_v41 }
 0x93f   :  { %v4052_v6 = vpop.f32.mrf.mxu3 }
 0x940   :  { %v8153_v2 = vadd.f32 %v4052_v6, %v4029_v4 }
 0x942   :  { %v4088_v51 = vsel %vm8155_vm11, %v8153_v2, 0.0 }
 0x943   :  { %v4109_v50 = vmul.f32 %v4088_v51, %v4088_v51  ;;  %v4094_v59 = vsel %vm137_vm1, %v4088_v51, 0.0  ;;  %v4144_v51 = vld [vmem:[%s8375_s10 + $0x1] sm:$0x1] }
 0x944   :  { %v4095_v37 = vadd.f32 %v4094_v59, %v4093_v21 }
 0x945   :  { %v4115_v58 = vsel %vm137_vm1, %v4109_v50, 0.0 }
 0x947   :  { %v4054_v35 = vpop.f32.mrf.mxu3 }
 0x948   :  { %v4055_v34 = vadd.f32 %v4054_v35, %v4031_v46  ;;  %v4116_v46 = vadd.f32 %v4115_v58, %v4114_v54  ;;  %v5069_v58 = vld [vmem:[%s8376_s11 + $0x38] sm:$0xff] }
 0x949   :  { %4467 = vmatpush.bf16.msra.mxu2 %v5069_v58 }
 0x94a   :  { %v4089_v19 = vsel %vm8159_vm12, %v4055_v34, 0.0 }
 0x94b   :  { %v4110_v62 = vmul.f32 %v4089_v19, %v4089_v19  ;;  %v4096_v17 = vsel %vm137_vm1, %v4089_v19, 0.0 }
 0x94c   :  { %v4097_v61 = vadd.f32 %v4096_v17, %v4095_v37 }
 0x94d   :  { %v4117_v4 = vsel %vm137_vm1, %v4110_v62, 0.0 }
 0x94e   :  { %v4118_v45 = vadd.f32 %v4117_v4, %v4116_v46  ;;  %v5068_v46 = vld [vmem:[%s8376_s11 + $0x30] sm:$0xff] }
 0x94f   :  { %v4057_v39 = vpop.f32.mrf.mxu3  ;;  %4468 = vmatpush.bf16.msra.mxu2 %v5068_v46  ;;  %v5075_v46 = vld [vmem:[%s8376_s11 + $0x68] sm:$0xff] }
 0x950   :  { %v4058_v7 = vadd.f32 %v4057_v39, %v4034_v40 }
 0x952   :  { %v4090_v0 = vsel %vm8172_vm6, %v4058_v7, 0.0 }
 0x953   :  { %v4098_v27 = vsel %vm137_vm1, %v4090_v0, 0.0  ;;  %v4111_v22 = vmul.f32 %v4090_v0, %v4090_v0 }
 0x954   :  { %v4099_v24 = vadd.f32 %v4098_v27, %v4097_v61 }
 0x955   :  { %v4119_v44 = vsel %vm137_vm1, %v4111_v22, 0.0 }
 0x956   :  { %v4100_v43 = vrot.slane %v4099_v24, 4  ;;  %v4120_v8 = vadd.f32 %v4119_v44, %v4118_v45 }
 0x957   :  { %v4059_v52 = vpop.f32.mrf.mxu3 }
 0x958   :  { %v4101_v5 = vadd.f32 %v4100_v43, %v4099_v24  ;;  %v4121_v31 = vrot.slane %v4120_v8, 4 }
 0x95a   :  { %v4102_v40 = vrot.slane %v4101_v5, 2  ;;  %v4122_v47 = vadd.f32 %v4121_v31, %v4120_v8 }
 0x95c   :  { %v4103_v20 = vadd.f32 %v4102_v40, %v4101_v5  ;;  %v4123_v60 = vrot.slane %v4122_v47, 2 }
 0x95e   :  { %v4104_v10 = vrot.slane %v4103_v20, 1  ;;  %v4124_v16 = vadd.f32 %v4123_v60, %v4122_v47  ;;  %v5066_v60 = vld [vmem:[%s8376_s11 + $0x20] sm:$0xff] }
 0x960   :  { %v4105_v48 = vadd.f32 %v4104_v10, %v4103_v20  ;;  %v4125_v38 = vrot.slane %v4124_v16, 1 }
 0x962   :  { %v4106_v26 = vmul.f32 0.05, %v4105_v48  ;;  %v4126_v32 = vadd.f32 %v4125_v38, %v4124_v16 }
 0x964   :  { %v4127_v53 = vmul.f32 0.05, %v4126_v32  ;;  %v4128_v21 = vmul.f32 %v4106_v26, %v4106_v26 }
 0x966   :  { %v4129_v41 = vsub.f32 %v4127_v53, %v4128_v21 }
 0x968   :  { %v4130_v11 = vmax.f32 %v4129_v41, 0.0 }
 0x96a   :  { %v4132_v15 = vadd.f32 1e-05, %v4130_v11 }
 0x96c   :  { %5117 = vrsqrt.f32 %v4132_v15  ;;  %vm4139_vm5 = vweird.f32 %v4132_v15 }
 0x972   :  { %v5118_v54 = vpop.eup %5117 }
 0x973   :  { %v4134_v6 = vmul.f32 %v5118_v54, %v4132_v15  ;;  %vm4140_vm7 = vweird.f32 %v5118_v54 }
 0x974   :  { %vm4141_vm14 = vmor %vm4139_vm5, %vm4140_vm7 }
 0x975   :  { %v4135_v57 = vmul.f32 %v5118_v54, %v4134_v6 }
 0x977   :  { %v4136_v23 = vmul.f32 0.5, %v4135_v57 }
 0x979   :  { %v4137_v56 = vsub.f32 1.5, %v4136_v23 }
 0x97b   :  { %v4138_v29 = vmul.f32 %v5118_v54, %v4137_v56 }
 0x97d   :  { %v4142_v35 = vsel %vm4141_vm14, %v5118_v54, %v4138_v29 }
 0x97e   :  { %v4143_v55 = vmul.f32 %v4142_v35, %v4131_v1 }
 0x980   :  { %v4145_v19 = vmul.f32 %v4143_v55, %v4106_v26  ;;  %v4147_v50 = vperm.slane %v4143_v55, 0 }
 0x982   :  { %v4146_v13 = vsub.f32 %v4144_v51, %v4145_v19  ;;  %v4148_v59 = vmul.f32 %v4147_v50, %v8125_v63  ;;  %v4149_v62 = vmul.f32 %v4147_v50, %v8141_v33  ;;  %v4150_v17 = vmul.f32 %v4147_v50, %v8153_v2  ;;  %v5067_v33 = vld [vmem:[%s8376_s11 + $0x28] sm:$0xff] }
 0x983   :  { %v4151_v39 = vmul.f32 %v4147_v50, %v4055_v34  ;;  %v4152_v4 = vmul.f32 %v4147_v50, %v4058_v7  ;;  %4469 = vmatpush.bf16.msra.mxu2 %v5067_v33  ;;  %v5081_v33 = vld [vmem:[%s8376_s11 + $0x98] sm:$0xff] }
 0x984   :  { %v4153_v37 = vperm.slane %v4146_v13, 0 }
 0x986   :  { %v4154_v61 = vadd.f32 %v4153_v37, %v4148_v59  ;;  %v4155_v0 = vadd.f32 %v4153_v37, %v4149_v62  ;;  %v4156_v27 = vadd.f32 %v4153_v37, %v4150_v17  ;;  %v4157_v63 = vadd.f32 %v4153_v37, %v4151_v39  ;;  %v5064_v17 = vld [vmem:[%s8376_s11 + $0x10] sm:$0xff]  ;;  %v5077_v39 = vld [vmem:[%s8376_s11 + $0x78] sm:$0xff] }
 0x987   :  { %v4158_v22 = vadd.f32 %v4153_v37, %v4152_v4  ;;  %4470 = vmatpush.bf16.msra.mxu2 %v5066_v60  ;;  %v5063_v37 = vld [vmem:[%s8376_s11 + $0x8] sm:$0xff]  ;;  %4485 = vmatpush.bf16.msrb.mxu3 %v5077_v39  ;;  %v5076_v4 = vld [vmem:[%s8376_s11 + $0x70] sm:$0xff] }
 0x988   :  { %vm4159_vm15 = vcmp.gt.f32.partialorder %v4154_v61, 0.0  ;;  %vm4160_vm9 = vcmp.gt.f32.partialorder %v4155_v0, 0.0  ;;  %vm4161_vm2 = vcmp.gt.f32.partialorder %v4156_v27, 0.0  ;;  %vm4162_vm13 = vcmp.gt.f32.partialorder %v4157_v63, 0.0 }
 0x989   :  { %vm4163_vm10 = vcmp.gt.f32.partialorder %v4158_v22, 0.0  ;;  %v4164_v2 = vmul.f32 0.2, %v4154_v61  ;;  %v4165_v34 = vmul.f32 0.2, %v4155_v0 }
 0x98a   :  { %v4166_v7 = vmul.f32 0.2, %v4156_v27  ;;  %v4167_v45 = vmul.f32 0.2, %v4157_v63  ;;  %v4168_v24 = vmul.f32 0.2, %v4158_v22 }
 0x98b   :  { %v4169_v44 = vsel %vm4159_vm15, %v4154_v61, %v4164_v2  ;;  %v4170_v43 = vsel %vm4160_vm9, %v4155_v0, %v4165_v34  ;;  %4471 = vmatpush.bf16.msra.mxu2 %v5065_v28  ;;  %4486 = vmatpush.bf16.msrb.mxu3 %v5076_v4  ;;  %v5074_v61 = vld [vmem:[%s8376_s11 + $0x60] sm:$0xff]  ;;  %v5071_v2 = vld [vmem:[%s8376_s11 + $0x48] sm:$0xff] }
 0x98c   :  { %v4171_v8 = vsel %vm4161_vm2, %v4156_v27, %v4166_v7  ;;  %v4172_v52 = vsel %vm4162_vm13, %v4157_v63, %v4167_v45  ;;  %v4173_v5 = vsel %vm4163_vm10, %v4158_v22, %v4168_v24  ;;  %v4174_v31 = vsel %vm8127_vm0, %v4169_v44, 0.0  ;;  %v5062_v0 = vld [vmem:[%s8376_s11] sm:$0xff]  ;;  %v5073_v27 = vld [vmem:[%s8376_s11 + $0x58] sm:$0xff]  ;;  %v5072_v63 = vld [vmem:[%s8376_s11 + $0x50] sm:$0xff] }
 0x98d   :  { %v4175_v40 = vsel %vm8136_vm3, %v4170_v43, 0.0  ;;  %v4176_v47 = vsel %vm8155_vm11, %v4171_v8, 0.0  ;;  %v4177_v20 = vsel %vm8159_vm12, %v4172_v52, 0.0  ;;  %4179 = vst.msk [vmem:[#allocation5 + $0x2] sm:$0xff] %vm137_vm1, %v4174_v31  ;;  %v4178_v14 = vsel %vm8172_vm6, %v4173_v5, 0.0  ;;  %v5070_v34 = vld [vmem:[%s8376_s11 + $0x40] sm:$0xff] }
 0x98e   :  { %4180 = vst.msk [vmem:[#allocation5 + $0xa] sm:$0xff] %vm137_vm1, %v4175_v40  ;;  %vm4220_vm0 = vcmask 1041920   ;;  %vm4217_vm3 = vcmask 1043968   ;;  %v5080_v45 = vld [vmem:[%s8376_s11 + $0x90] sm:$0xff]  ;;  %v5079_v24 = vld [vmem:[%s8376_s11 + $0x88] sm:$0xff]  ;;  %v5078_v8 = vld [vmem:[%s8376_s11 + $0x80] sm:$0xff] }
 0x98f   :  { %4181 = vst.msk [vmem:[#allocation5 + $0x12] sm:$0xff] %vm137_vm1, %v4176_v47  ;;  %4472 = vmatpush.bf16.msra.mxu2 %v5064_v17  ;;  %4487 = vmatpush.bf16.msrb.mxu3 %v5075_v46  ;;  %v5107_v46 = vld [vmem:[%s8378_s13 + $0x1] ss:$0 sm:$0xff] }
 0x990   :  { %4182 = vst.msk [vmem:[#allocation5 + $0x1a] sm:$0xff] %vm137_vm1, %v4177_v20 }
 0x991   :  { %4183 = vst.msk [vmem:[#allocation5 + $0x22] sm:$0xff] %vm137_vm1, %v4178_v14 }
 0x993   :  { %4473 = vmatpush.bf16.msra.mxu2 %v5063_v37  ;;  %4488 = vmatpush.bf16.msrb.mxu3 %v5074_v61 }
 0x995   :  { %v4197_v9 = vld [vmem:[#allocation5 + $0x1] ss:$2 sm:$0xff]  ;;  %v4184_v10 = vld [vmem:[#allocation5] ss:$2 sm:$0xff] }
 0x996   :  { %v4202_v12 = vpack.c.bf16 %v4197_v9, %v4197_v9  ;;  %v4223_v48 = vld [vmem:[#allocation5 + $0x2] ss:$2 sm:$0xff]  ;;  %v4189_v56 = vpack.c.bf16 %v4184_v10, %v4184_v10  ;;  %v4235_v51 = vld [vmem:[#allocation5 + $0x3] ss:$2 sm:$0xff] }
 0x997   :  { %v4199_v16 = vld [vmem:[#allocation5 + $0x11] ss:$2 sm:$0xff]  ;;  %v4225_v3 = vld [vmem:[#allocation5 + $0x12] ss:$2 sm:$0xff]  ;;  %v4228_v35 = vpack.c.bf16 %v4223_v48, %v4223_v48  ;;  %v4240_v62 = vpack.c.bf16 %v4235_v51, %v4235_v51  ;;  %4474 = vmatpush.bf16.msra.mxu2 %v5062_v0  ;;  %4489 = vmatpush.bf16.msrb.mxu3 %v5073_v27 }
 0x998   :  { %v4261_v38 = vld [vmem:[#allocation5 + $0x14] ss:$2 sm:$0xff]  ;;  %v4201_v26 = vld [vmem:[#allocation5 + $0x21] ss:$2 sm:$0xf]  ;;  %v4203_v32 = vpack.c.bf16 %v4199_v16, %v4199_v16  ;;  %4208 = vrot.lane.b32.xlu0 %v4202_v12, %s5235_s17  ;;  %v4229_v53 = vpack.c.bf16 %v4225_v3, %v4225_v3 }
 0x999   :  { %v4265_v21 = vpack.c.bf16 %v4261_v38, %v4261_v38  ;;  %v4204_v41 = vpack.c.bf16 %v4201_v26, %v4201_v26  ;;  %v4239_v11 = vld [vmem:[#allocation5 + $0x23] ss:$2 sm:$0xf]  ;;  %v4263_v15 = vld [vmem:[#allocation5 + $0x24] ss:$2 sm:$0xf] }
 0x99a   :  { %4210 = vrot.lane.b32.xlu1 %v4203_v32, %s5235_s17  ;;  %v4266_v54 = vpack.c.bf16 %v4263_v15, %v4263_v15  ;;  %v4188_v6 = vld [vmem:[#allocation5 + $0x20] ss:$2 sm:$0xf]  ;;  %4232 = vst.msk [vmem:[#allocation10 + $0x10] sm:$0xf] %vm147_vm8, %v4229_v53  ;;  %v4242_v13 = vpack.c.bf16 %v4239_v11, %v4239_v11 }
 0x99b   :  { %4212 = vrot.lane.b32.xlu2 %v4204_v41, %s5235_s17  ;;  %v4191_v57 = vpack.c.bf16 %v4188_v6, %v4188_v6  ;;  %4268 = vst.msk [vmem:[#allocation10 + $0x14] sm:$0xf] %vm147_vm8, %v4265_v21  ;;  %v4186_v23 = vld [vmem:[#allocation5 + $0x10] ss:$2 sm:$0xff]  ;;  %v4237_v50 = vld [vmem:[#allocation5 + $0x13] ss:$2 sm:$0xff]  ;;  %4490 = vmatpush.bf16.msrb.mxu3 %v5072_v63 }
 0x99c   :  { %v4259_v1 = vld [vmem:[#allocation5 + $0x4] ss:$2 sm:$0xff]  ;;  %4269 = vst.msk [vmem:[#allocation10 + $0x20] sm:$0x3] %vm4194_vm4, %v4266_v54  ;;  %v4190_v29 = vpack.c.bf16 %v4186_v23, %v4186_v23  ;;  %v4241_v58 = vpack.c.bf16 %v4237_v50, %v4237_v50  ;;  %4507 = vmatpush.bf16.msrb.mxu2 %v5081_v33  ;;  %v4522_v23 = vmul.f32 0.1, %v8651_v30 }
 0x99d   :  { %v4227_v55 = vld [vmem:[#allocation5 + $0x22] ss:$2 sm:$0xf]  ;;  %4195 = vst.msk [vmem:[#allocation10 + $0x18] sm:$0x3] %vm4194_vm4, %v4191_v57  ;;  %v4264_v59 = vpack.c.bf16 %v4259_v1, %v4259_v1 }
 0x99e   :  { %v4230_v19 = vpack.c.bf16 %v4227_v55, %v4227_v55  ;;  %4193 = vst.msk [vmem:[#allocation10 + $0xc] sm:$0xf] %vm147_vm8, %v4190_v29  ;;  %v4525_v1 = vfloor.f32 %v4522_v23 }
 0x99f   :  { %4192 = vst.msk [vmem:[#allocation10] sm:$0xf] %vm147_vm8, %v4189_v56  ;;  %4491 = vmatpush.bf16.msrb.mxu3 %v5071_v2  ;;  %v4521_v56 = vmul.f32 0.1, %v8652_v42 }
 0x9a0   :  { %4250 = vrot.lane.b32.xlu0 %v4242_v13, %s5235_s17  ;;  %4231 = vst.msk [vmem:[#allocation10 + $0x4] sm:$0xf] %vm147_vm8, %v4228_v35  ;;  %4508 = vmatpush.bf16.msrb.mxu2 %v5080_v45  ;;  %v4528_v51 = vmul.f32 10.0, %v4525_v1 }
 0x9a1   :  { %4233 = vst.msk [vmem:[#allocation10 + $0x1c] sm:$0x3] %vm4194_vm4, %v4230_v19  ;;  %v4524_v29 = vfloor.f32 %v4521_v56  ;;  %v4523_v19 = vmul.f32 0.1, %v8653_v36  ;;  %v4569_v56 = vld [vmem:[%s8377_s12] sm:$0x1] }
 0x9a2   :  { %4246 = vrot.lane.b32.xlu1 %v4240_v62, %s5235_s17  ;;  %4267 = vst.msk [vmem:[#allocation10 + $0x8] sm:$0xf] %vm147_vm8, %v4264_v59  ;;  %v5061_v48 = vld [vmem:[#allocation10 + $0x10] sm:$0xf0]  ;;  %v4531_v13 = vsub.f32 %v8658_v49, %v4528_v51 }
 0x9a3   :  { %4248 = vrot.lane.b32.xlu2 %v4241_v58, %s5235_s17  ;;  %4492 = vmatpush.bf16.msrb.mxu3 %v5070_v34  ;;  %v4275_v26 = vld [vmem:[#allocation10 + $0x20] sm:$0x3]  ;;  %v4527_v50 = vmul.f32 10.0, %v4524_v29  ;;  %v4526_v59 = vfloor.f32 %v4523_v19 }
 0x9a4   :  { %4509 = vmatpush.bf16.msrb.mxu2 %v5079_v24  ;;  %v4330_v32 = vunpack.c.l.b16 %v4275_v26  ;;  %vm8293_vm11 = vcmp.lt.f32.partialorder %v4531_v13, 5.0 }
 0x9a5   :  { %v4530_v62 = vsub.f32 %v8660_v18, %v4527_v50  ;;  %v4529_v42 = vmul.f32 10.0, %v4526_v59 }
 0x9a6   :  { %v4336_v53 = vpack.c.b16 %v4330_v32, %v4330_v32 }
 0x9a7   :  { %vm8297_vm12 = vcmp.lt.f32.partialorder %v4530_v62, 5.0  ;;  %v4532_v49 = vsub.f32 %v8661_v25, %v4529_v42 }
 0x9a8   :  { %4510 = vmatpush.bf16.msrb.mxu2 %v5078_v8 }
 0x9a9   :  { %v4938_v3 = vld [vmem:[#allocation10 + $0x8] sm:$0xf]  ;;  %vm8307_vm6 = vcmp.lt.f32.partialorder %v4532_v49, 5.0 }
 0x9aa   :  { %v4939_v38 = vor.u32 %v5061_v48, %v4938_v3 }
 0x9f5   :  { %v4213_v22 = vpop.permute.xlu2 %4212 }
 0x9f6   :  { %4221 = vst.msk [vmem:[#allocation10 + $0x18] sm:$0x3] %vm4220_vm0, %v4213_v22 }
 0x9fd   :  { %v4249_v7 = vpop.permute.xlu2 %4248 }
 0x9fe   :  { %4256 = vst.msk [vmem:[#allocation10 + $0x10] sm:$0xf] %vm4217_vm3, %v4249_v7 }
 0xa05   :  { %v4932_v60 = vld [vmem:[#allocation10 + $0xc] sm:$0xf0] }
 0xa0a   :  { %v4209_v44 = vpop.permute.xlu0 %4208 }
 0xa0b   :  { %4218 = vst.msk [vmem:[#allocation10] sm:$0xf] %vm4217_vm3, %v4209_v44 }
 0xa0c   :  { %v4211_v43 = vpop.permute.xlu1 %4210 }
 0xa0d   :  { %4219 = vst.msk [vmem:[#allocation10 + $0xc] sm:$0xf] %vm4217_vm3, %v4211_v43 }
 0xa12   :  { %v4251_v52 = vpop.permute.xlu0 %4250  ;;  %v4930_v5 = vld [vmem:[#allocation10] sm:$0xf] }
 0xa13   :  { %4257 = vst.msk [vmem:[#allocation10 + $0x1c] sm:$0x3] %vm4220_vm0, %v4251_v52 }
 0xa14   :  { %v4247_v31 = vpop.permute.xlu1 %4246  ;;  %v5060_v40 = vld [vmem:[#allocation10 + $0x8] sm:$0xf0] }
 0xa15   :  { %4255 = vst.msk [vmem:[#allocation10 + $0x4] sm:$0xf] %vm4217_vm3, %v4247_v31  ;;  %v4931_v47 = vor.u32 %v5060_v40, %v4930_v5 }
 0xa17   :  { %4475 = vmatmul.bf16.vlgmr.msra.gmra.mxu2 %v4931_v47 }
 0xa1a   :  { %v4274_v28 = vld [vmem:[#allocation10 + $0x18] sm:$0x33] }
 0xa1b   :  { %v4328_v9 = vunpack.c.l.b16 %v4274_v28  ;;  %v4329_v10 = vunpack.c.h.b16 %v4274_v28 }
 0xa1c   :  { %v5059_v20 = vld [vmem:[#allocation10 + $0x4] sm:$0xf] }
 0xa1d   :  { %v4935_v14 = vor.u32 %v5059_v20, %v4932_v60  ;;  %v4334_v12 = vpack.c.b16 %v4328_v9, %v4328_v9  ;;  %v4335_v16 = vpack.c.b16 %v4329_v10, %v4329_v10 }
 0xa1f   :  { %4493 = vmatmul.bf16.vlgmr.msrb.gmra.mxu3 %v4935_v14 }
 0xa27   :  { %4480 = vmatmul.bf16.gmra.mxu2 %v4334_v12 }
 0xa2f   :  { %4498 = vmatmul.bf16.gmra.mxu3 %v4335_v16 }
 0xa37   :  { %5020 = vmatmul.msk.bf16.vlgmr.msrb.gmra.mxu2 %vm137_vm1, %v4939_v38 }
 0xa47   :  { %5021 = vmatmul.msk.bf16.gmra.mxu2 %vm137_vm1, %v4336_v53 }
 0xa9a   :  { %v4476_v21 = vpop.f32.mrf.mxu2 }
 0xaa2   :  { %v4478_v41 = vpop.f32.mrf.mxu2  ;;  %v4494_v11 = vpop.f32.mrf.mxu3 }
 0xaa3   :  { %v4495_v58 = vadd.f32 %v4494_v11, %v4476_v21 }
 0xaaa   :  { %v4481_v15 = vpop.f32.mrf.mxu2  ;;  %v4496_v54 = vpop.f32.mrf.mxu3 }
 0xaab   :  { %v4497_v17 = vadd.f32 %v4496_v54, %v4478_v41 }
 0xab2   :  { %v4483_v6 = vpop.f32.mrf.mxu2  ;;  %v4499_v57 = vpop.f32.mrf.mxu3 }
 0xab3   :  { %v4500_v0 = vadd.f32 %v4499_v57, %v4481_v15 }
 0xaba   :  { %v4501_v35 = vpop.f32.mrf.mxu3  ;;  %v4512_v55 = vpop.f32.mrf.mxu2 }
 0xabb   :  { %v4513_v37 = vadd.f32 %v4512_v55, %v4495_v58  ;;  %v4582_v55 = vld [vmem:[%s8377_s12 + $0x1] sm:$0x1] }
 0xabd   :  { %v4536_v18 = vsel %vm8297_vm12, %v4513_v37, 0.0 }
 0xabe   :  { %v4551_v27 = vmul.f32 %v4536_v18, %v4536_v18  ;;  %v4539_v34 = vsel %vm137_vm1, %v4536_v18, 0.0 }
 0xac0   :  { %v4554_v24 = vsel %vm137_vm1, %v4551_v27, 0.0 }
 0xac2   :  { %v4514_v39 = vpop.f32.mrf.mxu2 }
 0xac3   :  { %v4515_v4 = vadd.f32 %v4514_v39, %v4497_v17 }
 0xac5   :  { %v4537_v36 = vsel %vm8293_vm11, %v4515_v4, 0.0 }
 0xac6   :  { %v4552_v61 = vmul.f32 %v4537_v36, %v4537_v36  ;;  %v4540_v63 = vsel %vm137_vm1, %v4537_v36, 0.0 }
 0xac7   :  { %v4541_v45 = vadd.f32 %v4540_v63, %v4539_v34 }
 0xac8   :  { %v4555_v7 = vsel %vm137_vm1, %v4552_v61, 0.0 }
 0xac9   :  { %v4556_v8 = vadd.f32 %v4555_v7, %v4554_v24 }
 0xaca   :  { %v4517_v22 = vpop.f32.mrf.mxu2 }
 0xacb   :  { %v4518_v2 = vadd.f32 %v4517_v22, %v4500_v0  ;;  %v5106_v22 = vld [vmem:[%s8378_s13] ss:$0 sm:$0xff] }
 0xacd   :  { %v4538_v25 = vsel %vm8307_vm6, %v4518_v2, 0.0 }
 0xace   :  { %v4542_v44 = vsel %vm147_vm8, %v4538_v25, 0.0  ;;  %v4553_v43 = vmul.f32 %v4538_v25, %v4538_v25  ;;  %v5108_v25 = vld [vmem:[%s8378_s13 + $0x2] ss:$0 sm:$0xff] }
 0xacf   :  { %v4543_v52 = vadd.f32 %v4542_v44, %v4541_v45 }
 0xad0   :  { %v4557_v5 = vsel %vm147_vm8, %v4553_v43, 0.0 }
 0xad1   :  { %v4544_v31 = vrot.slane %v4543_v52, 4  ;;  %v4558_v40 = vadd.f32 %v4557_v5, %v4556_v8 }
 0xad2   :  { %v4519_v47 = vpop.f32.mrf.mxu2 }
 0xad3   :  { %v4545_v20 = vadd.f32 %v4544_v31, %v4543_v52  ;;  %v4559_v60 = vrot.slane %v4558_v40, 4 }
 0xad5   :  { %v4546_v14 = vrot.slane %v4545_v20, 2  ;;  %v4560_v28 = vadd.f32 %v4559_v60, %v4558_v40 }
 0xad7   :  { %v4547_v9 = vadd.f32 %v4546_v14, %v4545_v20  ;;  %v4561_v12 = vrot.slane %v4560_v28, 2  ;;  %v5109_v14 = vld [vmem:[%s8378_s13 + $0x3] ss:$0 sm:$0xff] }
 0xad9   :  { %v4548_v10 = vrot.slane %v4547_v9, 1  ;;  %v4562_v16 = vadd.f32 %v4561_v12, %v4560_v28  ;;  %v5110_v28 = vld [vmem:[%s8378_s13 + $0x4] ss:$0 sm:$0xff]  ;;  %s5022_s13 = sld [smem:[#allocation11 + $0x2]] }
 0xadb   :  { %v4549_v3 = vadd.f32 %v4548_v10, %v4547_v9  ;;  %v4563_v48 = vrot.slane %v4562_v16, 1 }
 0xadd   :  { %v4550_v38 = vmul.f32 0.1, %v4549_v3  ;;  %v4564_v26 = vadd.f32 %v4563_v48, %v4562_v16 }
 0xadf   :  { %v4565_v32 = vmul.f32 0.1, %v4564_v26  ;;  %v4566_v53 = vmul.f32 %v4550_v38, %v4550_v38 }
 0xae1   :  { %v4567_v21 = vsub.f32 %v4565_v32, %v4566_v53 }
 0xae3   :  { %v4568_v41 = vmax.f32 %v4567_v21, 0.0 }
 0xae5   :  { %v4570_v11 = vadd.f32 1e-05, %v4568_v41 }
 0xae7   :  { %5119 = vrsqrt.f32 %v4570_v11  ;;  %vm4577_vm5 = vweird.f32 %v4570_v11 }
 0xaed   :  { %v5120_v15 = vpop.eup %5119 }
 0xaee   :  { %v4572_v54 = vmul.f32 %v5120_v15, %v4570_v11  ;;  %vm4578_vm7 = vweird.f32 %v5120_v15 }
 0xaef   :  { %vm4579_vm14 = vmor %vm4577_vm5, %vm4578_vm7  ;;  %vm4738_vm7 = vcmask 1024  }
 0xaf0   :  { %v4573_v6 = vmul.f32 %v5120_v15, %v4572_v54 }
 0xaf2   :  { %v4574_v57 = vmul.f32 0.5, %v4573_v6 }
 0xaf4   :  { %v4575_v23 = vsub.f32 1.5, %v4574_v57 }
 0xaf6   :  { %v4576_v1 = vmul.f32 %v5120_v15, %v4575_v23 }
 0xaf8   :  { %v4580_v29 = vsel %vm4579_vm14, %v5120_v15, %v4576_v1 }
 0xaf9   :  { %v4581_v35 = vmul.f32 %v4580_v29, %v4569_v56 }
 0xafb   :  { %v4583_v51 = vmul.f32 %v4581_v35, %v4550_v38  ;;  %v4585_v19 = vperm.slane %v4581_v35, 0 }
 0xafd   :  { %v4584_v50 = vsub.f32 %v4582_v55, %v4583_v51  ;;  %v4586_v13 = vmul.f32 %v4585_v19, %v4513_v37  ;;  %v4587_v59 = vmul.f32 %v4585_v19, %v4515_v4  ;;  %v4588_v62 = vmul.f32 %v4585_v19, %v4518_v2 }
 0xaff   :  { %v4589_v58 = vperm.slane %v4584_v50, 0  ;;  %v4688_v50 = vstv %s5022_s13 }
 0xb01   :  { %v4590_v17 = vadd.f32 %v4589_v58, %v4586_v13  ;;  %v4591_v39 = vadd.f32 %v4589_v58, %v4587_v59  ;;  %v4592_v42 = vadd.f32 %v4589_v58, %v4588_v62 }
 0xb03   :  { %vm4593_vm15 = vcmp.gt.f32.partialorder %v4590_v17, 0.0  ;;  %vm4594_vm9 = vcmp.gt.f32.partialorder %v4591_v39, 0.0  ;;  %vm4595_vm2 = vcmp.gt.f32.partialorder %v4592_v42, 0.0  ;;  %v4596_v36 = vmul.f32 0.2, %v4590_v17 }
 0xb04   :  { %v4597_v49 = vmul.f32 0.2, %v4591_v39  ;;  %v4598_v18 = vmul.f32 0.2, %v4592_v42 }
 0xb05   :  { %v4599_v61 = vsel %vm4593_vm15, %v4590_v17, %v4596_v36 }
 0xb06   :  { %v4600_v0 = vsel %vm4594_vm9, %v4591_v39, %v4597_v49  ;;  %v4601_v27 = vsel %vm4595_vm2, %v4592_v42, %v4598_v18  ;;  %v4602_v63 = vsel %vm8297_vm12, %v4599_v61, 0.0 }
 0xb07   :  { %v4603_v37 = vsel %vm8293_vm11, %v4600_v0, 0.0  ;;  %v4604_v4 = vsel %vm8307_vm6, %v4601_v27, 0.0  ;;  %4605 = vst.msk [vmem:[#allocation6 + $0x2] sm:$0xff] %vm137_vm1, %v4602_v63  ;;  %vm8721_vm11 = vcmask 7168  }
 0xb08   :  { %4606 = vst.msk [vmem:[#allocation6 + $0xa] sm:$0xff] %vm137_vm1, %v4603_v37 }
 0xb09   :  { %4607 = vst.msk [vmem:[#allocation6 + $0x12] sm:$0xf] %vm147_vm8, %v4604_v4 }
 0xb0f   :  { %v4624_v2 = vld [vmem:[#allocation6 + $0x1] ss:$2 sm:$0xff]  ;;  %v4608_v30 = vld [vmem:[#allocation6] ss:$2 sm:$0xff] }
 0xb10   :  { %v4610_v34 = vld [vmem:[#allocation6 + $0x10] ss:$2 sm:$0x3]  ;;  %v4629_v7 = vmul.f32 %v5107_v46, %v4624_v2  ;;  %v4613_v33 = vmul.f32 %v5106_v22, %v4608_v30  ;;  %v4626_v52 = vld [vmem:[#allocation6 + $0x11] ss:$2 sm:$0x3] }
 0xb11   :  { %v4614_v45 = vmul.f32 %v5106_v22, %v4610_v34  ;;  %v4642_v43 = vld [vmem:[#allocation6 + $0x12] ss:$2 sm:$0x3]  ;;  %v4640_v5 = vld [vmem:[#allocation6 + $0x2] ss:$2 sm:$0xff]  ;;  %v4630_v40 = vmul.f32 %v5107_v46, %v4626_v52 }
 0xb12   :  { %v4631_v24 = vsel %vm137_vm1, %v4629_v7, 0.0  ;;  %v4615_v44 = vsel %vm137_vm1, %v4613_v33, 0.0  ;;  %v4646_v31 = vmul.f32 %v5108_v25, %v4642_v43  ;;  %v4645_v47 = vmul.f32 %v5108_v25, %v4640_v5  ;;  %v4672_v12 = vld [vmem:[#allocation6 + $0x4] ss:$2 sm:$0xff]  ;;  %v4656_v10 = vld [vmem:[#allocation6 + $0x3] ss:$2 sm:$0xff] }
 0xb13   :  { %v4618_v8 = vsel %vm4194_vm4, %v4614_v45, 0.0  ;;  %4632 = vadd.xlane.f32.xlu2 %v4631_v24  ;;  %4616 = vadd.xlane.f32.xlu0 %v4615_v44  ;;  %v4634_v60 = vsel %vm4194_vm4, %v4630_v40, 0.0  ;;  %v4658_v16 = vld [vmem:[#allocation6 + $0x13] ss:$2 sm:$0x3]  ;;  %v4677_v3 = vmul.f32 %v5110_v28, %v4672_v12  ;;  %v4661_v48 = vmul.f32 %v5109_v14, %v4656_v10 }
 0xb14   :  { %4619 = vadd.xlane.f32.xlu1 %v4618_v8  ;;  %v4650_v20 = vsel %vm4194_vm4, %v4646_v31, 0.0  ;;  %v4647_v9 = vsel %vm137_vm1, %v4645_v47, 0.0  ;;  %v4662_v38 = vmul.f32 %v5109_v14, %v4658_v16  ;;  %v4674_v21 = vld [vmem:[#allocation6 + $0x14] ss:$2 sm:$0x3] }
 0xb15   :  { %v4679_v26 = vsel %vm137_vm1, %v4677_v3, 0.0  ;;  %v4663_v32 = vsel %vm137_vm1, %v4661_v48, 0.0  ;;  %v4678_v41 = vmul.f32 %v5110_v28, %v4674_v21 }
 0xb16   :  { %v4666_v53 = vsel %vm4194_vm4, %v4662_v38, 0.0 }
 0xb17   :  { %v4682_v11 = vsel %vm4194_vm4, %v4678_v41, 0.0 }
 0xb1b   :  { %4651 = vadd.xlane.f32.xlu2 %v4650_v20  ;;  %4635 = vadd.xlane.f32.xlu0 %v4634_v60 }
 0xb1c   :  { %4648 = vadd.xlane.f32.xlu1 %v4647_v9 }
 0xb23   :  { %4680 = vadd.xlane.f32.xlu2 %v4679_v26  ;;  %4664 = vadd.xlane.f32.xlu0 %v4663_v32 }
 0xb24   :  { %4667 = vadd.xlane.f32.xlu1 %v4666_v53 }
 0xb2b   :  { %4683 = vadd.xlane.f32.xlu0 %v4682_v11 }
 0xb86   :  { %v4633_v15 = vpop.xlane.xlu2 %4632  ;;  %v4617_v54 = vpop.xlane.xlu0 %4616 }
 0xb87   :  { %v4620_v6 = vpop.xlane.xlu1 %4619  ;;  %v4637_v1 = vadd.f32 %v4633_v15, %v4617_v54 }
 0xb8e   :  { %v4652_v57 = vpop.xlane.xlu2 %4651  ;;  %v4636_v23 = vpop.xlane.xlu0 %4635 }
 0xb8f   :  { %v4649_v56 = vpop.xlane.xlu1 %4648  ;;  %v4638_v55 = vadd.f32 %v4636_v23, %v4620_v6 }
 0xb90   :  { %v4653_v29 = vadd.f32 %v4649_v56, %v4637_v1 }
 0xb91   :  { %v4654_v62 = vadd.f32 %v4652_v57, %v4638_v55 }
 0xb96   :  { %v4665_v35 = vpop.xlane.xlu0 %4664  ;;  %v4681_v19 = vpop.xlane.xlu2 %4680 }
 0xb97   :  { %v4669_v51 = vadd.f32 %v4665_v35, %v4653_v29  ;;  %v4668_v59 = vpop.xlane.xlu1 %4667 }
 0xb98   :  { %v4670_v17 = vadd.f32 %v4668_v59, %v4654_v62 }
 0xb99   :  { %v4685_v13 = vadd.f32 %v4681_v19, %v4669_v51 }
 0xb9b   :  { %v4689_v58 = vadd.f32 %v4688_v50, %v4685_v13 }
 0xb9d   :  { %v4691_v39 = vand.u32 2147483647, %v4689_v58  ;;  %vm4699_vm0 = vcmp.ge.f32.partialorder %v4689_v58, 0.0 }
 0xb9e   :  { %v4684_v42 = vpop.xlane.xlu0 %4683 }
 0xb9f   :  { %v4693_v36 = vsub.f32 0.0, %v4691_v39  ;;  %v4686_v49 = vadd.f32 %v4684_v42, %v4670_v17 }
 0xba1   :  { %v4695_v18 = vmul.f32 1.442695, %v4693_v36  ;;  %v4690_v61 = vadd.f32 %v4688_v50, %v4686_v49 }
 0xba3   :  { %5121 = vpow2.f32 %v4695_v18  ;;  %v4692_v0 = vand.u32 2147483647, %v4690_v61  ;;  %vm4700_vm5 = vcmp.ge.f32.partialorder %v4690_v61, 0.0 }
 0xba5   :  { %v4694_v27 = vsub.f32 0.0, %v4692_v0 }
 0xba7   :  { %v4697_v63 = vmul.f32 1.442695, %v4694_v27 }
 0xba9   :  { %v5122_v37 = vpop.eup %5121  ;;  %5123 = vpow2.f32 %v4697_v63 }
 0xbaa   :  { %v4701_v4 = vadd.f32 1.0, %v5122_v37 }
 0xbac   :  { %5125 = vrcp.f32 %v4701_v4  ;;  %v4714_v7 = vand.u32 2147483648, %v4701_v4  ;;  %v4712_v45 = vand.u32 2147483647, %v4701_v4  ;;  %vm4708_vm8 = vweird.f32 %v4701_v4 }
 0xbae   :  { %v4715_v43 = vor.u32 1.1754944e-38, %v4714_v7  ;;  %vm4713_vm10 = vcmp.eq.f32.partialorder %v4712_v45, 8.507059e+37 }
 0xbaf   :  { %v5124_v22 = vpop.eup %5123 }
 0xbb0   :  { %v4702_v46 = vadd.f32 1.0, %v5124_v22 }
 0xbb2   :  { %v5126_v2 = vpop.eup %5125  ;;  %5127 = vrcp.f32 %v4702_v46  ;;  %v4729_v31 = vand.u32 2147483648, %v4702_v46  ;;  %v4727_v20 = vand.u32 2147483647, %v4702_v46  ;;  %vm4723_vm3 = vweird.f32 %v4702_v46 }
 0xbb3   :  { %v4704_v30 = vmul.f32 %v5126_v2, %v4701_v4  ;;  %vm4709_vm1 = vweird.f32 %v5126_v2 }
 0xbb4   :  { %vm4710_vm13 = vmor %vm4708_vm8, %vm4709_vm1  ;;  %v4730_v28 = vor.u32 1.1754944e-38, %v4729_v31  ;;  %vm4728_vm6 = vcmp.eq.f32.partialorder %v4727_v20, 8.507059e+37 }
 0xbb5   :  { %v4705_v34 = vsub.f32 1.0, %v4704_v30 }
 0xbb7   :  { %v4706_v33 = vmul.f32 %v5126_v2, %v4705_v34 }
 0xbb8   :  { %v5128_v25 = vpop.eup %5127 }
 0xbb9   :  { %v4707_v24 = vadd.f32 %v5126_v2, %v4706_v33  ;;  %v4719_v44 = vmul.f32 %v5128_v25, %v4702_v46  ;;  %vm4724_vm4 = vweird.f32 %v5128_v25 }
 0xbba   :  { %vm4725_vm12 = vmor %vm4723_vm3, %vm4724_vm4 }
 0xbbb   :  { %v4711_v8 = vsel %vm4710_vm13, %v5126_v2, %v4707_v24  ;;  %v4720_v52 = vsub.f32 1.0, %v4719_v44 }
 0xbbc   :  { %v4716_v5 = vsel %vm4713_vm10, %v4715_v43, %v4711_v8 }
 0xbbd   :  { %v4733_v40 = vmul.f32 %v5122_v37, %v4716_v5  ;;  %v4721_v47 = vmul.f32 %v5128_v25, %v4720_v52 }
 0xbbf   :  { %v4735_v60 = vsel %vm4699_vm0, %v4716_v5, %v4733_v40  ;;  %v4722_v14 = vadd.f32 %v5128_v25, %v4721_v47 }
 0xbc0   :  { %4737 = vst.msk [vmem:[%s8379_s14] sm:$0xff] %vm8721_vm11, %v4735_v60 }
 0xbc1   :  { %v4726_v9 = vsel %vm4725_vm12, %v5128_v25, %v4722_v14 }
 0xbc2   :  { %v4731_v12 = vsel %vm4728_vm6, %v4730_v28, %v4726_v9 }
 0xbc3   :  { %v4734_v10 = vmul.f32 %v5124_v22, %v4731_v12 }
 0xbc5   :  { %v4736_v16 = vsel %vm4700_vm5, %v4731_v12, %v4734_v10 }
 0xbc6   :  { %4739 = vst.msk [vmem:[%s8379_s14 + $0x8] sm:$0x3] %vm4738_vm7, %v4736_v16 }
 0xbc7   :  { %4744 = vsyncpa [#allocation12], 1 }

</bundles_post_ra>
